<compile_context>
chip_gen: v6e
topology: v6e:2x2x1
jax: 0.10.0
libtpu: 0.0.40
codegen_flags: <defaults>
</compile_context>

<pallas_src>
import numpy as np

import jax
import jax.numpy as jnp
from jax.experimental import pallas as pl
from jax.experimental.pallas import tpu as pltpu

H = W = 64
P = H * W                 # 4096 spatial positions (heatmaps are 64x64, as in the reference)
C_IN = 3                  # RGB input
C_FEAT = 16               # encoder keymap channels
C_HID = 32                # pose-head hidden channels
N_JOINTS = 16             # MPII joints

# conv taps in (dy, dx) = (kh-1, kw-1) order, t = kh*3 + kw
_TAPS = tuple((dy, dx) for dy in (-1, 0, 1) for dx in (-1, 0, 1))


# --------------------------------------------------------------------------
# In-kernel helpers
# --------------------------------------------------------------------------
def _conv2_stacked(h, w2_stack, b2, masks):
    """3x3 conv as ONE K=9*C matmul.

    h        : (C, P) f32 activation map
    w2_stack : (Cout, 9*C) bf16, column block t holds the (Cout, C) taps for tap t
    masks    : (9, P) f32 precomputed boundary-validity masks
    """
    shs = []
    for t, (dy, dx) in enumerate(_TAPS):
        s = 64 * dy + dx
        if s == 0:
            sh = h
        else:
            # sh[p] = h[p + s]; the mask zeroes taps that fall outside the 64x64 image
            sh = pltpu.roll(h, shift=(-s) % P, axis=1) * masks[t:t + 1]
        shs.append(sh.astype(jnp.bfloat16))
    sh_stack = jnp.concatenate(shs, axis=0)                      # (9*C, P) bf16
    return jnp.dot(w2_stack, sh_stack, preferred_element_type=jnp.float32) + b2


def _first_index_of(extreme_eq, pos):
    """First flat index where extreme_eq is True (matches torch.argmax/argmin)."""
    return jnp.min(jnp.where(extreme_eq, pos, jnp.int32(P)), axis=1, keepdims=True)


def _onehot_gather(keymap_bf, idx, pos):
    """keys[j, c] = keymap[c, idx[j]] via a (K,P)x(C,P)^T one-hot MXU matmul."""
    onehot = (pos == idx).astype(jnp.bfloat16)                   # (K, P)
    return jax.lax.dot_general(onehot, keymap_bf, (((1,), (1,)), ((), ())),
                               preferred_element_type=jnp.float32)   # (K, C)


# --------------------------------------------------------------------------
# Pallas kernels
# --------------------------------------------------------------------------
def _keyframe_kernel(p_ref, w1_ref, b1_ref, hw2_ref, hb2_ref, ew2_ref, eb2_ref,
                     m_ref, idx_ref, keys_ref):
    """Fused keyframe: shared conv1 (pose+encoder), pose head + argmax, encoder
    conv2, and in-kernel key gathering.  Only (16,) indices and (16,16) keys
    leave VMEM."""
    # shared conv1: concatenated weights -> (C_HID + C_FEAT, P) hidden map
    h = jnp.dot(w1_ref[...], p_ref[...], preferred_element_type=jnp.float32)
    h = jnp.maximum(h + b1_ref[...], 0.0)                        # (48, P) f32
    h_pose = h[:C_HID]                                           # (32, P)
    h_enc = h[C_HID:]                                            # (16, P)

    pos = jax.lax.broadcasted_iota(jnp.int32, (N_JOINTS, P), 1)

    # pose head: 1x1 conv + per-joint first-index argmax
    heat = jnp.dot(hw2_ref[...], h_pose.astype(jnp.bfloat16),
                   preferred_element_type=jnp.float32) + hb2_ref[...]   # (16, P)
    mx = jnp.max(heat, axis=1, keepdims=True)
    idx = _first_index_of(heat == mx, pos)
    idx_ref[...] = idx

    # encoder conv2 (stacked K=144 matmul) + key gathering at the argmax positions
    keymap = _conv2_stacked(h_enc, ew2_ref[...], eb2_ref[...], m_ref[...])   # (16, P)
    keys_ref[...] = _onehot_gather(keymap.astype(jnp.bfloat16), idx, pos)


def _posehead_kernel(p_ref, w1_ref, b1_ref, w2_ref, b2_ref, idx_ref):
    """Pose head only (first=False keyframes): conv3x3+ReLU, 1x1 head, argmax."""
    h = jnp.dot(w1_ref[...], p_ref[...], preferred_element_type=jnp.float32)
    h = jnp.maximum(h + b1_ref[...], 0.0)                        # (C_HID, P)
    heat = jnp.dot(w2_ref[...], h.astype(jnp.bfloat16),
                   preferred_element_type=jnp.float32) + b2_ref[...]     # (16, P)
    pos = jax.lax.broadcasted_iota(jnp.int32, heat.shape, 1)
    mx = jnp.max(heat, axis=1, keepdims=True)
    idx_ref[...] = _first_index_of(heat == mx, pos)


def _track_kernel(p_ref, w1_ref, b1_ref, w2_ref, b2_ref, m_ref,
                  keys_ref, xy_ref, idx_ref, newkeys_ref):
    """Fused tracking: encoder (conv1+conv2), merged first/prev distance maps,
    5x5 crop mask, weighting ring, per-joint argmin, and new-key gathering."""
    # encoder
    h = jnp.dot(w1_ref[...], p_ref[...], preferred_element_type=jnp.float32)
    h = jnp.maximum(h + b1_ref[...], 0.0)                        # (C_FEAT, P)
    keymap = _conv2_stacked(h, w2_ref[...], b2_ref[...], m_ref[...])      # (16, P) f32
    km_bf = keymap.astype(jnp.bfloat16)

    # TODO(synk): EncoderEstimator.get_dist_map's exact metric is not given in
    # the source; Euclidean distance over feature channels is used here.
    km_sq = jnp.sum(keymap * keymap, axis=0, keepdims=True)      # (1, P)
    keys = keys_ref[...]                                         # (2K, C_FEAT) = [first; prev]
    key_sq = jnp.sum(keys * keys, axis=1, keepdims=True)         # (2K, 1)
    cross = jnp.dot(keys.astype(jnp.bfloat16), km_bf,
                    preferred_element_type=jnp.float32)          # (2K, P) on MXU
    d = jnp.sqrt(jnp.maximum(key_sq + km_sq - 2.0 * cross, 0.0))
    d_first = d[:N_JOINTS]
    d_prev = d[N_JOINTS:]

    xy = xy_ref[...]                                             # (K, 2) int32 prev (x, y)
    px = xy[:, 0:1]
    py = xy[:, 1:2]
    pos = jax.lax.broadcasted_iota(jnp.int32, (N_JOINTS, P), 1)
    gx = pos & 63
    gy = pos >> 6

    # valid == the reference crop(img, prev, 5) window clamped to the image
    valid = (jnp.abs(gx - px) <= 2) & (jnp.abs(gy - py) <= 2)

    # weighting ring (0.5 base, 0.6 at move=1, 0.7 at unsaturated move=2 sides),
    # expressed in global coords; equals the reference crop-local construction.
    l1 = jnp.maximum(px - 1, 0); r1 = jnp.minimum(px + 1, 63)
    u1 = jnp.maximum(py - 1, 0); d1 = jnp.minimum(py + 1, 63)
    l2 = jnp.maximum(px - 2, 0); r2 = jnp.minimum(px + 2, 63)
    u2 = jnp.maximum(py - 2, 0); d2 = jnp.minimum(py + 2, 63)
    in_x1 = (gx >= l1) & (gx <= r1)
    in_y1 = (gy >= u1) & (gy <= d1)
    ring1 = (((gx == l1) | (gx == r1)) & in_y1) | (((gy == u1) | (gy == d1)) & in_x1)
    in_x2 = (gx >= l2) & (gx <= r2)
    in_y2 = (gy >= u2) & (gy <= d2)
    ring2 = (((gx == l2) & in_y2 & (px >= 2)) | ((gx == r2) & in_y2 & (px <= 61)) |
             ((gy == u2) & in_x2 & (py >= 2)) | ((gy == d2) & in_x2 & (py <= 61)))
    wmap = jnp.where(ring2, jnp.float32(0.7),
                     jnp.where(ring1, jnp.float32(0.6), jnp.float32(0.5)))

    # factored weighting: one multiply instead of two
    score = wmap * (0.25 * d_first + 0.75 * d_prev)
    score = jnp.where(valid, score, jnp.float32(3.0e38))
    mn = jnp.min(score, axis=1, keepdims=True)
    idx = _first_index_of(score == mn, pos)    # first flat index of the in-crop min
    idx_ref[...] = idx

    # new keys at the tracked positions (for the next frame), gathered in-kernel
    newkeys_ref[...] = _onehot_gather(km_bf, idx, pos)


# --------------------------------------------------------------------------
# pallas_call wrappers (grid=(1,), full-array blocks; operands are tiny)
# --------------------------------------------------------------------------
def _fullspec(shape):
    nd = len(shape)
    return pl.BlockSpec(shape, lambda i, _nd=nd: (0,) * _nd)


def _call(kernel, out_shapes, args):
    multi = isinstance(out_shapes, list)
    shapes = out_shapes if multi else [out_shapes]
    out_shape = tuple(jax.ShapeDtypeStruct(s, d) for (s, d) in shapes)
    out_specs = [_fullspec(s) for (s, _) in shapes]
    if not multi:
        out_shape = out_shape[0]
        out_specs = out_specs[0]
    return pl.pallas_call(
        kernel,
        out_shape=out_shape,
        grid_spec=pltpu.PrefetchScalarGridSpec(
            num_scalar_prefetch=0,
            grid=(1,),
            in_specs=[_fullspec(a.shape) for a in args],
            out_specs=out_specs),
        compiler_params=pltpu.CompilerParams(dimension_semantics=("arbitrary",)),
    )(*args)


def keyframe_call(patches, w1_cat, b1_cat, hr_w2, hr_b2, enc_w2s, enc_b2, masks):
    return _call(_keyframe_kernel,
                 [((N_JOINTS, 1), jnp.int32), ((N_JOINTS, C_FEAT), jnp.float32)],
                 (patches, w1_cat, b1_cat, hr_w2, hr_b2, enc_w2s, enc_b2, masks))


def posehead_call(patches, w1, b1, w2, b2):
    return _call(_posehead_kernel, ((N_JOINTS, 1), jnp.int32), (patches, w1, b1, w2, b2))


def track_call(patches, w1, b1, w2s, b2, masks, keys_cat, prev_xy):
    return _call(_track_kernel,
                 [((N_JOINTS, 1), jnp.int32), ((N_JOINTS, C_FEAT), jnp.float32)],
                 (patches, w1, b1, w2s, b2, masks, keys_cat, prev_xy))


# --------------------------------------------------------------------------
# JAX glue: im2col, static boundary masks, jitted per-frame functions, params
# --------------------------------------------------------------------------
def im2col_3x3(x):
    """x: (C, H, W) f32 -> (C*9, H*W) bf16, tap order matches weight.reshape(Cout, Cin*9)."""
    C = x.shape[0]
    xp = jnp.pad(x, ((0, 0), (1, 1), (1, 1)))
    pats = jnp.stack([xp[:, kh:kh + H, kw:kw + W]
                      for kh in range(3) for kw in range(3)], axis=1)   # (C, 9, H, W)
    return pats.reshape(C * 9, H * W).astype(jnp.bfloat16)


def _make_boundary_masks():
    """(9, P) f32: mask[t, p] = 1 iff tap t of position p lands inside the 64x64 image."""
    ys, xs = np.divmod(np.arange(P, dtype=np.int32), W)
    m = np.empty((9, P), np.float32)
    for t, (dy, dx) in enumerate(_TAPS):
        m[t] = ((xs + dx >= 0) & (xs + dx <= W - 1) &
                (ys + dy >= 0) & (ys + dy <= H - 1)).astype(np.float32)
    return jnp.asarray(m)


@jax.jit
def _keyframe_all(img, w1_cat, b1_cat, hr_w2, hr_b2, enc_w2s, enc_b2, masks):
    patches = im2col_3x3(img[0])                                 # shared im2col
    idx, keys = keyframe_call(patches, w1_cat, b1_cat, hr_w2, hr_b2,
                              enc_w2s, enc_b2, masks)
    idx = idx[:, 0]
    xy = jnp.stack([idx % 64, idx // 64], axis=1).astype(jnp.int32)
    return idx, keys, xy


@jax.jit
def _keyframe_pose_only(img, hr_w1, hr_b1, hr_w2, hr_b2):
    patches = im2col_3x3(img[0])
    return posehead_call(patches, hr_w1, hr_b1, hr_w2, hr_b2)[:, 0]


@jax.jit
def _track_frame(img, enc_w1, enc_b1, enc_w2s, enc_b2, masks,
                 first_keys, prev_keys, prev_xy):
    patches = im2col_3x3(img[0])
    keys_cat = jnp.concatenate([first_keys, prev_keys], axis=0)  # (2K, C_FEAT)
    flat, keys = track_call(patches, enc_w1, enc_b1, enc_w2s, enc_b2,
                            masks, keys_cat, prev_xy)
    flat = flat[:, 0]
    xy = jnp.stack([flat % 64, flat // 64], axis=1).astype(jnp.int32)
    return flat, keys, xy


def _init_params(seed):
    key = jax.random.PRNGKey(seed)
    k1, k2, k3, k4 = jax.random.split(key, 4)

    def conv(k, cout, cin, ksz):
        kw, kb = jax.random.split(k)
        w = jax.random.normal(kw, (cout, cin, ksz, ksz), jnp.float32) * 0.1
        b = jax.random.normal(kb, (cout, 1), jnp.float32) * 0.01
        return w, b

    ew1, eb1 = conv(k1, C_FEAT, C_IN, 3)
    ew2, eb2 = conv(k2, C_FEAT, C_FEAT, 3)
    hw1, hb1 = conv(k3, C_HID, C_IN, 3)
    hw2 = jax.random.normal(k4, (N_JOINTS, C_HID, 1, 1), jnp.float32) * 0.1
    hb2 = jnp.zeros((N_JOINTS, 1), jnp.float32)

    enc_w1 = ew1.reshape(C_FEAT, C_IN * 9).astype(jnp.bfloat16)
    hr_w1 = hw1.reshape(C_HID, C_IN * 9).astype(jnp.bfloat16)
    # stacked conv2 weight: W[out, t*Cin + in] = ew2[out, in, kh, kw], t = kh*3 + kw
    enc_w2s = ew2.transpose(0, 2, 3, 1).reshape(C_FEAT, 9 * C_FEAT).astype(jnp.bfloat16)
    hr_w2 = hw2.reshape(N_JOINTS, C_HID).astype(jnp.bfloat16)

    return dict(
        # fused keyframe conv1 = [pose-head (32) ; encoder (16)] rows (split at 32, 8-aligned)
        w1_cat=jnp.concatenate([hr_w1, enc_w1], axis=0),
        b1_cat=jnp.concatenate([hb1, eb1], axis=0),
        enc_w1=enc_w1, enc_b1=eb1, enc_w2s=enc_w2s, enc_b2=eb2,
        hr_w1=hr_w1, hr_b1=hb1, hr_w2=hr_w2, hr_b2=hb2,
    )


# --------------------------------------------------------------------------
# Pose estimator (stateful video tracker, mirroring the PyTorch module)
# --------------------------------------------------------------------------
class VideoPoseEstimatorPallas:
    def __init__(self, N=10, first=True, seed=0):
        self.N = N
        self.first = first
        # TODO(synk): the pretrained autoencoder encoder and the Lite-HRNet
        # backbone/checkpoint cannot be reproduced here; small synthetic conv
        # stand-ins with the same interfaces are used instead.
        self.params = _init_params(seed)
        self.masks = _make_boundary_masks()
        self.count = 0
        self.prev_img = None
        self.prev_result = None
        self.prev_keymap = None      # keymaps are never read in the first=True path;
        self.first_keymap = None     # not materialized (saves a 256 KiB HBM write/frame)
        self.prev_keys = None
        self.prev_xy = None
        self.first_img = None
        self.first_hrnet_result = None
        self.first_keys = None

    def forward(self, img):
        p = self.params
        if self.count % self.N == 0:
            # keyframe branch: fused pose head + encoder + key gather (one kernel)
            self.first_img = img
            self.prev_img = img
            if self.first:
                idx, keys, xy = _keyframe_all(img, p['w1_cat'], p['b1_cat'],
                                              p['hr_w2'], p['hr_b2'],
                                              p['enc_w2s'], p['enc_b2'], self.masks)
                self.first_keys = keys
                self.prev_keys = keys
                self.prev_xy = xy
            else:
                idx = _keyframe_pose_only(img, p['hr_w1'], p['hr_b1'],
                                          p['hr_w2'], p['hr_b2'])
            idx_h = np.asarray(jax.device_get(idx))
            keypoints = [(int(i) % 64, int(i) // 64) for i in idx_h]
            self.first_hrnet_result = keypoints
            self.prev_result = keypoints
            self.count += 1
            return keypoints
        elif self.first:
            # tracking branch: fused encoder + dist-map/crop/weighting/argmin (one kernel)
            flat, keys, xy = _track_frame(img, p['enc_w1'], p['enc_b1'],
                                          p['enc_w2s'], p['enc_b2'], self.masks,
                                          self.first_keys, self.prev_keys, self.prev_xy)
            flat_h = np.asarray(jax.device_get(flat))
            result = [(int(i) % 64, int(i) // 64) for i in flat_h]
            self.prev_img = img
            self.prev_result = result
            self.prev_keys = keys
            self.prev_xy = xy
            self.count += 1
            return result
        else:
            # TODO(synk): first=False path uses EncoderEstimator.set_memory /
            # __call__ whose definitions are not provided; not implemented.
            self.count += 1
            raise NotImplementedError("first=False branch is not translatable")

    __call__ = forward


# --------------------------------------------------------------------------
if __name__ == "__main__":
    key = jax.random.PRNGKey(0)
    k_img0, k_img1 = jax.random.split(key)
    img0 = jax.random.uniform(k_img0, (1, C_IN, H, W), jnp.float32)
    img1 = jax.random.uniform(k_img1, (1, C_IN, H, W), jnp.float32)

    est = VideoPoseEstimatorPallas(N=10, first=True, seed=0)

    kps_keyframe = est.forward(img0)   # fused keyframe kernel
    kps_tracked = est.forward(img1)    # fused encoder+track kernel

    jax.block_until_ready(est.prev_keys)
    jax.block_until_ready(est.prev_xy)
    assert len(kps_keyframe) == N_JOINTS and len(kps_tracked) == N_JOINTS
    assert all(0 <= x < 64 and 0 <= y < 64 for (x, y) in kps_keyframe + kps_tracked)
    # tracked keypoints must stay inside the 5x5 search window around the keyframe result
    assert all(abs(xt - xk) <= 2 and abs(yt - yk) <= 2
               for (xt, yt), (xk, yk) in zip(kps_tracked, kps_keyframe))
    assert est.prev_keys.shape == (N_JOINTS, C_FEAT)
    print("KERNEL_OK")
</pallas_src>

<mosaic_0001>
module attributes {stable_mosaic.version = 11 : i64} {
  func.func @_keyframe_kernel(%arg0: i32, %arg1: memref<27x4096xbf16, #tpu.memory_space<vmem>>, %arg2: memref<48x27xbf16, #tpu.memory_space<vmem>>, %arg3: memref<48x1xf32, #tpu.memory_space<vmem>>, %arg4: memref<16x32xbf16, #tpu.memory_space<vmem>>, %arg5: memref<16x1xf32, #tpu.memory_space<vmem>>, %arg6: memref<16x144xbf16, #tpu.memory_space<vmem>>, %arg7: memref<16x1xf32, #tpu.memory_space<vmem>>, %arg8: memref<9x4096xf32, #tpu.memory_space<vmem>>, %arg9: memref<16x1xi32, #tpu.memory_space<vmem>>, %arg10: memref<16x16xf32, #tpu.memory_space<vmem>>) attributes {dimension_semantics = [#tpu.dimension_semantics<arbitrary>], iteration_bounds = array<i64: 1>, scalar_prefetch = 0 : i64, scratch_operands = 0 : i64, tpu.core_type = #tpu.core_type<tc>, window_params = [{pipeline_mode = #tpu.pipeline_mode<synchronous>, transform_indices = @transform_0, window_bounds = array<i64: 27, 4096>}, {pipeline_mode = #tpu.pipeline_mode<synchronous>, transform_indices = @transform_1, window_bounds = array<i64: 48, 27>}, {pipeline_mode = #tpu.pipeline_mode<synchronous>, transform_indices = @transform_2, window_bounds = array<i64: 48, 1>}, {pipeline_mode = #tpu.pipeline_mode<synchronous>, transform_indices = @transform_3, window_bounds = array<i64: 16, 32>}, {pipeline_mode = #tpu.pipeline_mode<synchronous>, transform_indices = @transform_4, window_bounds = array<i64: 16, 1>}, {pipeline_mode = #tpu.pipeline_mode<synchronous>, transform_indices = @transform_5, window_bounds = array<i64: 16, 144>}, {pipeline_mode = #tpu.pipeline_mode<synchronous>, transform_indices = @transform_6, window_bounds = array<i64: 16, 1>}, {pipeline_mode = #tpu.pipeline_mode<synchronous>, transform_indices = @transform_7, window_bounds = array<i64: 9, 4096>}, {pipeline_mode = #tpu.pipeline_mode<synchronous>, transform_indices = @transform_8, window_bounds = array<i64: 16, 1>}, {pipeline_mode = #tpu.pipeline_mode<synchronous>, transform_indices = @transform_9, window_bounds = array<i64: 16, 16>}]} {
    %c0 = arith.constant 0 : index
    %c0_0 = arith.constant 0 : index
    %0 = vector.load %arg2[%c0, %c0_0] : memref<48x27xbf16, #tpu.memory_space<vmem>>, vector<48x27xbf16>
    %c0_1 = arith.constant 0 : index
    %c0_2 = arith.constant 0 : index
    %1 = vector.load %arg1[%c0_1, %c0_2] : memref<27x4096xbf16, #tpu.memory_space<vmem>>, vector<27x4096xbf16>
    %cst = arith.constant dense<0.000000e+00> : vector<48x4096xf32>
    %2 = tpu.matmul %0, %1, %cst {dimension_numbers = #tpu.dot_dimension_numbers<[1], [0], [0], [1], [0, 0, 1, 1], [], []>} : vector<48x27xbf16>, vector<27x4096xbf16>, vector<48x4096xf32> -> vector<48x4096xf32>
    %c0_3 = arith.constant 0 : index
    %c0_4 = arith.constant 0 : index
    %3 = vector.load %arg3[%c0_3, %c0_4] : memref<48x1xf32, #tpu.memory_space<vmem>>, vector<48x1xf32>
    %4 = vector.broadcast %3 : vector<48x1xf32> to vector<48x4096xf32>
    %5 = arith.addf %2, %4 : vector<48x4096xf32>
    %cst_5 = arith.constant 0.000000e+00 : f32
    %6 = vector.broadcast %cst_5 : f32 to vector<48x4096xf32>
    %7 = arith.maximumf %5, %6 : vector<48x4096xf32>
    %8 = vector.extract_strided_slice %7 {offsets = [0, 0], sizes = [32, 4096], strides = [1, 1]} : vector<48x4096xf32> to vector<32x4096xf32>
    %9 = vector.extract_strided_slice %7 {offsets = [32, 0], sizes = [16, 4096], strides = [1, 1]} : vector<48x4096xf32> to vector<16x4096xf32>
    %10 = tpu.iota {dimensions = array<i32: 1>} : vector<16x4096xi32>
    %c0_6 = arith.constant 0 : index
    %c0_7 = arith.constant 0 : index
    %11 = vector.load %arg4[%c0_6, %c0_7] : memref<16x32xbf16, #tpu.memory_space<vmem>>, vector<16x32xbf16>
    %12 = arith.truncf %8 : vector<32x4096xf32> to vector<32x4096xbf16>
    %cst_8 = arith.constant dense<0.000000e+00> : vector<16x4096xf32>
    %13 = tpu.matmul %11, %12, %cst_8 {dimension_numbers = #tpu.dot_dimension_numbers<[1], [0], [0], [1], [0, 0, 1, 1], [], []>} : vector<16x32xbf16>, vector<32x4096xbf16>, vector<16x4096xf32> -> vector<16x4096xf32>
    %c0_9 = arith.constant 0 : index
    %c0_10 = arith.constant 0 : index
    %14 = vector.load %arg5[%c0_9, %c0_10] : memref<16x1xf32, #tpu.memory_space<vmem>>, vector<16x1xf32>
    %15 = vector.broadcast %14 : vector<16x1xf32> to vector<16x4096xf32>
    %16 = arith.addf %13, %15 : vector<16x4096xf32>
    %cst_11 = arith.constant dense<0xFF800000> : vector<16xf32>
    %17 = vector.multi_reduction <maximumf>, %16, %cst_11 [1] : vector<16x4096xf32> to vector<16xf32>
    %18 = vector.shape_cast %17 : vector<16xf32> to vector<16x1xf32>
    %19 = vector.broadcast %18 : vector<16x1xf32> to vector<16x4096xf32>
    %20 = arith.cmpf oeq, %16, %19 : vector<16x4096xf32>
    %c4096_i32 = arith.constant 4096 : i32
    %21 = vector.broadcast %c4096_i32 : i32 to vector<16x4096xi32>
    %22 = arith.select %20, %10, %21 : vector<16x4096xi1>, vector<16x4096xi32>
    %cst_12 = arith.constant dense<2147483647> : vector<16xi32>
    %23 = vector.multi_reduction <minsi>, %22, %cst_12 [1] : vector<16x4096xi32> to vector<16xi32>
    %24 = vector.shape_cast %23 : vector<16xi32> to vector<16x1xi32>
    %c0_13 = arith.constant 0 : index
    %c0_14 = arith.constant 0 : index
    %25 = vector.load %arg9[%c0_13, %c0_14] : memref<16x1xi32, #tpu.memory_space<vmem>>, vector<16x1xi32>
    tpu.vector_store %arg9[%c0_13, %c0_14], %24 {strides = array<i32>} : memref<16x1xi32, #tpu.memory_space<vmem>>, vector<16x1xi32>,
    %c0_15 = arith.constant 0 : index
    %c0_16 = arith.constant 0 : index
    %26 = vector.load %arg6[%c0_15, %c0_16] : memref<16x144xbf16, #tpu.memory_space<vmem>>, vector<16x144xbf16>
    %c0_17 = arith.constant 0 : index
    %c0_18 = arith.constant 0 : index
    %27 = vector.load %arg7[%c0_17, %c0_18] : memref<16x1xf32, #tpu.memory_space<vmem>>, vector<16x1xf32>
    %c0_19 = arith.constant 0 : index
    %c0_20 = arith.constant 0 : index
    %28 = vector.load %arg8[%c0_19, %c0_20] : memref<9x4096xf32, #tpu.memory_space<vmem>>, vector<9x4096xf32>
    %c65_i32 = arith.constant 65 : i32
    %29 = tpu.dynamic_rotate %9 by %c65_i32 dim 1 : vector<16x4096xf32>, i32 -> vector<16x4096xf32>
    %30 = vector.extract_strided_slice %28 {offsets = [0, 0], sizes = [1, 4096], strides = [1, 1]} : vector<9x4096xf32> to vector<1x4096xf32>
    %31 = vector.broadcast %30 : vector<1x4096xf32> to vector<16x4096xf32>
    %32 = arith.mulf %29, %31 : vector<16x4096xf32>
    %33 = arith.truncf %32 : vector<16x4096xf32> to vector<16x4096xbf16>
    %c64_i32 = arith.constant 64 : i32
    %34 = tpu.dynamic_rotate %9 by %c64_i32 dim 1 : vector<16x4096xf32>, i32 -> vector<16x4096xf32>
    %35 = vector.extract_strided_slice %28 {offsets = [1, 0], sizes = [1, 4096], strides = [1, 1]} : vector<9x4096xf32> to vector<1x4096xf32>
    %36 = vector.broadcast %35 : vector<1x4096xf32> to vector<16x4096xf32>
    %37 = arith.mulf %34, %36 : vector<16x4096xf32>
    %38 = arith.truncf %37 : vector<16x4096xf32> to vector<16x4096xbf16>
    %c63_i32 = arith.constant 63 : i32
    %39 = tpu.dynamic_rotate %9 by %c63_i32 dim 1 : vector<16x4096xf32>, i32 -> vector<16x4096xf32>
    %40 = vector.extract_strided_slice %28 {offsets = [2, 0], sizes = [1, 4096], strides = [1, 1]} : vector<9x4096xf32> to vector<1x4096xf32>
    %41 = vector.broadcast %40 : vector<1x4096xf32> to vector<16x4096xf32>
    %42 = arith.mulf %39, %41 : vector<16x4096xf32>
    %43 = arith.truncf %42 : vector<16x4096xf32> to vector<16x4096xbf16>
    %c1_i32 = arith.constant 1 : i32
    %44 = tpu.dynamic_rotate %9 by %c1_i32 dim 1 : vector<16x4096xf32>, i32 -> vector<16x4096xf32>
    %45 = vector.extract_strided_slice %28 {offsets = [3, 0], sizes = [1, 4096], strides = [1, 1]} : vector<9x4096xf32> to vector<1x4096xf32>
    %46 = vector.broadcast %45 : vector<1x4096xf32> to vector<16x4096xf32>
    %47 = arith.mulf %44, %46 : vector<16x4096xf32>
    %48 = arith.truncf %47 : vector<16x4096xf32> to vector<16x4096xbf16>
    %49 = arith.truncf %9 : vector<16x4096xf32> to vector<16x4096xbf16>
    %c4095_i32 = arith.constant 4095 : i32
    %50 = tpu.dynamic_rotate %9 by %c4095_i32 dim 1 : vector<16x4096xf32>, i32 -> vector<16x4096xf32>
    %51 = vector.extract_strided_slice %28 {offsets = [5, 0], sizes = [1, 4096], strides = [1, 1]} : vector<9x4096xf32> to vector<1x4096xf32>
    %52 = vector.broadcast %51 : vector<1x4096xf32> to vector<16x4096xf32>
    %53 = arith.mulf %50, %52 : vector<16x4096xf32>
    %54 = arith.truncf %53 : vector<16x4096xf32> to vector<16x4096xbf16>
    %c4033_i32 = arith.constant 4033 : i32
    %55 = tpu.dynamic_rotate %9 by %c4033_i32 dim 1 : vector<16x4096xf32>, i32 -> vector<16x4096xf32>
    %56 = vector.extract_strided_slice %28 {offsets = [6, 0], sizes = [1, 4096], strides = [1, 1]} : vector<9x4096xf32> to vector<1x4096xf32>
    %57 = vector.broadcast %56 : vector<1x4096xf32> to vector<16x4096xf32>
    %58 = arith.mulf %55, %57 : vector<16x4096xf32>
    %59 = arith.truncf %58 : vector<16x4096xf32> to vector<16x4096xbf16>
    %c4032_i32 = arith.constant 4032 : i32
    %60 = tpu.dynamic_rotate %9 by %c4032_i32 dim 1 : vector<16x4096xf32>, i32 -> vector<16x4096xf32>
    %61 = vector.extract_strided_slice %28 {offsets = [7, 0], sizes = [1, 4096], strides = [1, 1]} : vector<9x4096xf32> to vector<1x4096xf32>
    %62 = vector.broadcast %61 : vector<1x4096xf32> to vector<16x4096xf32>
    %63 = arith.mulf %60, %62 : vector<16x4096xf32>
    %64 = arith.truncf %63 : vector<16x4096xf32> to vector<16x4096xbf16>
    %c4031_i32 = arith.constant 4031 : i32
    %65 = tpu.dynamic_rotate %9 by %c4031_i32 dim 1 : vector<16x4096xf32>, i32 -> vector<16x4096xf32>
    %66 = vector.extract_strided_slice %28 {offsets = [8, 0], sizes = [1, 4096], strides = [1, 1]} : vector<9x4096xf32> to vector<1x4096xf32>
    %67 = vector.broadcast %66 : vector<1x4096xf32> to vector<16x4096xf32>
    %68 = arith.mulf %65, %67 : vector<16x4096xf32>
    %69 = arith.truncf %68 : vector<16x4096xf32> to vector<16x4096xbf16>
    %70 = tpu.concatenate %33, %38, %43, %48, %49, %54, %59, %64, %69 in 0 : vector<16x4096xbf16>, vector<16x4096xbf16>, vector<16x4096xbf16>, vector<16x4096xbf16>, vector<16x4096xbf16>, vector<16x4096xbf16>, vector<16x4096xbf16>, vector<16x4096xbf16>, vector<16x4096xbf16> -> vector<144x4096xbf16>
    %cst_21 = arith.constant dense<0.000000e+00> : vector<16x4096xf32>
    %71 = tpu.matmul %26, %70, %cst_21 {dimension_numbers = #tpu.dot_dimension_numbers<[1], [0], [0], [1], [0, 0, 1, 1], [], []>} : vector<16x144xbf16>, vector<144x4096xbf16>, vector<16x4096xf32> -> vector<16x4096xf32>
    %72 = vector.broadcast %27 : vector<16x1xf32> to vector<16x4096xf32>
    %73 = arith.addf %71, %72 : vector<16x4096xf32>
    %74 = arith.truncf %73 : vector<16x4096xf32> to vector<16x4096xbf16>
    %75 = vector.broadcast %24 : vector<16x1xi32> to vector<16x4096xi32>
    %76 = arith.cmpi eq, %10, %75 : vector<16x4096xi32>
    %77 = arith.extui %76 : vector<16x4096xi1> to vector<16x4096xi32>
    %78 = arith.sitofp %77 : vector<16x4096xi32> to vector<16x4096xf32>
    %79 = arith.truncf %78 : vector<16x4096xf32> to vector<16x4096xbf16>
    %cst_22 = arith.constant dense<0.000000e+00> : vector<16x16xf32>
    %80 = tpu.matmul %79, %74, %cst_22 {dimension_numbers = #tpu.dot_dimension_numbers<[1], [1], [0], [0], [0, 0, 1, 0], [], []>} : vector<16x4096xbf16>, vector<16x4096xbf16>, vector<16x16xf32> -> vector<16x16xf32>
    %c0_23 = arith.constant 0 : index
    %c0_24 = arith.constant 0 : index
    %81 = vector.load %arg10[%c0_23, %c0_24] : memref<16x16xf32, #tpu.memory_space<vmem>>, vector<16x16xf32>
    tpu.vector_store %arg10[%c0_23, %c0_24], %80 {strides = array<i32>} : memref<16x16xf32, #tpu.memory_space<vmem>>, vector<16x16xf32>,
    return
  }
  func.func @transform_0(%arg0: i32) -> (i32, i32) {
    %c0_i32 = arith.constant 0 : i32
    %c0_i32_0 = arith.constant 0 : i32
    %c0_i32_1 = arith.constant 0 : i32
    return %c0_i32, %c0_i32_0 : i32, i32
  }
  func.func @transform_1(%arg0: i32) -> (i32, i32) {
    %c0_i32 = arith.constant 0 : i32
    %c0_i32_0 = arith.constant 0 : i32
    %c0_i32_1 = arith.constant 0 : i32
    return %c0_i32, %c0_i32_0 : i32, i32
  }
  func.func @transform_2(%arg0: i32) -> (i32, i32) {
    %c0_i32 = arith.constant 0 : i32
    %c0_i32_0 = arith.constant 0 : i32
    %c0_i32_1 = arith.constant 0 : i32
    return %c0_i32, %c0_i32_0 : i32, i32
  }
  func.func @transform_3(%arg0: i32) -> (i32, i32) {
    %c0_i32 = arith.constant 0 : i32
    %c0_i32_0 = arith.constant 0 : i32
    %c0_i32_1 = arith.constant 0 : i32
    return %c0_i32, %c0_i32_0 : i32, i32
  }
  func.func @transform_4(%arg0: i32) -> (i32, i32) {
    %c0_i32 = arith.constant 0 : i32
    %c0_i32_0 = arith.constant 0 : i32
    %c0_i32_1 = arith.constant 0 : i32
    return %c0_i32, %c0_i32_0 : i32, i32
  }
  func.func @transform_5(%arg0: i32) -> (i32, i32) {
    %c0_i32 = arith.constant 0 : i32
    %c0_i32_0 = arith.constant 0 : i32
    %c0_i32_1 = arith.constant 0 : i32
    return %c0_i32, %c0_i32_0 : i32, i32
  }
  func.func @transform_6(%arg0: i32) -> (i32, i32) {
    %c0_i32 = arith.constant 0 : i32
    %c0_i32_0 = arith.constant 0 : i32
    %c0_i32_1 = arith.constant 0 : i32
    return %c0_i32, %c0_i32_0 : i32, i32
  }
  func.func @transform_7(%arg0: i32) -> (i32, i32) {
    %c0_i32 = arith.constant 0 : i32
    %c0_i32_0 = arith.constant 0 : i32
    %c0_i32_1 = arith.constant 0 : i32
    return %c0_i32, %c0_i32_0 : i32, i32
  }
  func.func @transform_8(%arg0: i32) -> (i32, i32) {
    %c0_i32 = arith.constant 0 : i32
    %c0_i32_0 = arith.constant 0 : i32
    %c0_i32_1 = arith.constant 0 : i32
    return %c0_i32, %c0_i32_0 : i32, i32
  }
  func.func @transform_9(%arg0: i32) -> (i32, i32) {
    %c0_i32 = arith.constant 0 : i32
    %c0_i32_0 = arith.constant 0 : i32
    %c0_i32_1 = arith.constant 0 : i32
    return %c0_i32, %c0_i32_0 : i32, i32
  }
}

</mosaic_0001>

<bundles_post_ra>
// kernel: _keyframe_all.1
= control target key start
LH: loop header
LB: loop body
LE: loop exit
PB: predicated region body
PF: predicated region fallthrough
CT: control target
= control target key end

     0   :  { %vm452_vm0 = vcmask 1044480   ;;  %vm453_vm1 = vcmask 1045504   ;;  %v7785_v3 = vmov 65535   ;;  %v15121_v15 = vmov 0   ;;  %s15111_s0 = inlined_call_operand.vmem [shape: bf16[27,4096], index: 0, kind: input, shape index: {}]   ;;  %s15112_s1 = inlined_call_operand.vmem [shape: bf16[48,27], index: 1, kind: input, shape index: {}]   ;;  %s15113_s2 = inlined_call_operand.vmem [shape: f32[48,1], index: 2, kind: input, shape index: {}]   ;;  %s15114_s3 = inlined_call_operand.vmem [shape: bf16[16,32], index: 3, kind: input, shape index: {}]   ;;  %s15115_s4 = inlined_call_operand.vmem [shape: f32[16,1], index: 4, kind: input, shape index: {}]   ;;  %s15116_s5 = inlined_call_operand.vmem [shape: bf16[16,144], index: 5, kind: input, shape index: {}]   ;;  %s15117_s6 = inlined_call_operand.vmem [shape: f32[16,1], index: 6, kind: input, shape index: {}]   ;;  %s15118_s7 = inlined_call_operand.vmem [shape: f32[9,4096], index: 7, kind: input, shape index: {}]   ;;  %s15119_s8 = inlined_call_operand.vmem [shape: s32[16,1], index: 8, kind: output, shape index: {0}]   ;;  %s15120_s9 = inlined_call_operand.hbm [shape: f32[16,16], index: 9, kind: output, shape index: {1}]  }
   0x1   :  { %v71_v0 = vld [vmem:[%s15111_s0 + $0x100] sm:$0xff]  ;;  %v454_v4 = vsel %vm452_vm0, 4294967295, %v7785_v3  ;;  %v72_v5 = vld [vmem:[%s15111_s0 + $0x108] sm:$0xff]  ;;  %584 = vmatprep.mubr.bf16.mxu0 %v15121_v15  ;;  %647 = vmatprep.mubr.bf16.mxu1 %v15121_v15  ;;  %v73_v23 = vld [vmem:[%s15111_s0 + $0x110] sm:$0xff]  ;;  %vm442_vm2 = vcmask 220160  }
   0x2   :  { %v87_v1 = vld [vmem:[%s15111_s0 + $0x180] sm:$0x33]  ;;  %v88_v6 = vld [vmem:[%s15111_s0 + $0x188] sm:$0x33]  ;;  %v7861_v9 = vsel %vm453_vm1, %v454_v4, 0  ;;  %7733 = vset.pattern.permute.xlu1 %v15121_v15  ;;  %7732 = vset.pattern.permute.xlu0 %v15121_v15  ;;  %v74_v25 = vld [vmem:[%s15111_s0 + $0x118] sm:$0xff] }
   0x3   :  { %v7447_v2 = vcombine.high %v71_v0, %v87_v1  ;;  %v7446_v7 = vcombine.low %v71_v0, %v87_v1  ;;  %v39_v8 = vld [vmem:[%s15111_s0] sm:$0xff]  ;;  %v7449_v10 = vcombine.high %v72_v5, %v88_v6  ;;  %v7448_v11 = vcombine.low %v72_v5, %v88_v6  ;;  %v40_v13 = vld [vmem:[%s15111_s0 + $0x8] sm:$0xff]  ;;  %v89_v24 = vld [vmem:[%s15111_s0 + $0x190] sm:$0x33] }
   0x4   :  { %v55_v12 = vld [vmem:[%s15111_s0 + $0x80] sm:$0xff]  ;;  %v56_v14 = vld [vmem:[%s15111_s0 + $0x88] sm:$0xff]  ;;  %v7450_v27 = vcombine.low %v73_v23, %v89_v24  ;;  %v7451_v28 = vcombine.high %v73_v23, %v89_v24  ;;  %v90_v29 = vld [vmem:[%s15111_s0 + $0x198] sm:$0x33] }
   0x5   :  { %v460_v16 = vand.u32 %v7447_v2, %v7861_v9  ;;  %v457_v17 = vand.u32 %v7446_v7, %v7861_v9  ;;  %v7415_v18 = vcombine.high %v39_v8, %v55_v12  ;;  %v466_v19 = vand.u32 %v7449_v10, %v7861_v9  ;;  %v7895_v30 = vld [vmem:[%s15112_s1] sm:$0xff]   ;;  %v41_v33 = vld [vmem:[%s15111_s0 + $0x10] sm:$0xff]  ;;  %v42_v36 = vld [vmem:[%s15111_s0 + $0x18] sm:$0xff] }
   0x6   :  { %v463_v20 = vand.u32 %v7448_v11, %v7861_v9  ;;  %v7417_v21 = vcombine.high %v40_v13, %v56_v14  ;;  %v7414_v22 = vcombine.low %v39_v8, %v55_v12  ;;  %v7416_v26 = vcombine.low %v40_v13, %v56_v14  ;;  %v57_v34 = vld [vmem:[%s15111_s0 + $0x90] sm:$0xff]  ;;  %v7910_v37 = vld [vmem:[%s15111_s0 + $0x120] sm:$0xff]  ;;  %v58_v40 = vld [vmem:[%s15111_s0 + $0x98] sm:$0xff] }
   0x7   :  { %564 = vmatprep.subr.bf16.mxu0 %v460_v16  ;;  %627 = vmatprep.subr.bf16.mxu1 %v466_v19  ;;  %v7452_v31 = vcombine.low %v74_v25, %v90_v29  ;;  %v7453_v32 = vcombine.high %v74_v25, %v90_v29  ;;  %v472_v35 = vand.u32 %v7451_v28, %v7861_v9  ;;  %v7915_v38 = vld [vmem:[%s15111_s0 + $0x1a0] sm:$0x33]  ;;  %v76_v41 = vld [vmem:[%s15111_s0 + $0x128] sm:$0xff]  ;;  %v105_v51 = vld [vmem:[%s15113_s2 + $0x10] sm:$0xff] }
   0x8   :  { %565 = vmatpush1.bf16.msra.mxu0 %v457_v17  ;;  %628 = vmatpush1.bf16.msra.mxu1 %v463_v20  ;;  %v92_v42 = vld [vmem:[%s15111_s0 + $0x1a8] sm:$0x33]  ;;  %v469_v43 = vand.u32 %v7450_v27, %v7861_v9  ;;  %v7419_v45 = vcombine.high %v41_v33, %v57_v34  ;;  %v7455_v46 = vcombine.high %v7910_v37, %v7915_v38  ;;  %v103_v49 = vld [vmem:[%s15113_s2] sm:$0xff]  ;;  %v106_v57 = vld [vmem:[%s15113_s2 + $0x18] sm:$0xff] }
   0x9   :  { %566 = vmatprep.subr.bf16.mxu0 %v7415_v18  ;;  %629 = vmatprep.subr.bf16.mxu1 %v7417_v21  ;;  %v478_v39 = vand.u32 %v7453_v32, %v7861_v9  ;;  %v475_v44 = vand.u32 %v7452_v31, %v7861_v9  ;;  %v7421_v47 = vcombine.high %v42_v36, %v58_v40  ;;  %v7947_v54 = vld [vmem:[%s15112_s1 + $0x8] sm:$0xff]   ;;  %v7965_v58 = vld [vmem:[%s15112_s1 + $0x10] sm:$0xff]   ;;  %v107_v60 = vld [vmem:[%s15113_s2 + $0x20] sm:$0xff] }
   0xa   :  { %v7457_v48 = vcombine.high %v76_v41, %v92_v42  ;;  %v7418_v50 = vcombine.low %v41_v33, %v57_v34  ;;  %v7420_v52 = vcombine.low %v42_v36, %v58_v40  ;;  %v484_v53 = vand.u32 %v7455_v46, %v7861_v9  ;;  %111 = vperm.xlu1 %7733, %v103_v49   ;;  %v104_v56 = vld [vmem:[%s15113_s2 + $0x8] sm:$0xff] }
   0xb   :  { %121 = vperm.xlu0 %7732, %v105_v51   ;;  %v108_v59 = vld [vmem:[%s15113_s2 + $0x28] sm:$0xff] }
   0xc   :  { %567 = vmatpush1.bf16.msra.mxu0 %v7414_v22  ;;  %630 = vmatpush1.bf16.msra.mxu1 %v7416_v26  ;;  %v490_v55 = vand.u32 %v7457_v48, %v7861_v9 }
   0xd   :  { %690 = vmatprep.subr.bf16.mxu0 %v472_v35  ;;  %753 = vmatprep.subr.bf16.mxu1 %v478_v39 }
   0xe   :  { %116 = vperm.xlu1 %7733, %v104_v56  }
   0xf   :  { %7478 = vmatmul.mubr.msk.bf16.vlgmr.msra.gmra.mxu0 %vm442_vm2, %v7895_v30  ;;  %7481 = vmatmul.mubr.msk.bf16.vlgmr.msra.gmra.mxu1 %vm442_vm2, %v7895_v30 }
  0x10   :  { %594 = vmatprep.mubr.bf16.mxu0 %v15121_v15  ;;  %657 = vmatprep.mubr.bf16.mxu1 %v15121_v15 }
  0x11   :  { %691 = vmatpush1.bf16.msra.mxu0 %v469_v43  ;;  %754 = vmatpush1.bf16.msra.mxu1 %v475_v44 }
  0x12   :  { %692 = vmatprep.subr.bf16.mxu0 %v7419_v45  ;;  %755 = vmatprep.subr.bf16.mxu1 %v7421_v47 }
  0x13   :  { %126 = vperm.xlu0 %7732, %v106_v57  }
  0x15   :  { %693 = vmatpush1.bf16.msra.mxu0 %v7418_v50  ;;  %756 = vmatpush1.bf16.msra.mxu1 %v7420_v52 }
  0x16   :  { %816 = vmatprep.subr.bf16.mxu0 %v484_v53  ;;  %879 = vmatprep.subr.bf16.mxu1 %v490_v55 }
  0x17   :  { %7479 = vmatmul.mubr.msk.bf16.gmra.mxu0 %vm442_vm2, %v7947_v54  ;;  %7482 = vmatmul.mubr.msk.bf16.gmra.mxu1 %vm442_vm2, %v7947_v54 }
  0x18   :  { %604 = vmatprep.mubr.bf16.mxu0 %v15121_v15  ;;  %667 = vmatprep.mubr.bf16.mxu1 %v15121_v15 }
  0x19   :  { %15 = vsyncpa [#allocation3], 0  ;;  %136 = vperm.xlu1 %7733, %v108_v59   ;;  %131 = vperm.xlu0 %7732, %v107_v60   ;;  %v7454_v61 = vcombine.low %v7910_v37, %v7915_v38  ;;  %v7456_v62 = vcombine.low %v76_v41, %v92_v42  ;;  %v43_v63 = vld [vmem:[%s15111_s0 + $0x20] sm:$0xff]  ;;  %v44_v1 = vld [vmem:[%s15111_s0 + $0x28] sm:$0xff]  ;;  %vm1868_vm3 = vcmask 261120   ;;  %s7788_s23 = smov 65  }
  0x1a   :  { %v59_v0 = vld [vmem:[%s15111_s0 + $0xa0] sm:$0xff]  ;;  %v77_v2 = vld [vmem:[%s15111_s0 + $0x130] sm:$0xff]  ;;  %v60_v4 = vld [vmem:[%s15111_s0 + $0xa8] sm:$0xff]  ;;  %s7789_s24 = smov 127   ;;  %s7790_s1 = smov 1   ;;  %vm15709_vm7 = vcmask 130048  }
  0x1b   :  { %v93_v3 = vld [vmem:[%s15111_s0 + $0x1b0] sm:$0x33]  ;;  %v78_v5 = vld [vmem:[%s15111_s0 + $0x138] sm:$0xff]  ;;  %v481_v7 = vand.u32 %v7454_v61, %v7861_v9  ;;  %v487_v8 = vand.u32 %v7456_v62, %v7861_v9  ;;  %v7423_v10 = vcombine.high %v43_v63, %v59_v0  ;;  %v7425_v12 = vcombine.high %v44_v1, %v60_v4  ;;  %v79_v24 = vld [vmem:[%s15111_s0 + $0x140] sm:$0xff]  ;;  %s7791_s25 = smov 63  }
  0x1c   :  { %v94_v6 = vld [vmem:[%s15111_s0 + $0x1b8] sm:$0x33]  ;;  %v7459_v11 = vcombine.high %v77_v2, %v93_v3  ;;  %v7422_v14 = vcombine.low %v43_v63, %v59_v0  ;;  %v7424_v16 = vcombine.low %v44_v1, %v60_v4  ;;  %v7458_v19 = vcombine.low %v77_v2, %v93_v3  ;;  %v45_v21 = vld [vmem:[%s15111_s0 + $0x30] sm:$0xff]  ;;  %v95_v25 = vld [vmem:[%s15111_s0 + $0x1c0] sm:$0x33] }
  0x1d   :  { %v7461_v13 = vcombine.high %v78_v5, %v94_v6  ;;  %v7460_v20 = vcombine.low %v78_v5, %v94_v6  ;;  %v61_v22 = vld [vmem:[%s15111_s0 + $0xb0] sm:$0xff]  ;;  %v46_v23 = vld [vmem:[%s15111_s0 + $0x38] sm:$0xff]  ;;  %v80_v27 = vld [vmem:[%s15111_s0 + $0x148] sm:$0xff]  ;;  %v7463_v33 = vcombine.high %v79_v24, %v95_v25  ;;  %v7462_v40 = vcombine.low %v79_v24, %v95_v25 }
  0x1e   :  { %v496_v17 = vand.u32 %v7459_v11, %v7861_v9  ;;  %v62_v26 = vld [vmem:[%s15111_s0 + $0xb8] sm:$0xff]  ;;  %v96_v28 = vld [vmem:[%s15111_s0 + $0x1c8] sm:$0x33]  ;;  %v493_v29 = vand.u32 %v7458_v19, %v7861_v9  ;;  %v7427_v32 = vcombine.high %v45_v21, %v61_v22  ;;  %v7426_v36 = vcombine.low %v45_v21, %v61_v22  ;;  %v47_v42 = vld [vmem:[%s15111_s0 + $0x40] sm:$0xff] }
  0x1f   :  { %7480 = vmatmul.mubr.msk.bf16.gmra.mxu0 %vm442_vm2, %v7965_v58  ;;  %7483 = vmatmul.mubr.msk.bf16.gmra.mxu1 %vm442_vm2, %v7965_v58  ;;  %v502_v18 = vand.u32 %v7461_v13, %v7861_v9  ;;  %v499_v31 = vand.u32 %v7460_v20, %v7861_v9  ;;  %v7429_v34 = vcombine.high %v46_v23, %v62_v26  ;;  %v63_v43 = vld [vmem:[%s15111_s0 + $0xc0] sm:$0xff]  ;;  %v48_v44 = vld [vmem:[%s15111_s0 + $0x48] sm:$0xff]  ;;  %v81_v45 = vld [vmem:[%s15111_s0 + $0x150] sm:$0xff] }
  0x20   :  { %710 = vmatprep.mubr.bf16.mxu0 %v15121_v15  ;;  %773 = vmatprep.mubr.bf16.mxu1 %v15121_v15  ;;  %v7465_v35 = vcombine.high %v80_v27, %v96_v28  ;;  %v7428_v37 = vcombine.low %v46_v23, %v62_v26  ;;  %v508_v38 = vand.u32 %v7463_v33, %v7861_v9  ;;  %v97_v46 = vld [vmem:[%s15111_s0 + $0x1d0] sm:$0x33]  ;;  %v64_v47 = vld [vmem:[%s15111_s0 + $0xc8] sm:$0xff]  ;;  %v82_v48 = vld [vmem:[%s15111_s0 + $0x158] sm:$0xff] }
  0x21   :  { %v7464_v41 = vcombine.low %v80_v27, %v96_v28  ;;  %v98_v49 = vld [vmem:[%s15111_s0 + $0x1d8] sm:$0x33]  ;;  %v505_v50 = vand.u32 %v7462_v40, %v7861_v9  ;;  %v7431_v52 = vcombine.high %v47_v42, %v63_v43  ;;  %v7467_v53 = vcombine.high %v81_v45, %v97_v46  ;;  %v49_v0 = vld [vmem:[%s15111_s0 + $0x50] sm:$0xff]  ;;  %v83_v3 = vld [vmem:[%s15111_s0 + $0x160] sm:$0xff] }
  0x22   :  { %v514_v39 = vand.u32 %v7465_v35, %v7861_v9  ;;  %v7433_v55 = vcombine.high %v48_v44, %v64_v47  ;;  %v7469_v56 = vcombine.high %v82_v48, %v98_v49  ;;  %v7430_v57 = vcombine.low %v47_v42, %v63_v43  ;;  %v65_v1 = vld [vmem:[%s15111_s0 + $0xd0] sm:$0xff]  ;;  %v50_v2 = vld [vmem:[%s15111_s0 + $0x58] sm:$0xff]  ;;  %v99_v4 = vld [vmem:[%s15111_s0 + $0x1e0] sm:$0x33] }
  0x23   :  { %v511_v51 = vand.u32 %v7464_v41, %v7861_v9  ;;  %v7432_v59 = vcombine.low %v48_v44, %v64_v47  ;;  %v520_v60 = vand.u32 %v7467_v53, %v7861_v9  ;;  %v7466_v62 = vcombine.low %v81_v45, %v97_v46  ;;  %v66_v5 = vld [vmem:[%s15111_s0 + $0xd8] sm:$0xff]  ;;  %v84_v6 = vld [vmem:[%s15111_s0 + $0x168] sm:$0xff]  ;;  %v51_v22 = vld [vmem:[%s15111_s0 + $0x60] sm:$0xff] }
  0x24   :  { %v526_v61 = vand.u32 %v7469_v56, %v7861_v9  ;;  %v7468_v63 = vcombine.low %v82_v48, %v98_v49  ;;  %v7435_v11 = vcombine.high %v49_v0, %v65_v1  ;;  %v7437_v13 = vcombine.high %v50_v2, %v66_v5  ;;  %v67_v23 = vld [vmem:[%s15111_s0 + $0xe0] sm:$0xff]  ;;  %v52_v24 = vld [vmem:[%s15111_s0 + $0x68] sm:$0xff]  ;;  %v85_v25 = vld [vmem:[%s15111_s0 + $0x170] sm:$0xff] }
  0x25   :  { %v7470_v20 = vcombine.low %v83_v3, %v99_v4  ;;  %v101_v26 = vld [vmem:[%s15111_s0 + $0x1f0] sm:$0x33]  ;;  %v68_v27 = vld [vmem:[%s15111_s0 + $0xe8] sm:$0xff]  ;;  %v86_v28 = vld [vmem:[%s15111_s0 + $0x178] sm:$0xff]  ;;  %v7439_v33 = vcombine.high %v51_v22, %v67_v23 }
  0x26   :  { %v7441_v35 = vcombine.high %v52_v24, %v68_v27  ;;  %v7474_v41 = vcombine.low %v85_v25, %v101_v26  ;;  %v53_v43 = vld [vmem:[%s15111_s0 + $0x70] sm:$0xff]  ;;  %v54_v45 = vld [vmem:[%s15111_s0 + $0x78] sm:$0xff] }
  0x27   :  { %7484 = vmatmul.mubr.msk.bf16.vlgmr.msra.gmra.mxu0 %vm442_vm2, %v7895_v30  ;;  %7487 = vmatmul.mubr.msk.bf16.vlgmr.msra.gmra.mxu1 %vm442_vm2, %v7895_v30  ;;  %v69_v44 = vld [vmem:[%s15111_s0 + $0xf0] sm:$0xff]  ;;  %v70_v46 = vld [vmem:[%s15111_s0 + $0xf8] sm:$0xff] }
  0x28   :  { %720 = vmatprep.mubr.bf16.mxu0 %v15121_v15  ;;  %783 = vmatprep.mubr.bf16.mxu1 %v15121_v15  ;;  %v541_v47 = vand.u32 %v7474_v41, %v7861_v9  ;;  %v7443_v49 = vcombine.high %v53_v43, %v69_v44 }
  0x29   :  { %817 = vmatpush1.bf16.msra.mxu0 %v481_v7  ;;  %880 = vmatpush1.bf16.msra.mxu1 %v487_v8  ;;  %v100_v7 = vld [vmem:[%s15111_s0 + $0x1e8] sm:$0x33]  ;;  %v517_v8 = vand.u32 %v7466_v62, %v7861_v9 }
  0x2a   :  { %818 = vmatprep.subr.bf16.mxu0 %v7423_v10  ;;  %881 = vmatprep.subr.bf16.mxu1 %v7425_v12  ;;  %v523_v10 = vand.u32 %v7468_v63, %v7861_v9  ;;  %v7471_v12 = vcombine.high %v83_v3, %v99_v4  ;;  %v7472_v21 = vcombine.low %v84_v6, %v100_v7 }
  0x2d   :  { %819 = vmatpush1.bf16.msra.mxu0 %v7422_v14  ;;  %882 = vmatpush1.bf16.msra.mxu1 %v7424_v16  ;;  %v7473_v14 = vcombine.high %v84_v6, %v100_v7  ;;  %v7434_v16 = vcombine.low %v49_v0, %v65_v1 }
  0x2e   :  { %942 = vmatprep.subr.bf16.mxu0 %v496_v17  ;;  %1005 = vmatprep.subr.bf16.mxu1 %v502_v18  ;;  %v7436_v17 = vcombine.low %v50_v2, %v66_v5  ;;  %v532_v18 = vand.u32 %v7471_v12, %v7861_v9 }
  0x2f   :  { %7485 = vmatmul.mubr.msk.bf16.gmra.mxu0 %vm442_vm2, %v7947_v54  ;;  %7488 = vmatmul.mubr.msk.bf16.gmra.mxu1 %vm442_vm2, %v7947_v54  ;;  %v538_v19 = vand.u32 %v7473_v14, %v7861_v9 }
  0x30   :  { %730 = vmatprep.mubr.bf16.mxu0 %v15121_v15  ;;  %793 = vmatprep.mubr.bf16.mxu1 %v15121_v15 }
  0x37   :  { %7486 = vmatmul.mubr.msk.bf16.gmra.mxu0 %vm442_vm2, %v7965_v58  ;;  %7489 = vmatmul.mubr.msk.bf16.gmra.mxu1 %vm442_vm2, %v7965_v58 }
  0x38   :  { %836 = vmatprep.mubr.bf16.mxu0 %v15121_v15  ;;  %899 = vmatprep.mubr.bf16.mxu1 %v15121_v15 }
  0x3f   :  { %7490 = vmatmul.mubr.msk.bf16.vlgmr.msra.gmra.mxu0 %vm442_vm2, %v7895_v30  ;;  %7493 = vmatmul.mubr.msk.bf16.vlgmr.msra.gmra.mxu1 %vm442_vm2, %v7895_v30 }
  0x40   :  { %846 = vmatprep.mubr.bf16.mxu0 %v15121_v15  ;;  %909 = vmatprep.mubr.bf16.mxu1 %v15121_v15 }
  0x41   :  { %943 = vmatpush1.bf16.msra.mxu0 %v493_v29  ;;  %1006 = vmatpush1.bf16.msra.mxu1 %v499_v31  ;;  %v102_v29 = vld [vmem:[%s15111_s0 + $0x1f8] sm:$0x33]  ;;  %v529_v31 = vand.u32 %v7470_v20, %v7861_v9  ;;  %s7787_s0 = smov 64  }
  0x42   :  { %944 = vmatprep.subr.bf16.mxu0 %v7427_v32  ;;  %1007 = vmatprep.subr.bf16.mxu1 %v7429_v34  ;;  %v535_v32 = vand.u32 %v7472_v21, %v7861_v9  ;;  %v7475_v34 = vcombine.high %v85_v25, %v101_v26  ;;  %v7476_v42 = vcombine.low %v86_v28, %v102_v29 }
  0x44   :  { %v547_v48 = vand.u32 %v7476_v42, %v7861_v9 }
  0x45   :  { %945 = vmatpush1.bf16.msra.mxu0 %v7426_v36  ;;  %1008 = vmatpush1.bf16.msra.mxu1 %v7428_v37  ;;  %v7477_v36 = vcombine.high %v86_v28, %v102_v29  ;;  %v7438_v37 = vcombine.low %v51_v22, %v67_v23 }
  0x46   :  { %1068 = vmatprep.subr.bf16.mxu0 %v508_v38  ;;  %1131 = vmatprep.subr.bf16.mxu1 %v514_v39  ;;  %v7440_v38 = vcombine.low %v52_v24, %v68_v27  ;;  %v544_v39 = vand.u32 %v7475_v34, %v7861_v9 }
  0x47   :  { %7491 = vmatmul.mubr.msk.bf16.gmra.mxu0 %vm442_vm2, %v7947_v54  ;;  %7494 = vmatmul.mubr.msk.bf16.gmra.mxu1 %vm442_vm2, %v7947_v54  ;;  %v550_v40 = vand.u32 %v7477_v36, %v7861_v9 }
  0x48   :  { %856 = vmatprep.mubr.bf16.mxu0 %v15121_v15  ;;  %919 = vmatprep.mubr.bf16.mxu1 %v15121_v15 }
  0x4f   :  { %7492 = vmatmul.mubr.msk.bf16.gmra.mxu0 %vm442_vm2, %v7965_v58  ;;  %7495 = vmatmul.mubr.msk.bf16.gmra.mxu1 %vm442_vm2, %v7965_v58 }
  0x50   :  { %962 = vmatprep.mubr.bf16.mxu0 %v15121_v15  ;;  %1025 = vmatprep.mubr.bf16.mxu1 %v15121_v15 }
  0x57   :  { %7496 = vmatmul.mubr.msk.bf16.vlgmr.msra.gmra.mxu0 %vm442_vm2, %v7895_v30  ;;  %7499 = vmatmul.mubr.msk.bf16.vlgmr.msra.gmra.mxu1 %vm442_vm2, %v7895_v30 }
  0x58   :  { %972 = vmatprep.mubr.bf16.mxu0 %v15121_v15  ;;  %1035 = vmatprep.mubr.bf16.mxu1 %v15121_v15 }
  0x59   :  { %1069 = vmatpush1.bf16.msra.mxu0 %v505_v50  ;;  %1132 = vmatpush1.bf16.msra.mxu1 %v511_v51  ;;  %v7445_v50 = vcombine.high %v54_v45, %v70_v46  ;;  %v7442_v51 = vcombine.low %v53_v43, %v69_v44 }
  0x5a   :  { %1070 = vmatprep.subr.bf16.mxu0 %v7431_v52  ;;  %1133 = vmatprep.subr.bf16.mxu1 %v7433_v55  ;;  %v7444_v52 = vcombine.low %v54_v45, %v70_v46 }
  0x5d   :  { %1071 = vmatpush1.bf16.msra.mxu0 %v7430_v57  ;;  %1134 = vmatpush1.bf16.msra.mxu1 %v7432_v59 }
  0x5e   :  { %1194 = vmatprep.subr.bf16.mxu0 %v520_v60  ;;  %1257 = vmatprep.subr.bf16.mxu1 %v526_v61 }
  0x5f   :  { %7497 = vmatmul.mubr.msk.bf16.gmra.mxu0 %vm442_vm2, %v7947_v54  ;;  %7500 = vmatmul.mubr.msk.bf16.gmra.mxu1 %vm442_vm2, %v7947_v54 }
  0x60   :  { %982 = vmatprep.mubr.bf16.mxu0 %v15121_v15  ;;  %1045 = vmatprep.mubr.bf16.mxu1 %v15121_v15 }
  0x67   :  { %7498 = vmatmul.mubr.msk.bf16.gmra.mxu0 %vm442_vm2, %v7965_v58  ;;  %7501 = vmatmul.mubr.msk.bf16.gmra.mxu1 %vm442_vm2, %v7965_v58 }
  0x68   :  { %1088 = vmatprep.mubr.bf16.mxu0 %v15121_v15  ;;  %1151 = vmatprep.mubr.bf16.mxu1 %v15121_v15 }
  0x6f   :  { %7502 = vmatmul.mubr.msk.bf16.vlgmr.msra.gmra.mxu0 %vm442_vm2, %v7895_v30  ;;  %7505 = vmatmul.mubr.msk.bf16.vlgmr.msra.gmra.mxu1 %vm442_vm2, %v7895_v30 }
  0x70   :  { %1098 = vmatprep.mubr.bf16.mxu0 %v15121_v15  ;;  %1161 = vmatprep.mubr.bf16.mxu1 %v15121_v15 }
  0x71   :  { %1195 = vmatpush1.bf16.msra.mxu0 %v517_v8  ;;  %1258 = vmatpush1.bf16.msra.mxu1 %v523_v10 }
  0x72   :  { %1196 = vmatprep.subr.bf16.mxu0 %v7435_v11  ;;  %1259 = vmatprep.subr.bf16.mxu1 %v7437_v13 }
  0x75   :  { %1197 = vmatpush1.bf16.msra.mxu0 %v7434_v16  ;;  %1260 = vmatpush1.bf16.msra.mxu1 %v7436_v17 }
  0x76   :  { %1320 = vmatprep.subr.bf16.mxu0 %v532_v18  ;;  %1383 = vmatprep.subr.bf16.mxu1 %v538_v19 }
  0x77   :  { %7503 = vmatmul.mubr.msk.bf16.gmra.mxu0 %vm442_vm2, %v7947_v54  ;;  %7506 = vmatmul.mubr.msk.bf16.gmra.mxu1 %vm442_vm2, %v7947_v54 }
  0x78   :  { %1108 = vmatprep.mubr.bf16.mxu0 %v15121_v15  ;;  %1171 = vmatprep.mubr.bf16.mxu1 %v15121_v15 }
  0x7f   :  { %7504 = vmatmul.mubr.msk.bf16.gmra.mxu0 %vm442_vm2, %v7965_v58  ;;  %7507 = vmatmul.mubr.msk.bf16.gmra.mxu1 %vm442_vm2, %v7965_v58 }
  0x80   :  { %1214 = vmatprep.mubr.bf16.mxu0 %v15121_v15  ;;  %1277 = vmatprep.mubr.bf16.mxu1 %v15121_v15 }
  0x85   :  { %v8261_v56 = vpop.permute.xlu1 %111 }
  0x86   :  { %v8263_v59 = vpop.permute.xlu0 %121 }
  0x87   :  { %7508 = vmatmul.mubr.msk.bf16.vlgmr.msra.gmra.mxu0 %vm442_vm2, %v7895_v30  ;;  %7511 = vmatmul.mubr.msk.bf16.vlgmr.msra.gmra.mxu1 %vm442_vm2, %v7895_v30 }
  0x88   :  { %1224 = vmatprep.mubr.bf16.mxu0 %v15121_v15  ;;  %1287 = vmatprep.mubr.bf16.mxu1 %v15121_v15 }
  0x89   :  { %1321 = vmatpush1.bf16.msra.mxu0 %v529_v31  ;;  %1384 = vmatpush1.bf16.msra.mxu1 %v535_v32  ;;  %v8268_v0 = vpop.permute.xlu1 %116 }
  0x8a   :  { %1322 = vmatprep.subr.bf16.mxu0 %v7439_v33  ;;  %1385 = vmatprep.subr.bf16.mxu1 %v7441_v35 }
  0x8d   :  { %1323 = vmatpush1.bf16.msra.mxu0 %v7438_v37  ;;  %1386 = vmatpush1.bf16.msra.mxu1 %v7440_v38 }
  0x8e   :  { %1446 = vmatprep.subr.bf16.mxu0 %v544_v39  ;;  %1509 = vmatprep.subr.bf16.mxu1 %v550_v40  ;;  %v8270_v2 = vpop.permute.xlu0 %126 }
  0x8f   :  { %7509 = vmatmul.mubr.msk.bf16.gmra.mxu0 %vm442_vm2, %v7947_v54  ;;  %7512 = vmatmul.mubr.msk.bf16.gmra.mxu1 %vm442_vm2, %v7947_v54 }
  0x90   :  { %1234 = vmatprep.mubr.bf16.mxu0 %v15121_v15  ;;  %1297 = vmatprep.mubr.bf16.mxu1 %v15121_v15 }
  0x94   :  { %v8290_v33 = vpop.permute.xlu0 %131 }
  0x95   :  { %15728 = vst [vmem:[#allocation5_spill] sm:$0xff] %v8290_v33 }
  0x97   :  { %7510 = vmatmul.mubr.msk.bf16.gmra.mxu0 %vm442_vm2, %v7965_v58  ;;  %7513 = vmatmul.mubr.msk.bf16.gmra.mxu1 %vm442_vm2, %v7965_v58 }
  0x98   :  { %1340 = vmatprep.mubr.bf16.mxu0 %v15121_v15  ;;  %1403 = vmatprep.mubr.bf16.mxu1 %v15121_v15 }
  0x9f   :  { %7514 = vmatmul.mubr.msk.bf16.vlgmr.msra.gmra.mxu0 %vm442_vm2, %v7895_v30  ;;  %7517 = vmatmul.mubr.msk.bf16.vlgmr.msra.gmra.mxu1 %vm442_vm2, %v7895_v30 }
  0xa0   :  { %1350 = vmatprep.mubr.bf16.mxu0 %v15121_v15  ;;  %1413 = vmatprep.mubr.bf16.mxu1 %v15121_v15 }
  0xa1   :  { %1447 = vmatpush1.bf16.msra.mxu0 %v541_v47  ;;  %1510 = vmatpush1.bf16.msra.mxu1 %v547_v48  ;;  %v8298_v48 = vpop.permute.xlu1 %136 }
  0xa2   :  { %1448 = vmatprep.subr.bf16.mxu0 %v7443_v49  ;;  %1511 = vmatprep.subr.bf16.mxu1 %v7445_v50  ;;  %15729 = vst [vmem:[#allocation6_spill] sm:$0xff] %v8298_v48 }
  0xa5   :  { %1449 = vmatpush1.bf16.msra.mxu0 %v7442_v51  ;;  %1512 = vmatpush1.bf16.msra.mxu1 %v7444_v52 }
  0xa7   :  { %7515 = vmatmul.mubr.msk.bf16.gmra.mxu0 %vm442_vm2, %v7947_v54  ;;  %7518 = vmatmul.mubr.msk.bf16.gmra.mxu1 %vm442_vm2, %v7947_v54 }
  0xa8   :  { %1360 = vmatprep.mubr.bf16.mxu0 %v15121_v15  ;;  %1423 = vmatprep.mubr.bf16.mxu1 %v15121_v15 }
  0xaf   :  { %7516 = vmatmul.mubr.msk.bf16.gmra.mxu0 %vm442_vm2, %v7965_v58  ;;  %7519 = vmatmul.mubr.msk.bf16.gmra.mxu1 %vm442_vm2, %v7965_v58 }
  0xb0   :  { %1466 = vmatprep.mubr.bf16.mxu0 %v15121_v15  ;;  %1529 = vmatprep.mubr.bf16.mxu1 %v15121_v15 }
  0xb7   :  { %7520 = vmatmul.mubr.msk.bf16.vlgmr.msra.gmra.mxu0 %vm442_vm2, %v7895_v30  ;;  %7523 = vmatmul.mubr.msk.bf16.vlgmr.msra.gmra.mxu1 %vm442_vm2, %v7895_v30 }
  0xb8   :  { %1476 = vmatprep.mubr.bf16.mxu0 %v15121_v15  ;;  %1539 = vmatprep.mubr.bf16.mxu1 %v15121_v15 }
  0xbf   :  { %7521 = vmatmul.mubr.msk.bf16.gmra.mxu0 %vm442_vm2, %v7947_v54  ;;  %7524 = vmatmul.mubr.msk.bf16.gmra.mxu1 %vm442_vm2, %v7947_v54 }
  0xc0   :  { %1486 = vmatprep.mubr.bf16.mxu0 %v15121_v15  ;;  %1549 = vmatprep.mubr.bf16.mxu1 %v15121_v15 }
  0xc7   :  { %7522 = vmatmul.mubr.msk.bf16.gmra.mxu0 %vm442_vm2, %v7965_v58  ;;  %7525 = vmatmul.mubr.msk.bf16.gmra.mxu1 %vm442_vm2, %v7965_v58 }
  0xc8   :  { %1904 = vmatprep.mubr.bf16.mxu0 %v15121_v15  ;;  %1947 = vmatprep.mubr.bf16.mxu1 %v15121_v15 }
  0xcf   :  { %v586_v9 = vpop.f32.mrf.mxu0  ;;  %v649_v30 = vpop.f32.mrf.mxu1 }
  0xd0   :  { %v8266_v63 = vadd.f32 %v586_v9, %v8261_v56  ;;  %v8276_v8 = vadd.f32 %v649_v30, %v8261_v56 }
  0xd1   :  { %v588_v53 = vpop.f32.mrf.mxu0  ;;  %v651_v55 = vpop.f32.mrf.mxu1 }
  0xd2   :  { %v1560_v7 = vmax.f32 %v8266_v63, 0.0  ;;  %v589_v13 = vadd.f32 %v588_v53, %v8261_v56  ;;  %v652_v19 = vadd.f32 %v651_v55, %v8261_v56  ;;  %v8334_v63 = vld [vmem:[%s15114_s3] sm:$0xff]  }
  0xd3   :  { %v590_v54 = vpop.f32.mrf.mxu0  ;;  %v653_v57 = vpop.f32.mrf.mxu1 }
  0xd4   :  { %v591_v20 = vadd.f32 %v590_v54, %v8268_v0  ;;  %v654_v24 = vadd.f32 %v653_v57, %v8268_v0  ;;  %v1561_v41 = vmax.f32 %v589_v13, 0.0  ;;  %v1563_v46 = vmax.f32 %v652_v19, 0.0 }
  0xd5   :  { %v592_v60 = vpop.f32.mrf.mxu0  ;;  %v655_v61 = vpop.f32.mrf.mxu1 }
  0xd6   :  { %v593_v4 = vadd.f32 %v592_v60, %v8268_v0  ;;  %v656_v14 = vadd.f32 %v655_v61, %v8268_v0  ;;  %v1592_v47 = vmax.f32 %v591_v20, 0.0  ;;  %v1594_v52 = vmax.f32 %v654_v24, 0.0 }
  0xd7   :  { %v596_v62 = vpop.f32.mrf.mxu0  ;;  %v659_v58 = vpop.f32.mrf.mxu1 }
  0xd8   :  { %v597_v5 = vadd.f32 %v596_v62, %v8263_v59  ;;  %v660_v21 = vadd.f32 %v659_v58, %v8263_v59  ;;  %v1593_v25 = vmax.f32 %v593_v4, 0.0  ;;  %v1595_v36 = vmax.f32 %v656_v14, 0.0 }
  0xd9   :  { %v598_v1 = vpop.f32.mrf.mxu0  ;;  %v661_v3 = vpop.f32.mrf.mxu1  ;;  %v1562_v62 = vmax.f32 %v8276_v8, 0.0 }
  0xda   :  { %v599_v10 = vadd.f32 %v598_v1, %v8263_v59  ;;  %v662_v16 = vadd.f32 %v661_v3, %v8263_v59  ;;  %v1624_v26 = vmax.f32 %v597_v5, 0.0  ;;  %v1626_v42 = vmax.f32 %v660_v21, 0.0 }
  0xdb   :  { %v600_v6 = vpop.f32.mrf.mxu0  ;;  %v663_v12 = vpop.f32.mrf.mxu1  ;;  %v1788_v60 = vpack.c.bf16 %v1593_v25, %v1561_v41  ;;  %v1790_v61 = vpack.c.bf16 %v1595_v36, %v1563_v46 }
  0xdc   :  { %v601_v11 = vadd.f32 %v600_v6, %v8270_v2  ;;  %v664_v17 = vadd.f32 %v663_v12, %v8270_v2  ;;  %v1625_v29 = vmax.f32 %v599_v10, 0.0  ;;  %v1627_v37 = vmax.f32 %v662_v16, 0.0 }
  0xdd   :  { %v602_v18 = vpop.f32.mrf.mxu0  ;;  %v665_v23 = vpop.f32.mrf.mxu1  ;;  %v1787_v6 = vpack.c.bf16 %v1592_v47, %v1560_v7  ;;  %v1789_v10 = vpack.c.bf16 %v1594_v52, %v1562_v62 }
  0xde   :  { %v603_v22 = vadd.f32 %v602_v18, %v8270_v2  ;;  %v666_v27 = vadd.f32 %v665_v23, %v8270_v2  ;;  %v1656_v31 = vmax.f32 %v601_v11, 0.0  ;;  %v1658_v32 = vmax.f32 %v664_v17, 0.0 }
  0xdf   :  { %v606_v28 = vpop.f32.mrf.mxu0  ;;  %v669_v35 = vpop.f32.mrf.mxu1 }
  0xe0   :  { %v1657_v34 = vmax.f32 %v603_v22, 0.0  ;;  %v1659_v38 = vmax.f32 %v666_v27, 0.0  ;;  %v670_v39 = vadd.f32 %v669_v35, %v8290_v33  ;;  %v607_v43 = vadd.f32 %v606_v28, %v8290_v33 }
  0xe1   :  { %v8293_v40 = vpop.f32.mrf.mxu0  ;;  %v8296_v44 = vpop.f32.mrf.mxu1  ;;  %v1819_v9 = vpack.c.bf16 %v1656_v31, %v1624_v26  ;;  %v1821_v30 = vpack.c.bf16 %v1658_v32, %v1626_v42 }
  0xe2   :  { %v1820_v45 = vpack.c.bf16 %v1657_v34, %v1625_v29  ;;  %v8300_v49 = vmax.f32 %v670_v39, 0.0  ;;  %v1822_v51 = vpack.c.bf16 %v1659_v38, %v1627_v37  ;;  %v8309_v58 = vmax.f32 %v607_v43, 0.0 }
  0xe3   :  { %v610_v50 = vpop.f32.mrf.mxu0  ;;  %v673_v55 = vpop.f32.mrf.mxu1 }
  0xe4   :  { %15730 = vst [vmem:[#allocation7_spill] sm:$0xff] %v8300_v49  ;;  %v611_v53 = vadd.f32 %v610_v50, %v8298_v48  ;;  %1884 = vmatprep.subr.bf16.mxu0 %v1820_v45  ;;  %v674_v54 = vadd.f32 %v673_v55, %v8298_v48  ;;  %3402 = vrot.lane.b32.xlu0 %v8300_v49, %s7787_s0  ;;  %15731 = vst [vmem:[#allocation8_spill] sm:$0xff] %v8309_v58 }
  0xe5   :  { %1927 = vmatprep.subr.bf16.mxu1 %v1822_v51  ;;  %v8306_v57 = vpop.f32.mrf.mxu0  ;;  %v8313_v3 = vpop.f32.mrf.mxu1  ;;  %1885 = vmatpush1.bf16.msra.mxu0 %v1819_v9 }
  0xe6   :  { %v8311_v1 = vmax.f32 %v611_v53, 0.0  ;;  %1928 = vmatpush1.bf16.msra.mxu1 %v1821_v30  ;;  %v8315_v4 = vmax.f32 %v674_v54, 0.0  ;;  %1886 = vmatprep.subr.bf16.mxu0 %v1788_v60 }
  0xe7   :  { %1929 = vmatprep.subr.bf16.mxu1 %v1790_v61  ;;  %v8317_v5 = vpop.f32.mrf.mxu0  ;;  %v8321_v11 = vpop.f32.mrf.mxu1 }
  0xe8   :  { %15732 = vst [vmem:[#allocation9_spill] sm:$0xff] %v8311_v1  ;;  %15733 = vst [vmem:[#allocation10_spill] sm:$0xff] %v8315_v4  ;;  %3404 = vrot.lane.b32.xlu1 %v8315_v4, %s7787_s0  ;;  %3394 = vrot.lane.b32.xlu0 %v8309_v58, %s7787_s0  ;;  %v713_v54 = vadd.f32 %v8317_v5, %v8261_v56 }
  0xe9   :  { %v714_v12 = vpop.f32.mrf.mxu0  ;;  %v777_v14 = vpop.f32.mrf.mxu1  ;;  %1887 = vmatpush1.bf16.msra.mxu0 %v1787_v6 }
  0xea   :  { %1930 = vmatpush1.bf16.msra.mxu1 %v1789_v10  ;;  %v715_v32 = vadd.f32 %v714_v12, %v8261_v56  ;;  %v778_v38 = vadd.f32 %v777_v14, %v8261_v56  ;;  %v776_v10 = vadd.f32 %v8321_v11, %v8261_v56 }
  0xeb   :  { %v716_v7 = vpop.f32.mrf.mxu0  ;;  %v779_v16 = vpop.f32.mrf.mxu1 }
  0xec   :  { %3396 = vrot.lane.b32.xlu1 %v8311_v1, %s7787_s0  ;;  %2985 = vrot.lane.b32.xlu0 %v8300_v49, %s7788_s23  ;;  %v717_v39 = vadd.f32 %v716_v7, %v8268_v0  ;;  %v780_v45 = vadd.f32 %v779_v16, %v8268_v0  ;;  %v1565_v12 = vmax.f32 %v715_v32, 0.0 }
  0xed   :  { %v718_v17 = vpop.f32.mrf.mxu0  ;;  %v781_v18 = vpop.f32.mrf.mxu1  ;;  %7527 = vmatmul.mubr.msk.bf16.vlgmr.msra.gmra.mxu0 %vm1868_vm3, %v8334_v63  ;;  %7528 = vmatmul.mubr.msk.bf16.vlgmr.msra.gmra.mxu1 %vm1868_vm3, %v8334_v63 }
  0xee   :  { %2033 = vmatprep.mubr.bf16.mxu1 %v15121_v15  ;;  %1990 = vmatprep.mubr.bf16.mxu0 %v15121_v15  ;;  %v719_v27 = vadd.f32 %v718_v17, %v8268_v0  ;;  %v782_v34 = vadd.f32 %v781_v18, %v8268_v0  ;;  %v1567_v17 = vmax.f32 %v778_v38, 0.0  ;;  %v1596_v18 = vmax.f32 %v717_v39, 0.0 }
  0xef   :  { %v722_v19 = vpop.f32.mrf.mxu0  ;;  %v785_v20 = vpop.f32.mrf.mxu1  ;;  %v1598_v5 = vmax.f32 %v780_v45, 0.0  ;;  %v609_v39 = vadd.f32 %v8293_v40, %v8290_v33  ;;  %v613_v45 = vadd.f32 %v8306_v57, %v8298_v48 }
  0xf0   :  { %2987 = vrot.lane.b32.xlu1 %v8315_v4, %s7788_s23  ;;  %2977 = vrot.lane.b32.xlu0 %v8309_v58, %s7788_s23  ;;  %v723_v35 = vadd.f32 %v722_v19, %v8263_v59  ;;  %v786_v41 = vadd.f32 %v785_v20, %v8263_v59  ;;  %v1597_v52 = vmax.f32 %v719_v27, 0.0  ;;  %v1599_v60 = vmax.f32 %v782_v34, 0.0 }
  0xf1   :  { %v724_v21 = vpop.f32.mrf.mxu0  ;;  %v787_v22 = vpop.f32.mrf.mxu1 }
  0xf2   :  { %v725_v24 = vadd.f32 %v724_v21, %v8263_v59  ;;  %v788_v28 = vadd.f32 %v787_v22, %v8263_v59  ;;  %v1628_v61 = vmax.f32 %v723_v35, 0.0  ;;  %v1630_v14 = vmax.f32 %v786_v41, 0.0 }
  0xf3   :  { %v726_v23 = vpop.f32.mrf.mxu0  ;;  %v789_v26 = vpop.f32.mrf.mxu1  ;;  %v1792_v11 = vpack.c.bf16 %v1597_v52, %v1565_v12  ;;  %v8426_v52 = vmax.f32 %v609_v39, 0.0 }
  0xf4   :  { %v727_v25 = vadd.f32 %v726_v23, %v8270_v2  ;;  %v790_v29 = vadd.f32 %v789_v26, %v8270_v2  ;;  %2979 = vrot.lane.b32.xlu1 %v8311_v1, %s7788_s23  ;;  %4685 = vrot.lane.b32.xlu0 %v8300_v49, %s7789_s24  ;;  %v1629_v46 = vmax.f32 %v725_v24, 0.0  ;;  %v1631_v9 = vmax.f32 %v788_v28, 0.0 }
  0xf5   :  { %v728_v31 = vpop.f32.mrf.mxu0  ;;  %v791_v37 = vpop.f32.mrf.mxu1  ;;  %v1564_v23 = vmax.f32 %v713_v54, 0.0  ;;  %v1566_v26 = vmax.f32 %v776_v10, 0.0 }
  0xf6   :  { %v729_v36 = vadd.f32 %v728_v31, %v8270_v2  ;;  %v792_v42 = vadd.f32 %v791_v37, %v8270_v2  ;;  %v1660_v47 = vmax.f32 %v727_v25, 0.0  ;;  %v1662_v30 = vmax.f32 %v790_v29, 0.0 }
  0xf7   :  { %v8367_v43 = vpop.f32.mrf.mxu0  ;;  %v8370_v51 = vpop.f32.mrf.mxu1  ;;  %v1794_v25 = vpack.c.bf16 %v1599_v60, %v1567_v17  ;;  %v1791_v28 = vpack.c.bf16 %v1596_v18, %v1564_v23  ;;  %v1793_v31 = vpack.c.bf16 %v1598_v5, %v1566_v26 }
  0xf8   :  { %v1661_v50 = vmax.f32 %v729_v36, 0.0  ;;  %v1663_v53 = vmax.f32 %v792_v42, 0.0  ;;  %4687 = vrot.lane.b32.xlu1 %v8315_v4, %s7789_s24  ;;  %4677 = vrot.lane.b32.xlu0 %v8309_v58, %s7789_s24  ;;  %v1823_v19 = vpack.c.bf16 %v1660_v47, %v1628_v61  ;;  %v1825_v21 = vpack.c.bf16 %v1662_v30, %v1630_v14 }
  0xf9   :  { %v8376_v55 = vpop.f32.mrf.mxu0  ;;  %v8380_v62 = vpop.f32.mrf.mxu1  ;;  %v672_v42 = vadd.f32 %v8296_v44, %v8290_v33  ;;  %v676_v47 = vadd.f32 %v8313_v3, %v8298_v48  ;;  %v8430_v44 = vmax.f32 %v613_v45, 0.0 }
  0xfa   :  { %v1824_v6 = vpack.c.bf16 %v1661_v50, %v1629_v46  ;;  %v1826_v16 = vpack.c.bf16 %v1663_v53, %v1631_v9 }
  0xfb   :  { %v8384_v7 = vpop.f32.mrf.mxu0  ;;  %v8386_v20 = vpop.f32.mrf.mxu1  ;;  %v8428_v30 = vmax.f32 %v672_v42, 0.0  ;;  %v8434_v54 = vmax.f32 %v676_v47, 0.0 }
  0xfc   :  { %1970 = vmatprep.subr.bf16.mxu0 %v1824_v6  ;;  %2013 = vmatprep.subr.bf16.mxu1 %v1826_v16 }
  0xfd   :  { %4679 = vrot.lane.b32.xlu1 %v8311_v1, %s7789_s24  ;;  %v8390_v22 = vpop.f32.mrf.mxu0  ;;  %4228 = vrot.lane.b32.xlu0 %v8309_v58, %s7790_s1  ;;  %v8394_v24 = vpop.f32.mrf.mxu1  ;;  %15734 = vst [vmem:[#allocation11_spill] sm:$0xff] %v8428_v30  ;;  %15735 = vst [vmem:[#allocation12_spill] sm:$0xff] %v8434_v54 }
  0xfe   :  { %1971 = vmatpush1.bf16.msra.mxu0 %v1823_v19  ;;  %2014 = vmatpush1.bf16.msra.mxu1 %v1825_v21 }
  0xff   :  { %1972 = vmatprep.subr.bf16.mxu0 %v1792_v11  ;;  %v8396_v27 = vpop.f32.mrf.mxu0  ;;  %2015 = vmatprep.subr.bf16.mxu1 %v1794_v25  ;;  %v8398_v29 = vpop.f32.mrf.mxu1 }
 0x100   :  { %v902_v47 = vadd.f32 %v8398_v29, %v8261_v56 }
 0x101   :  { %4230 = vrot.lane.b32.xlu1 %v8311_v1, %s7790_s1  ;;  %v840_v32 = vpop.f32.mrf.mxu0  ;;  %4236 = vrot.lane.b32.xlu0 %v8300_v49, %s7790_s1  ;;  %v903_v34 = vpop.f32.mrf.mxu1 }
 0x102   :  { %1973 = vmatpush1.bf16.msra.mxu0 %v1791_v28  ;;  %2016 = vmatpush1.bf16.msra.mxu1 %v1793_v31  ;;  %v841_v12 = vadd.f32 %v840_v32, %v8261_v56  ;;  %v904_v19 = vadd.f32 %v903_v34, %v8261_v56 }
 0x103   :  { %v842_v35 = vpop.f32.mrf.mxu0  ;;  %v905_v36 = vpop.f32.mrf.mxu1 }
 0x104   :  { %v843_v5 = vadd.f32 %v842_v35, %v8268_v0  ;;  %v906_v25 = vadd.f32 %v905_v36, %v8268_v0  ;;  %v839_v35 = vadd.f32 %v8396_v27, %v8261_v56 }
 0x105   :  { %4238 = vrot.lane.b32.xlu1 %v8315_v4, %s7790_s1  ;;  %v844_v37 = vpop.f32.mrf.mxu0  ;;  %7529 = vmatmul.mubr.msk.bf16.vlgmr.msra.gmra.mxu0 %vm1868_vm3, %v8334_v63  ;;  %v907_v38 = vpop.f32.mrf.mxu1 }
 0x106   :  { %3811 = vrot.lane.b32.xlu0 %v8309_v58, %s7791_s25  ;;  %7530 = vmatmul.mubr.msk.bf16.vlgmr.msra.gmra.mxu1 %vm1868_vm3, %v8334_v63  ;;  %v845_v60 = vadd.f32 %v844_v37, %v8268_v0  ;;  %v908_v14 = vadd.f32 %v907_v38, %v8268_v0 }
 0x107   :  { %v848_v41 = vpop.f32.mrf.mxu0  ;;  %2119 = vmatprep.mubr.bf16.mxu1 %v15121_v15  ;;  %2076 = vmatprep.mubr.bf16.mxu0 %v15121_v15  ;;  %v911_v46 = vpop.f32.mrf.mxu1 }
 0x108   :  { %v849_v16 = vadd.f32 %v848_v41, %v8263_v59  ;;  %v912_v21 = vadd.f32 %v911_v46, %v8263_v59  ;;  %v1601_v37 = vmax.f32 %v845_v60, 0.0  ;;  %v1603_v42 = vmax.f32 %v908_v14, 0.0 }
 0x109   :  { %3813 = vrot.lane.b32.xlu1 %v8311_v1, %s7791_s25  ;;  %v850_v50 = vpop.f32.mrf.mxu0  ;;  %v913_v40 = vpop.f32.mrf.mxu1 }
 0x10a   :  { %3819 = vrot.lane.b32.xlu0 %v8300_v49, %s7791_s25  ;;  %v851_v57 = vadd.f32 %v850_v50, %v8263_v59  ;;  %v914_v61 = vadd.f32 %v913_v40, %v8263_v59  ;;  %v1632_v45 = vmax.f32 %v849_v16, 0.0  ;;  %v1569_v50 = vmax.f32 %v841_v12, 0.0 }
 0x10b   :  { %v852_v9 = vpop.f32.mrf.mxu0  ;;  %v915_v3 = vpop.f32.mrf.mxu1  ;;  %v1634_v40 = vmax.f32 %v912_v21, 0.0  ;;  %v1568_v12 = vmax.f32 %v839_v35, 0.0 }
 0x10c   :  { %v853_v53 = vadd.f32 %v852_v9, %v8270_v2  ;;  %v916_v6 = vadd.f32 %v915_v3, %v8270_v2  ;;  %v1633_v26 = vmax.f32 %v851_v57, 0.0  ;;  %v1635_v38 = vmax.f32 %v914_v61, 0.0 }
 0x10d   :  { %3821 = vrot.lane.b32.xlu1 %v8315_v4, %s7791_s25  ;;  %v854_v10 = vpop.f32.mrf.mxu0  ;;  %v917_v18 = vpop.f32.mrf.mxu1  ;;  %v1600_v3 = vmax.f32 %v843_v5, 0.0  ;;  %v1602_v61 = vmax.f32 %v906_v25, 0.0  ;;  %v1796_v29 = vpack.c.bf16 %v1601_v37, %v1569_v50 }
 0x10e   :  { %3398 = vrot.lane.b32.xlu0 %v8426_v52, %s7787_s0  ;;  %v855_v17 = vadd.f32 %v854_v10, %v8270_v2  ;;  %v918_v11 = vadd.f32 %v917_v18, %v8270_v2  ;;  %v1664_v28 = vmax.f32 %v853_v53, 0.0  ;;  %v1666_v39 = vmax.f32 %v916_v6, 0.0 }
 0x10f   :  { %v8451_v23 = vpop.f32.mrf.mxu0  ;;  %v8454_v32 = vpop.f32.mrf.mxu1  ;;  %v1571_v53 = vmax.f32 %v904_v19, 0.0  ;;  %v1795_v19 = vpack.c.bf16 %v1600_v3, %v1568_v12 }
 0x110   :  { %v1665_v31 = vmax.f32 %v855_v17, 0.0  ;;  %v1667_v41 = vmax.f32 %v918_v11, 0.0  ;;  %v1827_v60 = vpack.c.bf16 %v1664_v28, %v1632_v45  ;;  %v1829_v6 = vpack.c.bf16 %v1666_v39, %v1634_v40 }
 0x111   :  { %3400 = vrot.lane.b32.xlu1 %v8430_v44, %s7787_s0  ;;  %v8458_v34 = vpop.f32.mrf.mxu0  ;;  %v8464_v36 = vpop.f32.mrf.mxu1  ;;  %v1798_v16 = vpack.c.bf16 %v1603_v42, %v1571_v53  ;;  %v1570_v17 = vmax.f32 %v902_v47, 0.0 }
 0x112   :  { %15736 = vst [vmem:[#allocation13_spill] sm:$0xff] %v8458_v34  ;;  %3406 = vrot.lane.b32.xlu0 %v8428_v30, %s7787_s0  ;;  %15737 = vst [vmem:[#allocation14_spill] sm:$0xff] %v8464_v36  ;;  %v1828_v46 = vpack.c.bf16 %v1665_v31, %v1633_v26  ;;  %v1830_v57 = vpack.c.bf16 %v1667_v41, %v1635_v38 }
 0x113   :  { %v8468_v9 = vpop.f32.mrf.mxu0  ;;  %v8470_v27 = vpop.f32.mrf.mxu1  ;;  %v1797_v21 = vpack.c.bf16 %v1602_v61, %v1570_v17 }
 0x114   :  { %2056 = vmatprep.subr.bf16.mxu0 %v1828_v46  ;;  %2099 = vmatprep.subr.bf16.mxu1 %v1830_v57 }
 0x115   :  { %3408 = vrot.lane.b32.xlu1 %v8434_v54, %s7787_s0  ;;  %v8474_v10 = vpop.f32.mrf.mxu0  ;;  %v8478_v14 = vpop.f32.mrf.mxu1  ;;  %2057 = vmatpush1.bf16.msra.mxu0 %v1827_v60 }
 0x116   :  { %15738 = vst [vmem:[#allocation15_spill] sm:$0xff] %v8474_v10  ;;  %2981 = vrot.lane.b32.xlu0 %v8426_v52, %s7788_s23  ;;  %15739 = vst [vmem:[#allocation16_spill] sm:$0xff] %v8478_v14  ;;  %2100 = vmatpush1.bf16.msra.mxu1 %v1829_v6 }
 0x117   :  { %2058 = vmatprep.subr.bf16.mxu0 %v1796_v29  ;;  %v964_v18 = vpop.f32.mrf.mxu0  ;;  %2101 = vmatprep.subr.bf16.mxu1 %v1798_v16  ;;  %v1027_v5 = vpop.f32.mrf.mxu1 }
 0x119   :  { %2983 = vrot.lane.b32.xlu1 %v8430_v44, %s7788_s23  ;;  %v966_v11 = vpop.f32.mrf.mxu0  ;;  %v1029_v25 = vpop.f32.mrf.mxu1  ;;  %2059 = vmatpush1.bf16.msra.mxu0 %v1795_v19 }
 0x11a   :  { %2989 = vrot.lane.b32.xlu0 %v8428_v30, %s7788_s23  ;;  %2102 = vmatpush1.bf16.msra.mxu1 %v1797_v21  ;;  %v967_v3 = vadd.f32 %v966_v11, %v8261_v56  ;;  %v1030_v12 = vadd.f32 %v1029_v25, %v8261_v56 }
 0x11b   :  { %v968_v26 = vpop.f32.mrf.mxu0  ;;  %v1031_v28 = vpop.f32.mrf.mxu1 }
 0x11c   :  { %7531 = vmatmul.mubr.msk.bf16.vlgmr.msra.gmra.mxu0 %vm1868_vm3, %v8334_v63  ;;  %v969_v16 = vadd.f32 %v968_v26, %v8268_v0  ;;  %v1032_v11 = vadd.f32 %v1031_v28, %v8268_v0  ;;  %v965_v26 = vadd.f32 %v964_v18, %v8261_v56 }
 0x11d   :  { %2991 = vrot.lane.b32.xlu1 %v8434_v54, %s7788_s23  ;;  %v970_v31 = vpop.f32.mrf.mxu0  ;;  %v1033_v37 = vpop.f32.mrf.mxu1  ;;  %7532 = vmatmul.mubr.msk.bf16.vlgmr.msra.gmra.mxu1 %vm1868_vm3, %v8334_v63 }
 0x11e   :  { %4681 = vrot.lane.b32.xlu0 %v8426_v52, %s7789_s24  ;;  %2205 = vmatprep.mubr.bf16.mxu1 %v15121_v15  ;;  %v971_v50 = vadd.f32 %v970_v31, %v8268_v0  ;;  %v1034_v60 = vadd.f32 %v1033_v37, %v8268_v0  ;;  %v1604_v13 = vmax.f32 %v969_v16, 0.0  ;;  %v1606_v18 = vmax.f32 %v1032_v11, 0.0 }
 0x11f   :  { %v974_v38 = vpop.f32.mrf.mxu0  ;;  %2162 = vmatprep.mubr.bf16.mxu0 %v15121_v15  ;;  %v1037_v39 = vpop.f32.mrf.mxu1 }
 0x120   :  { %v975_v61 = vadd.f32 %v974_v38, %v8263_v59  ;;  %v1038_v17 = vadd.f32 %v1037_v39, %v8263_v59  ;;  %v1607_v39 = vmax.f32 %v1034_v60, 0.0 }
 0x121   :  { %4683 = vrot.lane.b32.xlu1 %v8430_v44, %s7789_s24  ;;  %v976_v41 = vpop.f32.mrf.mxu0  ;;  %v1039_v35 = vpop.f32.mrf.mxu1 }
 0x122   :  { %4689 = vrot.lane.b32.xlu0 %v8428_v30, %s7789_s24  ;;  %v977_v45 = vadd.f32 %v976_v41, %v8263_v59  ;;  %v1040_v40 = vadd.f32 %v1039_v35, %v8263_v59  ;;  %v1605_v35 = vmax.f32 %v971_v50, 0.0  ;;  %v1573_v50 = vmax.f32 %v967_v3, 0.0 }
 0x123   :  { %v978_v42 = vpop.f32.mrf.mxu0  ;;  %v1041_v47 = vpop.f32.mrf.mxu1  ;;  %v1572_v3 = vmax.f32 %v965_v26, 0.0 }
 0x124   :  { %v979_v46 = vadd.f32 %v978_v42, %v8270_v2  ;;  %v1042_v57 = vadd.f32 %v1041_v47, %v8270_v2  ;;  %v1637_v31 = vmax.f32 %v977_v45, 0.0  ;;  %v1639_v42 = vmax.f32 %v1040_v40, 0.0 }
 0x125   :  { %4691 = vrot.lane.b32.xlu1 %v8434_v54, %s7789_s24  ;;  %v980_v53 = vpop.f32.mrf.mxu0  ;;  %v1043_v29 = vpop.f32.mrf.mxu1  ;;  %v1638_v40 = vmax.f32 %v1038_v17, 0.0 }
 0x126   :  { %4232 = vrot.lane.b32.xlu0 %v8426_v52, %s7790_s1  ;;  %v981_v6 = vadd.f32 %v980_v53, %v8270_v2  ;;  %v1044_v19 = vadd.f32 %v1043_v29, %v8270_v2  ;;  %v1668_v37 = vmax.f32 %v979_v46, 0.0  ;;  %v1670_v47 = vmax.f32 %v1042_v57, 0.0 }
 0x127   :  { %v8515_v21 = vpop.f32.mrf.mxu0  ;;  %v8518_v41 = vpop.f32.mrf.mxu1  ;;  %v1636_v29 = vmax.f32 %v975_v61, 0.0  ;;  %v1028_v46 = vadd.f32 %v1027_v5, %v8261_v56  ;;  %v1800_v5 = vpack.c.bf16 %v1605_v35, %v1573_v50 }
 0x128   :  { %15740 = vst [vmem:[#allocation17_spill] sm:$0xff] %v8515_v21  ;;  %v1669_v38 = vmax.f32 %v981_v6, 0.0  ;;  %15741 = vst [vmem:[#allocation18_spill] sm:$0xff] %v8518_v41  ;;  %v1671_v53 = vmax.f32 %v1044_v19, 0.0  ;;  %v1575_v19 = vmax.f32 %v1030_v12, 0.0  ;;  %v1833_v60 = vpack.c.bf16 %v1670_v47, %v1638_v40 }
 0x129   :  { %4234 = vrot.lane.b32.xlu1 %v8430_v44, %s7790_s1  ;;  %v8522_v25 = vpop.f32.mrf.mxu0  ;;  %v8527_v28 = vpop.f32.mrf.mxu1  ;;  %v1831_v8 = vpack.c.bf16 %v1668_v37, %v1636_v29  ;;  %v1574_v16 = vmax.f32 %v1028_v46, 0.0  ;;  %v1799_v37 = vpack.c.bf16 %v1604_v13, %v1572_v3  ;;  %v737_v47 = vadd.f32 %v8384_v7, %v8298_v48 }
 0x12a   :  { %15742 = vst [vmem:[#allocation19_spill] sm:$0xff] %v8522_v25  ;;  %4240 = vrot.lane.b32.xlu0 %v8428_v30, %s7790_s1  ;;  %15743 = vst [vmem:[#allocation20_spill] sm:$0xff] %v8527_v28  ;;  %v1832_v45 = vpack.c.bf16 %v1669_v38, %v1637_v31  ;;  %v1834_v6 = vpack.c.bf16 %v1671_v53, %v1639_v42  ;;  %v1802_v12 = vpack.c.bf16 %v1607_v39, %v1575_v19 }
 0x12b   :  { %v8530_v57 = vpop.f32.mrf.mxu0  ;;  %v8532_v15 = vpop.f32.mrf.mxu1  ;;  %v733_v31 = vadd.f32 %v8367_v43, %v8290_v33  ;;  %v1801_v35 = vpack.c.bf16 %v1606_v18, %v1574_v16  ;;  %v8564_v7 = vmax.f32 %v737_v47, 0.0  ;;  %v796_v19 = vadd.f32 %v8370_v51, %v8290_v33 }
 0x12c   :  { %15744 = vst [vmem:[#allocation21_spill] sm:$0xff] %v8530_v57  ;;  %15745 = vst [vmem:[#allocation22_spill] sm:$0xff] %v8532_v15  ;;  %2142 = vmatprep.subr.bf16.mxu0 %v1832_v45  ;;  %2185 = vmatprep.subr.bf16.mxu1 %v1834_v6  ;;  %v15750_v45 = vmov 0   ;;  %v800_v3 = vadd.f32 %v8386_v20, %v8298_v48 }
 0x12d   :  { %4242 = vrot.lane.b32.xlu1 %v8434_v54, %s7790_s1  ;;  %v8536_v61 = vpop.f32.mrf.mxu0  ;;  %v8540_v17 = vpop.f32.mrf.mxu1  ;;  %2143 = vmatpush1.bf16.msra.mxu0 %v1831_v8  ;;  %v8554_v43 = vmax.f32 %v733_v31, 0.0  ;;  %15749 = vst [vmem:[#allocation26_spill] sm:$0xff] %v8564_v7 }
 0x12e   :  { %15746 = vst [vmem:[#allocation23_spill] sm:$0xff] %v8536_v61  ;;  %3815 = vrot.lane.b32.xlu0 %v8426_v52, %s7791_s25  ;;  %15747 = vst [vmem:[#allocation24_spill] sm:$0xff] %v8540_v17  ;;  %2186 = vmatpush1.bf16.msra.mxu1 %v1833_v60 }
 0x12f   :  { %2144 = vmatprep.subr.bf16.mxu0 %v1800_v5  ;;  %v8542_v11 = vpop.f32.mrf.mxu0  ;;  %2187 = vmatprep.subr.bf16.mxu1 %v1802_v12  ;;  %v8546_v38 = vpop.f32.mrf.mxu1  ;;  %15748 = vst [vmem:[#allocation25_spill] sm:$0xff] %v8554_v43 }
 0x131   :  { %3817 = vrot.lane.b32.xlu1 %v8430_v44, %s7791_s25  ;;  %v1092_v42 = vpop.f32.mrf.mxu0  ;;  %v1155_v8 = vpop.f32.mrf.mxu1  ;;  %2145 = vmatpush1.bf16.msra.mxu0 %v1799_v37 }
 0x132   :  { %3823 = vrot.lane.b32.xlu0 %v8428_v30, %s7791_s25  ;;  %2188 = vmatpush1.bf16.msra.mxu1 %v1801_v35  ;;  %v1093_v51 = vadd.f32 %v1092_v42, %v8261_v56 }
 0x133   :  { %v1094_v53 = vpop.f32.mrf.mxu0  ;;  %v1157_v13 = vpop.f32.mrf.mxu1 }
 0x134   :  { %7533 = vmatmul.mubr.msk.bf16.vlgmr.msra.gmra.mxu0 %vm1868_vm3, %v8334_v63  ;;  %v1158_v42 = vadd.f32 %v1157_v13, %v8268_v0 }
 0x135   :  { %3825 = vrot.lane.b32.xlu1 %v8434_v54, %s7791_s25  ;;  %v1096_v26 = vpop.f32.mrf.mxu0  ;;  %v1159_v39 = vpop.f32.mrf.mxu1  ;;  %7534 = vmatmul.mubr.msk.bf16.vlgmr.msra.gmra.mxu1 %vm1868_vm3, %v8334_v63 }
 0x136   :  { %3410 = vrot.lane.b32.xlu0 %v8554_v43, %s7787_s0  ;;  %2291 = vmatprep.mubr.bf16.mxu1 %v15750_v45  ;;  %v1097_v12 = vadd.f32 %v1096_v26, %v8268_v0  ;;  %v1160_v35 = vadd.f32 %v1159_v39, %v8268_v0 }
 0x137   :  { %v1100_v29 = vpop.f32.mrf.mxu0  ;;  %2248 = vmatprep.mubr.bf16.mxu0 %v15750_v45  ;;  %v1163_v46 = vpop.f32.mrf.mxu1 }
 0x138   :  { %v1101_v47 = vadd.f32 %v1100_v29, %v8263_v59  ;;  %v1609_v25 = vmax.f32 %v1097_v12, 0.0  ;;  %v1577_v12 = vmax.f32 %v1093_v51, 0.0 }
 0x139   :  { %3412 = vrot.lane.b32.xlu1 %v8564_v7, %s7787_s0  ;;  %v1102_v50 = vpop.f32.mrf.mxu0  ;;  %v1165_v40 = vpop.f32.mrf.mxu1 }
 0x13a   :  { %2993 = vrot.lane.b32.xlu0 %v8554_v43, %s7788_s23  ;;  %v1103_v18 = vadd.f32 %v1102_v50, %v8263_v59  ;;  %v1166_v16 = vadd.f32 %v1165_v40, %v8263_v59  ;;  %v1156_v50 = vadd.f32 %v1155_v8, %v8261_v56  ;;  %v1095_v40 = vadd.f32 %v1094_v53, %v8268_v0 }
 0x13b   :  { %v1104_v6 = vpop.f32.mrf.mxu0  ;;  %v1167_v5 = vpop.f32.mrf.mxu1  ;;  %v1091_v53 = vadd.f32 %v8542_v11, %v8261_v56 }
 0x13c   :  { %v1105_v60 = vadd.f32 %v1104_v6, %v8270_v2  ;;  %v1168_v31 = vadd.f32 %v1167_v5, %v8270_v2  ;;  %v1164_v6 = vadd.f32 %v1163_v46, %v8263_v59  ;;  %v1641_v39 = vmax.f32 %v1103_v18, 0.0 }
 0x13d   :  { %2995 = vrot.lane.b32.xlu1 %v8564_v7, %s7788_s23  ;;  %v1106_v37 = vpop.f32.mrf.mxu0  ;;  %v1169_v26 = vpop.f32.mrf.mxu1  ;;  %v1611_v46 = vmax.f32 %v1160_v35, 0.0  ;;  %v1608_v11 = vmax.f32 %v1095_v40, 0.0  ;;  %v1576_v51 = vmax.f32 %v1091_v53, 0.0 }
 0x13e   :  { %4693 = vrot.lane.b32.xlu0 %v8554_v43, %s7789_s24  ;;  %v1107_v20 = vadd.f32 %v1106_v37, %v8270_v2  ;;  %v1170_v5 = vadd.f32 %v1169_v26, %v8270_v2  ;;  %v1672_v29 = vmax.f32 %v1105_v60, 0.0  ;;  %v1643_v37 = vmax.f32 %v1166_v16, 0.0 }
 0x13f   :  { %v8593_v17 = vpop.f32.mrf.mxu0  ;;  %v8596_v28 = vpop.f32.mrf.mxu1  ;;  %v1674_v15 = vmax.f32 %v1168_v31, 0.0  ;;  %v1640_v26 = vmax.f32 %v1101_v47, 0.0  ;;  %v1154_v60 = vadd.f32 %v8546_v38, %v8261_v56  ;;  %v1642_v16 = vmax.f32 %v1164_v6, 0.0 }
 0x140   :  { %15751 = vst [vmem:[#allocation27_spill] sm:$0xff] %v8593_v17  ;;  %v1673_v61 = vmax.f32 %v1107_v20, 0.0  ;;  %15752 = vst [vmem:[#allocation28_spill] sm:$0xff] %v8596_v28  ;;  %v1675_v41 = vmax.f32 %v1170_v5, 0.0  ;;  %v8612_v5 = vmax.f32 %v796_v19, 0.0  ;;  %v1579_v28 = vmax.f32 %v1156_v50, 0.0 }
 0x141   :  { %4695 = vrot.lane.b32.xlu1 %v8564_v7, %s7789_s24  ;;  %v8600_v8 = vpop.f32.mrf.mxu0  ;;  %v8606_v13 = vpop.f32.mrf.mxu1  ;;  %v1835_v35 = vpack.c.bf16 %v1672_v29, %v1640_v26  ;;  %v1837_v17 = vpack.c.bf16 %v1674_v15, %v1642_v16  ;;  %v1804_v38 = vpack.c.bf16 %v1609_v25, %v1577_v12  ;;  %v8624_v50 = vmax.f32 %v800_v3, 0.0 }
 0x142   :  { %15753 = vst [vmem:[#allocation29_spill] sm:$0xff] %v8600_v8  ;;  %3827 = vrot.lane.b32.xlu0 %v8554_v43, %s7791_s25  ;;  %15754 = vst [vmem:[#allocation30_spill] sm:$0xff] %v8606_v13  ;;  %v1836_v18 = vpack.c.bf16 %v1673_v61, %v1641_v39  ;;  %v1838_v20 = vpack.c.bf16 %v1675_v41, %v1643_v37  ;;  %v1610_v8 = vmax.f32 %v1158_v42, 0.0  ;;  %v1578_v40 = vmax.f32 %v1154_v60, 0.0 }
 0x143   :  { %v8610_v31 = vpop.f32.mrf.mxu0  ;;  %15756 = vst [vmem:[#allocation32_spill] sm:$0xff] %v8612_v5  ;;  %v8614_v47 = vpop.f32.mrf.mxu1  ;;  %v1806_v19 = vpack.c.bf16 %v1611_v46, %v1579_v28  ;;  %15760 = vst [vmem:[#allocation36_spill] sm:$0xff] %v8624_v50  ;;  %v1803_v6 = vpack.c.bf16 %v1608_v11, %v1576_v51  ;;  %v735_v60 = vadd.f32 %v8376_v55, %v8290_v33 }
 0x144   :  { %15755 = vst [vmem:[#allocation31_spill] sm:$0xff] %v8610_v31  ;;  %15757 = vst [vmem:[#allocation33_spill] sm:$0xff] %v8614_v47  ;;  %2228 = vmatprep.subr.bf16.mxu0 %v1836_v18  ;;  %2271 = vmatprep.subr.bf16.mxu1 %v1838_v20  ;;  %v1805_v39 = vpack.c.bf16 %v1610_v8, %v1578_v40  ;;  %v8650_v12 = vadd.f32 %v8380_v62, %v8290_v33 }
 0x145   :  { %3829 = vrot.lane.b32.xlu1 %v8564_v7, %s7791_s25  ;;  %v8618_v61 = vpop.f32.mrf.mxu0  ;;  %v8622_v41 = vpop.f32.mrf.mxu1  ;;  %2229 = vmatpush1.bf16.msra.mxu0 %v1835_v35  ;;  %v739_v35 = vadd.f32 %v8390_v22, %v8298_v48 }
 0x146   :  { %15758 = vst [vmem:[#allocation34_spill] sm:$0xff] %v8618_v61  ;;  %3418 = vrot.lane.b32.xlu0 %v8612_v5, %s7787_s0  ;;  %15759 = vst [vmem:[#allocation35_spill] sm:$0xff] %v8622_v41  ;;  %2272 = vmatpush1.bf16.msra.mxu1 %v1837_v17 }
 0x147   :  { %2230 = vmatprep.subr.bf16.mxu0 %v1804_v38  ;;  %v1216_v15 = vpop.f32.mrf.mxu0  ;;  %2273 = vmatprep.subr.bf16.mxu1 %v1806_v19  ;;  %v8626_v42 = vpop.f32.mrf.mxu1 }
 0x149   :  { %3420 = vrot.lane.b32.xlu1 %v8624_v50, %s7787_s0  ;;  %v1218_v25 = vpop.f32.mrf.mxu0  ;;  %v1281_v29 = vpop.f32.mrf.mxu1  ;;  %2231 = vmatpush1.bf16.msra.mxu0 %v1803_v6 }
 0x14a   :  { %3001 = vrot.lane.b32.xlu0 %v8612_v5, %s7788_s23  ;;  %2274 = vmatpush1.bf16.msra.mxu1 %v1805_v39  ;;  %v1219_v62 = vadd.f32 %v1218_v25, %v8261_v56 }
 0x14b   :  { %v1220_v28 = vpop.f32.mrf.mxu0  ;;  %v1283_v3 = vpop.f32.mrf.mxu1 }
 0x14c   :  { %7535 = vmatmul.mubr.msk.bf16.vlgmr.msra.gmra.mxu0 %vm1868_vm3, %v8334_v63 }
 0x14d   :  { %3003 = vrot.lane.b32.xlu1 %v8624_v50, %s7788_s23  ;;  %v1222_v17 = vpop.f32.mrf.mxu0  ;;  %v1285_v37 = vpop.f32.mrf.mxu1  ;;  %7536 = vmatmul.mubr.msk.bf16.vlgmr.msra.gmra.mxu1 %vm1868_vm3, %v8334_v63 }
 0x14e   :  { %4701 = vrot.lane.b32.xlu0 %v8612_v5, %s7789_s24  ;;  %2377 = vmatprep.mubr.bf16.mxu1 %v15750_v45  ;;  %v1223_v38 = vadd.f32 %v1222_v17, %v8268_v0  ;;  %v1286_v40 = vadd.f32 %v1285_v37, %v8268_v0  ;;  %v1282_v17 = vadd.f32 %v1281_v29, %v8261_v56 }
 0x14f   :  { %v1226_v8 = vpop.f32.mrf.mxu0  ;;  %2334 = vmatprep.mubr.bf16.mxu0 %v15750_v45  ;;  %v1289_v53 = vpop.f32.mrf.mxu1  ;;  %v1284_v37 = vadd.f32 %v1283_v3, %v8268_v0 }
 0x150   :  { %v1227_v6 = vadd.f32 %v1226_v8, %v8263_v59 }
 0x151   :  { %4703 = vrot.lane.b32.xlu1 %v8624_v50, %s7789_s24  ;;  %v1228_v46 = vpop.f32.mrf.mxu0  ;;  %v1291_v26 = vpop.f32.mrf.mxu1 }
 0x152   :  { %4244 = vrot.lane.b32.xlu0 %v8554_v43, %s7790_s1  ;;  %v1229_v16 = vadd.f32 %v1228_v46, %v8263_v59  ;;  %v1292_v51 = vadd.f32 %v1291_v26, %v8263_v59  ;;  %v1221_v46 = vadd.f32 %v1220_v28, %v8268_v0  ;;  %v1290_v26 = vadd.f32 %v1289_v53, %v8263_v59 }
 0x153   :  { %v1230_v18 = vpop.f32.mrf.mxu0  ;;  %v1293_v11 = vpop.f32.mrf.mxu1  ;;  %v1217_v53 = vadd.f32 %v1216_v15, %v8261_v56  ;;  %v1583_v15 = vmax.f32 %v1282_v17, 0.0  ;;  %v802_v17 = vadd.f32 %v8394_v24, %v8298_v48 }
 0x154   :  { %v1231_v20 = vadd.f32 %v1230_v18, %v8270_v2  ;;  %v1294_v19 = vadd.f32 %v1293_v11, %v8270_v2  ;;  %v1645_v8 = vmax.f32 %v1229_v16, 0.0  ;;  %v1647_v13 = vmax.f32 %v1292_v51, 0.0 }
 0x155   :  { %4246 = vrot.lane.b32.xlu1 %v8564_v7, %s7790_s1  ;;  %v1232_v55 = vpop.f32.mrf.mxu0  ;;  %v1295_v39 = vpop.f32.mrf.mxu1  ;;  %v1646_v51 = vmax.f32 %v1290_v26, 0.0 }
 0x156   :  { %4252 = vrot.lane.b32.xlu0 %v8612_v5, %s7790_s1  ;;  %v1233_v22 = vadd.f32 %v1232_v55, %v8270_v2  ;;  %v1296_v18 = vadd.f32 %v1295_v39, %v8270_v2  ;;  %v8671_v11 = vpop.permute.xlu0 %3402  ;;  %v1676_v7 = vmax.f32 %v1231_v20, 0.0  ;;  %v1613_v55 = vmax.f32 %v1223_v38, 0.0 }
 0x157   :  { %v8673_v25 = vpop.f32.mrf.mxu0  ;;  %v8676_v41 = vpop.f32.mrf.mxu1  ;;  %v1678_v29 = vmax.f32 %v1294_v19, 0.0  ;;  %v1615_v39 = vmax.f32 %v1286_v40, 0.0  ;;  %v1280_v20 = vadd.f32 %v8626_v42, %v8261_v56  ;;  %v1581_v38 = vmax.f32 %v1219_v62, 0.0 }
 0x158   :  { %15761 = vst [vmem:[#allocation37_spill] sm:$0xff] %v8673_v25  ;;  %v1677_v43 = vmax.f32 %v1233_v22, 0.0  ;;  %15762 = vst [vmem:[#allocation38_spill] sm:$0xff] %v8676_v41  ;;  %v1679_v47 = vmax.f32 %v1296_v18, 0.0  ;;  %v1644_v25 = vmax.f32 %v1227_v6, 0.0  ;;  %v8693_v41 = vmax.f32 %v735_v60, 0.0 }
 0x159   :  { %4254 = vrot.lane.b32.xlu1 %v8624_v50, %s7790_s1  ;;  %v8680_v28 = vpop.f32.mrf.mxu0  ;;  %v8685_v3 = vpop.f32.mrf.mxu1  ;;  %v1612_v40 = vmax.f32 %v1221_v46, 0.0  ;;  %v1808_v42 = vpack.c.bf16 %v1613_v55, %v1581_v38  ;;  %v1580_v62 = vmax.f32 %v1217_v53, 0.0  ;;  %v8707_v60 = vmax.f32 %v739_v35, 0.0 }
 0x15a   :  { %15763 = vst [vmem:[#allocation39_spill] sm:$0xff] %v8680_v28  ;;  %3835 = vrot.lane.b32.xlu0 %v8612_v5, %s7791_s25  ;;  %15764 = vst [vmem:[#allocation40_spill] sm:$0xff] %v8685_v3  ;;  %v1840_v16 = vpack.c.bf16 %v1677_v43, %v1645_v8  ;;  %v8689_v19 = vpop.permute.xlu1 %3404  ;;  %v8691_v22 = vpop.permute.xlu0 %3394  ;;  %v1842_v18 = vpack.c.bf16 %v1679_v47, %v1647_v13  ;;  %v1839_v6 = vpack.c.bf16 %v1676_v7, %v1644_v25 }
 0x15b   :  { %15765 = vst [vmem:[#allocation41_spill] sm:$0xff] %v8691_v22  ;;  %15766 = vst [vmem:[#allocation42_spill] sm:$0xff] %v8693_v41  ;;  %v8695_v28 = vpop.f32.mrf.mxu0  ;;  %v8697_v61 = vpop.f32.mrf.mxu1  ;;  %v1614_v43 = vmax.f32 %v1284_v37, 0.0  ;;  %v1841_v8 = vpack.c.bf16 %v1678_v29, %v1646_v51  ;;  %v1810_v7 = vpack.c.bf16 %v1615_v39, %v1583_v15  ;;  %v1582_v46 = vmax.f32 %v1280_v20, 0.0 }
 0x15c   :  { %15767 = vst [vmem:[#allocation43_spill] sm:$0xff] %v8695_v28  ;;  %15768 = vst [vmem:[#allocation44_spill] sm:$0xff] %v8697_v61  ;;  %2314 = vmatprep.subr.bf16.mxu0 %v1840_v16  ;;  %2357 = vmatprep.subr.bf16.mxu1 %v1842_v18  ;;  %v8716_v37 = vmax.f32 %v8650_v12, 0.0  ;;  %v1807_v55 = vpack.c.bf16 %v1612_v40, %v1580_v62  ;;  %v8726_v16 = vmax.f32 %v802_v17, 0.0 }
 0x15d   :  { %3837 = vrot.lane.b32.xlu1 %v8624_v50, %s7791_s25  ;;  %v8703_v13 = vpop.f32.mrf.mxu0  ;;  %v8705_v47 = vpop.f32.mrf.mxu1  ;;  %2315 = vmatpush1.bf16.msra.mxu0 %v1839_v6  ;;  %15771 = vst [vmem:[#allocation47_spill] sm:$0xff] %v8707_v60  ;;  %v1809_v35 = vpack.c.bf16 %v1614_v43, %v1582_v46 }
 0x15e   :  { %3414 = vrot.lane.b32.xlu0 %v8693_v41, %s7787_s0  ;;  %15769 = vst [vmem:[#allocation45_spill] sm:$0xff] %v8703_v13  ;;  %15770 = vst [vmem:[#allocation46_spill] sm:$0xff] %v8705_v47  ;;  %2358 = vmatpush1.bf16.msra.mxu1 %v1841_v8  ;;  %v8711_v26 = vpop.permute.xlu1 %3396  ;;  %v8713_v25 = vpop.permute.xlu0 %2985 }
 0x15f   :  { %15772 = vst [vmem:[#allocation48_spill] sm:$0xff] %v8711_v26  ;;  %2316 = vmatprep.subr.bf16.mxu0 %v1808_v42  ;;  %15773 = vst [vmem:[#allocation49_spill] sm:$0xff] %v8716_v37  ;;  %2359 = vmatprep.subr.bf16.mxu1 %v1810_v7  ;;  %v8718_v29 = vpop.f32.mrf.mxu0  ;;  %v8720_v53 = vpop.f32.mrf.mxu1 }
 0x160   :  { %15774 = vst [vmem:[#allocation50_spill] sm:$0xff] %v8726_v16 }
 0x161   :  { %3416 = vrot.lane.b32.xlu1 %v8707_v60, %s7787_s0  ;;  %v1344_v24 = vpop.f32.mrf.mxu0  ;;  %v1407_v39 = vpop.f32.mrf.mxu1  ;;  %2317 = vmatpush1.bf16.msra.mxu0 %v1807_v55 }
 0x162   :  { %3422 = vrot.lane.b32.xlu0 %v8716_v37, %s7787_s0  ;;  %2360 = vmatpush1.bf16.msra.mxu1 %v1809_v35  ;;  %v8728_v12 = vpop.permute.xlu1 %2987  ;;  %v8730_v20 = vpop.permute.xlu0 %2977  ;;  %v1345_v13 = vadd.f32 %v1344_v24, %v8261_v56  ;;  %v1408_v28 = vadd.f32 %v1407_v39, %v8261_v56 }
 0x163   :  { %15775 = vst [vmem:[#allocation51_spill] sm:$0xff] %v8730_v20  ;;  %v1346_v38 = vpop.f32.mrf.mxu0  ;;  %v1409_v51 = vpop.f32.mrf.mxu1 }
 0x164   :  { %7537 = vmatmul.mubr.msk.bf16.vlgmr.msra.gmra.mxu0 %vm1868_vm3, %v8334_v63  ;;  %v1347_v39 = vadd.f32 %v1346_v38, %v8268_v0  ;;  %v1406_v38 = vadd.f32 %v8720_v53, %v8261_v56 }
 0x165   :  { %3424 = vrot.lane.b32.xlu1 %v8726_v16, %s7787_s0  ;;  %v1348_v18 = vpop.f32.mrf.mxu0  ;;  %v1411_v15 = vpop.f32.mrf.mxu1  ;;  %7538 = vmatmul.mubr.msk.bf16.vlgmr.msra.gmra.mxu1 %vm1868_vm3, %v8334_v63 }
 0x166   :  { %2997 = vrot.lane.b32.xlu0 %v8693_v41, %s7788_s23  ;;  %v8740_v40 = vpop.permute.xlu1 %2979  ;;  %v8742_v6 = vpop.permute.xlu0 %4685  ;;  %2463 = vmatprep.mubr.bf16.mxu1 %v15750_v45  ;;  %v1349_v31 = vadd.f32 %v1348_v18, %v8268_v0  ;;  %v1410_v18 = vadd.f32 %v1409_v51, %v8268_v0 }
 0x167   :  { %15776 = vst [vmem:[#allocation52_spill] sm:$0xff] %v8740_v40  ;;  %2420 = vmatprep.mubr.bf16.mxu0 %v15750_v45  ;;  %v1352_v43 = vpop.f32.mrf.mxu0  ;;  %v1415_v8 = vpop.f32.mrf.mxu1 }
 0x168   :  { %v1617_v51 = vmax.f32 %v1349_v31, 0.0  ;;  %v1616_v31 = vmax.f32 %v1347_v39, 0.0 }
 0x169   :  { %2999 = vrot.lane.b32.xlu1 %v8707_v60, %s7788_s23  ;;  %v1354_v42 = vpop.f32.mrf.mxu0  ;;  %v1417_v62 = vpop.f32.mrf.mxu1 }
 0x16a   :  { %3005 = vrot.lane.b32.xlu0 %v8716_v37, %s7788_s23  ;;  %v8750_v7 = vpop.permute.xlu1 %4687  ;;  %v8752_v63 = vpop.permute.xlu0 %4677  ;;  %v1355_v17 = vadd.f32 %v1354_v42, %v8263_v59  ;;  %v1418_v46 = vadd.f32 %v1417_v62, %v8263_v59  ;;  %v1412_v42 = vadd.f32 %v1411_v15, %v8268_v0 }
 0x16b   :  { %15777 = vst [vmem:[#allocation53_spill] sm:$0xff] %v8752_v63  ;;  %v1356_v55 = vpop.f32.mrf.mxu0  ;;  %v1419_v35 = vpop.f32.mrf.mxu1 }
 0x16c   :  { %v1357_v47 = vadd.f32 %v1356_v55, %v8270_v2  ;;  %v1420_v3 = vadd.f32 %v1419_v35, %v8270_v2  ;;  %v1353_v55 = vadd.f32 %v1352_v43, %v8263_v59  ;;  %v1416_v35 = vadd.f32 %v1415_v8, %v8263_v59 }
 0x16d   :  { %3007 = vrot.lane.b32.xlu1 %v8726_v16, %s7788_s23  ;;  %v1358_v62 = vpop.f32.mrf.mxu0  ;;  %v1421_v50 = vpop.f32.mrf.mxu1  ;;  %v1649_v15 = vmax.f32 %v1355_v17, 0.0  ;;  %v1651_v57 = vmax.f32 %v1418_v46, 0.0  ;;  %v1619_v17 = vmax.f32 %v1412_v42, 0.0  ;;  %v1618_v42 = vmax.f32 %v1410_v18, 0.0 }
 0x16e   :  { %4697 = vrot.lane.b32.xlu0 %v8693_v41, %s7789_s24  ;;  %v1359_v5 = vadd.f32 %v1358_v62, %v8270_v2  ;;  %v1422_v61 = vadd.f32 %v1421_v50, %v8270_v2  ;;  %v1680_v4 = vmax.f32 %v1357_v47, 0.0  ;;  %v1682_v43 = vmax.f32 %v1420_v3, 0.0 }
 0x16f   :  { %v8770_v24 = vpop.permute.xlu1 %4679  ;;  %v8774_v21 = vpop.permute.xlu0 %4228  ;;  %v1343_v50 = vadd.f32 %v8718_v29, %v8261_v56  ;;  %v1587_v29 = vmax.f32 %v1408_v28, 0.0 }
 0x170   :  { %15778 = vst [vmem:[#allocation54_spill] sm:$0xff] %v8770_v24  ;;  %15779 = vst [vmem:[#allocation55_spill] sm:$0xff] %v8774_v21  ;;  %v8776_v49 = vpop.f32.mrf.mxu0  ;;  %v1681_v54 = vmax.f32 %v1359_v5, 0.0  ;;  %v1683_v8 = vmax.f32 %v1422_v61, 0.0  ;;  %v8778_v30 = vpop.f32.mrf.mxu1  ;;  %v1648_v5 = vmax.f32 %v1353_v55, 0.0  ;;  %v1650_v61 = vmax.f32 %v1416_v35, 0.0 }
 0x171   :  { %15780 = vst [vmem:[#allocation56_spill] sm:$0xff] %v8776_v49  ;;  %15781 = vst [vmem:[#allocation57_spill] sm:$0xff] %v8778_v30  ;;  %4699 = vrot.lane.b32.xlu1 %v8707_v60, %s7789_s24  ;;  %v1585_v49 = vmax.f32 %v1345_v13, 0.0  ;;  %v15789_v13 = vlaneseq  ;;  %v1584_v35 = vmax.f32 %v1343_v50, 0.0 }
 0x172   :  { %4705 = vrot.lane.b32.xlu0 %v8716_v37, %s7789_s24  ;;  %v8788_v47 = vpop.f32.mrf.mxu0  ;;  %v8790_v3 = vpop.f32.mrf.mxu1  ;;  %v1846_v62 = vpack.c.bf16 %v1683_v8, %v1651_v57  ;;  %v1844_v30 = vpack.c.bf16 %v1681_v54, %v1649_v15  ;;  %v1843_v10 = vpack.c.bf16 %v1680_v4, %v1648_v5  ;;  %v1845_v36 = vpack.c.bf16 %v1682_v43, %v1650_v61 }
 0x173   :  { %15782 = vst [vmem:[#allocation58_spill] sm:$0xff] %v8788_v47  ;;  %15783 = vst [vmem:[#allocation59_spill] sm:$0xff] %v8790_v3  ;;  %v8792_v46 = vpop.permute.xlu1 %4230  ;;  %v8794_v14 = vpop.permute.xlu0 %4236  ;;  %v1814_v57 = vpack.c.bf16 %v1619_v17, %v1587_v29  ;;  %v1812_v28 = vpack.c.bf16 %v1617_v51, %v1585_v49  ;;  %v8807_v55 = vshrl.u32 %v15789_v13, 7  ;;  %v1586_v4 = vmax.f32 %v1406_v38, 0.0  ;;  %v8832_v17 = vld [vmem:[%s15118_s7 + $0x8] sm:$0xff] }
 0x174   :  { %15784 = vst [vmem:[#allocation60_spill] sm:$0xff] %v8792_v46  ;;  %15785 = vst [vmem:[#allocation61_spill] sm:$0xff] %v8794_v14  ;;  %v8796_v53 = vpop.f32.mrf.mxu0  ;;  %v8798_v34 = vpop.f32.mrf.mxu1  ;;  %2443 = vmatprep.subr.bf16.mxu1 %v1846_v62  ;;  %2400 = vmatprep.subr.bf16.mxu0 %v1844_v30  ;;  %v1811_v43 = vpack.c.bf16 %v1616_v31, %v1584_v35 }
 0x175   :  { %15786 = vst [vmem:[#allocation62_spill] sm:$0xff] %v8796_v53  ;;  %15787 = vst [vmem:[#allocation63_spill] sm:$0xff] %v8798_v34  ;;  %4707 = vrot.lane.b32.xlu1 %v8726_v16, %s7789_s24  ;;  %2401 = vmatpush1.bf16.msra.mxu0 %v1843_v10  ;;  %v1813_v8 = vpack.c.bf16 %v1618_v42, %v1586_v4  ;;  %v8825_v10 = vsub.s32 1, %v8807_v55  ;;  %v8846_v42 = vld [vmem:[%s15114_s3] sm:$0xff]  }
 0x176   :  { %4248 = vrot.lane.b32.xlu0 %v8693_v41, %s7790_s1  ;;  %v8804_v54 = vpop.f32.mrf.mxu0  ;;  %v8809_v39 = vpop.f32.mrf.mxu1  ;;  %2444 = vmatpush1.bf16.msra.mxu1 %v1845_v36  ;;  %v8822_v36 = vand.u32 127, %v15789_v13  ;;  %v859_v13 = vadd.f32 %v8451_v23, %v8290_v33  ;;  %v8871_v23 = vsub.s32 0, %v8807_v55 }
 0x177   :  { %15788 = vst [vmem:[#allocation64_spill] sm:$0xff] %v8804_v54  ;;  %15790 = vst [vmem:[#allocation65_spill] sm:$0xff] %v8809_v39  ;;  %v8811_v18 = vpop.permute.xlu1 %4238  ;;  %2445 = vmatprep.subr.bf16.mxu1 %v1814_v57  ;;  %2402 = vmatprep.subr.bf16.mxu0 %v1812_v28  ;;  %v3594_v31 = vrot.slane %v8832_v17, %v8825_v10 }
 0x178   :  { %15791 = vst [vmem:[#allocation66_spill] sm:$0xff] %v8811_v18  ;;  %v8813_v15 = vpop.permute.xlu0 %3811  ;;  %v8815_v30 = vpop.f32.mrf.mxu0  ;;  %15793 = vst [vmem:[#allocation68_spill] sm:$0xff] %v8825_v10  ;;  %vm3522_vm4 = vcmp.lt.s32.totalorder %v8822_v36, 64  ;;  %v8880_v54 = vmax.f32 %v859_v13, 0.0  ;;  %vm3105_vm5 = vcmp.lt.s32.totalorder %v8822_v36, 65  ;;  %v3177_v13 = vrot.slane %v8832_v17, %v8871_v23 }
 0x179   :  { %15792 = vst [vmem:[#allocation67_spill] sm:$0xff] %v8813_v15  ;;  %v1531_v49 = vpop.f32.mrf.mxu1  ;;  %4250 = vrot.lane.b32.xlu1 %v8707_v60, %s7790_s1  ;;  %2403 = vmatpush1.bf16.msra.mxu0 %v1811_v43  ;;  %v863_v43 = vadd.f32 %v8468_v9, %v8298_v48  ;;  %15796 = vst [vmem:[#allocation71_spill] sm:$0xff] %v8871_v23  ;;  %vm15700_vm6 = vcmp.lt.s32.totalorder %v8822_v36, 127  ;;  %vm15698_vm8 = vcmp.lt.s32.totalorder %v8822_v36, 1  ;;  %vm15691_vm9 = vcmp.lt.s32.totalorder %v8822_v36, 63 }
 0x17a   :  { %4256 = vrot.lane.b32.xlu0 %v8716_v37, %s7790_s1  ;;  %v1470_v50 = vpop.f32.mrf.mxu0  ;;  %2446 = vmatpush1.bf16.msra.mxu1 %v1813_v8  ;;  %15798 = vst [vmem:[#allocation73_spill] sm:$0xff] %v8880_v54 }
 0x17b   :  { %v1533_v38 = vpop.f32.mrf.mxu1  ;;  %v8827_v51 = vpop.permute.xlu1 %3813  ;;  %v8884_v3 = vmax.f32 %v863_v43, 0.0 }
 0x17c   :  { %15794 = vst [vmem:[#allocation69_spill] sm:$0xff] %v8827_v51  ;;  %v8834_v5 = vpop.permute.xlu0 %3819  ;;  %v1472_v61 = vpop.f32.mrf.mxu0  ;;  %7539 = vmatmul.mubr.msk.bf16.vlgmr.msra.gmra.mxu0 %vm1868_vm3, %v8846_v42  ;;  %v1534_v14 = vadd.f32 %v1533_v38, %v8261_v56 }
 0x17d   :  { %v1535_v62 = vpop.f32.mrf.mxu1  ;;  %4258 = vrot.lane.b32.xlu1 %v8726_v16, %s7790_s1  ;;  %7540 = vmatmul.mubr.msk.bf16.vlgmr.msra.gmra.mxu1 %vm1868_vm3, %v8846_v42  ;;  %15800 = vst [vmem:[#allocation75_spill] sm:$0xff] %v8884_v3 }
 0x17e   :  { %3831 = vrot.lane.b32.xlu0 %v8693_v41, %s7791_s25  ;;  %v1474_v29 = vpop.f32.mrf.mxu0  ;;  %2506 = vmatprep.mubr.bf16.mxu0 %v15750_v45  ;;  %v8898_v41 = vadd.f32 %v1531_v49, %v8261_v56  ;;  %v1536_v38 = vadd.f32 %v1535_v62, %v8268_v0 }
 0x17f   :  { %v1537_v57 = vpop.f32.mrf.mxu1  ;;  %v8850_v28 = vpop.permute.xlu1 %3821  ;;  %2549 = vmatprep.mubr.bf16.mxu1 %v15750_v45  ;;  %v1475_v18 = vadd.f32 %v1474_v29, %v8268_v0 }
 0x180   :  { %15795 = vst [vmem:[#allocation70_spill] sm:$0xff] %v8850_v28  ;;  %v8857_v35 = vpop.permute.xlu0 %3398  ;;  %v1478_v4 = vpop.f32.mrf.mxu0  ;;  %v1538_v43 = vadd.f32 %v1537_v57, %v8268_v0 }
 0x181   :  { %v8866_v8 = vsel %vm3522_vm4, %v8691_v22, %v8857_v35  ;;  %v1541_v15 = vpop.f32.mrf.mxu1  ;;  %3833 = vrot.lane.b32.xlu1 %v8707_v60, %s7791_s25  ;;  %v1479_v29 = vadd.f32 %v1478_v4, %v8263_v59  ;;  %v1469_v4 = vadd.f32 %v8815_v30, %v8261_v56 }
 0x182   :  { %v8874_v39 = vmul.f32 %v3594_v31, %v8866_v8  ;;  %3839 = vrot.lane.b32.xlu0 %v8716_v37, %s7791_s25  ;;  %v1480_v9 = vpop.f32.mrf.mxu0  ;;  %v1542_v57 = vadd.f32 %v1541_v15, %v8263_v59  ;;  %v1623_v15 = vmax.f32 %v1538_v43, 0.0 }
 0x183   :  { %v1543_v45 = vpop.f32.mrf.mxu1  ;;  %v8878_v51 = vpop.permute.xlu1 %3400  ;;  %v1481_v53 = vadd.f32 %v1480_v9, %v8263_v59  ;;  %v1652_v43 = vmax.f32 %v1479_v29, 0.0 }
 0x184   :  { %15797 = vst [vmem:[#allocation72_spill] sm:$0xff] %v8874_v39  ;;  %v8882_v22 = vpop.permute.xlu0 %3406  ;;  %v1482_v34 = vpop.f32.mrf.mxu0  ;;  %v8890_v47 = vsel %vm3522_vm4, %v8711_v26, %v8878_v51  ;;  %v1544_v49 = vadd.f32 %v1543_v45, %v8263_v59 }
 0x185   :  { %15799 = vst [vmem:[#allocation74_spill] sm:$0xff] %v8882_v22  ;;  %v1545_v60 = vpop.f32.mrf.mxu1  ;;  %3841 = vrot.lane.b32.xlu1 %v8726_v16, %s7791_s25  ;;  %v8903_v37 = vmul.f32 %v3594_v31, %v8890_v47  ;;  %v1471_v16 = vadd.f32 %v1470_v50, %v8261_v56  ;;  %v1483_v31 = vadd.f32 %v1482_v34, %v8270_v2 }
 0x186   :  { %3426 = vrot.lane.b32.xlu0 %v8880_v54, %s7787_s0  ;;  %v1484_v26 = vpop.f32.mrf.mxu0  ;;  %v1546_v9 = vadd.f32 %v1545_v60, %v8270_v2  ;;  %v1473_v50 = vadd.f32 %v1472_v61, %v8268_v0  ;;  %v1655_v60 = vmax.f32 %v1544_v49, 0.0  ;;  %v1654_v61 = vmax.f32 %v1542_v57, 0.0 }
 0x187   :  { %15801 = vst [vmem:[#allocation76_spill] sm:$0xff] %v8903_v37  ;;  %v1547_v23 = vpop.f32.mrf.mxu1  ;;  %v8911_v22 = vpop.permute.xlu1 %3408  ;;  %v1485_v10 = vadd.f32 %v1484_v26, %v8270_v2  ;;  %v1684_v26 = vmax.f32 %v1483_v31, 0.0  ;;  %v1589_v31 = vmax.f32 %v1471_v16, 0.0  ;;  %v1590_v16 = vmax.f32 %v8898_v41, 0.0 }
 0x188   :  { %15802 = vst [vmem:[#allocation77_spill] sm:$0xff] %v8911_v22  ;;  %v8917_v58 = vpop.permute.xlu0 %2981  ;;  %v1548_v45 = vadd.f32 %v1547_v23, %v8270_v2  ;;  %v1653_v22 = vmax.f32 %v1481_v53, 0.0  ;;  %v1686_v34 = vmax.f32 %v1546_v9, 0.0  ;;  %v1621_v2 = vmax.f32 %v1475_v18, 0.0 }
 0x189   :  { %3428 = vrot.lane.b32.xlu1 %v8884_v3, %s7787_s0  ;;  %v1685_v1 = vmax.f32 %v1485_v10, 0.0  ;;  %v8931_v59 = vsel %vm3105_vm5, %v8730_v20, %v8917_v58  ;;  %v1591_v23 = vmax.f32 %v1534_v14, 0.0  ;;  %v1622_v9 = vmax.f32 %v1536_v38, 0.0 }
 0x18a   :  { %3009 = vrot.lane.b32.xlu0 %v8880_v54, %s7788_s23  ;;  %v1687_v28 = vmax.f32 %v1548_v45, 0.0  ;;  %v8934_v53 = vmul.f32 %v3177_v13, %v8931_v59  ;;  %v8943_v18 = vsub.s32 7, %v8807_v55  ;;  %v1847_v45 = vpack.c.bf16 %v1684_v26, %v1652_v43 }
 0x18b   :  { %v2984_v0 = vpop.permute.xlu1 %2983  ;;  %v1848_v62 = vpack.c.bf16 %v1685_v1, %v1653_v22  ;;  %v1849_v1 = vpack.c.bf16 %v1686_v34, %v1654_v61  ;;  %v1620_v22 = vmax.f32 %v1473_v50, 0.0  ;;  %v1818_v57 = vpack.c.bf16 %v1623_v15, %v1591_v23 }
 0x18c   :  { %15803 = vst [vmem:[#allocation78_spill] sm:$0xff] %v8934_v53  ;;  %v8936_v10 = vpop.permute.xlu0 %2989  ;;  %v1850_v49 = vpack.c.bf16 %v1687_v28, %v1655_v60  ;;  %15804 = vst [vmem:[#allocation79_spill] sm:$0xff] %v8943_v18  ;;  %v3167_v56 = vsel %vm3105_vm5, %v8740_v40, %v2984_v0  ;;  %v1816_v30 = vpack.c.bf16 %v1621_v2, %v1589_v31  ;;  %v2913_v28 = vld [vmem:[%s15118_s7] sm:$0xff]  ;;  %v8957_v38 = vsub.s32 6, %v8807_v55 }
 0x18d   :  { %3011 = vrot.lane.b32.xlu1 %v8884_v3, %s7788_s23  ;;  %v8959_v50 = vmul.f32 %v3177_v13, %v3167_v56  ;;  %2486 = vmatprep.subr.bf16.mxu0 %v1848_v62  ;;  %v1588_v15 = vmax.f32 %v1469_v4, 0.0  ;;  %v8965_v34 = vsel %vm3522_vm4, %v8878_v51, %v8689_v19  ;;  %v922_v41 = vadd.f32 %v8454_v32, %v8290_v33 }
 0x18e   :  { %4709 = vrot.lane.b32.xlu0 %v8880_v54, %s7789_s24  ;;  %2529 = vmatprep.subr.bf16.mxu1 %v1850_v49  ;;  %15805 = vst [vmem:[#allocation80_spill] sm:$0xff] %v8957_v38  ;;  %v1817_v60 = vpack.c.bf16 %v1622_v9, %v1590_v16  ;;  %v5325_v13 = vrot.slane %v8832_v17, %v8943_v18  ;;  %v8989_v23 = vsub.s32 5, %v8807_v55 }
 0x18f   :  { %v8950_v14 = vpop.permute.xlu1 %2991  ;;  %15806 = vst [vmem:[#allocation81_spill] sm:$0xff] %v8959_v50  ;;  %2530 = vmatpush1.bf16.msra.mxu1 %v1849_v1  ;;  %2487 = vmatpush1.bf16.msra.mxu0 %v1847_v45  ;;  %v1815_v26 = vpack.c.bf16 %v1620_v22, %v1588_v15  ;;  %v5321_v2 = vrot.slane %v2913_v28, %v8943_v18  ;;  %v9004_v31 = vmax.f32 %v922_v41, 0.0  ;;  %v15829_v50 = vld [vmem:[#allocation71_spill] sm:$0xff] }
 0x190   :  { %v4682_v29 = vpop.permute.xlu0 %4681  ;;  %2531 = vmatprep.subr.bf16.mxu1 %v1818_v57  ;;  %2488 = vmatprep.subr.bf16.mxu0 %v1816_v30  ;;  %v8976_v61 = vsel %vm3522_vm4, %v8857_v35, %v8671_v11  ;;  %v8981_v51 = vsel %vm3105_vm5, %v2984_v0, %v8728_v12  ;;  %v5479_v62 = vmul.f32 %v5325_v13, %v8965_v34 }
 0x191   :  { %4711 = vrot.lane.b32.xlu1 %v8884_v3, %s7789_s24  ;;  %v5101_v4 = vrot.slane %v8832_v17, %v8957_v38  ;;  %15807 = vst [vmem:[#allocation82_spill] sm:$0xff] %v8989_v23  ;;  %v926_v0 = vadd.f32 %v8470_v27, %v8298_v48  ;;  %v5478_v43 = vmul.f32 %v5321_v2, %v8890_v47  ;;  %15808 = vst [vmem:[#allocation83_spill] sm:$0xff] %v9004_v31 }
 0x192   :  { %3843 = vrot.lane.b32.xlu0 %v8880_v54, %s7791_s25  ;;  %v9002_v49 = vsel %vm3105_vm5, %v8917_v58, %v8713_v25  ;;  %v5447_v9 = vmul.f32 %v5325_v13, %v8976_v61  ;;  %v5446_v22 = vmul.f32 %v5321_v2, %v8866_v8  ;;  %v5097_v27 = vrot.slane %v2913_v28, %v8957_v38  ;;  %v9037_v13 = vld [vmem:[%s15116_s5 + $0x4] ss:$8 sps:$4 sm:$0xff]  }
 0x193   :  { %v4684_v32 = vpop.permute.xlu1 %4683  ;;  %2532 = vmatpush1.bf16.msra.mxu1 %v1817_v60  ;;  %2489 = vmatpush1.bf16.msra.mxu0 %v1815_v26  ;;  %v5255_v1 = vmul.f32 %v5101_v4, %v8981_v51  ;;  %v5223_v57 = vmul.f32 %v5101_v4, %v9002_v49  ;;  %v4877_v45 = vrot.slane %v8832_v17, %v8989_v23  ;;  %v9027_v30 = vmax.f32 %v926_v0, 0.0 }
 0x194   :  { %v8993_v35 = vpop.permute.xlu0 %4689  ;;  %v4865_v47 = vsel %vm15700_vm6, %v4684_v32, %v8750_v7  ;;  %v5511_v16 = vpack.c.bf16 %v5479_v62, %v5447_v9  ;;  %v5510_v15 = vpack.c.bf16 %v5478_v43, %v5446_v22  ;;  %v5254_v41 = vmul.f32 %v5097_v27, %v3167_v56  ;;  %15810 = vst [vmem:[#allocation85_spill] sm:$0xff] %v9037_v13 }
 0x195   :  { %3845 = vrot.lane.b32.xlu1 %v8884_v3, %s7791_s25  ;;  %15809 = vst [vmem:[#allocation84_spill] sm:$0xff] %v9027_v30  ;;  %v4864_v60 = vsel %vm15700_vm6, %v4682_v29, %v8742_v6  ;;  %v4867_v26 = vsel %vm15700_vm6, %v8770_v24, %v4684_v32  ;;  %v5031_v2 = vmul.f32 %v4877_v45, %v4865_v47  ;;  %v9052_v32 = vsub.s32 3, %v8807_v55 }
 0x196   :  { %3434 = vrot.lane.b32.xlu0 %v9004_v31, %s7787_s0  ;;  %7541 = vmatmul.mubr.msk.bf16.vlgmr.msra.gmra.mxu0 %vm1868_vm3, %v8846_v42  ;;  %v5287_v62 = vpack.c.bf16 %v5255_v1, %v5223_v57  ;;  %v5222_v56 = vmul.f32 %v5097_v27, %v8931_v59  ;;  %v4873_v4 = vrot.slane %v2913_v28, %v8989_v23  ;;  %v15822_v57 = vld [vmem:[#allocation77_spill] sm:$0xff] }
 0x197   :  { %v9016_v58 = vpop.permute.xlu1 %4691  ;;  %7542 = vmatmul.mubr.msk.bf16.vlgmr.msra.gmra.mxu1 %vm1868_vm3, %v8846_v42  ;;  %5789 = vmatprep.subr.bf16.mxu0 %v5511_v16  ;;  %v4866_v0 = vsel %vm15700_vm6, %v8752_v63, %v4682_v29  ;;  %v4999_v43 = vmul.f32 %v4877_v45, %v4864_v60  ;;  %15811 = vst [vmem:[#allocation86_spill] sm:$0xff] %v9052_v32  ;;  %v15826_v63 = vld [vmem:[#allocation13_spill] sm:$0xff] }
 0x198   :  { %v9025_v8 = vpop.permute.xlu0 %4232  ;;  %5790 = vmatpush1.bf16.msra.mxu0 %v5510_v15  ;;  %v5286_v28 = vpack.c.bf16 %v5254_v41, %v5222_v56  ;;  %v5030_v9 = vmul.f32 %v4873_v4, %v4867_v26  ;;  %7578 = vmatprep.mubr.msk.bf16.mxu1 %vm15709_vm7, %v9037_v13  ;;  %v4998_v22 = vmul.f32 %v4873_v4, %v4866_v0 }
 0x199   :  { %3436 = vrot.lane.b32.xlu1 %v9027_v30, %s7787_s0  ;;  %5791 = vmatprep.subr.bf16.mxu0 %v5287_v62  ;;  %v5063_v1 = vpack.c.bf16 %v5031_v2, %v4999_v43  ;;  %v4428_v45 = vrot.slane %v8832_v17, %v9052_v32  ;;  %v4417_v41 = vsel %vm15698_vm8, %v8774_v21, %v9025_v8  ;;  %v7544_v17 = vld [vmem:[%s15118_s7 + $0x108] ss:$0 sm:$0xff]  ;;  %v9117_v43 = vld [vmem:[%s15118_s7 + $0x20] sm:$0xff] }
 0x19a   :  { %3017 = vrot.lane.b32.xlu0 %v9004_v31, %s7788_s23  ;;  %7577 = vmatprep.mubr.msk.bf16.mxu0 %vm15709_vm7, %v9037_v13  ;;  %v5062_v15 = vpack.c.bf16 %v5030_v9, %v4998_v22  ;;  %v4646_v26 = vpack.c.bf16 %v8430_v44, %v8426_v52  ;;  %v15816_v52 = vld [vmem:[#allocation70_spill] sm:$0xff]  ;;  %v3189_v40 = vrot.slane %v9117_v43, %v15829_v50  ;;  %v15834_v21 = vld [vmem:[#allocation15_spill] sm:$0xff] }
 0x19b   :  { %v9046_v42 = vpop.permute.xlu1 %4234  ;;  %v4550_v56 = vmul.f32 %v4428_v45, %v4417_v41 }
 0x19c   :  { %v9056_v59 = vpop.permute.xlu0 %4240  ;;  %5792 = vmatpush1.bf16.msra.mxu0 %v5286_v28  ;;  %v4418_v27 = vsel %vm15698_vm8, %v8792_v46, %v9046_v42  ;;  %v9122_v28 = vld [vmem:[%s15118_s7 + $0x10] sm:$0xff] }
 0x19d   :  { %15812 = vst [vmem:[#allocation87_spill] sm:$0xff] %v9056_v59  ;;  %3019 = vrot.lane.b32.xlu1 %v9027_v30, %s7788_s23  ;;  %5793 = vmatprep.subr.bf16.mxu0 %v5063_v1  ;;  %v4582_v60 = vmul.f32 %v4428_v45, %v4418_v27  ;;  %v5329_v22 = vrot.slane %v9122_v28, %v8943_v18  ;;  %v15819_v27 = vld [vmem:[#allocation9_spill] sm:$0xff]  ;;  %v15820_v45 = vld [vmem:[#allocation8_spill] sm:$0xff] }
 0x19e   :  { %4717 = vrot.lane.b32.xlu0 %v9004_v31, %s7789_s24  ;;  %v5105_v24 = vrot.slane %v9122_v28, %v8957_v38 }
 0x19f   :  { %v9071_v47 = vpop.permute.xlu1 %4242  ;;  %v4614_v1 = vpack.c.bf16 %v4582_v60, %v4550_v56  ;;  %v15823_v60 = vld [vmem:[#allocation68_spill] sm:$0xff] }
 0x1a0   :  { %15813 = vst [vmem:[#allocation88_spill] sm:$0xff] %v9071_v47  ;;  %v9080_v16 = vpop.permute.xlu0 %3815  ;;  %5794 = vmatpush1.bf16.msra.mxu0 %v5062_v15  ;;  %v15821_v15 = vpack.c.bf16 %v15819_v27, %v15820_v45  ;;  %v3606_v56 = vrot.slane %v9117_v43, %v15823_v60  ;;  %v861_v45 = vadd.f32 %v15826_v63, %v8290_v33 }
 0x1a1   :  { %15814 = vst [vmem:[#allocation89_spill] sm:$0xff] %v9080_v16  ;;  %v9095_v2 = vsel %vm15691_vm9, %v9080_v16, %v8834_v5  ;;  %4719 = vrot.lane.b32.xlu1 %v9027_v30, %s7789_s24  ;;  %5795 = vmatprep.subr.bf16.mxu0 %v4646_v26  ;;  %v9137_v26 = vld [vmem:[%s15118_s7 + $0x18] sm:$0xff]  ;;  %v9185_v63 = vsel %vm3105_vm5, %v8728_v12, %v8950_v14 }
 0x1a2   :  { %4260 = vrot.lane.b32.xlu0 %v8880_v54, %s7790_s1  ;;  %v9125_v9 = vmul.f32 %v7544_v17, %v9095_v2  ;;  %v5109_v39 = vrot.slane %v9137_v26, %v8957_v38  ;;  %v9205_v16 = vmax.f32 %v861_v45, 0.0 }
 0x1a3   :  { %v9099_v62 = vpop.permute.xlu1 %3817 }
 0x1a4   :  { %15815 = vst [vmem:[#allocation90_spill] sm:$0xff] %v9099_v62  ;;  %v9107_v44 = vsel %vm15691_vm9, %v9099_v62, %v15816_v52  ;;  %v9109_v4 = vpop.permute.xlu0 %3823  ;;  %15818 = vst [vmem:[#allocation91_spill] sm:$0xff] %v9125_v9  ;;  %5796 = vmatpush1.bf16.msra.mxu0 %v15821_v15  ;;  %v15825_v15 = vld [vmem:[#allocation74_spill] sm:$0xff]  ;;  %v865_v62 = vadd.f32 %v15834_v21, %v8298_v48  ;;  %v5256_v21 = vmul.f32 %v5105_v24, %v9185_v63 }
 0x1a5   :  { %v9112_v0 = vmul.f32 %v7544_v17, %v9107_v44  ;;  %v9143_v17 = vsel %vm3522_vm4, %v8689_v19, %v15822_v57  ;;  %5797 = vmatprep.subr.bf16.mxu0 %v4614_v1  ;;  %4262 = vrot.lane.b32.xlu1 %v8884_v3, %s7790_s1  ;;  %v9157_v29 = vsel %vm3522_vm4, %v8671_v11, %v15825_v15  ;;  %v15827_v11 = vld [vmem:[#allocation14_spill] sm:$0xff] }
 0x1a6   :  { %4268 = vrot.lane.b32.xlu0 %v9004_v31, %s7790_s1  ;;  %v5333_v19 = vrot.slane %v9137_v26, %v8943_v18  ;;  %v924_v9 = vadd.f32 %v15827_v11, %v8290_v33  ;;  %15833 = vst [vmem:[#allocation14_spill] sm:$0xff] %v9205_v16  ;;  %v9244_v45 = vmax.f32 %v865_v62, 0.0 }
 0x1a7   :  { %15817 = vst [vmem:[#allocation70_spill] sm:$0xff] %v9112_v0  ;;  %v9132_v41 = vpop.permute.xlu1 %3825  ;;  %v5480_v0 = vmul.f32 %v5329_v22, %v9143_v17 }
 0x1a8   :  { %v9149_v27 = vpop.permute.xlu0 %3410  ;;  %15841 = vst [vmem:[#allocation95_spill] sm:$0xff] %v9244_v45 }
 0x1a9   :  { %15824 = vst [vmem:[#allocation9_spill] sm:$0xff] %v9149_v27  ;;  %v3577_v1 = vsel %vm3522_vm4, %v15825_v15, %v9149_v27  ;;  %v5448_v15 = vmul.f32 %v5329_v22, %v9157_v29  ;;  %4270 = vrot.lane.b32.xlu1 %v9027_v30, %s7790_s1 }
 0x1aa   :  { %v9187_v37 = vmul.f32 %v3606_v56, %v3577_v1  ;;  %v5449_v20 = vmul.f32 %v5333_v19, %v3577_v1  ;;  %3851 = vrot.lane.b32.xlu0 %v9004_v31, %s7791_s25  ;;  %v4885_v1 = vrot.slane %v9137_v26, %v8989_v23 }
 0x1ab   :  { %v9174_v53 = vpop.permute.xlu1 %3412  ;;  %v5512_v3 = vpack.c.bf16 %v5480_v0, %v5448_v15 }
 0x1ac   :  { %15828 = vst [vmem:[#allocation8_spill] sm:$0xff] %v9174_v53  ;;  %15830 = vst [vmem:[#allocation77_spill] sm:$0xff] %v9187_v37  ;;  %v3578_v11 = vsel %vm3522_vm4, %v15822_v57, %v9174_v53  ;;  %v9195_v27 = vpop.permute.xlu0 %2993  ;;  %v15835_v57 = vld [vmem:[#allocation16_spill] sm:$0xff] }
 0x1ad   :  { %15831 = vst [vmem:[#allocation74_spill] sm:$0xff] %v9195_v27  ;;  %v9199_v22 = vmul.f32 %v3606_v56, %v3578_v11  ;;  %v5481_v12 = vmul.f32 %v5333_v19, %v3578_v11  ;;  %v3160_v46 = vsel %vm3105_vm5, %v8936_v10, %v9195_v27  ;;  %v928_v53 = vadd.f32 %v15835_v57, %v8298_v48 }
 0x1ae   :  { %v9217_v56 = vsel %vm3105_vm5, %v8713_v25, %v8936_v10  ;;  %v4863_v57 = vsel %vm15700_vm6, %v8750_v7, %v9016_v58  ;;  %v9228_v0 = vmul.f32 %v3189_v40, %v3160_v46  ;;  %3853 = vrot.lane.b32.xlu1 %v9027_v30, %s7791_s25  ;;  %v5225_v15 = vmul.f32 %v5109_v39, %v3160_v46 }
 0x1af   :  { %15832 = vst [vmem:[#allocation13_spill] sm:$0xff] %v9199_v22  ;;  %v9221_v19 = vpop.permute.xlu1 %2995  ;;  %v5513_v11 = vpack.c.bf16 %v5481_v12, %v5449_v20  ;;  %v9238_v20 = vmax.f32 %v924_v9, 0.0  ;;  %3430 = vrot.lane.b32.xlu0 %v9205_v16, %s7787_s0  ;;  %v5224_v37 = vmul.f32 %v5105_v24, %v9217_v56  ;;  %v4881_v22 = vrot.slane %v9122_v28, %v8989_v23 }
 0x1b0   :  { %15836 = vst [vmem:[#allocation15_spill] sm:$0xff] %v9221_v19  ;;  %15837 = vst [vmem:[#allocation16_spill] sm:$0xff] %v9228_v0  ;;  %v3161_v25 = vsel %vm3105_vm5, %v8950_v14, %v9221_v19  ;;  %v9236_v10 = vpop.permute.xlu0 %4693  ;;  %v9258_v46 = vsub.s32 2, %v8807_v55 }
 0x1b1   :  { %15838 = vst [vmem:[#allocation92_spill] sm:$0xff] %v9236_v10  ;;  %15839 = vst [vmem:[#allocation93_spill] sm:$0xff] %v9238_v20  ;;  %v9242_v12 = vmul.f32 %v3189_v40, %v3161_v25  ;;  %v5257_v7 = vmul.f32 %v5109_v39, %v3161_v25  ;;  %5832 = vmatprep.subr.bf16.mxu1 %v5513_v11  ;;  %v4860_v14 = vsel %vm15700_vm6, %v8993_v35, %v9236_v10 }
 0x1b2   :  { %5833 = vmatpush1.bf16.msra.mxu1 %v5512_v3  ;;  %v4862_v40 = vsel %vm15700_vm6, %v8742_v6, %v8993_v35  ;;  %15842 = vst [vmem:[#allocation96_spill] sm:$0xff] %v9258_v46  ;;  %v5288_v9 = vpack.c.bf16 %v5256_v21, %v5224_v37  ;;  %v5032_v11 = vmul.f32 %v4881_v22, %v4863_v57  ;;  %v9276_v37 = vmax.f32 %v928_v53, 0.0  ;;  %v15846_v57 = vld [vmem:[#allocation66_spill] sm:$0xff] }
 0x1b3   :  { %15840 = vst [vmem:[#allocation94_spill] sm:$0xff] %v9242_v12  ;;  %v9262_v39 = vpop.permute.xlu1 %4695  ;;  %v5289_v62 = vpack.c.bf16 %v5257_v7, %v5225_v15  ;;  %3432 = vrot.lane.b32.xlu1 %v9244_v45, %s7787_s0  ;;  %v5001_v55 = vmul.f32 %v4885_v1, %v4860_v14  ;;  %3438 = vrot.lane.b32.xlu0 %v9238_v20, %s7787_s0  ;;  %v15848_v7 = vld [vmem:[#allocation11_spill] sm:$0xff] }
 0x1b4   :  { %15843 = vst [vmem:[#allocation97_spill] sm:$0xff] %v9262_v39  ;;  %v4861_v3 = vsel %vm15700_vm6, %v9016_v58, %v9262_v39  ;;  %v9270_v6 = vpop.permute.xlu0 %3827  ;;  %v4023_v25 = vrot.slane %v9117_v43, %v9258_v46  ;;  %15845 = vst [vmem:[#allocation99_spill] sm:$0xff] %v9276_v37  ;;  %v5000_v21 = vmul.f32 %v4881_v22, %v4862_v40  ;;  %v15849_v22 = vld [vmem:[#allocation12_spill] sm:$0xff] }
 0x1b5   :  { %15844 = vst [vmem:[#allocation98_spill] sm:$0xff] %v9270_v6  ;;  %v5033_v35 = vmul.f32 %v4885_v1, %v4861_v3  ;;  %5834 = vmatprep.subr.bf16.mxu1 %v5289_v62  ;;  %v4414_v15 = vsel %vm15698_vm8, %v15846_v57, %v9071_v47  ;;  %v9286_v58 = vsel %vm15691_vm9, %v9109_v4, %v9270_v6  ;;  %v15850_v3 = vld [vmem:[#allocation61_spill] sm:$0xff] }
 0x1b6   :  { %5835 = vmatpush1.bf16.msra.mxu1 %v5288_v9  ;;  %v4436_v1 = vrot.slane %v9137_v26, %v9052_v32  ;;  %v4648_v14 = vpack.c.bf16 %v15849_v22, %v15848_v7  ;;  %v5064_v40 = vpack.c.bf16 %v5032_v11, %v5000_v21  ;;  %v4416_v62 = vsel %vm15698_vm8, %v9046_v42, %v15846_v57 }
 0x1b7   :  { %v9290_v43 = vpop.permute.xlu1 %3829  ;;  %v5065_v53 = vpack.c.bf16 %v5033_v35, %v5001_v55  ;;  %v4413_v9 = vsel %vm15698_vm8, %v15850_v3, %v9056_v59  ;;  %3440 = vrot.lane.b32.xlu1 %v9276_v37, %s7787_s0  ;;  %v9311_v21 = vmul.f32 %v4023_v25, %v9286_v58  ;;  %3013 = vrot.lane.b32.xlu0 %v9205_v16, %s7788_s23  ;;  %v9599_v59 = vld [vmem:[%s15118_s7 + $0x38] sm:$0xff] }
 0x1b8   :  { %15847 = vst [vmem:[#allocation66_spill] sm:$0xff] %v9290_v43  ;;  %v3995_v55 = vsel %vm15691_vm9, %v9132_v41, %v9290_v43  ;;  %v9308_v35 = vpop.permute.xlu0 %3418  ;;  %v4584_v11 = vmul.f32 %v4436_v1, %v4414_v15  ;;  %v4432_v57 = vrot.slane %v9122_v28, %v9052_v32  ;;  %v9323_v7 = vsel %vm15691_vm9, %v15816_v52, %v9132_v41 }
 0x1b9   :  { %15851 = vst [vmem:[#allocation11_spill] sm:$0xff] %v9311_v21  ;;  %v9315_v42 = vmul.f32 %v4023_v25, %v3995_v55  ;;  %5836 = vmatprep.subr.bf16.mxu1 %v5065_v53  ;;  %v4415_v15 = vsel %vm15698_vm8, %v9025_v8, %v15850_v3  ;;  %v4552_v22 = vmul.f32 %v4436_v1, %v4413_v9  ;;  %v15854_v3 = vld [vmem:[#allocation7_spill] sm:$0xff] }
 0x1ba   :  { %5837 = vmatpush1.bf16.msra.mxu1 %v5064_v40  ;;  %v4019_v25 = vrot.slane %v9137_v26, %v9258_v46  ;;  %v4583_v0 = vmul.f32 %v4432_v57, %v4416_v62  ;;  %v3996_v52 = vsel %vm15691_vm9, %v8834_v5, %v9109_v4  ;;  %v4551_v40 = vmul.f32 %v4432_v57, %v4415_v15  ;;  %v15853_v62 = vld [vmem:[#allocation10_spill] sm:$0xff] }
 0x1bb   :  { %15852 = vst [vmem:[#allocation12_spill] sm:$0xff] %v9315_v42  ;;  %v9333_v24 = vpop.permute.xlu1 %3420  ;;  %5838 = vmatprep.subr.bf16.mxu1 %v4648_v14  ;;  %3015 = vrot.lane.b32.xlu1 %v9244_v45, %s7788_s23  ;;  %v4616_v1 = vpack.c.bf16 %v4584_v11, %v4552_v22  ;;  %v4015_v14 = vrot.slane %v9122_v28, %v9258_v46  ;;  %v15876_v42 = vld [vmem:[#allocation22_spill] sm:$0xff] }
 0x1bc   :  { %v9341_v8 = vpop.permute.xlu0 %3001  ;;  %v4167_v41 = vmul.f32 %v4019_v25, %v9323_v7  ;;  %3021 = vrot.lane.b32.xlu0 %v9238_v20, %s7788_s23  ;;  %v15855_v9 = vpack.c.bf16 %v15853_v62, %v15854_v3  ;;  %v3602_v5 = vrot.slane %v9137_v26, %v15823_v60  ;;  %v4135_v4 = vmul.f32 %v4019_v25, %v3996_v52 }
 0x1bd   :  { %v4615_v12 = vpack.c.bf16 %v4583_v0, %v4551_v40  ;;  %v4166_v21 = vmul.f32 %v4015_v14, %v9107_v44  ;;  %v3598_v22 = vrot.slane %v9122_v28, %v15823_v60  ;;  %v4134_v25 = vmul.f32 %v4015_v14, %v9095_v2 }
 0x1be   :  { %5839 = vmatpush1.bf16.msra.mxu1 %v15855_v9  ;;  %v3750_v57 = vmul.f32 %v3602_v5, %v9143_v17  ;;  %v4199_v15 = vpack.c.bf16 %v4167_v41, %v4135_v4  ;;  %v3718_v0 = vmul.f32 %v3602_v5, %v9157_v29  ;;  %v3185_v44 = vrot.slane %v9137_v26, %v15829_v50 }
 0x1bf   :  { %v9353_v53 = vpop.permute.xlu1 %3003  ;;  %5840 = vmatprep.subr.bf16.mxu1 %v4616_v1  ;;  %3023 = vrot.lane.b32.xlu1 %v9276_v37, %s7788_s23  ;;  %v3749_v17 = vmul.f32 %v3598_v22, %v8965_v34  ;;  %v4198_v40 = vpack.c.bf16 %v4166_v21, %v4134_v25  ;;  %v3717_v2 = vmul.f32 %v3598_v22, %v8976_v61 }
 0x1c0   :  { %v9358_v11 = vpop.permute.xlu0 %4701  ;;  %4713 = vrot.lane.b32.xlu0 %v9205_v16, %s7789_s24  ;;  %v3333_v62 = vmul.f32 %v3185_v44, %v9185_v63  ;;  %v3782_v29 = vpack.c.bf16 %v3750_v57, %v3718_v0  ;;  %v3181_v26 = vrot.slane %v9122_v28, %v15829_v50  ;;  %v3301_v34 = vmul.f32 %v3185_v44, %v9217_v56  ;;  %v7546_v63 = vld [vmem:[%s15118_s7 + $0x118] ss:$0 sm:$0xff]  ;;  %v15862_v44 = vld [vmem:[#allocation17_spill] sm:$0xff] }
 0x1c1   :  { %15856 = vst [vmem:[#allocation61_spill] sm:$0xff] %v9358_v11  ;;  %v3781_v21 = vpack.c.bf16 %v3749_v17, %v3717_v2  ;;  %v5705_v3 = vmul.f32 %v7546_v63, %v3995_v55  ;;  %v5673_v9 = vmul.f32 %v7546_v63, %v9286_v58  ;;  %v2918_v58 = vld [vmem:[%s15118_s7 + $0x28] sm:$0xff]  ;;  %v985_v17 = vadd.f32 %v15862_v44, %v8290_v33 }
 0x1c2   :  { %5841 = vmatpush1.bf16.msra.mxu1 %v4615_v12  ;;  %v3332_v14 = vmul.f32 %v3181_v26, %v8981_v51  ;;  %v3365_v28 = vpack.c.bf16 %v3333_v62, %v3301_v34  ;;  %v3300_v56 = vmul.f32 %v3181_v26, %v9002_v49  ;;  %v7545_v51 = vld [vmem:[%s15118_s7 + $0x110] ss:$0 sm:$0xff]  ;;  %v5341_v0 = vrot.slane %v2918_v58, %v8943_v18 }
 0x1c3   :  { %v9369_v1 = vpop.permute.xlu1 %4703  ;;  %5842 = vmatprep.subr.bf16.mxu1 %v4199_v15  ;;  %4715 = vrot.lane.b32.xlu1 %v9244_v45, %s7789_s24  ;;  %v5704_v57 = vmul.f32 %v7545_v51, %v9323_v7  ;;  %v5737_v49 = vpack.c.bf16 %v5705_v3, %v5673_v9  ;;  %v5672_v15 = vmul.f32 %v7545_v51, %v3996_v52  ;;  %v9424_v52 = vld [vmem:[%s15116_s5] ss:$8 sps:$4 sm:$0xff]   ;;  %v15865_v34 = vld [vmem:[#allocation21_spill] sm:$0xff]  ;;  %v9457_v63 = vmax.f32 %v985_v17, 0.0 }
 0x1c4   :  { %15857 = vst [vmem:[#allocation10_spill] sm:$0xff] %v9369_v1  ;;  %v9374_v41 = vpop.permute.xlu0 %4244  ;;  %4721 = vrot.lane.b32.xlu0 %v9238_v20, %s7789_s24  ;;  %v3364_v4 = vpack.c.bf16 %v3332_v14, %v3300_v56  ;;  %15861 = vst [vmem:[#allocation102_spill] sm:$0xff] %v9424_v52  ;;  %v5117_v9 = vrot.slane %v2918_v58, %v8957_v38 }
 0x1c5   :  { %15858 = vst [vmem:[#allocation7_spill] sm:$0xff] %v9374_v41  ;;  %v5736_v25 = vpack.c.bf16 %v5704_v57, %v5672_v15  ;;  %15867 = vst [vmem:[#allocation104_spill] sm:$0xff] %v9457_v63 }
 0x1c6   :  { %5843 = vmatpush1.bf16.msra.mxu1 %v4198_v40 }
 0x1c7   :  { %v9383_v12 = vpop.permute.xlu1 %4246  ;;  %5844 = vmatprep.subr.bf16.mxu1 %v3782_v29  ;;  %4723 = vrot.lane.b32.xlu1 %v9276_v37, %s7789_s24 }
 0x1c8   :  { %15859 = vst [vmem:[#allocation100_spill] sm:$0xff] %v9383_v12  ;;  %v9391_v61 = vpop.permute.xlu0 %4252  ;;  %4264 = vrot.lane.b32.xlu0 %v9205_v16, %s7790_s1  ;;  %v5349_v12 = vrot.slane %v9599_v59, %v8943_v18 }
 0x1ca   :  { %5845 = vmatpush1.bf16.msra.mxu1 %v3781_v21  ;;  %v989_v21 = vadd.f32 %v15865_v34, %v8298_v48  ;;  %v15874_v34 = vld [vmem:[#allocation18_spill] sm:$0xff] }
 0x1cb   :  { %v9400_v5 = vpop.permute.xlu1 %4254  ;;  %5846 = vmatprep.subr.bf16.mxu1 %v3365_v28  ;;  %4266 = vrot.lane.b32.xlu1 %v9244_v45, %s7790_s1 }
 0x1cc   :  { %v9405_v55 = vpop.permute.xlu0 %3835  ;;  %4272 = vrot.lane.b32.xlu0 %v9238_v20, %s7790_s1  ;;  %v9471_v51 = vmax.f32 %v989_v21, 0.0  ;;  %v1048_v21 = vadd.f32 %v15874_v34, %v8290_v33 }
 0x1ce   :  { %5847 = vmatpush1.bf16.msra.mxu1 %v3364_v4  ;;  %15869 = vst [vmem:[#allocation106_spill] sm:$0xff] %v9471_v51  ;;  %v9522_v17 = vmax.f32 %v1048_v21, 0.0  ;;  %v15882_v21 = vld [vmem:[#allocation19_spill] sm:$0xff] }
 0x1cf   :  { %v9409_v22 = vpop.permute.xlu1 %3837  ;;  %5862 = vmatprep.subr.bf16.mxu1 %v5737_v49  ;;  %4274 = vrot.lane.b32.xlu1 %v9276_v37, %s7790_s1  ;;  %v987_v6 = vadd.f32 %v15882_v21, %v8290_v33 }
 0x1d0   :  { %v9416_v7 = vpop.permute.xlu0 %3414  ;;  %3847 = vrot.lane.b32.xlu0 %v9205_v16, %s7791_s25  ;;  %15877 = vst [vmem:[#allocation22_spill] sm:$0xff] %v9522_v17 }
 0x1d1   :  { %15860 = vst [vmem:[#allocation101_spill] sm:$0xff] %v9416_v7  ;;  %v9432_v40 = vsel %vm3522_vm4, %v9416_v7, %v9308_v35  ;;  %v9552_v10 = vmax.f32 %v987_v6, 0.0  ;;  %v15889_v7 = vld [vmem:[#allocation23_spill] sm:$0xff] }
 0x1d2   :  { %5863 = vmatpush2.bf16.msra.mxu1 %v5736_v25  ;;  %v9454_v14 = vmul.f32 %v5341_v0, %v9432_v40  ;;  %v991_v19 = vadd.f32 %v15889_v7, %v8298_v48 }
 0x1d3   :  { %v9434_v62 = vpop.permute.xlu1 %3416  ;;  %3849 = vrot.lane.b32.xlu1 %v9244_v45, %s7791_s25  ;;  %15885 = vst [vmem:[#allocation116_spill] sm:$0xff] %v9552_v10 }
 0x1d4   :  { %15863 = vst [vmem:[#allocation17_spill] sm:$0xff] %v9434_v62  ;;  %v9442_v29 = vsel %vm3522_vm4, %v9434_v62, %v9333_v24  ;;  %v9444_v2 = vpop.permute.xlu0 %3422  ;;  %3855 = vrot.lane.b32.xlu0 %v9238_v20, %s7791_s25  ;;  %15866 = vst [vmem:[#allocation21_spill] sm:$0xff] %v9454_v14  ;;  %v1052_v14 = vadd.f32 %v15876_v42, %v8298_v48 }
 0x1d5   :  { %v9449_v26 = vmul.f32 %v5341_v0, %v9442_v29  ;;  %5865 = vmatmul.mubr.bf16.vlgmr.msra.gmra.mxu1 %v9424_v52  ;;  %v9638_v54 = vsel %vm3522_vm4, %v9308_v35, %v9444_v2 }
 0x1d6   :  { %7580 = vmatprep.mubr.msk.bf16.mxu1 %vm15709_vm7, %v9037_v13 }
 0x1d7   :  { %15864 = vst [vmem:[#allocation103_spill] sm:$0xff] %v9449_v26  ;;  %v9459_v3 = vpop.permute.xlu1 %3424  ;;  %3857 = vrot.lane.b32.xlu1 %v9276_v37, %s7791_s25 }
 0x1d8   :  { %v9465_v28 = vpop.permute.xlu0 %2997  ;;  %3442 = vrot.lane.b32.xlu0 %v9457_v63, %s7787_s0 }
 0x1d9   :  { %15868 = vst [vmem:[#allocation105_spill] sm:$0xff] %v9465_v28  ;;  %v9478_v4 = vsel %vm3105_vm5, %v9465_v28, %v9341_v8 }
 0x1da   :  { %v9498_v25 = vmul.f32 %v5117_v9, %v9478_v4 }
 0x1db   :  { %v9480_v57 = vpop.permute.xlu1 %2999  ;;  %3444 = vrot.lane.b32.xlu1 %v9471_v51, %s7787_s0 }
 0x1dc   :  { %15870 = vst [vmem:[#allocation107_spill] sm:$0xff] %v9480_v57  ;;  %v9488_v49 = vsel %vm3105_vm5, %v9480_v57, %v9353_v53  ;;  %v9490_v15 = vpop.permute.xlu0 %3005  ;;  %3025 = vrot.lane.b32.xlu0 %v9457_v63, %s7788_s23  ;;  %15872 = vst [vmem:[#allocation109_spill] sm:$0xff] %v9498_v25 }
 0x1dd   :  { %v9495_v58 = vmul.f32 %v5117_v9, %v9488_v49 }
 0x1df   :  { %15871 = vst [vmem:[#allocation108_spill] sm:$0xff] %v9495_v58  ;;  %v9500_v0 = vpop.permute.xlu1 %3007  ;;  %3027 = vrot.lane.b32.xlu1 %v9471_v51, %s7788_s23  ;;  %v9532_v58 = vmax.f32 %v1052_v14, 0.0 }
 0x1e0   :  { %v9504_v44 = vpop.permute.xlu0 %4697  ;;  %4725 = vrot.lane.b32.xlu0 %v9457_v63, %s7789_s24 }
 0x1e1   :  { %15873 = vst [vmem:[#allocation110_spill] sm:$0xff] %v9504_v44  ;;  %15879 = vst [vmem:[#allocation112_spill] sm:$0xff] %v9532_v58  ;;  %v15886_v44 = vld [vmem:[#allocation20_spill] sm:$0xff] }
 0x1e2   :  { %v1050_v39 = vadd.f32 %v15886_v44, %v8290_v33 }
 0x1e3   :  { %v9512_v56 = vpop.permute.xlu1 %4699  ;;  %4727 = vrot.lane.b32.xlu1 %v9471_v51, %s7789_s24 }
 0x1e4   :  { %15875 = vst [vmem:[#allocation18_spill] sm:$0xff] %v9512_v56  ;;  %v9516_v9 = vpop.permute.xlu0 %4705  ;;  %3859 = vrot.lane.b32.xlu0 %v9457_v63, %s7791_s25  ;;  %v7548_v56 = vld [vmem:[%s15118_s7 + $0x128] ss:$0 sm:$0xff] }
 0x1e7   :  { %v9524_v25 = vpop.permute.xlu1 %4707  ;;  %3861 = vrot.lane.b32.xlu1 %v9471_v51, %s7791_s25 }
 0x1e8   :  { %v9528_v34 = vpop.permute.xlu0 %4248  ;;  %3450 = vrot.lane.b32.xlu0 %v9522_v17, %s7787_s0 }
 0x1e9   :  { %15878 = vst [vmem:[#allocation111_spill] sm:$0xff] %v9528_v34 }
 0x1eb   :  { %v9534_v26 = vpop.permute.xlu1 %4250  ;;  %3452 = vrot.lane.b32.xlu1 %v9532_v58, %s7787_s0 }
 0x1ec   :  { %15880 = vst [vmem:[#allocation113_spill] sm:$0xff] %v9534_v26  ;;  %v9538_v42 = vpop.permute.xlu0 %4256  ;;  %3033 = vrot.lane.b32.xlu0 %v9522_v17, %s7788_s23 }
 0x1ed   :  { %15881 = vst [vmem:[#allocation114_spill] sm:$0xff] %v9538_v42 }
 0x1ef   :  { %v9544_v43 = vpop.permute.xlu1 %4258  ;;  %3035 = vrot.lane.b32.xlu1 %v9532_v58, %s7788_s23 }
 0x1f0   :  { %15883 = vst [vmem:[#allocation19_spill] sm:$0xff] %v9544_v43  ;;  %v9548_v14 = vpop.permute.xlu0 %3831  ;;  %4733 = vrot.lane.b32.xlu0 %v9522_v17, %s7789_s24 }
 0x1f1   :  { %15884 = vst [vmem:[#allocation115_spill] sm:$0xff] %v9548_v14  ;;  %v9563_v21 = vsel %vm15691_vm9, %v9548_v14, %v9405_v55  ;;  %v9585_v14 = vld [vmem:[%s15118_s7 + $0x40] sm:$0xff] }
 0x1f2   :  { %v9590_v57 = vmul.f32 %v7548_v56, %v9563_v21  ;;  %v3622_v41 = vrot.slane %v9585_v14, %v15823_v60  ;;  %v3205_v16 = vrot.slane %v9585_v14, %v15829_v50 }
 0x1f3   :  { %v9565_v27 = vpop.permute.xlu1 %3833  ;;  %4735 = vrot.lane.b32.xlu1 %v9532_v58, %s7789_s24 }
 0x1f4   :  { %15887 = vst [vmem:[#allocation20_spill] sm:$0xff] %v9565_v27  ;;  %v9573_v6 = vsel %vm15691_vm9, %v9565_v27, %v9409_v22  ;;  %v9575_v44 = vpop.permute.xlu0 %3839  ;;  %3446 = vrot.lane.b32.xlu0 %v9552_v10, %s7787_s0  ;;  %15890 = vst [vmem:[#allocation23_spill] sm:$0xff] %v9590_v57  ;;  %v9592_v27 = vmax.f32 %v1050_v39, 0.0  ;;  %v9612_v39 = vld [vmem:[%s15118_s7 + $0x30] sm:$0xff]  ;;  %v9628_v57 = vmax.f32 %v991_v19, 0.0  ;;  %v5125_v19 = vrot.slane %v9599_v59, %v8957_v38 }
 0x1f5   :  { %v9580_v28 = vmul.f32 %v7548_v56, %v9573_v6  ;;  %v9618_v56 = vsel %vm3522_vm4, %v9333_v24, %v9459_v3  ;;  %v5345_v24 = vrot.slane %v9612_v39, %v8943_v18 }
 0x1f6   :  { %15891 = vst [vmem:[#allocation118_spill] sm:$0xff] %v9592_v27  ;;  %15893 = vst [vmem:[#allocation120_spill] sm:$0xff] %v9628_v57 }
 0x1f7   :  { %15888 = vst [vmem:[#allocation117_spill] sm:$0xff] %v9580_v28  ;;  %v9594_v62 = vpop.permute.xlu1 %3841  ;;  %4278 = vrot.lane.b32.xlu1 %v9471_v51, %s7790_s1  ;;  %v15894_v28 = vld [vmem:[#allocation24_spill] sm:$0xff]  ;;  %v5452_v52 = vmul.f32 %v5345_v24, %v9638_v54 }
 0x1f8   :  { %v9605_v47 = vpop.permute.xlu0 %3426  ;;  %3454 = vrot.lane.b32.xlu0 %v9592_v27, %s7787_s0  ;;  %v1054_v51 = vadd.f32 %v15894_v28, %v8298_v48  ;;  %v9651_v28 = vsel %vm3105_vm5, %v9353_v53, %v9500_v0 }
 0x1f9   :  { %15892 = vst [vmem:[#allocation119_spill] sm:$0xff] %v9605_v47  ;;  %v3569_v7 = vsel %vm3522_vm4, %v9444_v2, %v9605_v47  ;;  %v5484_v47 = vmul.f32 %v5345_v24, %v9618_v56 }
 0x1fa   :  { %v9653_v30 = vmul.f32 %v3622_v41, %v3569_v7  ;;  %v5453_v31 = vmul.f32 %v5349_v12, %v3569_v7  ;;  %v9671_v13 = vmax.f32 %v1054_v51, 0.0  ;;  %v9680_v7 = vsel %vm3105_vm5, %v9341_v8, %v9490_v15 }
 0x1fb   :  { %v9640_v45 = vpop.permute.xlu1 %3428  ;;  %3448 = vrot.lane.b32.xlu1 %v9628_v57, %s7787_s0 }
 0x1fc   :  { %15895 = vst [vmem:[#allocation24_spill] sm:$0xff] %v9640_v45  ;;  %15896 = vst [vmem:[#allocation121_spill] sm:$0xff] %v9653_v30  ;;  %v3570_v35 = vsel %vm3522_vm4, %v9459_v3, %v9640_v45  ;;  %v9661_v2 = vpop.permute.xlu0 %3009  ;;  %3029 = vrot.lane.b32.xlu0 %v9552_v10, %s7788_s23  ;;  %v5121_v3 = vrot.slane %v9612_v39, %v8957_v38 }
 0x1fd   :  { %15897 = vst [vmem:[#allocation122_spill] sm:$0xff] %v9661_v2  ;;  %v9665_v37 = vmul.f32 %v3622_v41, %v3570_v35  ;;  %v5485_v53 = vmul.f32 %v5349_v12, %v3570_v35  ;;  %v3152_v20 = vsel %vm3105_vm5, %v9490_v15, %v9661_v2  ;;  %15899 = vst [vmem:[#allocation124_spill] sm:$0xff] %v9671_v13 }
 0x1fe   :  { %v5516_v2 = vpack.c.bf16 %v5484_v47, %v5452_v52  ;;  %v5260_v51 = vmul.f32 %v5121_v3, %v9651_v28  ;;  %v9687_v45 = vmul.f32 %v3205_v16, %v3152_v20  ;;  %v5229_v24 = vmul.f32 %v5125_v19, %v3152_v20 }
 0x1ff   :  { %15898 = vst [vmem:[#allocation123_spill] sm:$0xff] %v9665_v37  ;;  %v9684_v12 = vpop.permute.xlu1 %3011  ;;  %v5517_v35 = vpack.c.bf16 %v5485_v53, %v5453_v31  ;;  %3456 = vrot.lane.b32.xlu1 %v9671_v13, %s7787_s0  ;;  %v5228_v52 = vmul.f32 %v5121_v3, %v9680_v7  ;;  %v4855_v53 = vsel %vm15700_vm6, %v9369_v1, %v9524_v25 }
 0x200   :  { %15900 = vst [vmem:[#allocation125_spill] sm:$0xff] %v9684_v12  ;;  %15901 = vst [vmem:[#allocation126_spill] sm:$0xff] %v9687_v45  ;;  %v3153_v8 = vsel %vm3105_vm5, %v9500_v0, %v9684_v12  ;;  %v9695_v15 = vpop.permute.xlu0 %4709  ;;  %3037 = vrot.lane.b32.xlu0 %v9592_v27, %s7788_s23  ;;  %v4901_v20 = vrot.slane %v9599_v59, %v8989_v23  ;;  %v15908_v0 = vld [vmem:[#allocation50_spill] sm:$0xff]  ;;  %v4035_v37 = vrot.slane %v9599_v59, %v9258_v46 }
 0x201   :  { %15902 = vst [vmem:[#allocation127_spill] sm:$0xff] %v9695_v15  ;;  %v9699_v31 = vmul.f32 %v3205_v16, %v3153_v8  ;;  %v5261_v47 = vmul.f32 %v5125_v19, %v3153_v8  ;;  %5918 = vmatprep.subr.bf16.mxu1 %v5517_v35  ;;  %v5292_v30 = vpack.c.bf16 %v5260_v51, %v5228_v52 }
 0x202   :  { %5919 = vmatpush1.bf16.msra.mxu1 %v5516_v2  ;;  %v4897_v16 = vrot.slane %v9612_v39, %v8989_v23  ;;  %v4852_v19 = vsel %vm15700_vm6, %v9516_v9, %v9695_v15  ;;  %v4854_v2 = vsel %vm15700_vm6, %v9358_v11, %v9516_v9  ;;  %v4039_v9 = vrot.slane %v9585_v14, %v9258_v46 }
 0x203   :  { %15903 = vst [vmem:[#allocation128_spill] sm:$0xff] %v9699_v31  ;;  %v5293_v41 = vpack.c.bf16 %v5261_v47, %v5229_v24  ;;  %3031 = vrot.lane.b32.xlu1 %v9628_v57, %s7788_s23  ;;  %v9724_v3 = vpop.permute.xlu1 %4711  ;;  %v5005_v24 = vmul.f32 %v4901_v20, %v4852_v19  ;;  %v4448_v31 = vrot.slane %v9612_v39, %v9052_v32 }
 0x204   :  { %4729 = vrot.lane.b32.xlu0 %v9552_v10, %s7789_s24  ;;  %15904 = vst [vmem:[#allocation129_spill] sm:$0xff] %v9724_v3  ;;  %v5036_v35 = vmul.f32 %v4897_v16, %v4855_v53  ;;  %v4853_v51 = vsel %vm15700_vm6, %v9524_v25, %v9724_v3  ;;  %v9730_v8 = vpop.permute.xlu0 %3843  ;;  %v5004_v52 = vmul.f32 %v4897_v16, %v4854_v2 }
 0x205   :  { %5920 = vmatprep.subr.bf16.mxu1 %v5293_v41  ;;  %15905 = vst [vmem:[#allocation130_spill] sm:$0xff] %v9730_v8  ;;  %v5037_v47 = vmul.f32 %v4901_v20, %v4853_v51  ;;  %v4406_v41 = vsel %vm15698_vm8, %v9400_v5, %v9544_v43  ;;  %v9742_v53 = vsel %vm15691_vm9, %v9575_v44, %v9730_v8  ;;  %v15907_v51 = vld [vmem:[#allocation49_spill] sm:$0xff] }
 0x206   :  { %5921 = vmatpush1.bf16.msra.mxu1 %v5292_v30  ;;  %v4452_v30 = vrot.slane %v9599_v59, %v9052_v32  ;;  %v5068_v20 = vpack.c.bf16 %v5036_v35, %v5004_v52  ;;  %v4405_v16 = vsel %vm15698_vm8, %v9391_v61, %v9538_v42  ;;  %v4652_v45 = vpack.c.bf16 %v15908_v0, %v15907_v51  ;;  %v15913_v51 = vld [vmem:[#allocation27_spill] sm:$0xff] }
 0x207   :  { %3039 = vrot.lane.b32.xlu1 %v9671_v13, %s7788_s23  ;;  %v9750_v25 = vpop.permute.xlu1 %3845  ;;  %v5069_v14 = vpack.c.bf16 %v5037_v47, %v5005_v24  ;;  %v4408_v35 = vsel %vm15698_vm8, %v9534_v26, %v9400_v5  ;;  %v9771_v47 = vmul.f32 %v4039_v9, %v9742_v53  ;;  %v9784_v0 = vsel %vm15691_vm9, %v9409_v22, %v9594_v62  ;;  %v10080_v26 = vld [vmem:[%s15118_s7 + $0x58] sm:$0xff] }
 0x208   :  { %4737 = vrot.lane.b32.xlu0 %v9592_v27, %s7789_s24  ;;  %15906 = vst [vmem:[#allocation131_spill] sm:$0xff] %v9750_v25  ;;  %v9760_v19 = vsel %vm15691_vm9, %v9594_v62, %v9750_v25  ;;  %v9762_v2 = vpop.permute.xlu0 %3434  ;;  %v4588_v24 = vmul.f32 %v4452_v30, %v4406_v41  ;;  %v4407_v5 = vsel %vm15698_vm8, %v9528_v34, %v9391_v61  ;;  %v15911_v61 = vld [vmem:[#allocation32_spill] sm:$0xff] }
 0x209   :  { %15909 = vst [vmem:[#allocation49_spill] sm:$0xff] %v9771_v47  ;;  %v9774_v52 = vmul.f32 %v4039_v9, %v9760_v19  ;;  %5922 = vmatprep.subr.bf16.mxu1 %v5069_v14  ;;  %v4556_v9 = vmul.f32 %v4452_v30, %v4405_v16  ;;  %v4587_v22 = vmul.f32 %v4448_v31, %v4408_v35  ;;  %v15912_v30 = vld [vmem:[#allocation36_spill] sm:$0xff] }
 0x20a   :  { %5923 = vmatpush1.bf16.msra.mxu1 %v5068_v20  ;;  %v9802_v62 = vsel %vm15691_vm9, %v9405_v55, %v9575_v44  ;;  %v4651_v16 = vpack.c.bf16 %v15912_v30, %v15911_v61  ;;  %v1111_v41 = vadd.f32 %v15913_v51, %v8290_v33  ;;  %v4171_v47 = vmul.f32 %v4035_v37, %v9784_v0 }
 0x20b   :  { %15910 = vst [vmem:[#allocation50_spill] sm:$0xff] %v9774_v52  ;;  %4731 = vrot.lane.b32.xlu1 %v9628_v57, %s7789_s24  ;;  %v9796_v14 = vpop.permute.xlu1 %3436  ;;  %5924 = vmatprep.subr.bf16.mxu1 %v4652_v45  ;;  %v4620_v52 = vpack.c.bf16 %v4588_v24, %v4556_v9  ;;  %v4555_v8 = vmul.f32 %v4448_v31, %v4407_v5 }
 0x20c   :  { %4276 = vrot.lane.b32.xlu0 %v9457_v63, %s7790_s1  ;;  %v9804_v20 = vpop.permute.xlu0 %3017  ;;  %v4031_v45 = vrot.slane %v9612_v39, %v9258_v46  ;;  %v3618_v55 = vrot.slane %v9599_v59, %v15823_v60  ;;  %v4139_v44 = vmul.f32 %v4035_v37, %v9802_v62  ;;  %v9825_v9 = vmax.f32 %v1111_v41, 0.0 }
 0x20d   :  { %v4619_v24 = vpack.c.bf16 %v4587_v22, %v4555_v8 }
 0x20e   :  { %5925 = vmatpush1.bf16.msra.mxu1 %v4651_v16  ;;  %v4170_v31 = vmul.f32 %v4031_v45, %v9573_v6  ;;  %15914 = vst [vmem:[#allocation32_spill] sm:$0xff] %v9825_v9  ;;  %v3754_v61 = vmul.f32 %v3618_v55, %v9618_v56  ;;  %v4203_v30 = vpack.c.bf16 %v4171_v47, %v4139_v44  ;;  %v15916_v56 = vld [vmem:[#allocation31_spill] sm:$0xff] }
 0x20f   :  { %4739 = vrot.lane.b32.xlu1 %v9671_v13, %s7789_s24  ;;  %v9820_v35 = vpop.permute.xlu1 %3019  ;;  %5926 = vmatprep.subr.bf16.mxu1 %v4620_v52  ;;  %v3614_v16 = vrot.slane %v9612_v39, %v15823_v60  ;;  %v4138_v37 = vmul.f32 %v4031_v45, %v9563_v21  ;;  %v3722_v8 = vmul.f32 %v3618_v55, %v9638_v54 }
 0x210   :  { %4280 = vrot.lane.b32.xlu0 %v9552_v10, %s7790_s1  ;;  %v9823_v5 = vpop.permute.xlu0 %4717  ;;  %v3201_v6 = vrot.slane %v9599_v59, %v15829_v50  ;;  %v1115_v47 = vadd.f32 %v15916_v56, %v8298_v48  ;;  %v3197_v59 = vrot.slane %v9612_v39, %v15829_v50 }
 0x211   :  { %v3753_v21 = vmul.f32 %v3614_v16, %v9442_v29  ;;  %v4202_v41 = vpack.c.bf16 %v4170_v31, %v4138_v37  ;;  %v3786_v54 = vpack.c.bf16 %v3754_v61, %v3722_v8  ;;  %v3721_v45 = vmul.f32 %v3614_v16, %v9432_v40  ;;  %v7550_v40 = vld [vmem:[%s15118_s7 + $0x138] ss:$0 sm:$0xff] }
 0x212   :  { %5927 = vmatpush1.bf16.msra.mxu1 %v4619_v24  ;;  %v3337_v51 = vmul.f32 %v3201_v6, %v9651_v28  ;;  %v3305_v55 = vmul.f32 %v3201_v6, %v9680_v7  ;;  %v9854_v29 = vmax.f32 %v1115_v47, 0.0  ;;  %v3336_v28 = vmul.f32 %v3197_v59, %v9488_v49  ;;  %v7549_v49 = vld [vmem:[%s15118_s7 + $0x130] ss:$0 sm:$0xff] }
 0x213   :  { %4282 = vrot.lane.b32.xlu1 %v9628_v57, %s7790_s1  ;;  %v9838_v52 = vpop.permute.xlu1 %4719  ;;  %5928 = vmatprep.subr.bf16.mxu1 %v4203_v30  ;;  %v3785_v44 = vpack.c.bf16 %v3753_v21, %v3721_v45  ;;  %v5709_v24 = vmul.f32 %v7550_v40, %v9760_v19  ;;  %v3304_v61 = vmul.f32 %v3197_v59, %v9478_v4  ;;  %v15922_v45 = vld [vmem:[#allocation102_spill] sm:$0xff] }
 0x214   :  { %3458 = vrot.lane.b32.xlu0 %v9825_v9, %s7787_s0  ;;  %15915 = vst [vmem:[#allocation36_spill] sm:$0xff] %v9838_v52  ;;  %v9843_v22 = vpop.permute.xlu0 %4260  ;;  %15918 = vst [vmem:[#allocation31_spill] sm:$0xff] %v9854_v29  ;;  %v3369_v7 = vpack.c.bf16 %v3337_v51, %v3305_v55  ;;  %v5677_v30 = vmul.f32 %v7550_v40, %v9742_v53  ;;  %v5708_v16 = vmul.f32 %v7549_v49, %v9784_v0  ;;  %v2922_v0 = vld [vmem:[%s15118_s7 + $0x48] sm:$0xff] }
 0x215   :  { %15917 = vst [vmem:[#allocation27_spill] sm:$0xff] %v9843_v22  ;;  %v3368_v19 = vpack.c.bf16 %v3336_v28, %v3304_v61  ;;  %v5676_v6 = vmul.f32 %v7549_v49, %v9802_v62  ;;  %v5357_v62 = vrot.slane %v2922_v0, %v8943_v18  ;;  %v10063_v22 = vld [vmem:[%s15118_s7 + $0x60] sm:$0xff] }
 0x216   :  { %5929 = vmatpush1.bf16.msra.mxu1 %v4202_v41  ;;  %v5741_v8 = vpack.c.bf16 %v5709_v24, %v5677_v30 }
 0x217   :  { %4286 = vrot.lane.b32.xlu1 %v9532_v58, %s7790_s1  ;;  %5930 = vmatprep.subr.bf16.mxu1 %v3786_v54  ;;  %v9860_v39 = vpop.permute.xlu1 %4262  ;;  %v5740_v53 = vpack.c.bf16 %v5708_v16, %v5676_v6 }
 0x218   :  { %3041 = vrot.lane.b32.xlu0 %v9825_v9, %s7788_s23  ;;  %15919 = vst [vmem:[#allocation132_spill] sm:$0xff] %v9860_v39  ;;  %v9863_v31 = vpop.permute.xlu0 %4268 }
 0x21a   :  { %5931 = vmatpush1.bf16.msra.mxu1 %v3785_v44  ;;  %v15925_v44 = vld [vmem:[#allocation85_spill] sm:$0xff] }
 0x21b   :  { %3460 = vrot.lane.b32.xlu1 %v9854_v29, %s7787_s0  ;;  %5932 = vmatprep.subr.bf16.mxu1 %v3369_v7  ;;  %v9875_v37 = vpop.permute.xlu1 %4270  ;;  %v5133_v7 = vrot.slane %v2922_v0, %v8957_v38 }
 0x21c   :  { %4741 = vrot.lane.b32.xlu0 %v9825_v9, %s7789_s24  ;;  %v9877_v4 = vpop.permute.xlu0 %3851 }
 0x21e   :  { %5933 = vmatpush1.bf16.msra.mxu1 %v3368_v19 }
 0x21f   :  { %3043 = vrot.lane.b32.xlu1 %v9854_v29, %s7788_s23  ;;  %5948 = vmatprep.subr.bf16.mxu1 %v5741_v8 }
 0x220   :  { %4284 = vrot.lane.b32.xlu0 %v9522_v17, %s7790_s1  ;;  %v9884_v56 = vpop.permute.xlu1 %3853 }
 0x221   :  { %v9889_v47 = vpop.permute.xlu0 %3430 }
 0x222   :  { %15920 = vst [vmem:[#allocation133_spill] sm:$0xff] %v9889_v47  ;;  %5949 = vmatpush2.bf16.msra.mxu1 %v5740_v53  ;;  %v9900_v21 = vsel %vm3522_vm4, %v9889_v47, %v9762_v2  ;;  %v15930_v53 = vld [vmem:[#allocation29_spill] sm:$0xff] }
 0x223   :  { %4743 = vrot.lane.b32.xlu1 %v9854_v29, %s7789_s24  ;;  %v9919_v55 = vmul.f32 %v5357_v62, %v9900_v21  ;;  %v1113_v0 = vadd.f32 %v15930_v53, %v8290_v33  ;;  %v15945_v47 = vld [vmem:[#allocation37_spill] sm:$0xff] }
 0x224   :  { %4288 = vrot.lane.b32.xlu0 %v9592_v27, %s7790_s1 }
 0x225   :  { %v9902_v41 = vpop.permute.xlu1 %3432  ;;  %v9910_v54 = vpop.permute.xlu0 %3438  ;;  %5951 = vmatmul.mubr.bf16.vlgmr.msra.gmra.mxu1 %v15922_v45  ;;  %15924 = vst [vmem:[#allocation136_spill] sm:$0xff] %v9919_v55  ;;  %v9980_v53 = vmax.f32 %v1113_v0, 0.0 }
 0x226   :  { %15921 = vst [vmem:[#allocation134_spill] sm:$0xff] %v9902_v41  ;;  %v9908_v51 = vsel %vm3522_vm4, %v9902_v41, %v9796_v14  ;;  %7582 = vmatprep.mubr.msk.bf16.mxu1 %vm15709_vm7, %v15925_v44  ;;  %v15936_v44 = vld [vmem:[#allocation33_spill] sm:$0xff] }
 0x227   :  { %v9914_v59 = vmul.f32 %v5357_v62, %v9908_v51  ;;  %4290 = vrot.lane.b32.xlu1 %v9671_v13, %s7790_s1 }
 0x228   :  { %3863 = vrot.lane.b32.xlu0 %v9552_v10, %s7791_s25  ;;  %v5365_v10 = vrot.slane %v10080_v26, %v8943_v18 }
 0x229   :  { %15923 = vst [vmem:[#allocation135_spill] sm:$0xff] %v9914_v59  ;;  %v9925_v28 = vpop.permute.xlu1 %3440  ;;  %v9927_v40 = vpop.permute.xlu0 %3013  ;;  %v15934_v59 = vld [vmem:[#allocation28_spill] sm:$0xff] }
 0x22a   :  { %15926 = vst [vmem:[#allocation85_spill] sm:$0xff] %v9927_v40  ;;  %v9940_v61 = vsel %vm3105_vm5, %v9927_v40, %v9804_v20  ;;  %v1174_v25 = vadd.f32 %v15934_v59, %v8290_v33  ;;  %15935 = vst [vmem:[#allocation28_spill] sm:$0xff] %v9980_v53  ;;  %v15939_v59 = vld [vmem:[#allocation30_spill] sm:$0xff]  ;;  %v10088_v1 = vsel %vm3522_vm4, %v9796_v14, %v9925_v28 }
 0x22b   :  { %3865 = vrot.lane.b32.xlu1 %v9628_v57, %s7791_s25  ;;  %v9958_v8 = vmul.f32 %v5133_v7, %v9940_v61  ;;  %v1176_v0 = vadd.f32 %v15939_v59, %v8290_v33  ;;  %v1237_v59 = vadd.f32 %v15945_v47, %v8290_v33  ;;  %v10098_v57 = vsel %vm3522_vm4, %v9762_v2, %v9910_v54 }
 0x22c   :  { %3867 = vrot.lane.b32.xlu0 %v9522_v17, %s7791_s25  ;;  %v10112_v17 = vpop.f32.mrf.mxu1 }
 0x22d   :  { %v9942_v49 = vpop.permute.xlu1 %3015  ;;  %15929 = vst [vmem:[#allocation139_spill] sm:$0xff] %v9958_v8  ;;  %v1178_v8 = vadd.f32 %v15936_v44, %v8298_v48  ;;  %15956 = vst [vmem:[#allocation150_spill] sm:$0xff] %v10112_v17 }
 0x22e   :  { %15927 = vst [vmem:[#allocation137_spill] sm:$0xff] %v9942_v49  ;;  %v9948_v30 = vsel %vm3105_vm5, %v9942_v49, %v9820_v35  ;;  %v9950_v19 = vpop.permute.xlu0 %3021  ;;  %v15947_v49 = vld [vmem:[#allocation43_spill] sm:$0xff] }
 0x22f   :  { %v9953_v16 = vmul.f32 %v5133_v7, %v9948_v30  ;;  %3869 = vrot.lane.b32.xlu1 %v9532_v58, %s7791_s25  ;;  %v15932_v7 = vld [vmem:[#allocation34_spill] sm:$0xff] }
 0x230   :  { %3871 = vrot.lane.b32.xlu0 %v9592_v27, %s7791_s25  ;;  %v1117_v24 = vadd.f32 %v15932_v7, %v8298_v48  ;;  %v3221_v27 = vrot.slane %v10063_v22, %v15829_v50 }
 0x231   :  { %15928 = vst [vmem:[#allocation138_spill] sm:$0xff] %v9953_v16  ;;  %v9962_v6 = vpop.permute.xlu1 %3023 }
 0x232   :  { %v9966_v62 = vpop.permute.xlu0 %4713  ;;  %v9990_v16 = vmax.f32 %v1117_v24, 0.0  ;;  %v15942_v24 = vld [vmem:[#allocation35_spill] sm:$0xff]  ;;  %v10126_v58 = vsel %vm3105_vm5, %v9820_v35, %v9962_v6 }
 0x233   :  { %15931 = vst [vmem:[#allocation29_spill] sm:$0xff] %v9966_v62  ;;  %3873 = vrot.lane.b32.xlu1 %v9671_v13, %s7791_s25  ;;  %v9994_v62 = vmax.f32 %v1174_v25, 0.0  ;;  %v1180_v44 = vadd.f32 %v15942_v24, %v8298_v48  ;;  %v10010_v25 = vmax.f32 %v1176_v0, 0.0  ;;  %v1241_v24 = vadd.f32 %v15947_v49, %v8298_v48  ;;  %v7552_v49 = vld [vmem:[%s15118_s7 + $0x148] ss:$0 sm:$0xff] }
 0x234   :  { %3875 = vrot.lane.b32.xlu0 %v9825_v9, %s7791_s25  ;;  %15937 = vst [vmem:[#allocation33_spill] sm:$0xff] %v9990_v16  ;;  %v10026_v0 = vmax.f32 %v1237_v59, 0.0 }
 0x235   :  { %v9976_v55 = vpop.permute.xlu1 %4715  ;;  %15938 = vst [vmem:[#allocation140_spill] sm:$0xff] %v9994_v62  ;;  %15944 = vst [vmem:[#allocation142_spill] sm:$0xff] %v10010_v25  ;;  %v10034_v47 = vmax.f32 %v1241_v24, 0.0 }
 0x236   :  { %15933 = vst [vmem:[#allocation34_spill] sm:$0xff] %v9976_v55  ;;  %v9982_v15 = vpop.permute.xlu0 %4721  ;;  %v10004_v55 = vmax.f32 %v1178_v8, 0.0  ;;  %v10020_v8 = vmax.f32 %v1180_v44, 0.0  ;;  %15949 = vst [vmem:[#allocation143_spill] sm:$0xff] %v10026_v0 }
 0x237   :  { %3877 = vrot.lane.b32.xlu1 %v9854_v29, %s7791_s25  ;;  %15951 = vst [vmem:[#allocation145_spill] sm:$0xff] %v10034_v47 }
 0x238   :  { %3462 = vrot.lane.b32.xlu0 %v9980_v53, %s7787_s0  ;;  %15941 = vst [vmem:[#allocation141_spill] sm:$0xff] %v10004_v55 }
 0x239   :  { %v9992_v7 = vpop.permute.xlu1 %4723 }
 0x23a   :  { %v9998_v3 = vpop.permute.xlu0 %4264 }
 0x23b   :  { %15940 = vst [vmem:[#allocation30_spill] sm:$0xff] %v9998_v3  ;;  %3464 = vrot.lane.b32.xlu1 %v9990_v16, %s7787_s0 }
 0x23c   :  { %3466 = vrot.lane.b32.xlu0 %v9994_v62, %s7787_s0 }
 0x23d   :  { %v10008_v40 = vpop.permute.xlu1 %4266 }
 0x23e   :  { %15943 = vst [vmem:[#allocation35_spill] sm:$0xff] %v10008_v40  ;;  %v10014_v12 = vpop.permute.xlu0 %4272 }
 0x23f   :  { %15946 = vst [vmem:[#allocation37_spill] sm:$0xff] %v10014_v12  ;;  %3468 = vrot.lane.b32.xlu1 %v10004_v55, %s7787_s0 }
 0x240   :  { %3470 = vrot.lane.b32.xlu0 %v10010_v25, %s7787_s0 }
 0x241   :  { %v10024_v41 = vpop.permute.xlu1 %4274 }
 0x242   :  { %15948 = vst [vmem:[#allocation43_spill] sm:$0xff] %v10024_v41  ;;  %v10028_v43 = vpop.permute.xlu0 %3847 }
 0x243   :  { %15950 = vst [vmem:[#allocation144_spill] sm:$0xff] %v10028_v43  ;;  %3472 = vrot.lane.b32.xlu1 %v10020_v8, %s7787_s0  ;;  %v10045_v44 = vsel %vm15691_vm9, %v10028_v43, %v9877_v4  ;;  %v10070_v43 = vld [vmem:[%s15118_s7 + $0x50] sm:$0xff] }
 0x244   :  { %3474 = vrot.lane.b32.xlu0 %v10026_v0, %s7787_s0  ;;  %v5361_v11 = vrot.slane %v10070_v43, %v8943_v18  ;;  %v5137_v35 = vrot.slane %v10070_v43, %v8957_v38 }
 0x245   :  { %v10036_v39 = vpop.permute.xlu1 %3849 }
 0x246   :  { %15952 = vst [vmem:[#allocation146_spill] sm:$0xff] %v10036_v39  ;;  %v10051_v59 = vsel %vm15691_vm9, %v10036_v39, %v9884_v56  ;;  %v10053_v24 = vpop.permute.xlu0 %3855  ;;  %v10073_v39 = vmul.f32 %v7552_v49, %v10045_v44  ;;  %v5488_v2 = vmul.f32 %v5361_v11, %v10088_v1 }
 0x247   :  { %v10056_v42 = vmul.f32 %v7552_v49, %v10051_v59  ;;  %3476 = vrot.lane.b32.xlu1 %v10034_v47, %s7787_s0  ;;  %v3638_v49 = vrot.slane %v10063_v22, %v15823_v60 }
 0x248   :  { %3045 = vrot.lane.b32.xlu0 %v9980_v53, %s7788_s23  ;;  %15954 = vst [vmem:[#allocation148_spill] sm:$0xff] %v10073_v39 }
 0x249   :  { %15953 = vst [vmem:[#allocation147_spill] sm:$0xff] %v10056_v42  ;;  %v10075_v34 = vpop.permute.xlu1 %3857 }
 0x24a   :  { %v10092_v63 = vpop.permute.xlu0 %3442 }
 0x24b   :  { %15955 = vst [vmem:[#allocation149_spill] sm:$0xff] %v10092_v63  ;;  %v3561_v14 = vsel %vm3522_vm4, %v9910_v54, %v10092_v63  ;;  %3047 = vrot.lane.b32.xlu1 %v9990_v16, %s7788_s23  ;;  %v5141_v54 = vrot.slane %v10080_v26, %v8957_v38  ;;  %v5456_v63 = vmul.f32 %v5361_v11, %v10098_v57 }
 0x24c   :  { %3049 = vrot.lane.b32.xlu0 %v9994_v62, %s7788_s23  ;;  %v10128_v39 = vmul.f32 %v3638_v49, %v3561_v14  ;;  %v5457_v29 = vmul.f32 %v5365_v10, %v3561_v14  ;;  %v5264_v38 = vmul.f32 %v5137_v35, %v10126_v58 }
 0x24d   :  { %v10115_v13 = vpop.permute.xlu1 %3444  ;;  %v5520_v14 = vpack.c.bf16 %v5488_v2, %v5456_v63 }
 0x24e   :  { %15957 = vst [vmem:[#allocation151_spill] sm:$0xff] %v10115_v13  ;;  %15958 = vst [vmem:[#allocation152_spill] sm:$0xff] %v10128_v39  ;;  %v3562_v17 = vsel %vm3522_vm4, %v9925_v28, %v10115_v13  ;;  %v10134_v42 = vpop.permute.xlu0 %3025  ;;  %v4917_v28 = vrot.slane %v10080_v26, %v8989_v23  ;;  %v4913_v39 = vrot.slane %v10070_v43, %v8989_v23 }
 0x24f   :  { %15959 = vst [vmem:[#allocation153_spill] sm:$0xff] %v10134_v42  ;;  %v10136_v9 = vmul.f32 %v3638_v49, %v3562_v17  ;;  %v5489_v45 = vmul.f32 %v5365_v10, %v3562_v17  ;;  %v3144_v11 = vsel %vm3105_vm5, %v9950_v19, %v10134_v42  ;;  %3051 = vrot.lane.b32.xlu1 %v10004_v55, %s7788_s23  ;;  %v1553_v49 = vpop.f32.mrf.mxu1 }
 0x250   :  { %3053 = vrot.lane.b32.xlu0 %v10010_v25, %s7788_s23  ;;  %v10154_v10 = vsel %vm3105_vm5, %v9804_v20, %v9950_v19  ;;  %v4847_v25 = vsel %vm15700_vm6, %v9838_v52, %v9992_v7  ;;  %v10165_v63 = vmul.f32 %v3221_v27, %v3144_v11  ;;  %v5233_v2 = vmul.f32 %v5141_v54, %v3144_v11  ;;  %v16131_v52 = vld [vmem:[#allocation48_spill] sm:$0xff] }
 0x251   :  { %15960 = vst [vmem:[#allocation154_spill] sm:$0xff] %v10136_v9  ;;  %v10158_v42 = vpop.permute.xlu1 %3027  ;;  %v5521_v13 = vpack.c.bf16 %v5489_v45, %v5457_v29  ;;  %v5232_v45 = vmul.f32 %v5137_v35, %v10154_v10  ;;  %v4055_v11 = vrot.slane %v10063_v22, %v9258_v46  ;;  %v1852_v22 = vld [vmem:[%s15115_s4 + $0x8] sm:$0xff] }
 0x252   :  { %15961 = vst [vmem:[#allocation155_spill] sm:$0xff] %v10158_v42  ;;  %15962 = vst [vmem:[#allocation156_spill] sm:$0xff] %v10165_v63  ;;  %v3145_v20 = vsel %vm3105_vm5, %v9962_v6, %v10158_v42  ;;  %v10171_v19 = vpop.permute.xlu0 %4725 }
 0x253   :  { %15963 = vst [vmem:[#allocation157_spill] sm:$0xff] %v10171_v19  ;;  %v10173_v17 = vmul.f32 %v3221_v27, %v3145_v20  ;;  %v5265_v29 = vmul.f32 %v5141_v54, %v3145_v20  ;;  %3055 = vrot.lane.b32.xlu1 %v10020_v8, %s7788_s23  ;;  %6004 = vmatprep.subr.bf16.mxu1 %v5521_v13  ;;  %v10187_v54 = vpop.f32.mrf.mxu1  ;;  %v1851_v20 = vld [vmem:[%s15115_s4] sm:$0xff] }
 0x254   :  { %v4844_v6 = vsel %vm15700_vm6, %v9982_v15, %v10171_v19  ;;  %3057 = vrot.lane.b32.xlu0 %v10026_v0, %s7788_s23  ;;  %6005 = vmatpush1.bf16.msra.mxu1 %v5520_v14  ;;  %v1554_v27 = vadd.f32 %v1553_v49, %v8290_v33  ;;  %15965 = vst [vmem:[#allocation159_spill] sm:$0xff] %v10187_v54 }
 0x255   :  { %15964 = vst [vmem:[#allocation158_spill] sm:$0xff] %v10173_v17  ;;  %v4846_v13 = vsel %vm15700_vm6, %v9823_v5, %v9982_v15  ;;  %v10195_v35 = vpop.permute.xlu1 %4727  ;;  %v5297_v9 = vpack.c.bf16 %v5265_v29, %v5233_v2  ;;  %v5296_v14 = vpack.c.bf16 %v5264_v38, %v5232_v45  ;;  %v5040_v19 = vmul.f32 %v4913_v39, %v4847_v25  ;;  %v15970_v29 = vld [vmem:[#allocation93_spill] sm:$0xff]  ;;  %v15971_v45 = vld [vmem:[#allocation99_spill] sm:$0xff] }
 0x256   :  { %15966 = vst [vmem:[#allocation160_spill] sm:$0xff] %v10195_v35  ;;  %v4845_v49 = vsel %vm15700_vm6, %v9992_v7, %v10195_v35  ;;  %v10204_v54 = vpop.permute.xlu0 %3859  ;;  %v5009_v15 = vmul.f32 %v4917_v28, %v4844_v6  ;;  %v5008_v63 = vmul.f32 %v4913_v39, %v4846_v13  ;;  %v4398_v38 = vsel %vm15698_vm8, %v9875_v37, %v10024_v41  ;;  %v16097_v41 = vld [vmem:[#allocation55_spill] sm:$0xff] }
 0x257   :  { %15967 = vst [vmem:[#allocation161_spill] sm:$0xff] %v10204_v54  ;;  %v5041_v42 = vmul.f32 %v4917_v28, %v4845_v49  ;;  %3059 = vrot.lane.b32.xlu1 %v10034_v47, %s7788_s23  ;;  %6006 = vmatprep.subr.bf16.mxu1 %v5297_v9  ;;  %v10218_v7 = vsel %vm15691_vm9, %v10053_v24, %v10204_v54  ;;  %v10223_v25 = vmax.f32 %v1554_v27, 0.0  ;;  %v1557_v9 = vpop.f32.mrf.mxu1 }
 0x258   :  { %1855 = vperm.xlu0 %7732, %v1851_v20   ;;  %6007 = vmatpush1.bf16.msra.mxu1 %v5296_v14  ;;  %v4468_v39 = vrot.slane %v10080_v26, %v9052_v32  ;;  %v4656_v6 = vpack.c.bf16 %v15971_v45, %v15970_v29  ;;  %v5072_v13 = vpack.c.bf16 %v5040_v19, %v5008_v63 }
 0x259   :  { %15968 = vst [vmem:[#allocation162_spill] sm:$0xff] %v10223_v25  ;;  %v10227_v28 = vpop.permute.xlu1 %3861  ;;  %v5073_v2 = vpack.c.bf16 %v5041_v42, %v5009_v15  ;;  %v4400_v20 = vsel %vm15698_vm8, %v10008_v40, %v9875_v37  ;;  %v4397_v27 = vsel %vm15698_vm8, %v9863_v31, %v10014_v12  ;;  %v10248_v63 = vmul.f32 %v4055_v11, %v10218_v7 }
 0x25a   :  { %15969 = vst [vmem:[#allocation163_spill] sm:$0xff] %v10227_v28  ;;  %v10243_v14 = vsel %vm15691_vm9, %v10075_v34, %v10227_v28  ;;  %v10245_v42 = vpop.permute.xlu0 %3450  ;;  %v4592_v49 = vmul.f32 %v4468_v39, %v4398_v38  ;;  %v1558_v37 = vadd.f32 %v1557_v9, %v8298_v48  ;;  %v4464_v15 = vrot.slane %v10070_v43, %v9052_v32 }
 0x25b   :  { %15972 = vst [vmem:[#allocation93_spill] sm:$0xff] %v10248_v63  ;;  %v10251_v19 = vmul.f32 %v4055_v11, %v10243_v14  ;;  %1860 = vperm.xlu1 %7733, %v1852_v22   ;;  %6008 = vmatprep.subr.bf16.mxu1 %v5073_v2  ;;  %v10260_v29 = vsel %vm15691_vm9, %v9884_v56, %v10075_v34  ;;  %v10466_v63 = vld [vmem:[%s15118_s7 + $0x78] sm:$0xff] }
 0x25c   :  { %4352 = vrot.lane.b32.xlu0 %v10223_v25, %s7790_s1  ;;  %6009 = vmatpush1.bf16.msra.mxu1 %v5072_v13  ;;  %v4399_v11 = vsel %vm15698_vm8, %v9998_v3, %v9863_v31  ;;  %v4560_v38 = vmul.f32 %v4468_v39, %v4397_v27  ;;  %v4051_v22 = vrot.slane %v10080_v26, %v9258_v46  ;;  %v15974_v31 = vld [vmem:[#allocation83_spill] sm:$0xff]  ;;  %v15975_v39 = vld [vmem:[#allocation84_spill] sm:$0xff] }
 0x25d   :  { %15973 = vst [vmem:[#allocation99_spill] sm:$0xff] %v10251_v19  ;;  %v10272_v2 = vpop.permute.xlu1 %3452  ;;  %6010 = vmatprep.subr.bf16.mxu1 %v4656_v6  ;;  %v4591_v34 = vmul.f32 %v4464_v15, %v4400_v20  ;;  %v10278_v56 = vsel %vm15691_vm9, %v9877_v4, %v10053_v24  ;;  %v4655_v13 = vpack.c.bf16 %v15975_v39, %v15974_v31  ;;  %v10289_v6 = vmax.f32 %v1558_v37, 0.0 }
 0x25e   :  { %v10280_v45 = vpop.permute.xlu0 %3033  ;;  %v4175_v27 = vmul.f32 %v4051_v22, %v10260_v29  ;;  %v4624_v9 = vpack.c.bf16 %v4592_v49, %v4560_v38  ;;  %v4559_v17 = vmul.f32 %v4464_v15, %v4399_v11  ;;  %v4047_v4 = vrot.slane %v10070_v43, %v9258_v46 }
 0x25f   :  { %4747 = vrot.lane.b32.xlu1 %v9990_v16, %s7789_s24  ;;  %15976 = vst [vmem:[#allocation83_spill] sm:$0xff] %v10289_v6  ;;  %v4143_v24 = vmul.f32 %v4051_v22, %v10278_v56  ;;  %v3634_v31 = vrot.slane %v10080_v26, %v15823_v60  ;;  %v3630_v38 = vrot.slane %v10070_v43, %v15823_v60 }
 0x260   :  { %3935 = vrot.lane.b32.xlu0 %v10223_v25, %s7791_s25  ;;  %6011 = vmatpush1.bf16.msra.mxu1 %v4655_v13  ;;  %v4623_v39 = vpack.c.bf16 %v4591_v34, %v4559_v17  ;;  %v4174_v15 = vmul.f32 %v4047_v4, %v10051_v59  ;;  %v4142_v22 = vmul.f32 %v4047_v4, %v10045_v44 }
 0x261   :  { %v10294_v20 = vpop.permute.xlu1 %3035  ;;  %6012 = vmatprep.subr.bf16.mxu1 %v4624_v9  ;;  %v4207_v37 = vpack.c.bf16 %v4175_v27, %v4143_v24  ;;  %v3758_v11 = vmul.f32 %v3634_v31, %v10088_v1  ;;  %v3726_v59 = vmul.f32 %v3634_v31, %v10098_v57  ;;  %v3217_v9 = vrot.slane %v10080_v26, %v15829_v50  ;;  %v2926_v26 = vld [vmem:[%s15118_s7 + $0x68] sm:$0xff] }
 0x262   :  { %v10298_v49 = vpop.permute.xlu0 %4733  ;;  %v3757_v1 = vmul.f32 %v3630_v38, %v9908_v51  ;;  %v4206_v13 = vpack.c.bf16 %v4174_v15, %v4142_v22  ;;  %v3725_v4 = vmul.f32 %v3630_v38, %v9900_v21  ;;  %v3213_v57 = vrot.slane %v10070_v43, %v15829_v50  ;;  %v7554_v21 = vld [vmem:[%s15118_s7 + $0x158] ss:$0 sm:$0xff] }
 0x263   :  { %15977 = vst [vmem:[#allocation84_spill] sm:$0xff] %v10298_v49  ;;  %4354 = vrot.lane.b32.xlu1 %v10289_v6, %s7790_s1  ;;  %v3341_v27 = vmul.f32 %v3217_v9, %v10126_v58  ;;  %v3790_v44 = vpack.c.bf16 %v3758_v11, %v3726_v59  ;;  %v3309_v24 = vmul.f32 %v3217_v9, %v10154_v10 }
 0x264   :  { %3518 = vrot.lane.b32.xlu0 %v10223_v25, %s7787_s0  ;;  %6013 = vmatpush1.bf16.msra.mxu1 %v4623_v39  ;;  %v3789_v31 = vpack.c.bf16 %v3757_v1, %v3725_v4  ;;  %v3340_v39 = vmul.f32 %v3213_v57, %v9948_v30  ;;  %v5713_v43 = vmul.f32 %v7554_v21, %v10243_v14  ;;  %v7553_v14 = vld [vmem:[%s15118_s7 + $0x150] ss:$0 sm:$0xff] }
 0x265   :  { %v10309_v17 = vpop.permute.xlu1 %4735  ;;  %6014 = vmatprep.subr.bf16.mxu1 %v4207_v37  ;;  %v5373_v15 = vrot.slane %v2926_v26, %v8943_v18  ;;  %v3373_v10 = vpack.c.bf16 %v3341_v27, %v3309_v24  ;;  %v3308_v37 = vmul.f32 %v3213_v57, %v9940_v61  ;;  %v5681_v38 = vmul.f32 %v7554_v21, %v10218_v7  ;;  %v15985_v24 = vld [vmem:[#allocation142_spill] sm:$0xff] }
 0x266   :  { %15978 = vst [vmem:[#allocation164_spill] sm:$0xff] %v10309_v17  ;;  %v10314_v34 = vpop.permute.xlu0 %3446  ;;  %v5712_v9 = vmul.f32 %v7553_v14, %v10260_v29  ;;  %v5680_v27 = vmul.f32 %v7553_v14, %v10278_v56  ;;  %v10412_v14 = vld [vmem:[%s15116_s5 + $0x4] ss:$8 sps:$4 sm:$0xff]  }
 0x267   :  { %15979 = vst [vmem:[#allocation165_spill] sm:$0xff] %v10314_v34  ;;  %3937 = vrot.lane.b32.xlu1 %v10289_v6, %s7791_s25  ;;  %v10348_v30 = vsel %vm3522_vm4, %v10314_v34, %v10245_v42  ;;  %v3372_v59 = vpack.c.bf16 %v3340_v39, %v3308_v37  ;;  %v15987_v39 = vld [vmem:[#allocation80_spill] sm:$0xff] }
 0x268   :  { %3101 = vrot.lane.b32.xlu0 %v10223_v25, %s7788_s23  ;;  %6015 = vmatpush1.bf16.msra.mxu1 %v4206_v13  ;;  %v10371_v7 = vmul.f32 %v5373_v15, %v10348_v30  ;;  %v5745_v13 = vpack.c.bf16 %v5713_v43, %v5681_v38  ;;  %v5744_v57 = vpack.c.bf16 %v5712_v9, %v5680_v27  ;;  %v15992_v9 = vld [vmem:[#allocation32_spill] sm:$0xff]  ;;  %v10450_v25 = vld [vmem:[%s15118_s7 + $0x80] sm:$0xff] }
 0x269   :  { %v10328_v51 = vpop.permute.xlu1 %4278  ;;  %6016 = vmatprep.subr.bf16.mxu1 %v3790_v44  ;;  %v5149_v56 = vrot.slane %v2926_v26, %v15987_v39  ;;  %v15990_v26 = vld [vmem:[#allocation102_spill] sm:$0xff]  ;;  %v5157_v12 = vrot.slane %v10466_v63, %v15987_v39 }
 0x26a   :  { %15980 = vst [vmem:[#allocation166_spill] sm:$0xff] %v10328_v51  ;;  %v10331_v58 = vpop.permute.xlu0 %3454  ;;  %15984 = vst [vmem:[#allocation170_spill] sm:$0xff] %v10371_v7  ;;  %v5381_v7 = vrot.slane %v10466_v63, %v8943_v18 }
 0x26b   :  { %3520 = vrot.lane.b32.xlu1 %v10289_v6, %s7787_s0  ;;  %v10483_v28 = vsel %vm3522_vm4, %v10245_v42, %v10331_v58  ;;  %v3237_v42 = vrot.slane %v10450_v25, %v15829_v50 }
 0x26c   :  { %4745 = vrot.lane.b32.xlu0 %v9980_v53, %s7789_s24  ;;  %6017 = vmatpush1.bf16.msra.mxu1 %v3789_v31 }
 0x26d   :  { %v10350_v11 = vpop.permute.xlu1 %3448  ;;  %6018 = vmatprep.subr.bf16.mxu1 %v3373_v10 }
 0x26e   :  { %15981 = vst [vmem:[#allocation167_spill] sm:$0xff] %v10350_v11  ;;  %v10360_v61 = vsel %vm3522_vm4, %v10350_v11, %v10272_v2  ;;  %v10362_v22 = vpop.permute.xlu0 %3029 }
 0x26f   :  { %15982 = vst [vmem:[#allocation168_spill] sm:$0xff] %v10362_v22  ;;  %v10366_v1 = vmul.f32 %v5373_v15, %v10360_v61  ;;  %3103 = vrot.lane.b32.xlu1 %v10289_v6, %s7788_s23  ;;  %v10399_v15 = vsel %vm3105_vm5, %v10362_v22, %v10280_v45 }
 0x270   :  { %4749 = vrot.lane.b32.xlu0 %v9994_v62, %s7789_s24  ;;  %6019 = vmatpush1.bf16.msra.mxu1 %v3372_v59  ;;  %v10417_v38 = vmul.f32 %v5149_v56, %v10399_v15 }
 0x271   :  { %15983 = vst [vmem:[#allocation169_spill] sm:$0xff] %v10366_v1  ;;  %v3457_v44 = vpop.permute.xlu1 %3456  ;;  %6034 = vmatprep.subr.bf16.mxu1 %v5745_v13 }
 0x272   :  { %v10376_v4 = vpop.permute.xlu0 %3037  ;;  %15991 = vst [vmem:[#allocation102_spill] sm:$0xff] %v10417_v38  ;;  %v10473_v54 = vsel %vm3522_vm4, %v10272_v2, %v3457_v44  ;;  %v3654_v38 = vrot.slane %v10450_v25, %v15823_v60 }
 0x273   :  { %4751 = vrot.lane.b32.xlu1 %v10004_v55, %s7789_s24 }
 0x274   :  { %4753 = vrot.lane.b32.xlu0 %v15985_v24, %s7789_s24  ;;  %6035 = vmatpush2.bf16.msra.mxu1 %v5744_v57 }
 0x275   :  { %v10384_v31 = vpop.permute.xlu1 %3031 }
 0x276   :  { %15986 = vst [vmem:[#allocation142_spill] sm:$0xff] %v10384_v31  ;;  %v10391_v21 = vsel %vm3105_vm5, %v10384_v31, %v10294_v20  ;;  %v10393_v43 = vpop.permute.xlu0 %4729 }
 0x277   :  { %15988 = vst [vmem:[#allocation171_spill] sm:$0xff] %v10393_v43  ;;  %4755 = vrot.lane.b32.xlu1 %v10020_v8, %s7789_s24  ;;  %v10404_v10 = vmul.f32 %v5149_v56, %v10391_v21  ;;  %6037 = vmatmul.mubr.bf16.vlgmr.msra.gmra.mxu1 %v15990_v26  ;;  %v15995_v26 = vld [vmem:[#allocation31_spill] sm:$0xff] }
 0x278   :  { %4757 = vrot.lane.b32.xlu0 %v10026_v0, %s7789_s24  ;;  %7584 = vmatprep.mubr.msk.bf16.mxu1 %vm15709_vm7, %v10412_v14 }
 0x279   :  { %15989 = vst [vmem:[#allocation172_spill] sm:$0xff] %v10404_v10  ;;  %v3040_v37 = vpop.permute.xlu1 %3039 }
 0x27a   :  { %v10419_v59 = vpop.permute.xlu0 %4737 }
 0x27b   :  { %4759 = vrot.lane.b32.xlu1 %v10034_v47, %s7789_s24 }
 0x27c   :  { %4292 = vrot.lane.b32.xlu0 %v15992_v9, %s7790_s1 }
 0x27d   :  { %v10427_v27 = vpop.permute.xlu1 %4731 }
 0x27e   :  { %15993 = vst [vmem:[#allocation173_spill] sm:$0xff] %v10427_v27  ;;  %v10429_v57 = vpop.permute.xlu0 %4276 }
 0x27f   :  { %15994 = vst [vmem:[#allocation174_spill] sm:$0xff] %v10429_v57  ;;  %4294 = vrot.lane.b32.xlu1 %v15995_v26, %s7790_s1  ;;  %v10459_v26 = vld [vmem:[%s15118_s7 + $0x70] sm:$0xff] }
 0x280   :  { %4296 = vrot.lane.b32.xlu0 %v9980_v53, %s7790_s1  ;;  %v5377_v19 = vrot.slane %v10459_v26, %v8943_v18 }
 0x281   :  { %v10435_v56 = vpop.permute.xlu1 %4739 }
 0x282   :  { %v10437_v29 = vpop.permute.xlu0 %4280  ;;  %v5492_v1 = vmul.f32 %v5377_v19, %v10473_v54  ;;  %v5460_v35 = vmul.f32 %v5377_v19, %v10483_v28 }
 0x283   :  { %15996 = vst [vmem:[#allocation175_spill] sm:$0xff] %v10437_v29  ;;  %4298 = vrot.lane.b32.xlu1 %v9990_v16, %s7790_s1 }
 0x284   :  { %4300 = vrot.lane.b32.xlu0 %v9994_v62, %s7790_s1 }
 0x285   :  { %v10443_v13 = vpop.permute.xlu1 %4282 }
 0x286   :  { %15997 = vst [vmem:[#allocation176_spill] sm:$0xff] %v10443_v13  ;;  %v10445_v6 = vpop.permute.xlu0 %3458 }
 0x287   :  { %15998 = vst [vmem:[#allocation177_spill] sm:$0xff] %v10445_v6  ;;  %4302 = vrot.lane.b32.xlu1 %v10004_v55, %s7790_s1  ;;  %v3553_v2 = vsel %vm3522_vm4, %v10331_v58, %v10445_v6  ;;  %v10506_v58 = vsel %vm3105_vm5, %v10294_v20, %v3040_v37  ;;  %v5153_v20 = vrot.slane %v10459_v26, %v15987_v39 }
 0x288   :  { %4304 = vrot.lane.b32.xlu0 %v15985_v24, %s7790_s1  ;;  %v10508_v6 = vmul.f32 %v3654_v38, %v3553_v2  ;;  %v5461_v43 = vmul.f32 %v5381_v7, %v3553_v2  ;;  %v5524_v2 = vpack.c.bf16 %v5492_v1, %v5460_v35 }
 0x289   :  { %v10461_v9 = vpop.permute.xlu1 %4286 }
 0x28a   :  { %v10477_v10 = vpop.permute.xlu0 %3041  ;;  %16001 = vst [vmem:[#allocation180_spill] sm:$0xff] %v10508_v6 }
 0x28b   :  { %15999 = vst [vmem:[#allocation178_spill] sm:$0xff] %v10477_v10  ;;  %4306 = vrot.lane.b32.xlu1 %v10020_v8, %s7790_s1  ;;  %v3136_v31 = vsel %vm3105_vm5, %v10376_v4, %v10477_v10 }
 0x28c   :  { %3879 = vrot.lane.b32.xlu0 %v9980_v53, %s7791_s25  ;;  %v10544_v35 = vmul.f32 %v3237_v42, %v3136_v31 }
 0x28d   :  { %v10500_v57 = vpop.permute.xlu1 %3460 }
 0x28e   :  { %16000 = vst [vmem:[#allocation179_spill] sm:$0xff] %v10500_v57  ;;  %v3554_v53 = vsel %vm3522_vm4, %v3457_v44, %v10500_v57  ;;  %v10513_v27 = vpop.permute.xlu0 %4741  ;;  %v4933_v44 = vrot.slane %v10466_v63, %v8989_v23  ;;  %v5268_v57 = vmul.f32 %v5153_v20, %v10506_v58  ;;  %16005 = vst [vmem:[#allocation184_spill] sm:$0xff] %v10544_v35 }
 0x28f   :  { %16002 = vst [vmem:[#allocation181_spill] sm:$0xff] %v10513_v27  ;;  %v10519_v19 = vmul.f32 %v3654_v38, %v3554_v53  ;;  %v5493_v22 = vmul.f32 %v5381_v7, %v3554_v53  ;;  %3881 = vrot.lane.b32.xlu1 %v9990_v16, %s7791_s25  ;;  %v10533_v38 = vsel %vm3105_vm5, %v10280_v45, %v10376_v4 }
 0x290   :  { %3883 = vrot.lane.b32.xlu0 %v9994_v62, %s7791_s25  ;;  %v4839_v16 = vsel %vm15700_vm6, %v10309_v17, %v10435_v56  ;;  %v5237_v4 = vmul.f32 %v5157_v12, %v3136_v31  ;;  %v4836_v6 = vsel %vm15700_vm6, %v10419_v59, %v10513_v27 }
 0x291   :  { %16003 = vst [vmem:[#allocation182_spill] sm:$0xff] %v10519_v19  ;;  %v10537_v7 = vpop.permute.xlu1 %3043  ;;  %v5525_v10 = vpack.c.bf16 %v5493_v22, %v5461_v43  ;;  %v5236_v22 = vmul.f32 %v5153_v20, %v10533_v38  ;;  %v4929_v43 = vrot.slane %v10459_v26, %v8989_v23 }
 0x292   :  { %16004 = vst [vmem:[#allocation183_spill] sm:$0xff] %v10537_v7  ;;  %v3137_v45 = vsel %vm3105_vm5, %v3040_v37, %v10537_v7  ;;  %v4285_v1 = vpop.permute.xlu0 %4284  ;;  %v5013_v7 = vmul.f32 %v4933_v44, %v4836_v6 }
 0x293   :  { %v10549_v11 = vmul.f32 %v3237_v42, %v3137_v45  ;;  %v5269_v53 = vmul.f32 %v5157_v12, %v3137_v45  ;;  %3885 = vrot.lane.b32.xlu1 %v10004_v55, %s7791_s25  ;;  %6090 = vmatprep.subr.bf16.mxu1 %v5525_v10  ;;  %v4838_v12 = vsel %vm15700_vm6, %v10298_v49, %v10419_v59  ;;  %v16008_v42 = vld [vmem:[#allocation39_spill] sm:$0xff] }
 0x294   :  { %3887 = vrot.lane.b32.xlu0 %v15985_v24, %s7791_s25  ;;  %6091 = vmatpush1.bf16.msra.mxu1 %v5524_v2  ;;  %v1239_v20 = vadd.f32 %v16008_v42, %v8290_v33  ;;  %v5300_v45 = vpack.c.bf16 %v5268_v57, %v5236_v22  ;;  %v5044_v19 = vmul.f32 %v4929_v43, %v4839_v16  ;;  %v16010_v16 = vld [vmem:[#allocation38_spill] sm:$0xff] }
 0x295   :  { %16006 = vst [vmem:[#allocation185_spill] sm:$0xff] %v10549_v11  ;;  %v10568_v10 = vpop.permute.xlu1 %4743  ;;  %v5301_v37 = vpack.c.bf16 %v5269_v53, %v5237_v4  ;;  %v5012_v31 = vmul.f32 %v4929_v43, %v4838_v12  ;;  %v1300_v57 = vadd.f32 %v16010_v16, %v8290_v33  ;;  %v16011_v53 = vld [vmem:[#allocation45_spill] sm:$0xff] }
 0x296   :  { %16007 = vst [vmem:[#allocation186_spill] sm:$0xff] %v10568_v10  ;;  %v4837_v2 = vsel %vm15700_vm6, %v10435_v56, %v10568_v10  ;;  %v10576_v27 = vpop.permute.xlu0 %4288  ;;  %v1243_v4 = vadd.f32 %v16011_v53, %v8298_v48  ;;  %v4484_v56 = vrot.slane %v10466_v63, %v9052_v32  ;;  %v10590_v22 = vmax.f32 %v1239_v20, 0.0 }
 0x297   :  { %16009 = vst [vmem:[#allocation39_spill] sm:$0xff] %v10576_v27  ;;  %v5045_v59 = vmul.f32 %v4933_v44, %v4837_v2  ;;  %3889 = vrot.lane.b32.xlu1 %v10020_v8, %s7791_s25  ;;  %6092 = vmatprep.subr.bf16.mxu1 %v5301_v37  ;;  %v5076_v37 = vpack.c.bf16 %v5044_v19, %v5012_v31  ;;  %v16015_v19 = vld [vmem:[#allocation118_spill] sm:$0xff] }
 0x298   :  { %3891 = vrot.lane.b32.xlu0 %v10026_v0, %s7791_s25  ;;  %6093 = vmatpush1.bf16.msra.mxu1 %v5300_v45  ;;  %16013 = vst [vmem:[#allocation45_spill] sm:$0xff] %v10590_v22  ;;  %v4389_v43 = vsel %vm15698_vm8, %v4285_v1, %v10576_v27  ;;  %v4391_v45 = vsel %vm15698_vm8, %v10437_v29, %v4285_v1  ;;  %v10614_v53 = vmax.f32 %v1243_v4, 0.0  ;;  %v16022_v27 = vld [vmem:[#allocation22_spill] sm:$0xff] }
 0x299   :  { %v10588_v6 = vpop.permute.xlu1 %4290  ;;  %v5077_v44 = vpack.c.bf16 %v5045_v59, %v5013_v7  ;;  %v16016_v7 = vld [vmem:[#allocation124_spill] sm:$0xff]  ;;  %v4480_v20 = vrot.slane %v10459_v26, %v9052_v32  ;;  %v4392_v1 = vsel %vm15698_vm8, %v10443_v13, %v10461_v9 }
 0x29a   :  { %16012 = vst [vmem:[#allocation38_spill] sm:$0xff] %v10588_v6  ;;  %v4390_v12 = vsel %vm15698_vm8, %v10461_v9, %v10588_v6  ;;  %v10599_v42 = vpop.permute.xlu0 %3863  ;;  %v4660_v31 = vpack.c.bf16 %v16016_v7, %v16015_v19  ;;  %v16017_v59 = vld [vmem:[#allocation44_spill] sm:$0xff]  ;;  %16018 = vst [vmem:[#allocation118_spill] sm:$0xff] %v10614_v53  ;;  %v10622_v19 = vmax.f32 %v1300_v57, 0.0 }
 0x29b   :  { %16014 = vst [vmem:[#allocation187_spill] sm:$0xff] %v10599_v42  ;;  %v4596_v2 = vmul.f32 %v4484_v56, %v4390_v12  ;;  %3893 = vrot.lane.b32.xlu1 %v10034_v47, %s7791_s25  ;;  %6094 = vmatprep.subr.bf16.mxu1 %v5077_v44  ;;  %v1304_v16 = vadd.f32 %v16017_v59, %v8298_v48  ;;  %v16021_v7 = vld [vmem:[#allocation40_spill] sm:$0xff] }
 0x29c   :  { %3478 = vrot.lane.b32.xlu0 %v10590_v22, %s7787_s0  ;;  %6095 = vmatpush1.bf16.msra.mxu1 %v5076_v37  ;;  %v4564_v44 = vmul.f32 %v4484_v56, %v4389_v43  ;;  %16020 = vst [vmem:[#allocation44_spill] sm:$0xff] %v10622_v19  ;;  %v1302_v35 = vadd.f32 %v16021_v7, %v8290_v33  ;;  %v16023_v59 = vld [vmem:[#allocation112_spill] sm:$0xff] }
 0x29d   :  { %v10620_v12 = vpop.permute.xlu1 %3865  ;;  %6096 = vmatprep.subr.bf16.mxu1 %v4660_v31  ;;  %v4563_v37 = vmul.f32 %v4480_v20, %v4391_v45  ;;  %v4659_v4 = vpack.c.bf16 %v16023_v59, %v16022_v27  ;;  %v4595_v10 = vmul.f32 %v4480_v20, %v4392_v1  ;;  %v7556_v9 = vld [vmem:[%s15118_s7 + $0x168] ss:$0 sm:$0xff]  ;;  %v10638_v56 = vmax.f32 %v1304_v16, 0.0  ;;  %v16025_v27 = vld [vmem:[#allocation46_spill] sm:$0xff] }
 0x29e   :  { %16019 = vst [vmem:[#allocation124_spill] sm:$0xff] %v10620_v12  ;;  %v3868_v11 = vpop.permute.xlu0 %3867  ;;  %v4628_v6 = vpack.c.bf16 %v4596_v2, %v4564_v44  ;;  %v1306_v43 = vadd.f32 %v16025_v27, %v8298_v48  ;;  %v10642_v2 = vmax.f32 %v1302_v35, 0.0  ;;  %v16027_v31 = vld [vmem:[#allocation56_spill] sm:$0xff]  ;;  %v3650_v35 = vrot.slane %v10466_v63, %v15823_v60 }
 0x29f   :  { %3480 = vrot.lane.b32.xlu1 %v10614_v53, %s7787_s0  ;;  %v3974_v57 = vsel %vm15691_vm9, %v10599_v42, %v3868_v11  ;;  %16024 = vst [vmem:[#allocation40_spill] sm:$0xff] %v10638_v56  ;;  %v1363_v20 = vadd.f32 %v16027_v31, %v8290_v33  ;;  %v4627_v1 = vpack.c.bf16 %v4595_v10, %v4563_v37 }
 0x2a0   :  { %3482 = vrot.lane.b32.xlu0 %v10622_v19, %s7787_s0  ;;  %6097 = vmatpush1.bf16.msra.mxu1 %v4659_v4  ;;  %16026 = vst [vmem:[#allocation22_spill] sm:$0xff] %v10642_v2  ;;  %v10649_v59 = vmul.f32 %v7556_v9, %v3974_v57  ;;  %v4067_v4 = vrot.slane %v10466_v63, %v9258_v46  ;;  %v10667_v37 = vmax.f32 %v1306_v43, 0.0 }
 0x2a1   :  { %v3870_v45 = vpop.permute.xlu1 %3869  ;;  %6098 = vmatprep.subr.bf16.mxu1 %v4628_v6  ;;  %v4063_v10 = vrot.slane %v10459_v26, %v9258_v46  ;;  %v3762_v13 = vmul.f32 %v3650_v35, %v10473_v54  ;;  %v3730_v54 = vmul.f32 %v3650_v35, %v10483_v28 }
 0x2a2   :  { %v3975_v44 = vsel %vm15691_vm9, %v10620_v12, %v3870_v45  ;;  %v3872_v7 = vpop.permute.xlu0 %3871  ;;  %16028 = vst [vmem:[#allocation112_spill] sm:$0xff] %v10649_v59  ;;  %16030 = vst [vmem:[#allocation56_spill] sm:$0xff] %v10667_v37  ;;  %v10673_v12 = vmax.f32 %v1363_v20, 0.0  ;;  %v3646_v20 = vrot.slane %v10459_v26, %v15823_v60 }
 0x2a3   :  { %v10651_v16 = vmul.f32 %v7556_v9, %v3975_v44  ;;  %3484 = vrot.lane.b32.xlu1 %v10638_v56, %s7787_s0  ;;  %v10663_v6 = vsel %vm15691_vm9, %v3868_v11, %v3872_v7  ;;  %v16031_v9 = vld [vmem:[#allocation62_spill] sm:$0xff]  ;;  %v4178_v29 = vmul.f32 %v4063_v10, %v3975_v44  ;;  %v4146_v44 = vmul.f32 %v4063_v10, %v3974_v57 }
 0x2a4   :  { %3486 = vrot.lane.b32.xlu0 %v10642_v2, %s7787_s0  ;;  %6099 = vmatpush1.bf16.msra.mxu1 %v4627_v1  ;;  %v1367_v27 = vadd.f32 %v16031_v9, %v8298_v48  ;;  %16032 = vst [vmem:[#allocation62_spill] sm:$0xff] %v10673_v12  ;;  %v4147_v43 = vmul.f32 %v4067_v4, %v10663_v6 }
 0x2a5   :  { %16029 = vst [vmem:[#allocation46_spill] sm:$0xff] %v10651_v16  ;;  %v3874_v31 = vpop.permute.xlu1 %3873  ;;  %v4071_v9 = vrot.slane %v10450_v25, %v9258_v46  ;;  %v3233_v25 = vrot.slane %v10466_v63, %v15829_v50  ;;  %v3761_v16 = vmul.f32 %v3646_v20, %v10360_v61  ;;  %v4210_v49 = vpack.c.bf16 %v4178_v29, %v4146_v44 }
 0x2a6   :  { %v3973_v11 = vsel %vm15691_vm9, %v3870_v45, %v3874_v31  ;;  %v10678_v17 = vpop.permute.xlu0 %3875  ;;  %v3729_v63 = vmul.f32 %v3646_v20, %v10348_v30  ;;  %v3229_v61 = vrot.slane %v10459_v26, %v15829_v50  ;;  %v7558_v30 = vld [vmem:[%s15118_s7 + $0x178] ss:$0 sm:$0xff]  ;;  %v10729_v26 = vld [vmem:[%s15118_s7 + $0x88] sm:$0xff]  ;;  %v7557_v20 = vld [vmem:[%s15118_s7 + $0x170] ss:$0 sm:$0xff] }
 0x2a7   :  { %16033 = vst [vmem:[#allocation188_spill] sm:$0xff] %v10678_v17  ;;  %v4179_v1 = vmul.f32 %v4067_v4, %v3973_v11  ;;  %3488 = vrot.lane.b32.xlu1 %v10667_v37, %s7787_s0  ;;  %v3970_v45 = vsel %vm15691_vm9, %v3872_v7, %v10678_v17  ;;  %v10693_v4 = vmax.f32 %v1367_v27, 0.0  ;;  %v3794_v7 = vpack.c.bf16 %v3762_v13, %v3730_v54 }
 0x2a8   :  { %3490 = vrot.lane.b32.xlu0 %v10673_v12, %s7787_s0  ;;  %v3345_v35 = vmul.f32 %v3233_v25, %v10506_v58  ;;  %v10706_v10 = vmul.f32 %v4071_v9, %v3970_v45  ;;  %v3313_v29 = vmul.f32 %v3233_v25, %v10533_v38  ;;  %v5685_v54 = vmul.f32 %v7558_v30, %v3970_v45 }
 0x2a9   :  { %16034 = vst [vmem:[#allocation189_spill] sm:$0xff] %v10693_v4  ;;  %v10697_v42 = vpop.permute.xlu1 %3877  ;;  %v4211_v59 = vpack.c.bf16 %v4179_v1, %v4147_v43  ;;  %v5389_v43 = vrot.slane %v10729_v26, %v8943_v18  ;;  %v5716_v25 = vmul.f32 %v7557_v20, %v3973_v11  ;;  %v10769_v11 = vld [vmem:[%s15118_s7 + $0xa0] sm:$0xff] }
 0x2aa   :  { %16035 = vst [vmem:[#allocation190_spill] sm:$0xff] %v10697_v42  ;;  %v3971_v28 = vsel %vm15691_vm9, %v3874_v31, %v10697_v42  ;;  %v10703_v57 = vpop.permute.xlu0 %3462  ;;  %16037 = vst [vmem:[#allocation192_spill] sm:$0xff] %v10706_v10  ;;  %v3793_v31 = vpack.c.bf16 %v3761_v16, %v3729_v63  ;;  %v3377_v16 = vpack.c.bf16 %v3345_v35, %v3313_v29 }
 0x2ab   :  { %16036 = vst [vmem:[#allocation191_spill] sm:$0xff] %v10703_v57  ;;  %v10708_v27 = vmul.f32 %v4071_v9, %v3971_v28  ;;  %3492 = vrot.lane.b32.xlu1 %v10693_v4, %s7787_s0  ;;  %6100 = vmatprep.subr.bf16.mxu1 %v4211_v59  ;;  %v3344_v59 = vmul.f32 %v3229_v61, %v10391_v21  ;;  %v10746_v9 = vld [vmem:[%s15118_s7 + $0x98] sm:$0xff]  ;;  %16044 = vst [vmem:[#allocation199_spill] sm:$0xff] %v10769_v11 }
 0x2ac   :  { %3061 = vrot.lane.b32.xlu0 %v10590_v22, %s7788_s23  ;;  %6101 = vmatpush1.bf16.msra.mxu1 %v4210_v49  ;;  %v5717_v38 = vmul.f32 %v7558_v30, %v3971_v28  ;;  %v3312_v21 = vmul.f32 %v3229_v61, %v10399_v15  ;;  %v3666_v61 = vrot.slane %v10746_v9, %v15823_v60 }
 0x2ad   :  { %16038 = vst [vmem:[#allocation193_spill] sm:$0xff] %v10708_v27  ;;  %v10720_v58 = vpop.permute.xlu1 %3464  ;;  %6102 = vmatprep.subr.bf16.mxu1 %v3794_v7  ;;  %v5684_v29 = vmul.f32 %v7557_v20, %v10663_v6  ;;  %v5173_v42 = vrot.slane %v10746_v9, %v15987_v39 }
 0x2ae   :  { %16039 = vst [vmem:[#allocation194_spill] sm:$0xff] %v10720_v58  ;;  %v3467_v49 = vpop.permute.xlu0 %3466  ;;  %v3376_v44 = vpack.c.bf16 %v3344_v59, %v3312_v21  ;;  %v5749_v45 = vpack.c.bf16 %v5717_v38, %v5685_v54  ;;  %v5397_v54 = vrot.slane %v10746_v9, %v8943_v18 }
 0x2af   :  { %3063 = vrot.lane.b32.xlu1 %v10614_v53, %s7788_s23  ;;  %v10739_v1 = vsel %vm3522_vm4, %v10703_v57, %v3467_v49  ;;  %v5748_v38 = vpack.c.bf16 %v5716_v25, %v5684_v29 }
 0x2b0   :  { %16040 = vst [vmem:[#allocation195_spill] sm:$0xff] %v10739_v1  ;;  %3065 = vrot.lane.b32.xlu0 %v10622_v19, %s7788_s23  ;;  %6103 = vmatpush1.bf16.msra.mxu1 %v3793_v31  ;;  %v10757_v35 = vmul.f32 %v5389_v43, %v10739_v1 }
 0x2b1   :  { %v3469_v15 = vpop.permute.xlu1 %3468  ;;  %6104 = vmatprep.subr.bf16.mxu1 %v3377_v16  ;;  %v3670_v16 = vrot.slane %v10769_v11, %v15823_v60 }
 0x2b2   :  { %v10754_v28 = vsel %vm3522_vm4, %v10720_v58, %v3469_v15  ;;  %v3471_v7 = vpop.permute.xlu0 %3470  ;;  %16042 = vst [vmem:[#allocation197_spill] sm:$0xff] %v10757_v35 }
 0x2b3   :  { %16041 = vst [vmem:[#allocation196_spill] sm:$0xff] %v10754_v28  ;;  %v10760_v63 = vmul.f32 %v5389_v43, %v10754_v28  ;;  %3067 = vrot.lane.b32.xlu1 %v10638_v56, %s7788_s23  ;;  %v3547_v31 = vsel %vm3522_vm4, %v3467_v49, %v3471_v7  ;;  %v10787_v49 = vld [vmem:[%s15118_s7 + $0x90] sm:$0xff]  ;;  %v16089_v28 = vld [vmem:[#allocation59_spill] sm:$0xff] }
 0x2b4   :  { %3069 = vrot.lane.b32.xlu0 %v10642_v2, %s7788_s23  ;;  %6105 = vmatpush1.bf16.msra.mxu1 %v3376_v44  ;;  %v10789_v21 = vmul.f32 %v3666_v61, %v3547_v31  ;;  %v5393_v44 = vrot.slane %v10787_v49, %v8943_v18  ;;  %v1428_v1 = vadd.f32 %v16089_v28, %v8290_v33  ;;  %v16094_v28 = vld [vmem:[#allocation90_spill] sm:$0xff] }
 0x2b5   :  { %16043 = vst [vmem:[#allocation198_spill] sm:$0xff] %v10760_v63  ;;  %v3473_v59 = vpop.permute.xlu1 %3472  ;;  %6120 = vmatprep.subr.bf16.mxu1 %v5749_v45 }
 0x2b6   :  { %v3548_v43 = vsel %vm3522_vm4, %v3469_v15, %v3473_v59  ;;  %v10782_v6 = vpop.permute.xlu0 %3474  ;;  %16046 = vst [vmem:[#allocation201_spill] sm:$0xff] %v10789_v21 }
 0x2b7   :  { %16045 = vst [vmem:[#allocation200_spill] sm:$0xff] %v10782_v6  ;;  %v10791_v20 = vmul.f32 %v3666_v61, %v3548_v43  ;;  %v3545_v15 = vsel %vm3522_vm4, %v3471_v7, %v10782_v6  ;;  %3071 = vrot.lane.b32.xlu1 %v10667_v37, %s7788_s23  ;;  %v5496_v45 = vmul.f32 %v5393_v44, %v3548_v43 }
 0x2b8   :  { %3073 = vrot.lane.b32.xlu0 %v10673_v12, %s7788_s23  ;;  %6121 = vmatpush2.bf16.msra.mxu1 %v5748_v38  ;;  %v10808_v29 = vmul.f32 %v3670_v16, %v3545_v15  ;;  %v5465_v30 = vmul.f32 %v5397_v54, %v3545_v15  ;;  %v10822_v38 = vld [vmem:[%s15116_s5] ss:$8 sps:$4 sm:$0xff]   ;;  %v5464_v43 = vmul.f32 %v5393_v44, %v3547_v31  ;;  %v10844_v44 = vpop.f32.mrf.mxu0 }
 0x2b9   :  { %16047 = vst [vmem:[#allocation202_spill] sm:$0xff] %v10791_v20  ;;  %v10804_v25 = vpop.permute.xlu1 %3476  ;;  %v5165_v61 = vrot.slane %v10729_v26, %v15987_v39  ;;  %v16085_v20 = vld [vmem:[#allocation57_spill] sm:$0xff] }
 0x2ba   :  { %16048 = vst [vmem:[#allocation203_spill] sm:$0xff] %v10804_v25  ;;  %16049 = vst [vmem:[#allocation204_spill] sm:$0xff] %v10808_v29  ;;  %v3546_v7 = vsel %vm3522_vm4, %v3473_v59, %v10804_v25  ;;  %v10813_v13 = vpop.permute.xlu0 %3045  ;;  %v5528_v15 = vpack.c.bf16 %v5496_v45, %v5464_v43  ;;  %v10865_v59 = vpop.f32.mrf.mxu0 }
 0x2bb   :  { %16050 = vst [vmem:[#allocation205_spill] sm:$0xff] %v10813_v13  ;;  %v10815_v6 = vmul.f32 %v3670_v16, %v3546_v7  ;;  %v5497_v10 = vmul.f32 %v5397_v54, %v3546_v7  ;;  %3075 = vrot.lane.b32.xlu1 %v10693_v4, %s7788_s23  ;;  %6123 = vmatmul.mubr.bf16.vlgmr.msra.gmra.mxu1 %v10822_v38  ;;  %16057 = vst [vmem:[#allocation212_spill] sm:$0xff] %v10865_v59 }
 0x2bc   :  { %4761 = vrot.lane.b32.xlu0 %v10590_v22, %s7789_s24  ;;  %7586 = vmatprep.mubr.msk.bf16.mxu1 %vm15709_vm7, %v10412_v14 }
 0x2bd   :  { %16051 = vst [vmem:[#allocation206_spill] sm:$0xff] %v10815_v6  ;;  %v10831_v16 = vpop.permute.xlu1 %3047  ;;  %v5529_v54 = vpack.c.bf16 %v5497_v10, %v5465_v30  ;;  %v5169_v6 = vrot.slane %v10787_v49, %v15987_v39 }
 0x2be   :  { %16052 = vst [vmem:[#allocation207_spill] sm:$0xff] %v10831_v16  ;;  %v3050_v7 = vpop.permute.xlu0 %3049 }
 0x2bf   :  { %4763 = vrot.lane.b32.xlu1 %v10614_v53, %s7789_s24  ;;  %6176 = vmatprep.subr.bf16.mxu1 %v5529_v54  ;;  %v10840_v31 = vsel %vm3105_vm5, %v10813_v13, %v3050_v7  ;;  %v3249_v54 = vrot.slane %v10746_v9, %v15829_v50 }
 0x2c0   :  { %16053 = vst [vmem:[#allocation208_spill] sm:$0xff] %v10840_v31  ;;  %4765 = vrot.lane.b32.xlu0 %v10622_v19, %s7789_s24  ;;  %6177 = vmatpush1.bf16.msra.mxu1 %v5528_v15  ;;  %v10852_v45 = vmul.f32 %v5165_v61, %v10840_v31  ;;  %v16090_v31 = vld [vmem:[#allocation63_spill] sm:$0xff] }
 0x2c1   :  { %v3052_v10 = vpop.permute.xlu1 %3051 }
 0x2c2   :  { %v10849_v26 = vsel %vm3105_vm5, %v10831_v16, %v3052_v10  ;;  %v3054_v30 = vpop.permute.xlu0 %3053  ;;  %16055 = vst [vmem:[#allocation210_spill] sm:$0xff] %v10852_v45 }
 0x2c3   :  { %16054 = vst [vmem:[#allocation209_spill] sm:$0xff] %v10849_v26  ;;  %v10855_v43 = vmul.f32 %v5165_v61, %v10849_v26  ;;  %4767 = vrot.lane.b32.xlu1 %v10638_v56, %s7789_s24  ;;  %v3130_v15 = vsel %vm3105_vm5, %v3050_v7, %v3054_v30  ;;  %v3253_v7 = vrot.slane %v10769_v11, %v15829_v50 }
 0x2c4   :  { %4769 = vrot.lane.b32.xlu0 %v10642_v2, %s7789_s24  ;;  %v10873_v27 = vmul.f32 %v3249_v54, %v3130_v15  ;;  %v1430_v11 = vadd.f32 %v16090_v31, %v8298_v48 }
 0x2c5   :  { %16056 = vst [vmem:[#allocation211_spill] sm:$0xff] %v10855_v43  ;;  %v3056_v29 = vpop.permute.xlu1 %3055 }
 0x2c6   :  { %v3131_v61 = vsel %vm3105_vm5, %v3052_v10, %v3056_v29  ;;  %v10871_v25 = vpop.permute.xlu0 %3057  ;;  %16059 = vst [vmem:[#allocation214_spill] sm:$0xff] %v10873_v27  ;;  %v7746_v27 = vld [vmem:[%s15118_s7 + $0x28] sm:$0xff] }
 0x2c7   :  { %16058 = vst [vmem:[#allocation213_spill] sm:$0xff] %v10871_v25  ;;  %v10875_v17 = vmul.f32 %v3249_v54, %v3131_v61  ;;  %4771 = vrot.lane.b32.xlu1 %v10667_v37, %s7789_s24  ;;  %v3128_v10 = vsel %vm3105_vm5, %v3054_v30, %v10871_v25  ;;  %v10890_v54 = vpop.f32.mrf.mxu0  ;;  %v5272_v35 = vmul.f32 %v5169_v6, %v3131_v61  ;;  %v16100_v61 = vld [vmem:[#allocation89_spill] sm:$0xff] }
 0x2c8   :  { %4773 = vrot.lane.b32.xlu0 %v10673_v12, %s7789_s24  ;;  %v10899_v13 = vmul.f32 %v3253_v7, %v3128_v10  ;;  %v5241_v57 = vmul.f32 %v5173_v42, %v3128_v10  ;;  %v5240_v25 = vmul.f32 %v5169_v6, %v3130_v15  ;;  %v10967_v15 = vrot.slane %v7746_v27, %v15823_v60 }
 0x2c9   :  { %16060 = vst [vmem:[#allocation215_spill] sm:$0xff] %v10875_v17  ;;  %v10892_v45 = vpop.permute.xlu1 %3059  ;;  %v10907_v58 = vpop.f32.mrf.mxu0 }
 0x2ca   :  { %16061 = vst [vmem:[#allocation216_spill] sm:$0xff] %v10892_v45  ;;  %v3129_v63 = vsel %vm3105_vm5, %v3056_v29, %v10892_v45  ;;  %16062 = vst [vmem:[#allocation217_spill] sm:$0xff] %v10899_v13  ;;  %v5304_v29 = vpack.c.bf16 %v5272_v35, %v5240_v25  ;;  %v11049_v25 = vmax.f32 %v1428_v1, 0.0  ;;  %v7543_v1 = vld [vmem:[%s15118_s7 + $0x100] ss:$0 sm:$0xff] }
 0x2cb   :  { %v10901_v16 = vmul.f32 %v3253_v7, %v3129_v63  ;;  %v5273_v30 = vmul.f32 %v5173_v42, %v3129_v63  ;;  %4775 = vrot.lane.b32.xlu1 %v10693_v4, %s7789_s24  ;;  %16064 = vst [vmem:[#allocation219_spill] sm:$0xff] %v10907_v58  ;;  %v10911_v45 = vpop.f32.mrf.mxu0  ;;  %v10917_v42 = vpop.f32.mrf.mxu1  ;;  %v7744_v7 = vld [vmem:[%s15118_s7 + $0x8] sm:$0xff] }
 0x2cc   :  { %4308 = vrot.lane.b32.xlu0 %v10026_v0, %s7790_s1  ;;  %16065 = vst [vmem:[#allocation220_spill] sm:$0xff] %v10911_v45  ;;  %16066 = vst [vmem:[#allocation221_spill] sm:$0xff] %v10917_v42  ;;  %v4011_v10 = vrot.slane %v7744_v7, %v9258_v46  ;;  %v7745_v7 = vld [vmem:[%s15118_s7 + $0x20] sm:$0xff]  ;;  %v16086_v0 = vld [vmem:[#allocation58_spill] sm:$0xff] }
 0x2cd   :  { %16063 = vst [vmem:[#allocation218_spill] sm:$0xff] %v10901_v16  ;;  %v5305_v43 = vpack.c.bf16 %v5273_v30, %v5241_v57  ;;  %v10919_v63 = vpop.f32.mrf.mxu0  ;;  %v10927_v57 = vpop.f32.mrf.mxu1  ;;  %v10953_v17 = vrot.slane %v7745_v7, %v9052_v32  ;;  %v10970_v59 = vrot.slane %v7745_v7, %v8943_v18  ;;  %v1426_v16 = vadd.f32 %v16085_v20, %v8290_v33  ;;  %v16095_v45 = vld [vmem:[#allocation69_spill] sm:$0xff] }
 0x2ce   :  { %16067 = vst [vmem:[#allocation222_spill] sm:$0xff] %v10919_v63  ;;  %16069 = vst [vmem:[#allocation224_spill] sm:$0xff] %v10927_v57  ;;  %v1365_v58 = vadd.f32 %v16086_v0, %v8290_v33  ;;  %v10995_v20 = vrot.slane %v7745_v7, %v8989_v23  ;;  %v10998_v0 = vrot.slane %v7746_v27, %v8989_v23 }
 0x2cf   :  { %4310 = vrot.lane.b32.xlu1 %v10034_v47, %s7790_s1  ;;  %6178 = vmatprep.subr.bf16.mxu1 %v5305_v43  ;;  %v10937_v30 = vpop.f32.mrf.mxu0  ;;  %v10982_v47 = vrot.slane %v7745_v7, %v15987_v39  ;;  %v10984_v21 = vpop.f32.mrf.mxu1  ;;  %v4001_v31 = vsel %vm15691_vm9, %v16095_v45, %v16094_v28  ;;  %v11015_v7 = vld [vmem:[%s15118_s7] sm:$0xff]  ;;  %v11029_v28 = vrot.slane %v7746_v27, %v9258_v46  ;;  %v11035_v34 = vmax.f32 %v1426_v16, 0.0 }
 0x2d0   :  { %4312 = vrot.lane.b32.xlu0 %v10590_v22, %s7790_s1  ;;  %6179 = vmatpush1.bf16.msra.mxu1 %v5304_v29  ;;  %16073 = vst [vmem:[#allocation226_spill] sm:$0xff] %v10937_v30  ;;  %v10973_v30 = vrot.slane %v7746_v27, %v15829_v50  ;;  %16087 = vst [vmem:[#allocation57_spill] sm:$0xff] %v10984_v21  ;;  %v1489_v57 = vadd.f32 %v10844_v44, %v8290_v33  ;;  %v11051_v43 = vmax.f32 %v1430_v11, 0.0 }
 0x2d1   :  { %v11000_v42 = vpop.f32.mrf.mxu0  ;;  %v11045_v40 = vpop.f32.mrf.mxu1  ;;  %16104 = vst [vmem:[#allocation55_spill] sm:$0xff] %v11049_v25  ;;  %v4007_v33 = vrot.slane %v11015_v7, %v9258_v46 }
 0x2d2   :  { %16091 = vst [vmem:[#allocation59_spill] sm:$0xff] %v11000_v42  ;;  %v4424_v42 = vrot.slane %v11015_v7, %v9052_v32  ;;  %16102 = vst [vmem:[#allocation69_spill] sm:$0xff] %v11045_v40  ;;  %v11074_v40 = vmul.f32 %v7543_v1, %v4001_v31 }
 0x2d3   :  { %v10921_v6 = vpop.permute.xlu0 %1855  ;;  %4314 = vrot.lane.b32.xlu1 %v10614_v53, %s7790_s1  ;;  %16105 = vst [vmem:[#allocation89_spill] sm:$0xff] %v11051_v43  ;;  %v11053_v16 = vpop.f32.mrf.mxu0 }
 0x2d4   :  { %16068 = vst [vmem:[#allocation223_spill] sm:$0xff] %v10921_v6  ;;  %4316 = vrot.lane.b32.xlu0 %v10622_v19, %s7790_s1  ;;  %v11026_v6 = vrot.slane %v7746_v27, %v9052_v32 }
 0x2d6   :  { %v10929_v35 = vpop.permute.xlu1 %1860 }
 0x2d7   :  { %16070 = vst [vmem:[#allocation225_spill] sm:$0xff] %v10929_v35  ;;  %v10939_v29 = vpop.permute.xlu0 %4352  ;;  %4318 = vrot.lane.b32.xlu1 %v10638_v56, %s7790_s1  ;;  %v16093_v35 = vld [vmem:[#allocation64_spill] sm:$0xff] }
 0x2d8   :  { %16074 = vst [vmem:[#allocation227_spill] sm:$0xff] %v10939_v29  ;;  %4320 = vrot.lane.b32.xlu0 %v10642_v2, %s7790_s1  ;;  %v4419_v51 = vsel %vm15698_vm8, %v10939_v29, %v16097_v41  ;;  %16098 = vst [vmem:[#allocation64_spill] sm:$0xff] %v11035_v34  ;;  %v4165_v41 = vmul.f32 %v4011_v10, %v4001_v31 }
 0x2d9   :  { %v4549_v11 = vmul.f32 %v4424_v42, %v4419_v51  ;;  %v11086_v51 = vadd.f32 %v10890_v54, %v8298_v48 }
 0x2da   :  { %v10986_v26 = vpop.permute.xlu1 %4747 }
 0x2db   :  { %16088 = vst [vmem:[#allocation58_spill] sm:$0xff] %v10986_v26  ;;  %v11002_v21 = vpop.permute.xlu0 %3935  ;;  %4322 = vrot.lane.b32.xlu1 %v10667_v37, %s7790_s1  ;;  %v1369_v26 = vadd.f32 %v16093_v35, %v8298_v48  ;;  %v16096_v35 = vld [vmem:[#allocation65_spill] sm:$0xff] }
 0x2dc   :  { %16092 = vst [vmem:[#allocation63_spill] sm:$0xff] %v11002_v21  ;;  %3895 = vrot.lane.b32.xlu0 %v10590_v22, %s7791_s25  ;;  %v1432_v63 = vadd.f32 %v16096_v35, %v8298_v48  ;;  %v11037_v22 = vmax.f32 %v1365_v58, 0.0  ;;  %v16101_v35 = vld [vmem:[#allocation67_spill] sm:$0xff]  ;;  %v16107_v58 = vld [vmem:[#allocation60_spill] sm:$0xff]  ;;  %v11104_v48 = vpop.f32.mrf.mxu0 }
 0x2dd   :  { %v4000_v13 = vsel %vm15691_vm9, %v16101_v35, %v16100_v61  ;;  %16106 = vst [vmem:[#allocation67_spill] sm:$0xff] %v11053_v16  ;;  %v11063_v61 = vmax.f32 %v1369_v26, 0.0  ;;  %v11080_v26 = vsel %vm15691_vm9, %v11002_v21, %v16101_v35  ;;  %v16116_v21 = vld [vmem:[#allocation88_spill] sm:$0xff] }
 0x2de   :  { %16099 = vst [vmem:[#allocation90_spill] sm:$0xff] %v11037_v22  ;;  %v11047_v27 = vpop.permute.xlu1 %4354  ;;  %16111 = vst [vmem:[#allocation230_spill] sm:$0xff] %v11080_v26  ;;  %v11098_v35 = vmul.f32 %v7543_v1, %v4000_v13  ;;  %v16121_v1 = vld [vmem:[#allocation87_spill] sm:$0xff]  ;;  %v11166_v3 = vpop.f32.mrf.mxu0 }
 0x2df   :  { %16103 = vst [vmem:[#allocation65_spill] sm:$0xff] %v11047_v27  ;;  %v4420_v44 = vsel %vm15698_vm8, %v11047_v27, %v16107_v58  ;;  %v11059_v29 = vpop.permute.xlu0 %3518  ;;  %3897 = vrot.lane.b32.xlu1 %v10614_v53, %s7791_s25  ;;  %16109 = vst [vmem:[#allocation228_spill] sm:$0xff] %v11063_v61  ;;  %v11072_v58 = vmax.f32 %v1432_v63, 0.0  ;;  %v4133_v27 = vmul.f32 %v4011_v10, %v4000_v13  ;;  %v11082_v53 = vmax.f32 %v1489_v57, 0.0  ;;  %v11094_v10 = vpop.f32.mrf.mxu1  ;;  %v16115_v57 = vld [vmem:[#allocation100_spill] sm:$0xff] }
 0x2e0   :  { %16108 = vst [vmem:[#allocation60_spill] sm:$0xff] %v11059_v29  ;;  %v4581_v16 = vmul.f32 %v4424_v42, %v4420_v44  ;;  %3899 = vrot.lane.b32.xlu0 %v10622_v19, %s7791_s25  ;;  %v7748_v42 = vld [vmem:[%s15118_s7 + $0x40] sm:$0xff]  ;;  %16113 = vst [vmem:[#allocation232_spill] sm:$0xff] %v11094_v10  ;;  %v4412_v54 = vsel %vm15698_vm8, %v16116_v21, %v16115_v57  ;;  %v4132_v21 = vmul.f32 %v4007_v33, %v11080_v26 }
 0x2e1   :  { %16110 = vst [vmem:[#allocation229_spill] sm:$0xff] %v11072_v58  ;;  %16112 = vst [vmem:[#allocation231_spill] sm:$0xff] %v11082_v53  ;;  %v11092_v63 = vrot.slane %v7748_v42, %v9052_v32  ;;  %v4197_v13 = vpack.c.bf16 %v4165_v41, %v4133_v27  ;;  %v3590_v10 = vrot.slane %v11015_v7, %v15823_v60  ;;  %v7749_v27 = vld [vmem:[%s15118_s7 + $0x48] sm:$0xff]  ;;  %v11152_v26 = vpop.f32.mrf.mxu1 }
 0x2e2   :  { %v4613_v31 = vpack.c.bf16 %v4581_v16, %v4549_v11  ;;  %v11096_v44 = vpop.permute.xlu1 %3937  ;;  %16117 = vst [vmem:[#allocation100_spill] sm:$0xff] %v11104_v48  ;;  %v16120_v16 = vld [vmem:[#allocation7_spill] sm:$0xff]  ;;  %v11132_v41 = vrot.slane %v7749_v27, %v15823_v60 }
 0x2e3   :  { %16114 = vst [vmem:[#allocation233_spill] sm:$0xff] %v11096_v44  ;;  %v11110_v19 = vsel %vm15691_vm9, %v11096_v44, %v16095_v45  ;;  %v11112_v62 = vpop.permute.xlu0 %3101  ;;  %3901 = vrot.lane.b32.xlu1 %v10638_v56, %s7791_s25  ;;  %v4411_v11 = vsel %vm15698_vm8, %v16121_v1, %v16120_v16  ;;  %v11135_v1 = vrot.slane %v7748_v42, %v8943_v18  ;;  %v16122_v44 = vld [vmem:[#allocation41_spill] sm:$0xff] }
 0x2e4   :  { %16118 = vst [vmem:[#allocation88_spill] sm:$0xff] %v11110_v19  ;;  %16119 = vst [vmem:[#allocation234_spill] sm:$0xff] %v11112_v62  ;;  %v4164_v48 = vmul.f32 %v4007_v33, %v11110_v19  ;;  %3903 = vrot.lane.b32.xlu0 %v10642_v2, %s7791_s25  ;;  %v11141_v33 = vsel %vm3522_vm4, %v11059_v29, %v16122_v44  ;;  %5798 = vmatpush1.bf16.msra.mxu0 %v4613_v31  ;;  %v16128_v44 = vld [vmem:[#allocation17_spill] sm:$0xff]  ;;  %v16129_v31 = vld [vmem:[#allocation8_spill] sm:$0xff] }
 0x2e5   :  { %16123 = vst [vmem:[#allocation7_spill] sm:$0xff] %v11141_v33  ;;  %v11144_v56 = vmul.f32 %v10953_v17, %v4412_v54  ;;  %v11147_v45 = vrot.slane %v7749_v27, %v15829_v50  ;;  %v11150_v2 = vrot.slane %v7748_v42, %v15987_v39  ;;  %16125 = vst [vmem:[#allocation41_spill] sm:$0xff] %v11152_v26  ;;  %5799 = vmatprep.subr.bf16.mxu0 %v4197_v13  ;;  %v16143_v26 = vld [vmem:[#allocation74_spill] sm:$0xff] }
 0x2e6   :  { %v4196_v19 = vpack.c.bf16 %v4164_v48, %v4132_v21  ;;  %v11154_v60 = vpop.permute.xlu1 %3520  ;;  %v11157_v55 = vmul.f32 %v10953_v17, %v4411_v11  ;;  %v3576_v54 = vsel %vm3522_vm4, %v16129_v31, %v16128_v44  ;;  %v11164_v29 = vrot.slane %v7748_v42, %v8989_v23  ;;  %16130 = vst [vmem:[#allocation17_spill] sm:$0xff] %v11166_v3  ;;  %v16134_v17 = vld [vmem:[#allocation107_spill] sm:$0xff] }
 0x2e7   :  { %16124 = vst [vmem:[#allocation87_spill] sm:$0xff] %v11144_v56  ;;  %16126 = vst [vmem:[#allocation235_spill] sm:$0xff] %v11154_v60  ;;  %v11172_v48 = vsel %vm3522_vm4, %v11154_v60, %v16131_v52  ;;  %v11174_v13 = vpop.permute.xlu0 %4745  ;;  %3905 = vrot.lane.b32.xlu1 %v10667_v37, %s7791_s25  ;;  %v16135_v11 = vld [vmem:[#allocation15_spill] sm:$0xff]  ;;  %v3715_v42 = vmul.f32 %v3590_v10, %v11141_v33  ;;  %v3173_v44 = vrot.slane %v11015_v7, %v15829_v50  ;;  %v16141_v37 = vld [vmem:[#allocation9_spill] sm:$0xff]  ;;  %v11213_v50 = vpop.f32.mrf.mxu1 }
 0x2e8   :  { %16127 = vst [vmem:[#allocation236_spill] sm:$0xff] %v11157_v55  ;;  %16132 = vst [vmem:[#allocation8_spill] sm:$0xff] %v11172_v48  ;;  %v3159_v21 = vsel %vm3105_vm5, %v16135_v11, %v16134_v17  ;;  %v3747_v31 = vmul.f32 %v3590_v10, %v11172_v48  ;;  %3907 = vrot.lane.b32.xlu0 %v10673_v12, %s7791_s25  ;;  %v11189_v52 = vrot.slane %v7749_v27, %v8989_v23  ;;  %v16138_v17 = vld [vmem:[#allocation51_spill] sm:$0xff]  ;;  %v16140_v10 = vld [vmem:[#allocation101_spill] sm:$0xff] }
 0x2e9   :  { %16133 = vst [vmem:[#allocation48_spill] sm:$0xff] %v11174_v13  ;;  %v11192_v60 = vrot.slane %v7749_v27, %v9052_v32  ;;  %v11195_v13 = vrot.slane %v7749_v27, %v9258_v46  ;;  %v11201_v11 = vsel %vm3105_vm5, %v11112_v62, %v16138_v17  ;;  %5800 = vmatpush1.bf16.msra.mxu0 %v4196_v19  ;;  %v16142_v12 = vld [vmem:[#allocation105_spill] sm:$0xff]  ;;  %16144 = vst [vmem:[#allocation101_spill] sm:$0xff] %v11213_v50  ;;  %v16145_v33 = vld [vmem:[#allocation76_spill] sm:$0xff] }
 0x2ea   :  { %16139 = vst [vmem:[#allocation51_spill] sm:$0xff] %v11201_v11  ;;  %v3575_v3 = vsel %vm3522_vm4, %v16141_v37, %v16140_v10  ;;  %v3158_v27 = vsel %vm3105_vm5, %v16143_v26, %v16142_v12  ;;  %v16146_v17 = vld [vmem:[#allocation72_spill] sm:$0xff]  ;;  %v11218_v19 = vpop.permute.xlu1 %3103  ;;  %v11221_v7 = vmul.f32 %v10967_v15, %v3576_v54  ;;  %v11224_v55 = vmul.f32 %v10970_v59, %v3576_v54  ;;  %v11229_v10 = vpop.f32.mrf.mxu0 }
 0x2eb   :  { %16136 = vst [vmem:[#allocation107_spill] sm:$0xff] %v11192_v60  ;;  %16137 = vst [vmem:[#allocation15_spill] sm:$0xff] %v11195_v13  ;;  %v3779_v13 = vpack.c.bf16 %v3747_v31, %v3715_v42  ;;  %v16147_v62 = vpack.c.bf16 %v16145_v33, %v16146_v17  ;;  %v11227_v37 = vmul.f32 %v10982_v47, %v3159_v21  ;;  %v16150_v12 = vld [vmem:[#allocation52_spill] sm:$0xff]  ;;  %3909 = vrot.lane.b32.xlu1 %v10693_v4, %s7791_s25  ;;  %v16153_v33 = vld [vmem:[#allocation10_spill] sm:$0xff] }
 0x2ec   :  { %16148 = vst [vmem:[#allocation9_spill] sm:$0xff] %v11218_v19  ;;  %16149 = vst [vmem:[#allocation105_spill] sm:$0xff] %v11229_v10  ;;  %v11235_v26 = vsel %vm3105_vm5, %v11218_v19, %v16150_v12  ;;  %v16154_v42 = vld [vmem:[#allocation18_spill] sm:$0xff]  ;;  %v16155_v31 = vld [vmem:[#allocation97_spill] sm:$0xff]  ;;  %v3298_v50 = vmul.f32 %v3173_v44, %v11201_v11  ;;  %3494 = vrot.lane.b32.xlu0 %v11037_v22, %s7787_s0  ;;  %v11254_v19 = vmul.f32 %v10967_v15, %v3575_v3 }
 0x2ed   :  { %5801 = vmatprep.subr.bf16.mxu0 %v16147_v62  ;;  %16151 = vst [vmem:[#allocation74_spill] sm:$0xff] %v11235_v26  ;;  %v11237_v62 = vpop.permute.xlu0 %4749  ;;  %v4857_v54 = vsel %vm15700_vm6, %v16154_v42, %v16153_v33  ;;  %v4859_v17 = vsel %vm15700_vm6, %v16155_v31, %v16154_v42  ;;  %v3330_v12 = vmul.f32 %v3173_v44, %v11235_v26  ;;  %v16158_v42 = vld [vmem:[#allocation61_spill] sm:$0xff]  ;;  %v16159_v31 = vld [vmem:[#allocation110_spill] sm:$0xff]  ;;  %v16160_v56 = vld [vmem:[#allocation92_spill] sm:$0xff] }
 0x2ee   :  { %16152 = vst [vmem:[#allocation76_spill] sm:$0xff] %v11237_v62  ;;  %16156 = vst [vmem:[#allocation72_spill] sm:$0xff] %v11254_v19  ;;  %v11257_v4 = vmul.f32 %v10970_v59, %v3575_v3  ;;  %v11260_v33 = vmul.f32 %v10982_v47, %v3158_v27  ;;  %v11263_v10 = vmul.f32 %v10973_v30, %v3159_v21  ;;  %5802 = vmatpush1.bf16.msra.mxu0 %v3779_v13  ;;  %v16161_v11 = vld [vmem:[#allocation113_spill] sm:$0xff]  ;;  %v11277_v47 = vpop.f32.mrf.mxu1  ;;  %v16164_v13 = vld [vmem:[#allocation78_spill] sm:$0xff]  ;;  %v11282_v60 = vpop.permute.xlu1 %4751 }
 0x2ef   :  { %v4856_v44 = vsel %vm15700_vm6, %v16159_v31, %v16158_v42  ;;  %v4858_v15 = vsel %vm15700_vm6, %v16160_v56, %v16159_v31  ;;  %v4410_v3 = vsel %vm15698_vm8, %v16115_v57, %v16161_v11  ;;  %16162 = vst [vmem:[#allocation10_spill] sm:$0xff] %v11277_v47  ;;  %v3362_v59 = vpack.c.bf16 %v3330_v12, %v3298_v50  ;;  %v16163_v21 = vld [vmem:[#allocation81_spill] sm:$0xff]  ;;  %v16167_v31 = vld [vmem:[#allocation20_spill] sm:$0xff]  ;;  %v16168_v57 = vld [vmem:[#allocation66_spill] sm:$0xff]  ;;  %v11296_v11 = vpop.f32.mrf.mxu0 }
 0x2f0   :  { %16157 = vst [vmem:[#allocation52_spill] sm:$0xff] %v11263_v10  ;;  %v16165_v26 = vpack.c.bf16 %v16163_v21, %v16164_v13  ;;  %16166 = vst [vmem:[#allocation18_spill] sm:$0xff] %v11282_v60  ;;  %v11287_v48 = vmul.f32 %v10995_v20, %v4859_v17  ;;  %v11290_v56 = vmul.f32 %v10998_v0, %v4857_v54  ;;  %3496 = vrot.lane.b32.xlu1 %v11063_v61, %s7787_s0  ;;  %v16171_v21 = vld [vmem:[#allocation111_spill] sm:$0xff]  ;;  %v16188_v10 = vld [vmem:[#allocation21_spill] sm:$0xff] }
 0x2f1   :  { %v3993_v50 = vsel %vm15691_vm9, %v16168_v57, %v16167_v31  ;;  %16169 = vst [vmem:[#allocation97_spill] sm:$0xff] %v11296_v11  ;;  %v4754_v12 = vpop.permute.xlu0 %4753  ;;  %v4409_v54 = vsel %vm15698_vm8, %v16120_v16, %v16171_v21  ;;  %3498 = vrot.lane.b32.xlu0 %v11035_v34, %s7787_s0  ;;  %v11314_v31 = vmul.f32 %v10995_v20, %v4858_v15  ;;  %v7547_v57 = vld [vmem:[%s15118_s7 + $0x120] ss:$0 sm:$0xff]  ;;  %v16173_v21 = vld [vmem:[#allocation98_spill] sm:$0xff]  ;;  %v11340_v15 = vpop.f32.mrf.mxu1 }
 0x2f2   :  { %5803 = vmatprep.subr.bf16.mxu0 %v16165_v26  ;;  %v11301_v26 = vmul.f32 %v10973_v30, %v3158_v27  ;;  %v11317_v30 = vmul.f32 %v10998_v0, %v4856_v44  ;;  %v11320_v27 = vmul.f32 %v11026_v6, %v4410_v3  ;;  %v16172_v16 = vld [vmem:[#allocation115_spill] sm:$0xff]  ;;  %v11330_v13 = vmul.f32 %v11029_v28, %v3993_v50  ;;  %v16176_v3 = vld [vmem:[#allocation70_spill] sm:$0xff]  ;;  %v11355_v19 = vpop.f32.mrf.mxu0 }
 0x2f3   :  { %v3992_v17 = vsel %vm15691_vm9, %v16173_v21, %v16172_v16  ;;  %5804 = vmatpush1.bf16.msra.mxu0 %v3362_v59  ;;  %v11332_v20 = vmul.f32 %v7547_v57, %v3993_v50  ;;  %v7750_v0 = vld [vmem:[%s15118_s7 + $0x60] sm:$0xff]  ;;  %16175 = vst [vmem:[#allocation92_spill] sm:$0xff] %v11340_v15  ;;  %v4756_v16 = vpop.permute.xlu1 %4755  ;;  %v11350_v21 = vmul.f32 %v11026_v6, %v4409_v54  ;;  %16180 = vst [vmem:[#allocation81_spill] sm:$0xff] %v11355_v19  ;;  %v11393_v19 = vpop.f32.mrf.mxu1 }
 0x2f4   :  { %16170 = vst [vmem:[#allocation61_spill] sm:$0xff] %v11301_v26  ;;  %v11338_v44 = vrot.slane %v7750_v0, %v8943_v18  ;;  %v16177_v42 = vld [vmem:[#allocation91_spill] sm:$0xff]  ;;  %v11353_v11 = vrot.slane %v7750_v0, %v9052_v32  ;;  %3500 = vrot.lane.b32.xlu1 %v11051_v43, %s7787_s0  ;;  %v4831_v6 = vsel %vm15700_vm6, %v11282_v60, %v4756_v16  ;;  %16186 = vst [vmem:[#allocation115_spill] sm:$0xff] %v11393_v19 }
 0x2f5   :  { %16174 = vst [vmem:[#allocation110_spill] sm:$0xff] %v11332_v20  ;;  %v16178_v47 = vpack.c.bf16 %v16176_v3, %v16177_v42  ;;  %v11357_v15 = vpop.permute.xlu0 %4757  ;;  %v11364_v42 = vmul.f32 %v11029_v28, %v3992_v17  ;;  %v11366_v3 = vmul.f32 %v7547_v57, %v3992_v17  ;;  %v4949_v54 = vrot.slane %v10746_v9, %v8989_v23  ;;  %v16193_v57 = vld [vmem:[#allocation132_spill] sm:$0xff] }
 0x2f6   :  { %16179 = vst [vmem:[#allocation113_spill] sm:$0xff] %v11353_v11  ;;  %16181 = vst [vmem:[#allocation78_spill] sm:$0xff] %v11357_v15  ;;  %3502 = vrot.lane.b32.xlu0 %v11049_v25, %s7787_s0  ;;  %v11376_v59 = vrot.slane %v7750_v0, %v15987_v39  ;;  %v4945_v50 = vrot.slane %v10787_v49, %v8989_v23  ;;  %v4828_v28 = vsel %vm15700_vm6, %v4754_v12, %v11357_v15  ;;  %v16187_v15 = vld [vmem:[#allocation103_spill] sm:$0xff] }
 0x2f7   :  { %5819 = vmatprep.subr.bf16.mxu0 %v16178_v47  ;;  %16182 = vst [vmem:[#allocation20_spill] sm:$0xff] %v11366_v3  ;;  %v16184_v17 = vpack.c.bf16 %v11074_v40, %v11098_v35  ;;  %v11391_v60 = vrot.slane %v7750_v0, %v8989_v23  ;;  %v4830_v26 = vsel %vm15700_vm6, %v11237_v62, %v4754_v12  ;;  %v11401_v40 = vpop.permute.xlu1 %4759  ;;  %v16192_v47 = vld [vmem:[#allocation114_spill] sm:$0xff]  ;;  %v11413_v12 = vpop.f32.mrf.mxu0  ;;  %v16198_v35 = vld [vmem:[#allocation24_spill] sm:$0xff] }
 0x2f8   :  { %16183 = vst [vmem:[#allocation66_spill] sm:$0xff] %v11376_v59  ;;  %v16189_v59 = vpack.c.bf16 %v16187_v15, %v16188_v10  ;;  %16190 = vst [vmem:[#allocation98_spill] sm:$0xff] %v11401_v40  ;;  %v5048_v62 = vmul.f32 %v4945_v50, %v4831_v6  ;;  %v4829_v10 = vsel %vm15700_vm6, %v4756_v16, %v11401_v40  ;;  %3504 = vrot.lane.b32.xlu1 %v11072_v58, %s7787_s0  ;;  %v16200_v16 = vld [vmem:[#allocation137_spill] sm:$0xff]  ;;  %v11439_v40 = vld [vmem:[%s15118_s7 + $0x68] sm:$0xff] }
 0x2f9   :  { %5820 = vmatpush2.bf16.msra.mxu0 %v16184_v17  ;;  %16185 = vst [vmem:[#allocation111_spill] sm:$0xff] %v11391_v60  ;;  %v16191_v17 = vld [vmem:[#allocation27_spill] sm:$0xff]  ;;  %16195 = vst [vmem:[#allocation70_spill] sm:$0xff] %v11413_v12  ;;  %v11418_v15 = vpop.permute.xlu0 %4292  ;;  %v5017_v3 = vmul.f32 %v4949_v54, %v4828_v28  ;;  %v5049_v20 = vmul.f32 %v4949_v54, %v4829_v10  ;;  %v16201_v6 = vld [vmem:[#allocation125_spill] sm:$0xff]  ;;  %v11443_v54 = vrot.slane %v11439_v40, %v8989_v23 }
 0x2fa   :  { %5875 = vmatprep.subr.bf16.mxu0 %v16189_v59  ;;  %v4403_v0 = vsel %vm15698_vm8, %v16192_v47, %v16191_v17  ;;  %v16194_v60 = vld [vmem:[#allocation19_spill] sm:$0xff]  ;;  %16196 = vst [vmem:[#allocation91_spill] sm:$0xff] %v11418_v15  ;;  %v16197_v59 = vld [vmem:[#allocation134_spill] sm:$0xff]  ;;  %3506 = vrot.lane.b32.xlu0 %v11082_v53, %s7787_s0  ;;  %v3151_v15 = vsel %vm3105_vm5, %v16201_v6, %v16200_v16  ;;  %16202 = vst [vmem:[#allocation21_spill] sm:$0xff] %v11439_v40 }
 0x2fb   :  { %v4404_v19 = vsel %vm15698_vm8, %v16194_v60, %v16193_v57  ;;  %v3568_v47 = vsel %vm3522_vm4, %v16198_v35, %v16197_v59  ;;  %v11430_v60 = vmax.f32 %v11086_v51, 0.0  ;;  %16203 = vst [vmem:[#allocation27_spill] sm:$0xff] %v11443_v54  ;;  %v5016_v28 = vmul.f32 %v4945_v50, %v4830_v26  ;;  %v16206_v10 = vld [vmem:[#allocation133_spill] sm:$0xff]  ;;  %v16207_v59 = vld [vmem:[#allocation119_spill] sm:$0xff]  ;;  %v11461_v26 = vpop.f32.mrf.mxu1  ;;  %v16210_v50 = vld [vmem:[#allocation108_spill] sm:$0xff]  ;;  %v11478_v54 = vpop.f32.mrf.mxu0 }
 0x2fc   :  { %5822 = vmatmul.mubr.bf16.vlgmr.msra.gmra.mxu0 %v10822_v38  ;;  %v16204_v35 = vpack.c.bf16 %v11224_v55, %v11257_v4  ;;  %v11451_v51 = vmul.f32 %v11092_v63, %v4403_v0  ;;  %v3567_v16 = vsel %vm3522_vm4, %v16207_v59, %v16206_v10  ;;  %v11459_v6 = vrot.slane %v11439_v40, %v9052_v32  ;;  %v16211_v55 = vld [vmem:[#allocation109_spill] sm:$0xff]  ;;  %v16216_v59 = vld [vmem:[#allocation122_spill] sm:$0xff] }
 0x2fd   :  { %16199 = vst [vmem:[#allocation103_spill] sm:$0xff] %v11430_v60  ;;  %7579 = vmatprep.mubr.msk.bf16.mxu0 %vm15709_vm7, %v10412_v14  ;;  %16209 = vst [vmem:[#allocation19_spill] sm:$0xff] %v11461_v26  ;;  %v16212_v4 = vpack.c.bf16 %v16210_v50, %v16211_v55  ;;  %v5081_v14 = vpack.c.bf16 %v5049_v20, %v5017_v3  ;;  %v11469_v0 = vmul.f32 %v11092_v63, %v4404_v19  ;;  %v16215_v10 = vld [vmem:[#allocation85_spill] sm:$0xff]  ;;  %v11480_v12 = vpop.permute.xlu0 %4296  ;;  %v16219_v19 = vld [vmem:[#allocation34_spill] sm:$0xff] }
 0x2fe   :  { %5876 = vmatpush1.bf16.msra.mxu0 %v16204_v35  ;;  %16205 = vst [vmem:[#allocation114_spill] sm:$0xff] %v11451_v51  ;;  %16208 = vst [vmem:[#allocation132_spill] sm:$0xff] %v11459_v6  ;;  %v11466_v35 = vpop.permute.xlu1 %4294  ;;  %v11472_v23 = vmul.f32 %v11135_v1, %v3568_v47  ;;  %v3150_v6 = vsel %vm3105_vm5, %v16216_v59, %v16215_v10  ;;  %v5080_v26 = vpack.c.bf16 %v5048_v62, %v5016_v28  ;;  %v16220_v3 = vld [vmem:[#allocation129_spill] sm:$0xff]  ;;  %v16226_v10 = vld [vmem:[#allocation127_spill] sm:$0xff] }
 0x2ff   :  { %5877 = vmatprep.subr.bf16.mxu0 %v16212_v4  ;;  %16213 = vst [vmem:[#allocation134_spill] sm:$0xff] %v11466_v35  ;;  %16214 = vst [vmem:[#allocation24_spill] sm:$0xff] %v11469_v0  ;;  %3508 = vrot.lane.b32.xlu1 %v11430_v60, %s7787_s0  ;;  %v11485_v20 = vmul.f32 %v11132_v41, %v3568_v47  ;;  %v11488_v63 = vmul.f32 %v11150_v2, %v3151_v15  ;;  %v2944_v59 = vld [vmem:[%s15118_s7 + $0xf8] sm:$0xff]  ;;  %v16257_v51 = vld [vmem:[#allocation51_spill] sm:$0xff] }
 0x300   :  { %16217 = vst [vmem:[#allocation137_spill] sm:$0xff] %v11480_v12  ;;  %v4851_v50 = vsel %vm15700_vm6, %v16220_v3, %v16219_v19  ;;  %3077 = vrot.lane.b32.xlu0 %v11037_v22, %s7788_s23  ;;  %6180 = vmatprep.subr.bf16.mxu1 %v5081_v14  ;;  %v11497_v62 = vmul.f32 %v11132_v41, %v3567_v16  ;;  %v16225_v41 = vld [vmem:[#allocation29_spill] sm:$0xff] }
 0x301   :  { %16218 = vst [vmem:[#allocation125_spill] sm:$0xff] %v11485_v20  ;;  %v11500_v28 = vmul.f32 %v11135_v1, %v3567_v16  ;;  %v11504_v47 = vrot.slane %v11439_v40, %v9258_v46  ;;  %v16223_v55 = vpack.c.bf16 %v11227_v37, %v11260_v33  ;;  %6181 = vmatpush1.bf16.msra.mxu1 %v5080_v26  ;;  %v11519_v16 = vpop.f32.mrf.mxu1  ;;  %v16239_v26 = vld [vmem:[#allocation42_spill] sm:$0xff]  ;;  %v16250_v40 = vld [vmem:[#allocation88_spill] sm:$0xff] }
 0x302   :  { %16221 = vst [vmem:[#allocation133_spill] sm:$0xff] %v11497_v62  ;;  %v11510_v4 = vmul.f32 %v11150_v2, %v3150_v6  ;;  %v11513_v14 = vmul.f32 %v11147_v45, %v3151_v15  ;;  %v4850_v1 = vsel %vm15700_vm6, %v16226_v10, %v16225_v41  ;;  %v16227_v37 = vpack.c.bf16 %v11290_v56, %v11317_v30  ;;  %v11527_v2 = vpop.permute.xlu1 %4298  ;;  %v11543_v30 = vpop.f32.mrf.mxu0  ;;  %v16231_v10 = vld [vmem:[#allocation36_spill] sm:$0xff] }
 0x303   :  { %16222 = vst [vmem:[#allocation119_spill] sm:$0xff] %v11504_v47  ;;  %5878 = vmatpush1.bf16.msra.mxu0 %v16223_v55  ;;  %16228 = vst [vmem:[#allocation109_spill] sm:$0xff] %v11527_v2  ;;  %v16229_v33 = vpack.c.bf16 %v10020_v8, %v15985_v24  ;;  %v4848_v3 = vsel %vm15700_vm6, %v16225_v41, %v9823_v5  ;;  %v11541_v56 = vmul.f32 %v11164_v29, %v4851_v50  ;;  %v4301_v55 = vpop.permute.xlu0 %4300  ;;  %v11581_v24 = vpop.f32.mrf.mxu1 }
 0x304   :  { %16224 = vst [vmem:[#allocation108_spill] sm:$0xff] %v11513_v14  ;;  %5879 = vmatprep.subr.bf16.mxu0 %v16227_v37  ;;  %3079 = vrot.lane.b32.xlu1 %v11063_v61, %s7788_s23  ;;  %v11548_v8 = vmul.f32 %v11147_v45, %v3150_v6  ;;  %v4849_v5 = vsel %vm15700_vm6, %v16219_v19, %v16231_v10  ;;  %v16232_v37 = vld [vmem:[#allocation30_spill] sm:$0xff]  ;;  %v16234_v19 = vld [vmem:[#allocation141_spill] sm:$0xff]  ;;  %v16235_v10 = vld [vmem:[#allocation140_spill] sm:$0xff] }
 0x305   :  { %6182 = vmatprep.subr.bf16.mxu1 %v16229_v33  ;;  %3081 = vrot.lane.b32.xlu0 %v11035_v34, %s7788_s23  ;;  %v11561_v41 = vmul.f32 %v11164_v29, %v4850_v1  ;;  %v4401_v45 = vsel %vm15698_vm8, %v16191_v17, %v16232_v37  ;;  %v5445_v6 = vrot.slane %v2944_v59, %v8943_v18  ;;  %v16237_v29 = vld [vmem:[#allocation68_spill] sm:$0xff]  ;;  %v16238_v37 = vld [vmem:[#allocation47_spill] sm:$0xff]  ;;  %v16253_v14 = vld [vmem:[#allocation25_spill] sm:$0xff] }
 0x306   :  { %16230 = vst [vmem:[#allocation85_spill] sm:$0xff] %v11548_v8  ;;  %v16233_v33 = vpack.c.bf16 %v11287_v48, %v11314_v31  ;;  %v16236_v15 = vpack.c.bf16 %v16234_v19, %v16235_v10  ;;  %v11575_v50 = vmul.f32 %v11189_v52, %v4848_v3  ;;  %v11579_v1 = vrot.slane %v10787_v49, %v16237_v29  ;;  %v4303_v48 = vpop.permute.xlu1 %4302  ;;  %v16242_v10 = vld [vmem:[#allocation8_spill] sm:$0xff]  ;;  %v16246_v31 = vld [vmem:[#allocation74_spill] sm:$0xff] }
 0x307   :  { %v5221_v17 = vrot.slane %v2944_v59, %v15987_v39  ;;  %v16240_v35 = vpack.c.bf16 %v16238_v37, %v16239_v26  ;;  %v11598_v59 = vpop.f32.mrf.mxu0  ;;  %v11601_v26 = vmul.f32 %v5445_v6, %v16242_v10  ;;  %v7574_v37 = vld [vmem:[%s15118_s7 + $0x1f8] ss:$0 sm:$0xff]  ;;  %v16248_v10 = vld [vmem:[#allocation7_spill] sm:$0xff] }
 0x308   :  { %5880 = vmatpush1.bf16.msra.mxu0 %v16233_v33  ;;  %6183 = vmatpush1.bf16.msra.mxu1 %v16236_v15  ;;  %v11590_v15 = vmul.f32 %v11189_v52, %v4849_v5  ;;  %v16241_v33 = vld [vmem:[#allocation35_spill] sm:$0xff]  ;;  %v11627_v47 = vmul.f32 %v7574_v37, %v16250_v40  ;;  %v16255_v39 = vld [vmem:[#allocation146_spill] sm:$0xff] }
 0x309   :  { %5881 = vmatprep.subr.bf16.mxu0 %v16240_v35  ;;  %v4402_v19 = vsel %vm15698_vm8, %v16193_v57, %v16241_v33  ;;  %16243 = vst [vmem:[#allocation122_spill] sm:$0xff] %v11601_v26  ;;  %v11603_v35 = vpop.permute.xlu0 %4304  ;;  %3083 = vrot.lane.b32.xlu1 %v11051_v43, %s7788_s23  ;;  %v16245_v52 = vld [vmem:[#allocation107_spill] sm:$0xff]  ;;  %v11614_v3 = vmul.f32 %v5221_v17, %v16246_v31  ;;  %v16269_v26 = vld [vmem:[#allocation236_spill] sm:$0xff] }
 0x30a   :  { %16244 = vst [vmem:[#allocation34_spill] sm:$0xff] %v11603_v35  ;;  %v11608_v5 = vmul.f32 %v16245_v52, %v4401_v45  ;;  %v4384_v57 = vsel %vm15698_vm8, %v11527_v2, %v4303_v48  ;;  %v4500_v33 = vrot.slane %v10746_v9, %v9052_v32  ;;  %3085 = vrot.lane.b32.xlu0 %v11049_v25, %s7788_s23  ;;  %16251 = vst [vmem:[#allocation127_spill] sm:$0xff] %v11627_v47  ;;  %v16252_v2 = vld [vmem:[#allocation26_spill] sm:$0xff] }
 0x30b   :  { %16247 = vst [vmem:[#allocation129_spill] sm:$0xff] %v11614_v3  ;;  %v11624_v45 = vmul.f32 %v5445_v6, %v16248_v10  ;;  %v4496_v31 = vrot.slane %v10787_v49, %v9052_v32  ;;  %v4381_v8 = vsel %vm15698_vm8, %v4301_v55, %v11603_v35  ;;  %v16254_v62 = vpack.c.bf16 %v16252_v2, %v16253_v14  ;;  %v16256_v6 = vld [vmem:[#allocation131_spill] sm:$0xff]  ;;  %v11644_v10 = vpop.f32.mrf.mxu1  ;;  %v11655_v14 = vpop.permute.xlu1 %4306 }
 0x30c   :  { %v11638_v20 = vmul.f32 %v16245_v52, %v4402_v19  ;;  %v3985_v40 = vsel %vm15691_vm9, %v16256_v6, %v16255_v39  ;;  %v11647_v32 = vmul.f32 %v5221_v17, %v16257_v51  ;;  %v4383_v35 = vsel %vm15698_vm8, %v11480_v12, %v4301_v55  ;;  %16260 = vst [vmem:[#allocation30_spill] sm:$0xff] %v11655_v14  ;;  %v11657_v2 = vpop.f32.mrf.mxu0  ;;  %v16262_v19 = vld [vmem:[#allocation230_spill] sm:$0xff]  ;;  %v16265_v55 = vld [vmem:[#allocation144_spill] sm:$0xff] }
 0x30d   :  { %16249 = vst [vmem:[#allocation29_spill] sm:$0xff] %v11624_v45  ;;  %5882 = vmatpush1.bf16.msra.mxu0 %v16254_v62  ;;  %v16259_v62 = vpack.c.bf16 %v11320_v27, %v11350_v21  ;;  %16261 = vst [vmem:[#allocation141_spill] sm:$0xff] %v11657_v2  ;;  %v11660_v52 = vmul.f32 %v7574_v37, %v16262_v19  ;;  %v4599_v39 = vmul.f32 %v4496_v31, %v4384_v57  ;;  %v11665_v17 = vpop.permute.xlu0 %3879  ;;  %v7551_v21 = vld [vmem:[%s15118_s7 + $0x140] ss:$0 sm:$0xff]  ;;  %v16266_v37 = vld [vmem:[#allocation130_spill] sm:$0xff] }
 0x30e   :  { %16258 = vst [vmem:[#allocation36_spill] sm:$0xff] %v11647_v32  ;;  %v4382_v51 = vsel %vm15698_vm8, %v4303_v48, %v11655_v14  ;;  %16264 = vst [vmem:[#allocation68_spill] sm:$0xff] %v11665_v17  ;;  %3087 = vrot.lane.b32.xlu1 %v11072_v58, %s7788_s23  ;;  %v3984_v57 = vsel %vm15691_vm9, %v16266_v37, %v16265_v55  ;;  %v4568_v6 = vmul.f32 %v4500_v33, %v4381_v8  ;;  %v16268_v45 = vld [vmem:[#allocation87_spill] sm:$0xff]  ;;  %v11694_v55 = vpop.f32.mrf.mxu1  ;;  %v16279_v8 = vld [vmem:[#allocation165_spill] sm:$0xff]  ;;  %v11718_v47 = vpop.f32.mrf.mxu0 }
 0x30f   :  { %5883 = vmatprep.subr.bf16.mxu0 %v16259_v62  ;;  %16263 = vst [vmem:[#allocation140_spill] sm:$0xff] %v11660_v52  ;;  %v4600_v62 = vmul.f32 %v4500_v33, %v4382_v51  ;;  %3089 = vrot.lane.b32.xlu0 %v11082_v53, %s7788_s23  ;;  %v11682_v19 = vmul.f32 %v7551_v21, %v3985_v40  ;;  %v16271_v33 = vld [vmem:[#allocation15_spill] sm:$0xff]  ;;  %16273 = vst [vmem:[#allocation35_spill] sm:$0xff] %v11694_v55  ;;  %v16280_v14 = vld [vmem:[#allocation149_spill] sm:$0xff] }
 0x310   :  { %v4567_v27 = vmul.f32 %v4496_v31, %v4383_v35  ;;  %v16270_v12 = vpack.c.bf16 %v16268_v45, %v16269_v26  ;;  %v11692_v51 = vmul.f32 %v16271_v33, %v3985_v40  ;;  %v16274_v37 = vld [vmem:[#allocation71_spill] sm:$0xff]  ;;  %v16275_v35 = vpack.c.bf16 %v11330_v13, %v11364_v42  ;;  %v11761_v3 = vpop.f32.mrf.mxu1 }
 0x311   :  { %16267 = vst [vmem:[#allocation47_spill] sm:$0xff] %v11682_v19  ;;  %v11698_v48 = vrot.slane %v10787_v49, %v16274_v37  ;;  %v4632_v26 = vpack.c.bf16 %v4600_v62, %v4568_v6  ;;  %v11708_v31 = vmul.f32 %v16271_v33, %v3984_v57  ;;  %v11710_v40 = vmul.f32 %v7551_v21, %v3984_v57  ;;  %v3884_v42 = vpop.permute.xlu0 %3883  ;;  %v16282_v6 = vld [vmem:[#allocation166_spill] sm:$0xff]  ;;  %v16283_v62 = vld [vmem:[#allocation43_spill] sm:$0xff]  ;;  %v16301_v19 = vld [vmem:[#allocation224_spill] sm:$0xff] }
 0x312   :  { %5884 = vmatpush1.bf16.msra.mxu0 %v16270_v12  ;;  %16272 = vst [vmem:[#allocation42_spill] sm:$0xff] %v11692_v51  ;;  %v11703_v12 = vpop.permute.xlu1 %3881  ;;  %v11716_v52 = vsel %vm3522_vm4, %v16280_v14, %v16279_v8  ;;  %v4631_v13 = vpack.c.bf16 %v4599_v39, %v4567_v27  ;;  %3091 = vrot.lane.b32.xlu1 %v11430_v60, %s7788_s23  ;;  %v16284_v21 = vld [vmem:[#allocation167_spill] sm:$0xff]  ;;  %v16287_v14 = vld [vmem:[#allocation168_spill] sm:$0xff]  ;;  %v16288_v8 = vld [vmem:[#allocation153_spill] sm:$0xff] }
 0x313   :  { %5885 = vmatprep.subr.bf16.mxu0 %v16275_v35  ;;  %16276 = vst [vmem:[#allocation8_spill] sm:$0xff] %v11703_v12  ;;  %16277 = vst [vmem:[#allocation107_spill] sm:$0xff] %v11708_v31  ;;  %v4396_v33 = vsel %vm15698_vm8, %v16283_v62, %v16282_v6  ;;  %v16285_v57 = vld [vmem:[#allocation151_spill] sm:$0xff]  ;;  %v11736_v39 = vsel %vm3105_vm5, %v16288_v8, %v16287_v14  ;;  %4777 = vrot.lane.b32.xlu0 %v11037_v22, %s7789_s24  ;;  %v16290_v62 = vld [vmem:[#allocation142_spill] sm:$0xff] }
 0x314   :  { %16278 = vst [vmem:[#allocation74_spill] sm:$0xff] %v11710_v40  ;;  %16281 = vst [vmem:[#allocation7_spill] sm:$0xff] %v11716_v52  ;;  %v11730_v35 = vsel %vm3522_vm4, %v16285_v57, %v16284_v21  ;;  %6184 = vmatprep.subr.bf16.mxu1 %v4632_v26  ;;  %v16291_v45 = vld [vmem:[#allocation155_spill] sm:$0xff]  ;;  %v7560_v21 = vld [vmem:[%s15118_s7 + $0x188] ss:$0 sm:$0xff]  ;;  %v3966_v57 = vsel %vm15691_vm9, %v11665_v17, %v3884_v42  ;;  %v11759_v27 = vmul.f32 %v11338_v44, %v11716_v52 }
 0x315   :  { %16286 = vst [vmem:[#allocation88_spill] sm:$0xff] %v11730_v35  ;;  %16289 = vst [vmem:[#allocation26_spill] sm:$0xff] %v11736_v39  ;;  %v11746_v32 = vsel %vm3105_vm5, %v16291_v45, %v16290_v62  ;;  %v16293_v14 = vld [vmem:[#allocation12_spill] sm:$0xff]  ;;  %v16294_v8 = vld [vmem:[#allocation11_spill] sm:$0xff]  ;;  %6185 = vmatpush1.bf16.msra.mxu1 %v4631_v13  ;;  %v4083_v13 = vrot.slane %v10746_v9, %v9258_v46 }
 0x316   :  { %16292 = vst [vmem:[#allocation25_spill] sm:$0xff] %v11746_v32  ;;  %v16295_v26 = vpack.c.bf16 %v16293_v14, %v16294_v8  ;;  %16296 = vst [vmem:[#allocation146_spill] sm:$0xff] %v11759_v27  ;;  %v16298_v45 = vld [vmem:[#allocation223_spill] sm:$0xff]  ;;  %v16299_v62 = vld [vmem:[#allocation222_spill] sm:$0xff]  ;;  %v3886_v14 = vpop.permute.xlu1 %3885  ;;  %v11777_v8 = vmul.f32 %v11353_v11, %v4396_v33  ;;  %4779 = vrot.lane.b32.xlu1 %v11063_v61, %s7789_s24 }
 0x317   :  { %16297 = vst [vmem:[#allocation131_spill] sm:$0xff] %v11761_v3  ;;  %v11765_v40 = vadd.f32 %v16299_v62, %v16298_v45  ;;  %v11769_v55 = vadd.f32 %v16301_v19, %v16298_v45  ;;  %v16303_v17 = vld [vmem:[#allocation72_spill] sm:$0xff]  ;;  %v16307_v62 = vld [vmem:[#allocation66_spill] sm:$0xff]  ;;  %v11787_v19 = vpop.f32.mrf.mxu0  ;;  %4781 = vrot.lane.b32.xlu0 %v11035_v34, %s7789_s24  ;;  %v16318_v9 = vld [vmem:[#allocation221_spill] sm:$0xff] }
 0x318   :  { %5886 = vmatpush1.bf16.msra.mxu0 %v16295_v26  ;;  %v16304_v37 = vpack.c.bf16 %v11221_v7, %v16303_v17  ;;  %16305 = vst [vmem:[#allocation144_spill] sm:$0xff] %v11777_v8  ;;  %v11781_v26 = vmul.f32 %v11338_v44, %v11730_v35  ;;  %v11785_v52 = vmul.f32 %v16307_v62, %v11736_v39  ;;  %16309 = vst [vmem:[#allocation236_spill] sm:$0xff] %v11787_v19  ;;  %v3888_v17 = vpop.permute.xlu0 %3887  ;;  %v16313_v35 = vld [vmem:[#allocation13_spill] sm:$0xff]  ;;  %v16320_v3 = vld [vmem:[#allocation84_spill] sm:$0xff] }
 0x319   :  { %16300 = vst [vmem:[#allocation51_spill] sm:$0xff] %v11765_v40  ;;  %16302 = vst [vmem:[#allocation230_spill] sm:$0xff] %v11769_v55  ;;  %v3967_v7 = vsel %vm15691_vm9, %v11703_v12, %v3886_v14  ;;  %v11798_v44 = vmul.f32 %v7560_v21, %v3966_v57  ;;  %v4079_v12 = vrot.slane %v10787_v49, %v9258_v46  ;;  %v16321_v11 = vld [vmem:[#allocation171_spill] sm:$0xff]  ;;  %v16330_v31 = vld [vmem:[#allocation160_spill] sm:$0xff] }
 0x31a   :  { %5887 = vmatprep.subr.bf16.mxu0 %v16304_v37  ;;  %16306 = vst [vmem:[#allocation130_spill] sm:$0xff] %v11781_v26  ;;  %16308 = vst [vmem:[#allocation87_spill] sm:$0xff] %v11785_v52  ;;  %v11796_v37 = vmul.f32 %v16307_v62, %v11746_v32  ;;  %v11800_v33 = vmul.f32 %v7560_v21, %v3967_v7  ;;  %v11810_v39 = vsel %vm15691_vm9, %v3884_v42, %v3888_v17  ;;  %v16314_v62 = vld [vmem:[#allocation77_spill] sm:$0xff]  ;;  %v16316_v21 = vld [vmem:[#allocation220_spill] sm:$0xff]  ;;  %v3890_v19 = vpop.permute.xlu1 %3889 }
 0x31b   :  { %16311 = vst [vmem:[#allocation165_spill] sm:$0xff] %v11798_v44  ;;  %v16315_v32 = vpack.c.bf16 %v16313_v35, %v16314_v62  ;;  %v11817_v8 = vadd.f32 %v16316_v21, %v16298_v45  ;;  %v11821_v6 = vadd.f32 %v16318_v9, %v16298_v45  ;;  %v11827_v49 = vsel %vm15700_vm6, %v16321_v11, %v16320_v3  ;;  %v16323_v42 = vld [vmem:[#allocation157_spill] sm:$0xff]  ;;  %v16326_v21 = vld [vmem:[#allocation52_spill] sm:$0xff]  ;;  %v16333_v3 = vld [vmem:[#allocation195_spill] sm:$0xff] }
 0x31c   :  { %16310 = vst [vmem:[#allocation15_spill] sm:$0xff] %v11796_v37  ;;  %16312 = vst [vmem:[#allocation149_spill] sm:$0xff] %v11800_v33  ;;  %v11833_v35 = vsel %vm15700_vm6, %v16323_v42, %v16321_v11  ;;  %v2561_v62 = vmax.f32 %v11765_v40, %v11769_v55  ;;  %v16327_v9 = vld [vmem:[#allocation61_spill] sm:$0xff]  ;;  %v11850_v11 = vpop.f32.mrf.mxu0  ;;  %v4182_v42 = vmul.f32 %v4079_v12, %v3967_v7  ;;  %4783 = vrot.lane.b32.xlu1 %v11051_v43, %s7789_s24  ;;  %v16341_v27 = vld [vmem:[#allocation59_spill] sm:$0xff] }
 0x31d   :  { %5888 = vmatpush1.bf16.msra.mxu0 %v16315_v32  ;;  %16317 = vst [vmem:[#allocation43_spill] sm:$0xff] %v11817_v8  ;;  %16319 = vst [vmem:[#allocation167_spill] sm:$0xff] %v11821_v6  ;;  %v11835_v32 = vpop.f32.mrf.mxu1  ;;  %v16328_v2 = vpack.c.bf16 %v16326_v21, %v16327_v9  ;;  %v11854_v55 = vsel %vm15691_vm9, %v3886_v14, %v3890_v19  ;;  %v16331_v21 = vld [vmem:[#allocation199_spill] sm:$0xff]  ;;  %v11858_v9 = vpop.permute.xlu0 %3891  ;;  %v3733_v40 = vmul.f32 %v11579_v1, %v16333_v3  ;;  %v16337_v3 = vld [vmem:[#allocation94_spill] sm:$0xff] }
 0x31e   :  { %16322 = vst [vmem:[#allocation151_spill] sm:$0xff] %v11827_v49  ;;  %16324 = vst [vmem:[#allocation168_spill] sm:$0xff] %v11833_v35  ;;  %v16329_v49 = vld [vmem:[#allocation173_spill] sm:$0xff]  ;;  %v4151_v7 = vmul.f32 %v4083_v13, %v11810_v39  ;;  %v4183_v14 = vmul.f32 %v4083_v13, %v11854_v55  ;;  %4785 = vrot.lane.b32.xlu0 %v11049_v25, %s7789_s24  ;;  %v16338_v35 = vld [vmem:[#allocation16_spill] sm:$0xff] }
 0x31f   :  { %16325 = vst [vmem:[#allocation153_spill] sm:$0xff] %v11835_v32  ;;  %5889 = vmatprep.subr.bf16.mxu0 %v16328_v2  ;;  %v11848_v51 = vsel %vm15700_vm6, %v16330_v31, %v16329_v49  ;;  %v4087_v2 = vrot.slane %v16331_v21, %v9258_v46  ;;  %16332 = vst [vmem:[#allocation142_spill] sm:$0xff] %v11858_v9  ;;  %v16334_v31 = vld [vmem:[#allocation100_spill] sm:$0xff]  ;;  %v4150_v46 = vmul.f32 %v4079_v12, %v3966_v57  ;;  %v11882_v52 = vpop.f32.mrf.mxu1  ;;  %v16340_v26 = vld [vmem:[#allocation225_spill] sm:$0xff] }
 0x320   :  { %v11866_v44 = vadd.f32 %v16334_v31, %v16298_v45  ;;  %v16336_v21 = vld [vmem:[#allocation196_spill] sm:$0xff]  ;;  %v3962_v32 = vsel %vm15691_vm9, %v3888_v17, %v11858_v9  ;;  %v16339_v37 = vpack.c.bf16 %v16337_v3, %v16338_v35  ;;  %v2560_v31 = vmax.f32 %v11817_v8, %v11821_v6  ;;  %v16345_v57 = vld [vmem:[#allocation117_spill] sm:$0xff]  ;;  %v16346_v17 = vld [vmem:[#allocation23_spill] sm:$0xff]  ;;  %v11898_v3 = vpop.f32.mrf.mxu0  ;;  %4787 = vrot.lane.b32.xlu1 %v11072_v58, %s7789_s24 }
 0x321   :  { %v3765_v33 = vmul.f32 %v11579_v1, %v16336_v21  ;;  %v11887_v0 = vadd.f32 %v16341_v27, %v16340_v26  ;;  %v16343_v1 = vld [vmem:[#allocation69_spill] sm:$0xff]  ;;  %v16347_v21 = vpack.c.bf16 %v16345_v57, %v16346_v17  ;;  %v4215_v35 = vpack.c.bf16 %v4183_v14, %v4151_v7  ;;  %v16351_v57 = vld [vmem:[#allocation67_spill] sm:$0xff]  ;;  %v16360_v8 = vld [vmem:[#allocation226_spill] sm:$0xff] }
 0x322   :  { %16335 = vst [vmem:[#allocation155_spill] sm:$0xff] %v11866_v44  ;;  %5890 = vmatpush1.bf16.msra.mxu0 %v16339_v37  ;;  %v2563_v13 = vmax.f32 %v2561_v62, %v11866_v44  ;;  %v11891_v12 = vadd.f32 %v16343_v1, %v16340_v26  ;;  %v11896_v37 = vpop.permute.xlu1 %3893  ;;  %v16349_v6 = vld [vmem:[#allocation209_spill] sm:$0xff]  ;;  %v4214_v44 = vpack.c.bf16 %v4182_v42, %v4150_v46  ;;  %v11907_v1 = vpop.permute.xlu0 %3478  ;;  %v16358_v42 = vld [vmem:[#allocation20_spill] sm:$0xff] }
 0x323   :  { %16342 = vst [vmem:[#allocation12_spill] sm:$0xff] %v11887_v0  ;;  %5905 = vmatprep.subr.bf16.mxu0 %v16347_v21  ;;  %16348 = vst [vmem:[#allocation223_spill] sm:$0xff] %v11896_v37  ;;  %v11902_v62 = vmul.f32 %v11698_v48, %v16349_v6  ;;  %v3963_v27 = vsel %vm15691_vm9, %v3890_v19, %v11896_v37  ;;  %v11913_v17 = vadd.f32 %v16351_v57, %v16298_v45  ;;  %v16353_v7 = vld [vmem:[#allocation41_spill] sm:$0xff]  ;;  %v16357_v19 = vld [vmem:[#allocation110_spill] sm:$0xff] }
 0x324   :  { %16344 = vst [vmem:[#allocation11_spill] sm:$0xff] %v11891_v12  ;;  %16350 = vst [vmem:[#allocation222_spill] sm:$0xff] %v11907_v1  ;;  %v11917_v14 = vadd.f32 %v16353_v7, %v16298_v45  ;;  %v11919_v6 = vmul.f32 %v4087_v2, %v3962_v32  ;;  %v11921_v46 = vmul.f32 %v4087_v2, %v3963_v27  ;;  %4789 = vrot.lane.b32.xlu0 %v11082_v53, %s7789_s24  ;;  %v16362_v7 = vld [vmem:[#allocation57_spill] sm:$0xff]  ;;  %v11937_v2 = vpop.f32.mrf.mxu1 }
 0x325   :  { %16352 = vst [vmem:[#allocation224_spill] sm:$0xff] %v11913_v17  ;;  %6186 = vmatprep.subr.bf16.mxu1 %v4215_v35  ;;  %v16359_v21 = vpack.c.bf16 %v16357_v19, %v16358_v42  ;;  %v2562_v57 = vmax.f32 %v2560_v31, %v11913_v17  ;;  %v11931_v9 = vadd.f32 %v16360_v8, %v16340_v26  ;;  %16364 = vst [vmem:[#allocation221_spill] sm:$0xff] %v11937_v2  ;;  %v16365_v19 = vld [vmem:[#allocation135_spill] sm:$0xff]  ;;  %v16366_v31 = vld [vmem:[#allocation136_spill] sm:$0xff] }
 0x326   :  { %16354 = vst [vmem:[#allocation72_spill] sm:$0xff] %v11917_v14  ;;  %16355 = vst [vmem:[#allocation66_spill] sm:$0xff] %v11919_v6  ;;  %6187 = vmatpush1.bf16.msra.mxu1 %v4214_v44  ;;  %v11935_v37 = vadd.f32 %v16362_v7, %v16340_v26  ;;  %v2565_v53 = vmax.f32 %v2563_v13, %v11917_v14  ;;  %v2594_v35 = vmax.f32 %v11887_v0, %v11891_v12  ;;  %v11947_v8 = vpop.permute.xlu1 %3480  ;;  %v16370_v17 = vld [vmem:[#allocation201_spill] sm:$0xff]  ;;  %v16372_v12 = vld [vmem:[#allocation208_spill] sm:$0xff]  ;;  %v11959_v44 = vpop.f32.mrf.mxu0 }
 0x327   :  { %16356 = vst [vmem:[#allocation13_spill] sm:$0xff] %v11921_v46  ;;  %5906 = vmatpush2.bf16.msra.mxu0 %v16359_v21  ;;  %16361 = vst [vmem:[#allocation77_spill] sm:$0xff] %v11931_v9  ;;  %v16367_v42 = vpack.c.bf16 %v16365_v19, %v16366_v31  ;;  %v16369_v21 = vld [vmem:[#allocation202_spill] sm:$0xff]  ;;  %v11955_v13 = vld [vmem:[%s15118_s7 + $0xb0] sm:$0xff]  ;;  %v3797_v14 = vpack.c.bf16 %v3765_v33, %v3733_v40  ;;  %v3316_v0 = vmul.f32 %v11698_v48, %v16372_v12  ;;  %v11964_v31 = vpop.permute.xlu0 %3482 }
 0x328   :  { %16363 = vst [vmem:[#allocation220_spill] sm:$0xff] %v11935_v37  ;;  %16368 = vst [vmem:[#allocation84_spill] sm:$0xff] %v11947_v8  ;;  %v16371_v7 = vpack.c.bf16 %v16369_v21, %v16370_v17  ;;  %v7562_v19 = vld [vmem:[%s15118_s7 + $0x198] ss:$0 sm:$0xff]  ;;  %4791 = vrot.lane.b32.xlu1 %v11430_v60, %s7789_s24  ;;  %v11970_v17 = vrot.slane %v11955_v13, %v8943_v18  ;;  %v16374_v40 = vld [vmem:[#allocation232_spill] sm:$0xff]  ;;  %v2593_v60 = vmax.f32 %v11931_v9, %v11935_v37  ;;  %v12009_v9 = vpop.f32.mrf.mxu0 }
 0x329   :  { %5961 = vmatprep.subr.bf16.mxu0 %v16367_v42  ;;  %16373 = vst [vmem:[#allocation171_spill] sm:$0xff] %v11964_v31  ;;  %v11974_v33 = vadd.f32 %v16374_v40, %v16298_v45  ;;  %v16376_v48 = vld [vmem:[#allocation81_spill] sm:$0xff]  ;;  %v16380_v6 = vld [vmem:[#allocation62_spill] sm:$0xff]  ;;  %v3380_v46 = vpack.c.bf16 %v11902_v62, %v3316_v0  ;;  %v16381_v40 = vpack.c.bf16 %v11472_v23, %v11500_v28  ;;  %v16383_v23 = vld [vmem:[#allocation139_spill] sm:$0xff] }
 0x32a   :  { %6188 = vmatprep.subr.bf16.mxu1 %v16371_v7  ;;  %v11978_v12 = vadd.f32 %v16376_v48, %v16298_v45  ;;  %v16378_v42 = vld [vmem:[#allocation105_spill] sm:$0xff]  ;;  %v5721_v7 = vmul.f32 %v7562_v19, %v3963_v27  ;;  %4324 = vrot.lane.b32.xlu0 %v16380_v6, %s7790_s1  ;;  %v5689_v0 = vmul.f32 %v7562_v19, %v3962_v32  ;;  %v16382_v62 = vld [vmem:[#allocation138_spill] sm:$0xff] }
 0x32b   :  { %16375 = vst [vmem:[#allocation157_spill] sm:$0xff] %v11974_v33  ;;  %v11982_v21 = vadd.f32 %v16378_v42, %v16340_v26  ;;  %5908 = vmatmul.mubr.bf16.vlgmr.msra.gmra.mxu0 %v10822_v38  ;;  %6189 = vmatpush1.bf16.msra.mxu1 %v3797_v14  ;;  %v2564_v48 = vmax.f32 %v2562_v57, %v11974_v33  ;;  %v11994_v42 = vpop.f32.mrf.mxu1  ;;  %v7561_v38 = vld [vmem:[%s15118_s7 + $0x190] ss:$0 sm:$0xff]  ;;  %v12004_v14 = vpop.permute.xlu1 %3484  ;;  %v16386_v57 = vld [vmem:[#allocation215_spill] sm:$0xff] }
 0x32c   :  { %16377 = vst [vmem:[#allocation52_spill] sm:$0xff] %v11978_v12  ;;  %5962 = vmatpush1.bf16.msra.mxu0 %v16381_v40  ;;  %v2567_v27 = vmax.f32 %v2565_v53, %v11978_v12  ;;  %v16384_v28 = vpack.c.bf16 %v16382_v62, %v16383_v23  ;;  %16385 = vst [vmem:[#allocation173_spill] sm:$0xff] %v12004_v14  ;;  %v16387_v40 = vld [vmem:[#allocation214_spill] sm:$0xff]  ;;  %v5720_v53 = vmul.f32 %v7561_v38, %v11854_v55  ;;  %v3487_v32 = vpop.permute.xlu0 %3486  ;;  %v16389_v19 = vld [vmem:[#allocation189_spill] sm:$0xff] }
 0x32d   :  { %16379 = vst [vmem:[#allocation61_spill] sm:$0xff] %v11982_v21  ;;  %v2596_v6 = vmax.f32 %v2594_v35, %v11982_v21  ;;  %v16388_v37 = vpack.c.bf16 %v16386_v57, %v16387_v40  ;;  %v12015_v35 = vld [vmem:[%s15118_s7 + $0xb8] sm:$0xff]  ;;  %4326 = vrot.lane.b32.xlu1 %v16389_v19, %s7790_s1  ;;  %v12022_v62 = vld [vmem:[%s15118_s7 + $0xc0] sm:$0xff]  ;;  %v16391_v55 = vld [vmem:[#allocation97_spill] sm:$0xff]  ;;  %v5753_v19 = vpack.c.bf16 %v5721_v7, %v5689_v0 }
 0x32e   :  { %5963 = vmatprep.subr.bf16.mxu0 %v16384_v28  ;;  %16390 = vst [vmem:[#allocation160_spill] sm:$0xff] %v12022_v62  ;;  %v12033_v23 = vadd.f32 %v16391_v55, %v16298_v45  ;;  %v16393_v28 = vld [vmem:[#allocation17_spill] sm:$0xff]  ;;  %v16395_v40 = vld [vmem:[#allocation115_spill] sm:$0xff]  ;;  %v16397_v12 = vld [vmem:[#allocation10_spill] sm:$0xff]  ;;  %4328 = vrot.lane.b32.xlu0 %v11037_v22, %s7790_s1  ;;  %v5413_v55 = vrot.slane %v12015_v35, %v8943_v18 }
 0x32f   :  { %6190 = vmatprep.subr.bf16.mxu1 %v16388_v37  ;;  %v12027_v37 = vld [vmem:[%s15116_s5 + $0x4] ss:$8 sps:$4 sm:$0xff]   ;;  %v12037_v57 = vadd.f32 %v16393_v28, %v16340_v26  ;;  %v12041_v21 = vadd.f32 %v16395_v40, %v16298_v45  ;;  %v12045_v33 = vadd.f32 %v16397_v12, %v16340_v26  ;;  %v5688_v1 = vmul.f32 %v7561_v38, %v11810_v39  ;;  %v12057_v12 = vpop.f32.mrf.mxu1  ;;  %v3489_v39 = vpop.permute.xlu1 %3488 }
 0x330   :  { %7581 = vmatprep.mubr.msk.bf16.mxu0 %vm15709_vm7, %v12027_v37  ;;  %16392 = vst [vmem:[#allocation199_spill] sm:$0xff] %v12033_v23  ;;  %v16399_v28 = vpack.c.bf16 %v11488_v63, %v11510_v4  ;;  %6191 = vmatpush1.bf16.msra.mxu1 %v3380_v46  ;;  %v2566_v40 = vmax.f32 %v2564_v48, %v12033_v23  ;;  %v12066_v4 = vpop.f32.mrf.mxu0  ;;  %v12072_v48 = vpop.permute.xlu0 %3490  ;;  %v16444_v23 = vld [vmem:[#allocation15_spill] sm:$0xff]  ;;  %v16484_v18 = vld [vmem:[#allocation108_spill] sm:$0xff] }
 0x331   :  { %16394 = vst [vmem:[#allocation195_spill] sm:$0xff] %v12037_v57  ;;  %16396 = vst [vmem:[#allocation100_spill] sm:$0xff] %v12041_v21  ;;  %v2595_v8 = vmax.f32 %v2593_v60, %v12037_v57  ;;  %v2569_v2 = vmax.f32 %v2567_v27, %v12041_v21  ;;  %v2598_v7 = vmax.f32 %v2596_v6, %v12045_v33  ;;  %6206 = vmatprep.subr.bf16.mxu1 %v5753_v19  ;;  %v16405_v6 = vld [vmem:[#allocation101_spill] sm:$0xff]  ;;  %v16414_v57 = vld [vmem:[#allocation14_spill] sm:$0xff] }
 0x332   :  { %16398 = vst [vmem:[#allocation196_spill] sm:$0xff] %v12045_v33  ;;  %5964 = vmatpush1.bf16.msra.mxu0 %v16399_v28  ;;  %v16400_v0 = vpack.c.bf16 %v11590_v15, %v11575_v50  ;;  %v3686_v63 = vrot.slane %v12022_v62, %v16237_v29  ;;  %v12070_v60 = vadd.f32 %v11598_v59, %v16298_v45  ;;  %16402 = vst [vmem:[#allocation16_spill] sm:$0xff] %v12072_v48  ;;  %v16403_v50 = vld [vmem:[#allocation92_spill] sm:$0xff]  ;;  %v16413_v33 = vld [vmem:[#allocation95_spill] sm:$0xff] }
 0x333   :  { %v5752_v46 = vpack.c.bf16 %v5720_v53, %v5688_v1  ;;  %4330 = vrot.lane.b32.xlu1 %v11063_v61, %s7790_s1  ;;  %v12078_v15 = vadd.f32 %v16403_v50, %v16298_v45  ;;  %v12082_v27 = vadd.f32 %v16405_v6, %v16340_v26  ;;  %v12086_v38 = vadd.f32 %v11644_v10, %v16298_v45 }
 0x334   :  { %5965 = vmatprep.subr.bf16.mxu0 %v16400_v0  ;;  %16401 = vst [vmem:[#allocation94_spill] sm:$0xff] %v12070_v60  ;;  %v12090_v59 = vadd.f32 %v11478_v54, %v16340_v26  ;;  %v12095_v1 = vsel %vm3522_vm4, %v12004_v14, %v3489_v39  ;;  %v3537_v53 = vsel %vm3522_vm4, %v3487_v32, %v12072_v48  ;;  %v12111_v0 = vpop.f32.mrf.mxu1  ;;  %v16465_v48 = vld [vmem:[#allocation166_spill] sm:$0xff] }
 0x335   :  { %16404 = vst [vmem:[#allocation225_spill] sm:$0xff] %v12078_v15  ;;  %16406 = vst [vmem:[#allocation59_spill] sm:$0xff] %v12082_v27  ;;  %4332 = vrot.lane.b32.xlu0 %v11035_v34, %s7790_s1  ;;  %v12104_v10 = vadd.f32 %v11519_v16, %v16340_v26  ;;  %v16411_v54 = vpack.c.bf16 %v11541_v56, %v11561_v41  ;;  %6207 = vmatpush2.bf16.msra.mxu1 %v5752_v46  ;;  %v12123_v41 = vpop.permute.xlu1 %3492  ;;  %v12138_v46 = vpop.permute.xlu0 %3061 }
 0x336   :  { %16407 = vst [vmem:[#allocation69_spill] sm:$0xff] %v12086_v38  ;;  %16408 = vst [vmem:[#allocation117_spill] sm:$0xff] %v12090_v59  ;;  %v2568_v19 = vmax.f32 %v2566_v40, %v12078_v15  ;;  %v2597_v28 = vmax.f32 %v2595_v8, %v12082_v27  ;;  %v2571_v50 = vmax.f32 %v2569_v2, %v12070_v60  ;;  %v12129_v40 = vpop.f32.mrf.mxu0  ;;  %v16423_v27 = vld [vmem:[#allocation75_spill] sm:$0xff]  ;;  %v12169_v21 = vpop.f32.mrf.mxu1 }
 0x337   :  { %16409 = vst [vmem:[#allocation23_spill] sm:$0xff] %v12095_v1  ;;  %16410 = vst [vmem:[#allocation209_spill] sm:$0xff] %v12104_v10  ;;  %5966 = vmatpush1.bf16.msra.mxu0 %v16411_v54  ;;  %v2600_v6 = vmax.f32 %v2598_v7, %v12090_v59  ;;  %v12118_v16 = vsel %vm3522_vm4, %v11964_v31, %v3487_v32  ;;  %v16415_v56 = vpack.c.bf16 %v16413_v33, %v16414_v57  ;;  %v16420_v33 = vld [vmem:[#allocation70_spill] sm:$0xff]  ;;  %v16443_v15 = vld [vmem:[#allocation87_spill] sm:$0xff] }
 0x338   :  { %16412 = vst [vmem:[#allocation67_spill] sm:$0xff] %v12118_v16  ;;  %16416 = vst [vmem:[#allocation41_spill] sm:$0xff] %v12123_v41  ;;  %v12127_v8 = vadd.f32 %v11543_v30, %v16298_v45  ;;  %v5500_v2 = vmul.f32 %v11970_v17, %v12095_v1  ;;  %v12133_v7 = vmul.f32 %v3686_v63, %v3537_v53  ;;  %4334 = vrot.lane.b32.xlu1 %v11051_v43, %s7790_s1 }
 0x339   :  { %5967 = vmatprep.subr.bf16.mxu0 %v16415_v56  ;;  %v3538_v32 = vsel %vm3522_vm4, %v3489_v39, %v12123_v41  ;;  %16419 = vst [vmem:[#allocation226_spill] sm:$0xff] %v12138_v46  ;;  %v12144_v30 = vadd.f32 %v16420_v33, %v16340_v26  ;;  %v5469_v57 = vmul.f32 %v5413_v55, %v3537_v53  ;;  %v12153_v39 = vld [vmem:[%s15116_s5] ss:$8 sps:$4 sm:$0xff]   ;;  %v16424_v33 = vld [vmem:[#allocation73_spill] sm:$0xff] }
 0x33a   :  { %16417 = vst [vmem:[#allocation110_spill] sm:$0xff] %v12127_v8  ;;  %16418 = vst [vmem:[#allocation20_spill] sm:$0xff] %v12133_v7  ;;  %v12146_v54 = vmul.f32 %v3686_v63, %v3538_v32  ;;  %v5501_v56 = vmul.f32 %v5413_v55, %v3538_v32  ;;  %4336 = vrot.lane.b32.xlu0 %v11049_v25, %s7790_s1  ;;  %6209 = vmatmul.mubr.bf16.vlgmr.msra.gmra.mxu1 %v12153_v39  ;;  %v16426_v53 = vld [vmem:[#allocation164_spill] sm:$0xff]  ;;  %v16467_v46 = vld [vmem:[#allocation125_spill] sm:$0xff] }
 0x33b   :  { %16421 = vst [vmem:[#allocation57_spill] sm:$0xff] %v12144_v30  ;;  %v5468_v59 = vmul.f32 %v11970_v17, %v12118_v16  ;;  %v16425_v60 = vpack.c.bf16 %v16423_v27, %v16424_v33  ;;  %v2570_v63 = vmax.f32 %v2568_v19, %v12127_v8  ;;  %v2599_v55 = vmax.f32 %v2597_v28, %v12144_v30  ;;  %v12177_v19 = vpop.permute.xlu1 %3063  ;;  %v12179_v33 = vpop.f32.mrf.mxu0  ;;  %v16481_v16 = vld [vmem:[#allocation121_spill] sm:$0xff] }
 0x33c   :  { %16422 = vst [vmem:[#allocation135_spill] sm:$0xff] %v12146_v54  ;;  %7588 = vmatprep.mubr.msk.bf16.mxu1 %vm15709_vm7, %v12027_v37  ;;  %v4841_v32 = vsel %vm15700_vm6, %v16329_v49, %v16426_v53  ;;  %v2573_v17 = vmax.f32 %v2571_v50, %v12086_v38  ;;  %16428 = vst [vmem:[#allocation136_spill] sm:$0xff] %v12177_v19  ;;  %v5533_v28 = vpack.c.bf16 %v5501_v56, %v5469_v57  ;;  %v12182_v49 = vpop.permute.xlu0 %3065  ;;  %v16433_v57 = vld [vmem:[#allocation111_spill] sm:$0xff]  ;;  %v16434_v53 = vld [vmem:[#allocation174_spill] sm:$0xff] }
 0x33d   :  { %5968 = vmatpush1.bf16.msra.mxu0 %v16425_v60  ;;  %v16427_v60 = vpack.c.bf16 %v11638_v20, %v11608_v5  ;;  %v2602_v30 = vmax.f32 %v2600_v6, %v12104_v10  ;;  %v5532_v8 = vpack.c.bf16 %v5500_v2, %v5468_v59  ;;  %16429 = vst [vmem:[#allocation202_spill] sm:$0xff] %v12182_v49  ;;  %v16431_v20 = vld [vmem:[#allocation19_spill] sm:$0xff]  ;;  %v16435_v6 = vld [vmem:[#allocation37_spill] sm:$0xff]  ;;  %v16441_v10 = vld [vmem:[#allocation146_spill] sm:$0xff] }
 0x33e   :  { %4338 = vrot.lane.b32.xlu1 %v11072_v58, %s7790_s1  ;;  %v12188_v50 = vadd.f32 %v11581_v24, %v16298_v45  ;;  %v12192_v5 = vadd.f32 %v16431_v20, %v16340_v26  ;;  %v12196_v56 = vmul.f32 %v16433_v57, %v11848_v51  ;;  %v4395_v59 = vsel %vm15698_vm8, %v16435_v6, %v16434_v53  ;;  %v16439_v51 = vld [vmem:[#allocation114_spill] sm:$0xff] }
 0x33f   :  { %5969 = vmatprep.subr.bf16.mxu0 %v16427_v60  ;;  %v12204_v2 = vadd.f32 %v11850_v11, %v16298_v45  ;;  %3911 = vrot.lane.b32.xlu0 %v11037_v22, %s7791_s25  ;;  %v12210_v24 = vadd.f32 %v11718_v47, %v16340_v26  ;;  %v16438_v60 = vld [vmem:[#allocation24_spill] sm:$0xff]  ;;  %v16442_v11 = vld [vmem:[#allocation130_spill] sm:$0xff]  ;;  %v12225_v47 = vpop.f32.mrf.mxu1  ;;  %v12341_v19 = vadd.f32 %v11959_v44, %v16340_v26 }
 0x340   :  { %16430 = vst [vmem:[#allocation201_spill] sm:$0xff] %v12188_v50  ;;  %16432 = vst [vmem:[#allocation208_spill] sm:$0xff] %v12192_v5  ;;  %6262 = vmatprep.subr.bf16.mxu1 %v5533_v28  ;;  %v16440_v20 = vpack.c.bf16 %v16438_v60, %v16439_v51  ;;  %v2572_v27 = vmax.f32 %v2570_v63, %v12188_v50  ;;  %v2601_v6 = vmax.f32 %v2599_v55, %v12192_v5  ;;  %v16445_v28 = vld [vmem:[#allocation168_spill] sm:$0xff]  ;;  %v16446_v51 = vld [vmem:[#allocation42_spill] sm:$0xff]  ;;  %v12231_v63 = vpop.permute.xlu1 %3067  ;;  %v12237_v50 = vpop.f32.mrf.mxu0 }
 0x341   :  { %16436 = vst [vmem:[#allocation232_spill] sm:$0xff] %v12204_v2  ;;  %16437 = vst [vmem:[#allocation81_spill] sm:$0xff] %v12210_v24  ;;  %6263 = vmatpush1.bf16.msra.mxu1 %v5532_v8  ;;  %v12223_v54 = vmul.f32 %v16433_v57, %v16445_v28  ;;  %v2575_v60 = vmax.f32 %v2573_v17, %v12204_v2  ;;  %v16447_v8 = vld [vmem:[#allocation107_spill] sm:$0xff]  ;;  %v2604_v7 = vmax.f32 %v2602_v30, %v12210_v24  ;;  %v3070_v57 = vpop.permute.xlu0 %3069  ;;  %v16452_v17 = vld [vmem:[#allocation236_spill] sm:$0xff] }
 0x342   :  { %5970 = vmatpush1.bf16.msra.mxu0 %v16440_v20  ;;  %v16448_v20 = vpack.c.bf16 %v16446_v51, %v16447_v8  ;;  %16449 = vst [vmem:[#allocation105_spill] sm:$0xff] %v12231_v63  ;;  %v16450_v55 = vld [vmem:[#allocation151_spill] sm:$0xff]  ;;  %3913 = vrot.lane.b32.xlu1 %v11063_v61, %s7791_s25  ;;  %v12244_v28 = vadd.f32 %v16452_v17, %v16298_v45  ;;  %v16454_v51 = vld [vmem:[#allocation141_spill] sm:$0xff]  ;;  %v16464_v22 = vld [vmem:[#allocation176_spill] sm:$0xff] }
 0x343   :  { %v16451_v5 = vld [vmem:[#allocation27_spill] sm:$0xff]  ;;  %v12248_v8 = vadd.f32 %v16454_v51, %v16340_v26  ;;  %v16456_v2 = vld [vmem:[#allocation113_spill] sm:$0xff]  ;;  %v12260_v24 = vadd.f32 %v11882_v52, %v16298_v45  ;;  %3915 = vrot.lane.b32.xlu0 %v11035_v34, %s7791_s25  ;;  %v12283_v41 = vsel %vm15698_vm8, %v16465_v48, %v16464_v22  ;;  %v12301_v48 = vld [vmem:[%s15118_s7 + $0xa8] sm:$0xff]  ;;  %16479 = vst [vmem:[#allocation101_spill] sm:$0xff] %v12341_v19 }
 0x344   :  { %5971 = vmatprep.subr.bf16.mxu0 %v16448_v20  ;;  %v12235_v38 = vmul.f32 %v16451_v5, %v16450_v55  ;;  %16453 = vst [vmem:[#allocation138_spill] sm:$0xff] %v12244_v28  ;;  %v12251_v20 = vmul.f32 %v16451_v5, %v4841_v32  ;;  %v12256_v30 = vmul.f32 %v16456_v2, %v4395_v59  ;;  %v16458_v17 = vld [vmem:[#allocation175_spill] sm:$0xff]  ;;  %v16461_v55 = vld [vmem:[#allocation50_spill] sm:$0xff]  ;;  %v16462_v59 = vld [vmem:[#allocation49_spill] sm:$0xff] }
 0x345   :  { %16455 = vst [vmem:[#allocation139_spill] sm:$0xff] %v12248_v8  ;;  %16457 = vst [vmem:[#allocation215_spill] sm:$0xff] %v12260_v24  ;;  %v12268_v51 = vsel %vm15698_vm8, %v16434_v53, %v16458_v17  ;;  %v16459_v32 = vld [vmem:[#allocation131_spill] sm:$0xff]  ;;  %v16463_v2 = vpack.c.bf16 %v16461_v55, %v16462_v59  ;;  %v2574_v52 = vmax.f32 %v2572_v27, %v12244_v28  ;;  %v12285_v53 = vpop.f32.mrf.mxu1  ;;  %v16468_v55 = vld [vmem:[#allocation133_spill] sm:$0xff]  ;;  %v3072_v27 = vpop.permute.xlu1 %3071 }
 0x346   :  { %v12272_v5 = vadd.f32 %v16459_v32, %v16340_v26  ;;  %v2603_v61 = vmax.f32 %v2601_v6, %v12248_v8  ;;  %v2577_v17 = vmax.f32 %v2575_v60, %v12260_v24  ;;  %v16466_v32 = vld [vmem:[#allocation80_spill] sm:$0xff]  ;;  %v16469_v59 = vpack.c.bf16 %v16467_v46, %v16468_v55  ;;  %v12295_v8 = vpop.f32.mrf.mxu0  ;;  %v12305_v24 = vpop.permute.xlu0 %3073  ;;  %3917 = vrot.lane.b32.xlu1 %v11051_v43, %s7791_s25  ;;  %v16472_v46 = vld [vmem:[#allocation153_spill] sm:$0xff]  ;;  %v16478_v43 = vld [vmem:[#allocation82_spill] sm:$0xff] }
 0x347   :  { %5972 = vmatpush1.bf16.msra.mxu0 %v16463_v2  ;;  %v5185_v34 = vrot.slane %v11955_v13, %v16466_v32  ;;  %v16470_v2 = vld [vmem:[#allocation71_spill] sm:$0xff]  ;;  %v5189_v60 = vrot.slane %v12015_v35, %v16466_v32  ;;  %16471 = vst [vmem:[#allocation97_spill] sm:$0xff] %v12305_v24  ;;  %v12311_v55 = vadd.f32 %v16472_v46, %v16298_v45 }
 0x348   :  { %16460 = vst [vmem:[#allocation214_spill] sm:$0xff] %v12272_v5  ;;  %5973 = vmatprep.subr.bf16.mxu0 %v16469_v59  ;;  %v3269_v6 = vrot.slane %v12022_v62, %v16470_v2  ;;  %v2606_v22 = vmax.f32 %v2604_v7, %v12272_v5  ;;  %v16474_v59 = vld [vmem:[#allocation35_spill] sm:$0xff]  ;;  %v12319_v5 = vadd.f32 %v12066_v4, %v16298_v45  ;;  %v12351_v62 = vpop.f32.mrf.mxu1 }
 0x349   :  { %16473 = vst [vmem:[#allocation17_spill] sm:$0xff] %v12311_v55  ;;  %v12315_v7 = vadd.f32 %v16474_v59, %v16340_v26  ;;  %v12324_v28 = vsel %vm3105_vm5, %v12231_v63, %v3072_v27  ;;  %3919 = vrot.lane.b32.xlu0 %v11049_v25, %s7791_s25  ;;  %v12331_v46 = vld [vmem:[%s15118_s7 + $0xa0] sm:$0xff]  ;;  %v12337_v4 = vrot.slane %v12301_v48, %v16478_v43 }
 0x34a   :  { %16476 = vst [vmem:[#allocation10_spill] sm:$0xff] %v12319_v5  ;;  %16477 = vst [vmem:[#allocation92_spill] sm:$0xff] %v12324_v28  ;;  %v4953_v59 = vrot.slane %v12331_v46, %v16478_v43  ;;  %v3120_v25 = vsel %vm3105_vm5, %v3070_v57, %v12305_v24  ;;  %v16480_v63 = vld [vmem:[#allocation123_spill] sm:$0xff]  ;;  %v2576_v1 = vmax.f32 %v2574_v52, %v12311_v55  ;;  %v12372_v52 = vpop.f32.mrf.mxu0  ;;  %3921 = vrot.lane.b32.xlu1 %v11072_v58, %s7791_s25  ;;  %v16493_v55 = vld [vmem:[#allocation128_spill] sm:$0xff] }
 0x34b   :  { %16475 = vst [vmem:[#allocation115_spill] sm:$0xff] %v12315_v7  ;;  %v16482_v31 = vpack.c.bf16 %v16480_v63, %v16481_v16  ;;  %v2605_v14 = vmax.f32 %v2603_v61, %v12315_v7  ;;  %v12355_v32 = vadd.f32 %v12111_v0, %v16298_v45  ;;  %v2579_v44 = vmax.f32 %v2577_v17, %v12319_v5  ;;  %v16485_v16 = vld [vmem:[#allocation85_spill] sm:$0xff]  ;;  %v12366_v63 = vpop.permute.xlu1 %3075  ;;  %v4762_v7 = vpop.permute.xlu0 %4761  ;;  %v16492_v5 = vld [vmem:[#allocation78_spill] sm:$0xff] }
 0x34c   :  { %v12361_v24 = vsel %vm3105_vm5, %v12182_v49, %v3070_v57  ;;  %16487 = vst [vmem:[#allocation14_spill] sm:$0xff] %v12366_v63  ;;  %v12370_v61 = vadd.f32 %v12009_v9, %v16298_v45  ;;  %v2608_v0 = vmax.f32 %v2606_v22, %v12341_v19  ;;  %v5276_v17 = vmul.f32 %v5185_v34, %v12324_v28  ;;  %v12398_v28 = vpop.f32.mrf.mxu1 }
 0x34d   :  { %5974 = vmatpush1.bf16.msra.mxu0 %v16482_v31  ;;  %16483 = vst [vmem:[#allocation95_spill] sm:$0xff] %v12355_v32  ;;  %v16486_v31 = vpack.c.bf16 %v16484_v18, %v16485_v16  ;;  %v3121_v57 = vsel %vm3105_vm5, %v3072_v27, %v12366_v63  ;;  %v12383_v18 = vadd.f32 %v11898_v3, %v16340_v26  ;;  %v16494_v63 = vld [vmem:[#allocation126_spill] sm:$0xff] }
 0x34e   :  { %16488 = vst [vmem:[#allocation70_spill] sm:$0xff] %v12370_v61  ;;  %v12385_v9 = vmul.f32 %v3269_v6, %v3120_v25  ;;  %v5245_v16 = vmul.f32 %v5189_v60, %v3120_v25  ;;  %v5277_v22 = vmul.f32 %v5189_v60, %v3121_v57  ;;  %v5244_v19 = vmul.f32 %v5185_v34, %v12361_v24  ;;  %v16498_v60 = vld [vmem:[#allocation148_spill] sm:$0xff]  ;;  %v16502_v34 = vld [vmem:[#allocation221_spill] sm:$0xff] }
 0x34f   :  { %5975 = vmatprep.subr.bf16.mxu0 %v16486_v31  ;;  %16489 = vst [vmem:[#allocation75_spill] sm:$0xff] %v12383_v18  ;;  %v12387_v31 = vmul.f32 %v3269_v6, %v3121_v57  ;;  %v4826_v27 = vsel %vm15700_vm6, %v16492_v5, %v4762_v7  ;;  %v16495_v49 = vpack.c.bf16 %v16493_v55, %v16494_v63  ;;  %v16497_v6 = vld [vmem:[#allocation147_spill] sm:$0xff]  ;;  %v4764_v57 = vpop.permute.xlu1 %4763 }
 0x350   :  { %16490 = vst [vmem:[#allocation73_spill] sm:$0xff] %v12385_v9  ;;  %v2578_v58 = vmax.f32 %v2576_v1, %v12370_v61  ;;  %v2607_v3 = vmax.f32 %v2605_v14, %v12383_v18  ;;  %v12402_v25 = vadd.f32 %v11994_v42, %v16340_v26  ;;  %v16499_v5 = vpack.c.bf16 %v16497_v6, %v16498_v60  ;;  %v2428_v14 = vpop.f32.mrf.mxu0  ;;  %v16501_v18 = vld [vmem:[#allocation98_spill] sm:$0xff]  ;;  %v4766_v61 = vpop.permute.xlu0 %4765 }
 0x351   :  { %16491 = vst [vmem:[#allocation164_spill] sm:$0xff] %v12387_v31  ;;  %5976 = vmatpush1.bf16.msra.mxu0 %v16495_v49  ;;  %v5309_v55 = vpack.c.bf16 %v5277_v22, %v5245_v16  ;;  %v12411_v1 = vadd.f32 %v12057_v12, %v16298_v45  ;;  %v2581_v49 = vmax.f32 %v2579_v44, %v12355_v32 }
 0x352   :  { %16496 = vst [vmem:[#allocation19_spill] sm:$0xff] %v12402_v25  ;;  %5991 = vmatprep.subr.bf16.mxu0 %v16499_v5  ;;  %v5308_v63 = vpack.c.bf16 %v5276_v17, %v5244_v19  ;;  %v4827_v42 = vsel %vm15700_vm6, %v16501_v18, %v4764_v57  ;;  %v12419_v9 = vadd.f32 %v16502_v34, %v16340_v26  ;;  %v16506_v19 = vld [vmem:[#allocation132_spill] sm:$0xff]  ;;  %v16507_v17 = vld [vmem:[#allocation47_spill] sm:$0xff]  ;;  %v16508_v18 = vld [vmem:[#allocation74_spill] sm:$0xff] }
 0x353   :  { %16500 = vst [vmem:[#allocation111_spill] sm:$0xff] %v12411_v1  ;;  %v2610_v6 = vmax.f32 %v2608_v0, %v12402_v25  ;;  %v12422_v16 = vmul.f32 %v4953_v59, %v4826_v27  ;;  %v12424_v22 = vmul.f32 %v4953_v59, %v4827_v42  ;;  %v4824_v12 = vsel %vm15700_vm6, %v4762_v7, %v4766_v61  ;;  %v12441_v27 = vpop.f32.mrf.mxu1  ;;  %v16516_v42 = vld [vmem:[#allocation163_spill] sm:$0xff] }
 0x354   :  { %16503 = vst [vmem:[#allocation174_spill] sm:$0xff] %v12419_v9  ;;  %6264 = vmatprep.subr.bf16.mxu1 %v5309_v55  ;;  %v12430_v44 = vmul.f32 %v16506_v19, %v12268_v51  ;;  %v16509_v60 = vpack.c.bf16 %v16507_v17, %v16508_v18  ;;  %v2580_v34 = vmax.f32 %v2578_v58, %v12411_v1  ;;  %v16512_v58 = vld [vmem:[#allocation169_spill] sm:$0xff]  ;;  %v16513_v55 = vld [vmem:[#allocation170_spill] sm:$0xff] }
 0x355   :  { %16504 = vst [vmem:[#allocation37_spill] sm:$0xff] %v12422_v16  ;;  %16505 = vst [vmem:[#allocation24_spill] sm:$0xff] %v12424_v22  ;;  %6265 = vmatpush1.bf16.msra.mxu1 %v5308_v63  ;;  %v2609_v0 = vmax.f32 %v2607_v3, %v12419_v9  ;;  %v12439_v59 = vmul.f32 %v16506_v19, %v12283_v41  ;;  %v12445_v7 = vadd.f32 %v12295_v8, %v16298_v45  ;;  %v4768_v63 = vpop.permute.xlu1 %4767  ;;  %v16515_v41 = vld [vmem:[#allocation124_spill] sm:$0xff]  ;;  %v2508_v8 = vpop.f32.mrf.mxu0  ;;  %v16535_v9 = vld [vmem:[#allocation86_spill] sm:$0xff] }
 0x356   :  { %5992 = vmatpush2.bf16.msra.mxu0 %v16509_v60  ;;  %v12449_v51 = vadd.f32 %v12179_v33, %v16340_v26  ;;  %v16514_v3 = vpack.c.bf16 %v16512_v58, %v16513_v55  ;;  %v12460_v19 = vsel %vm15691_vm9, %v16516_v42, %v16515_v41  ;;  %v4825_v17 = vsel %vm15700_vm6, %v4764_v57, %v4768_v63  ;;  %v4770_v33 = vpop.permute.xlu0 %4769  ;;  %v16610_v1 = vld [vmem:[#allocation186_spill] sm:$0xff] }
 0x357   :  { %16510 = vst [vmem:[#allocation114_spill] sm:$0xff] %v12445_v7  ;;  %v12466_v18 = vadd.f32 %v12237_v50, %v16298_v45  ;;  %v12470_v60 = vadd.f32 %v12129_v40, %v16340_v26  ;;  %v2583_v58 = vmax.f32 %v2581_v49, %v12445_v7  ;;  %v12478_v41 = vmul.f32 %v12337_v4, %v4825_v17  ;;  %v16526_v17 = vld [vmem:[#allocation161_spill] sm:$0xff]  ;;  %v2510_v5 = vpop.f32.mrf.mxu0 }
 0x358   :  { %16511 = vst [vmem:[#allocation146_spill] sm:$0xff] %v12449_v51  ;;  %6047 = vmatprep.subr.bf16.mxu0 %v16514_v3  ;;  %v2612_v55 = vmax.f32 %v2610_v6, %v12449_v51  ;;  %v12475_v3 = vmul.f32 %v12337_v4, %v4824_v12  ;;  %v16519_v50 = vpack.c.bf16 %v16442_v11, %v16441_v10  ;;  %v2551_v6 = vpop.f32.mrf.mxu1  ;;  %v16522_v10 = vld [vmem:[#allocation172_spill] sm:$0xff]  ;;  %v16523_v11 = vld [vmem:[#allocation102_spill] sm:$0xff] }
 0x359   :  { %16517 = vst [vmem:[#allocation130_spill] sm:$0xff] %v12466_v18  ;;  %16518 = vst [vmem:[#allocation87_spill] sm:$0xff] %v12470_v60  ;;  %5994 = vmatmul.mubr.bf16.vlgmr.msra.gmra.mxu0 %v12153_v39  ;;  %v5075_v40 = vpack.c.bf16 %v12251_v20, %v12235_v38  ;;  %v2582_v57 = vmax.f32 %v2580_v34, %v12466_v18  ;;  %v2611_v49 = vmax.f32 %v2609_v0, %v12470_v60  ;;  %v4772_v38 = vpop.permute.xlu1 %4771  ;;  %v16525_v0 = vld [vmem:[#allocation187_spill] sm:$0xff] }
 0x35a   :  { %6048 = vmatpush1.bf16.msra.mxu0 %v16519_v50  ;;  %7583 = vmatprep.mubr.msk.bf16.mxu0 %vm15709_vm7, %v12027_v37  ;;  %v12492_v4 = vadd.f32 %v12351_v62, %v16298_v45  ;;  %v12496_v12 = vadd.f32 %v12225_v47, %v16340_v26  ;;  %v16524_v42 = vpack.c.bf16 %v16522_v10, %v16523_v11  ;;  %v16527_v47 = vld [vmem:[#allocation119_spill] sm:$0xff]  ;;  %v12515_v10 = vpop.permute.xlu0 %4773 }
 0x35b   :  { %v12509_v62 = vsel %vm15691_vm9, %v16526_v17, %v16525_v0  ;;  %v12513_v50 = vmul.f32 %v16527_v47, %v12460_v19  ;;  %16528 = vst [vmem:[#allocation42_spill] sm:$0xff] %v12515_v10  ;;  %v12519_v11 = vadd.f32 %v12285_v53, %v16298_v45  ;;  %v4823_v17 = vsel %vm15700_vm6, %v4768_v63, %v4772_v38 }
 0x35c   :  { %16520 = vst [vmem:[#allocation15_spill] sm:$0xff] %v12492_v4  ;;  %16521 = vst [vmem:[#allocation168_spill] sm:$0xff] %v12496_v12  ;;  %6049 = vmatprep.subr.bf16.mxu0 %v16524_v42  ;;  %v12523_v42 = vadd.f32 %v12169_v21, %v16340_v26  ;;  %v2585_v34 = vmax.f32 %v2583_v58, %v12492_v4  ;;  %v2614_v0 = vmax.f32 %v2612_v55, %v12496_v12 }
 0x35d   :  { %16529 = vst [vmem:[#allocation107_spill] sm:$0xff] %v12519_v11  ;;  %v4965_v20 = vrot.slane %v12015_v35, %v16478_v43  ;;  %v4961_v51 = vrot.slane %v11955_v13, %v16478_v43  ;;  %v4820_v53 = vsel %vm15700_vm6, %v4770_v33, %v12515_v10  ;;  %v16531_v21 = vpack.c.bf16 %v16444_v23, %v16443_v15  ;;  %v12549_v25 = vpop.permute.xlu1 %4775  ;;  %v2553_v15 = vpop.f32.mrf.mxu1 }
 0x35e   :  { %16530 = vst [vmem:[#allocation151_spill] sm:$0xff] %v12523_v42  ;;  %v2584_v58 = vmax.f32 %v2582_v57, %v12519_v11  ;;  %v2613_v55 = vmax.f32 %v2611_v49, %v12523_v42  ;;  %v12542_v63 = vadd.f32 %v2510_v5, %v16298_v45  ;;  %v12545_v12 = vadd.f32 %v2428_v14, %v16340_v26  ;;  %v4309_v5 = vpop.permute.xlu0 %4308  ;;  %v16538_v11 = vld [vmem:[#allocation34_spill] sm:$0xff] }
 0x35f   :  { %6050 = vmatpush1.bf16.msra.mxu0 %v16531_v21  ;;  %v4822_v60 = vsel %vm15700_vm6, %v4766_v61, %v4770_v33  ;;  %16534 = vst [vmem:[#allocation141_spill] sm:$0xff] %v12549_v25  ;;  %v4504_v23 = vrot.slane %v12331_v46, %v16535_v9  ;;  %v5052_v21 = vmul.f32 %v4961_v51, %v4823_v17  ;;  %v2512_v33 = vpop.f32.mrf.mxu0 }
 0x360   :  { %16532 = vst [vmem:[#allocation27_spill] sm:$0xff] %v12542_v63  ;;  %16533 = vst [vmem:[#allocation236_spill] sm:$0xff] %v12545_v12  ;;  %6051 = vmatprep.subr.bf16.mxu0 %v5075_v40  ;;  %v4821_v57 = vsel %vm15700_vm6, %v4772_v38, %v12549_v25  ;;  %v12557_v49 = vadd.f32 %v2508_v8, %v16298_v45  ;;  %v12561_v14 = vadd.f32 %v12372_v52, %v16340_v26 }
 0x361   :  { %v2587_v61 = vmax.f32 %v2585_v34, %v12542_v63  ;;  %v2616_v40 = vmax.f32 %v2614_v0, %v12545_v12  ;;  %v5021_v42 = vmul.f32 %v4965_v20, %v4820_v53  ;;  %v5053_v4 = vmul.f32 %v4965_v20, %v4821_v57  ;;  %v16598_v63 = vld [vmem:[#allocation191_spill] sm:$0xff] }
 0x362   :  { %16536 = vst [vmem:[#allocation113_spill] sm:$0xff] %v12557_v49  ;;  %16537 = vst [vmem:[#allocation175_spill] sm:$0xff] %v12561_v14  ;;  %v5020_v17 = vmul.f32 %v4961_v51, %v4822_v60  ;;  %v4379_v38 = vsel %vm15698_vm8, %v16538_v11, %v4309_v5  ;;  %v16539_v8 = vpack.c.bf16 %v12196_v56, %v12223_v54  ;;  %v16542_v51 = vld [vmem:[#allocation120_spill] sm:$0xff]  ;;  %v4311_v11 = vpop.permute.xlu1 %4310 }
 0x363   :  { %v2586_v7 = vmax.f32 %v2584_v58, %v12557_v49  ;;  %v2615_v52 = vmax.f32 %v2613_v55, %v12561_v14  ;;  %v12574_v34 = vadd.f32 %v2553_v15, %v16298_v45  ;;  %v12578_v0 = vadd.f32 %v12441_v27, %v16340_v26  ;;  %v16543_v60 = vld [vmem:[#allocation116_spill] sm:$0xff]  ;;  %v16545_v58 = vld [vmem:[#allocation30_spill] sm:$0xff]  ;;  %v4313_v15 = vpop.permute.xlu0 %4312 }
 0x364   :  { %6052 = vmatpush1.bf16.msra.mxu0 %v16539_v8  ;;  %v16544_v20 = vpack.c.bf16 %v16542_v51, %v16543_v60  ;;  %v4508_v54 = vrot.slane %v12301_v48, %v16535_v9  ;;  %v5085_v56 = vpack.c.bf16 %v5053_v4, %v5021_v42  ;;  %v5084_v53 = vpack.c.bf16 %v5052_v21, %v5020_v17  ;;  %v2555_v51 = vpop.f32.mrf.mxu1  ;;  %v2514_v60 = vpop.f32.mrf.mxu0  ;;  %v16588_v14 = vld [vmem:[#allocation152_spill] sm:$0xff] }
 0x365   :  { %16540 = vst [vmem:[#allocation131_spill] sm:$0xff] %v12574_v34  ;;  %16541 = vst [vmem:[#allocation50_spill] sm:$0xff] %v12578_v0  ;;  %v4380_v55 = vsel %vm15698_vm8, %v16545_v58, %v4311_v11  ;;  %v12589_v57 = vadd.f32 %v2551_v6, %v16298_v45  ;;  %v12593_v27 = vadd.f32 %v12398_v28, %v16340_v26  ;;  %v16550_v45 = vld [vmem:[#allocation106_spill] sm:$0xff]  ;;  %v16551_v6 = vld [vmem:[#allocation104_spill] sm:$0xff] }
 0x366   :  { %6053 = vmatprep.subr.bf16.mxu0 %v16544_v20  ;;  %v2589_v8 = vmax.f32 %v2587_v61, %v12574_v34  ;;  %v12596_v20 = vmul.f32 %v4504_v23, %v4379_v38  ;;  %v12598_v4 = vmul.f32 %v4504_v23, %v4380_v55  ;;  %v4377_v42 = vsel %vm15698_vm8, %v4309_v5, %v4313_v15  ;;  %v16553_v38 = vld [vmem:[#allocation21_spill] sm:$0xff]  ;;  %v16555_v55 = vld [vmem:[#allocation56_spill] sm:$0xff] }
 0x367   :  { %16546 = vst [vmem:[#allocation49_spill] sm:$0xff] %v12589_v57  ;;  %16547 = vst [vmem:[#allocation176_spill] sm:$0xff] %v12593_v27  ;;  %6266 = vmatprep.subr.bf16.mxu1 %v5085_v56  ;;  %v2618_v21 = vmax.f32 %v2616_v40, %v12578_v0  ;;  %v16552_v17 = vpack.c.bf16 %v16550_v45, %v16551_v6  ;;  %v2588_v28 = vmax.f32 %v2586_v7, %v12589_v57  ;;  %v4315_v56 = vpop.permute.xlu1 %4314  ;;  %v16558_v7 = vld [vmem:[#allocation144_spill] sm:$0xff]  ;;  %v16567_v0 = vld [vmem:[#allocation7_spill] sm:$0xff] }
 0x368   :  { %16548 = vst [vmem:[#allocation166_spill] sm:$0xff] %v12596_v20  ;;  %16549 = vst [vmem:[#allocation125_spill] sm:$0xff] %v12598_v4  ;;  %6267 = vmatpush1.bf16.msra.mxu1 %v5084_v53  ;;  %v2617_v61 = vmax.f32 %v2615_v52, %v12593_v27  ;;  %v3642_v58 = vrot.slane %v16553_v38, %v16237_v29  ;;  %v4145_v23 = vmul.f32 %v16527_v47, %v12509_v62  ;;  %v16556_v53 = vld [vmem:[#allocation22_spill] sm:$0xff]  ;;  %v16616_v20 = vld [vmem:[#allocation197_spill] sm:$0xff] }
 0x369   :  { %6054 = vmatpush1.bf16.msra.mxu0 %v16552_v17  ;;  %v16554_v40 = vpack.c.bf16 %v12439_v59, %v12430_v44  ;;  %v16557_v45 = vpack.c.bf16 %v16555_v55, %v16556_v53  ;;  %v4625_v52 = vpack.c.bf16 %v16558_v7, %v12256_v30  ;;  %v12623_v6 = vadd.f32 %v2514_v60, %v16340_v26  ;;  %v4317_v17 = vpop.permute.xlu0 %4316  ;;  %v16561_v44 = vld [vmem:[#allocation88_spill] sm:$0xff] }
 0x36a   :  { %v4378_v47 = vsel %vm15698_vm8, %v4311_v11, %v4315_v56  ;;  %v12628_v38 = vadd.f32 %v2512_v33, %v16340_v26  ;;  %v3760_v59 = vmul.f32 %v3642_v58, %v16561_v44  ;;  %v12631_v5 = vmul.f32 %v4508_v54, %v4377_v42  ;;  %v16564_v60 = vld [vmem:[#allocation40_spill] sm:$0xff] }
 0x36b   :  { %6055 = vmatprep.subr.bf16.mxu0 %v16554_v40  ;;  %6268 = vmatprep.subr.bf16.mxu1 %v16557_v45  ;;  %16559 = vst [vmem:[#allocation133_spill] sm:$0xff] %v12623_v6  ;;  %v2557_v40 = vpop.f32.mrf.mxu1  ;;  %v12633_v55 = vmul.f32 %v4508_v54, %v4378_v47  ;;  %v4209_v53 = vpack.c.bf16 %v12513_v50, %v4145_v23  ;;  %v16565_v45 = vld [vmem:[#allocation44_spill] sm:$0xff]  ;;  %v4319_v50 = vpop.permute.xlu1 %4318 }
 0x36c   :  { %16560 = vst [vmem:[#allocation71_spill] sm:$0xff] %v12628_v38  ;;  %16562 = vst [vmem:[#allocation153_spill] sm:$0xff] %v12631_v5  ;;  %v2620_v30 = vmax.f32 %v2618_v21, %v12623_v6  ;;  %v16566_v7 = vpack.c.bf16 %v16564_v60, %v16565_v45  ;;  %v2590_v11 = vmax.f32 %v2588_v28, %v2589_v8  ;;  %v7755_v42 = vld [vmem:[%s15118_s7 + $0x68] sm:$0xff]  ;;  %v16586_v6 = vld [vmem:[#allocation159_spill] sm:$0xff] }
 0x36d   :  { %16563 = vst [vmem:[#allocation35_spill] sm:$0xff] %v12633_v55  ;;  %6056 = vmatpush1.bf16.msra.mxu0 %v4625_v52  ;;  %v2619_v33 = vmax.f32 %v2617_v61, %v12628_v38  ;;  %v3728_v27 = vmul.f32 %v3642_v58, %v16567_v0  ;;  %v3225_v54 = vrot.slane %v7755_v42, %v16470_v2  ;;  %v12651_v52 = vpop.permute.xlu0 %4320  ;;  %v16571_v0 = vld [vmem:[#allocation25_spill] sm:$0xff] }
 0x36e   :  { %6269 = vmatpush1.bf16.msra.mxu1 %v16566_v7  ;;  %6057 = vmatprep.subr.bf16.mxu0 %v4209_v53  ;;  %v12649_v23 = vadd.f32 %v2557_v40, %v16340_v26  ;;  %16569 = vst [vmem:[#allocation121_spill] sm:$0xff] %v12651_v52  ;;  %v12654_v8 = vadd.f32 %v2555_v51, %v16340_v26  ;;  %v16572_v26 = vld [vmem:[#allocation99_spill] sm:$0xff]  ;;  %v16573_v51 = vld [vmem:[#allocation93_spill] sm:$0xff] }
 0x36f   :  { %2591 = vmax.xlane.f32.xlu0 %v2590_v11  ;;  %v3343_v28 = vmul.f32 %v3225_v54, %v16571_v0  ;;  %v4376_v61 = vsel %vm15698_vm8, %v4315_v56, %v4319_v50  ;;  %v4516_v58 = vrot.slane %v12015_v35, %v16535_v9  ;;  %v3792_v47 = vpack.c.bf16 %v3760_v59, %v3728_v27  ;;  %v16575_v56 = vld [vmem:[#allocation26_spill] sm:$0xff]  ;;  %v12674_v59 = vpop.permute.xlu1 %4322  ;;  %v16578_v0 = vld [vmem:[#allocation28_spill] sm:$0xff]  ;;  %v16618_v5 = vld [vmem:[#allocation181_spill] sm:$0xff] }
 0x370   :  { %16568 = vst [vmem:[#allocation123_spill] sm:$0xff] %v12649_v23  ;;  %16570 = vst [vmem:[#allocation108_spill] sm:$0xff] %v12654_v8  ;;  %v2622_v44 = vmax.f32 %v2620_v30, %v12649_v23  ;;  %v4512_v40 = vrot.slane %v11955_v13, %v16535_v9  ;;  %v4373_v53 = vsel %vm15698_vm8, %v4317_v17, %v12651_v52  ;;  %v16611_v52 = vld [vmem:[#allocation18_spill] sm:$0xff] }
 0x371   :  { %v16574_v60 = vpack.c.bf16 %v16572_v26, %v16573_v51  ;;  %v2621_v45 = vmax.f32 %v2619_v33, %v12654_v8  ;;  %v3311_v7 = vmul.f32 %v3225_v54, %v16575_v56  ;;  %v4375_v27 = vsel %vm15698_vm8, %v4313_v15, %v4317_v17  ;;  %16576 = vst [vmem:[#allocation85_spill] sm:$0xff] %v12674_v59  ;;  %v12679_v42 = vpop.permute.xlu0 %3895  ;;  %v16579_v26 = vld [vmem:[#allocation33_spill] sm:$0xff]  ;;  %v16581_v33 = vld [vmem:[#allocation31_spill] sm:$0xff]  ;;  %v16583_v56 = vld [vmem:[#allocation150_spill] sm:$0xff] }
 0x372   :  { %v4603_v30 = vmul.f32 %v4512_v40, %v4376_v61  ;;  %v4374_v11 = vsel %vm15698_vm8, %v4319_v50, %v12674_v59  ;;  %16577 = vst [vmem:[#allocation78_spill] sm:$0xff] %v12679_v42  ;;  %v16582_v54 = vld [vmem:[#allocation5_spill] sm:$0xff]  ;;  %v4572_v15 = vmul.f32 %v4516_v58, %v4373_v53  ;;  %v16584_v61 = vld [vmem:[#allocation212_spill] sm:$0xff]  ;;  %v16585_v50 = vld [vmem:[#allocation6_spill] sm:$0xff]  ;;  %v4571_v12 = vmul.f32 %v4512_v40, %v4375_v27 }
 0x373   :  { %6058 = vmatpush1.bf16.msra.mxu0 %v16574_v60  ;;  %v16580_v60 = vld [vmem:[#allocation32_spill] sm:$0xff]  ;;  %v12687_v23 = vadd.f32 %v16583_v56, %v16582_v54  ;;  %v4604_v17 = vmul.f32 %v4516_v58, %v4374_v11  ;;  %v12691_v8 = vadd.f32 %v16584_v61, %v16582_v54  ;;  %v12695_v38 = vadd.f32 %v16586_v6, %v16585_v50  ;;  %v16587_v51 = vld [vmem:[#allocation154_spill] sm:$0xff]  ;;  %v16590_v56 = vld [vmem:[#allocation219_spill] sm:$0xff] }
 0x374   :  { %6059 = vmatprep.subr.bf16.mxu0 %v3792_v47  ;;  %v3375_v47 = vpack.c.bf16 %v3343_v28, %v3311_v7  ;;  %v16589_v34 = vpack.c.bf16 %v16587_v51, %v16588_v14  ;;  %v2623_v21 = vmax.f32 %v2621_v45, %v2622_v44  ;;  %v12702_v57 = vadd.f32 %v16590_v56, %v16585_v50  ;;  %v7555_v28 = vld [vmem:[%s15118_s7 + $0x160] ss:$0 sm:$0xff]  ;;  %v16592_v40 = vld [vmem:[#allocation194_spill] sm:$0xff]  ;;  %v16595_v27 = vld [vmem:[#allocation80_spill] sm:$0xff] }
 0x375   :  { %v7756_v58 = vld [vmem:[%s15118_s7 + $0x80] sm:$0xff]  ;;  %v4636_v44 = vpack.c.bf16 %v4604_v17, %v4572_v15  ;;  %v5714_v45 = vmul.f32 %v7555_v28, %v12460_v19  ;;  %v4635_v50 = vpack.c.bf16 %v4603_v30, %v4571_v12  ;;  %v3900_v56 = vpop.permute.xlu0 %3899  ;;  %v12737_v19 = vld [vmem:[%s15118_s7 + $0x88] sm:$0xff] }
 0x376   :  { %v16591_v6 = vld [vmem:[#allocation79_spill] sm:$0xff]  ;;  %v5161_v11 = vrot.slane %v7756_v58, %v16595_v27  ;;  %2624 = vmax.xlane.f32.xlu1 %v2623_v21  ;;  %v4937_v15 = vrot.slane %v7756_v58, %v16478_v43  ;;  %v4941_v17 = vrot.slane %v12737_v19, %v16478_v43  ;;  %v12742_v12 = vrot.slane %v7756_v58, %v16535_v9 }
 0x377   :  { %6060 = vmatpush1.bf16.msra.mxu0 %v16589_v34  ;;  %v5385_v53 = vrot.slane %v7756_v58, %v16591_v6  ;;  %v16593_v7 = vld [vmem:[#allocation179_spill] sm:$0xff]  ;;  %v12717_v34 = vpop.permute.xlu1 %3897  ;;  %6270 = vmatprep.subr.bf16.mxu1 %v4636_v44  ;;  %v5682_v21 = vmul.f32 %v7555_v28, %v12509_v62  ;;  %v12758_v58 = vrot.slane %v12737_v19, %v16535_v9  ;;  %v16605_v62 = vld [vmem:[#allocation96_spill] sm:$0xff] }
 0x378   :  { %v12715_v14 = vsel %vm3522_vm4, %v16593_v7, %v16592_v40  ;;  %6061 = vmatprep.subr.bf16.mxu0 %v3375_v47  ;;  %16594 = vst [vmem:[#allocation128_spill] sm:$0xff] %v12717_v34  ;;  %v16596_v51 = vld [vmem:[#allocation207_spill] sm:$0xff]  ;;  %v16599_v40 = vld [vmem:[#allocation177_spill] sm:$0xff]  ;;  %v16601_v7 = vld [vmem:[#allocation178_spill] sm:$0xff]  ;;  %6271 = vmatpush1.bf16.msra.mxu1 %v4635_v50  ;;  %v12762_v28 = vrot.slane %v12737_v19, %v16605_v62 }
 0x379   :  { %v16597_v54 = vld [vmem:[#allocation183_spill] sm:$0xff]  ;;  %v12731_v47 = vsel %vm3522_vm4, %v16599_v40, %v16598_v63  ;;  %v5494_v30 = vmul.f32 %v5385_v53, %v12715_v14  ;;  %v16600_v63 = vld [vmem:[#allocation205_spill] sm:$0xff]  ;;  %v16603_v40 = vld [vmem:[#allocation156_spill] sm:$0xff]  ;;  %v3678_v44 = vrot.slane %v11955_v13, %v16237_v29  ;;  %v3904_v10 = vpop.permute.xlu0 %3903 }
 0x37a   :  { %v12725_v61 = vsel %vm3105_vm5, %v16597_v54, %v16596_v51  ;;  %v12750_v51 = vsel %vm3105_vm5, %v16601_v7, %v16600_v63  ;;  %v16602_v54 = vld [vmem:[#allocation158_spill] sm:$0xff]  ;;  %v16607_v7 = vld [vmem:[#allocation112_spill] sm:$0xff]  ;;  %v5462_v50 = vmul.f32 %v5385_v53, %v12731_v47  ;;  %v3682_v53 = vrot.slane %v12015_v35, %v16237_v29 }
 0x37b   :  { %v16604_v49 = vpack.c.bf16 %v16602_v54, %v16603_v40  ;;  %v5270_v18 = vmul.f32 %v5161_v11, %v12725_v61  ;;  %v16606_v63 = vld [vmem:[#allocation46_spill] sm:$0xff]  ;;  %v3902_v54 = vpop.permute.xlu1 %3901  ;;  %v5238_v25 = vmul.f32 %v5161_v11, %v12750_v51  ;;  %v16612_v9 = vld [vmem:[#allocation76_spill] sm:$0xff]  ;;  %v12796_v11 = vsel %vm15691_vm9, %v3900_v56, %v3904_v10 }
 0x37c   :  { %v16608_v32 = vpack.c.bf16 %v16606_v63, %v16607_v7  ;;  %v16609_v40 = vld [vmem:[#allocation58_spill] sm:$0xff]  ;;  %v16613_v63 = vld [vmem:[#allocation48_spill] sm:$0xff] }
 0x37d   :  { %6062 = vmatpush1.bf16.msra.mxu0 %v16604_v49  ;;  %v5746_v49 = vpack.c.bf16 %v5714_v45, %v5682_v21  ;;  %v4835_v31 = vsel %vm15700_vm6, %v16610_v1, %v16609_v40  ;;  %v4833_v59 = vsel %vm15700_vm6, %v16609_v40, %v16611_v52  ;;  %v4099_v45 = vrot.slane %v12015_v35, %v16605_v62 }
 0x37e   :  { %6077 = vmatprep.subr.bf16.mxu0 %v16608_v32  ;;  %v4832_v32 = vsel %vm15700_vm6, %v16613_v63, %v16612_v9  ;;  %v5526_v1 = vpack.c.bf16 %v5494_v30, %v5462_v50  ;;  %v3265_v21 = vrot.slane %v12015_v35, %v16470_v2  ;;  %v12792_v52 = vsel %vm15691_vm9, %v12717_v34, %v3902_v54  ;;  %v16615_v50 = vld [vmem:[#allocation198_spill] sm:$0xff] }
 0x37f   :  { %16614 = vst [vmem:[#allocation126_spill] sm:$0xff] %v12792_v52  ;;  %v5302_v9 = vpack.c.bf16 %v5270_v18, %v5238_v25  ;;  %v12798_v7 = vmul.f32 %v4937_v15, %v4835_v31  ;;  %v5047_v40 = vmul.f32 %v4941_v17, %v4833_v59  ;;  %v4095_v30 = vrot.slane %v11955_v13, %v16605_v62  ;;  %v3906_v4 = vpop.permute.xlu1 %3905  ;;  %v12818_v18 = vpop.permute.xlu0 %3907  ;;  %v16630_v34 = vld [vmem:[#allocation134_spill] sm:$0xff] }
 0x380   :  { %v16617_v35 = vpack.c.bf16 %v16615_v50, %v16616_v20  ;;  %v4834_v55 = vsel %vm15700_vm6, %v16618_v5, %v16613_v63  ;;  %v5015_v43 = vmul.f32 %v4941_v17, %v4832_v32  ;;  %v12812_v31 = vsel %vm15691_vm9, %v12679_v42, %v3900_v56  ;;  %16620 = vst [vmem:[#allocation148_spill] sm:$0xff] %v12818_v18  ;;  %v16621_v5 = vld [vmem:[#allocation160_spill] sm:$0xff]  ;;  %v16622_v63 = vld [vmem:[#allocation173_spill] sm:$0xff]  ;;  %v16626_v42 = vld [vmem:[#allocation210_spill] sm:$0xff] }
 0x381   :  { %6078 = vmatpush2.bf16.msra.mxu0 %v5746_v49  ;;  %16619 = vst [vmem:[#allocation147_spill] sm:$0xff] %v12812_v31  ;;  %v12816_v25 = vsel %vm15691_vm9, %v3902_v54, %v3906_v4  ;;  %v4186_v20 = vmul.f32 %v4095_v30, %v12792_v52  ;;  %v4155_v59 = vmul.f32 %v4099_v45, %v12796_v11  ;;  %v16623_v56 = vld [vmem:[#allocation84_spill] sm:$0xff]  ;;  %v16624_v54 = vld [vmem:[#allocation23_spill] sm:$0xff] }
 0x382   :  { %6133 = vmatprep.subr.bf16.mxu0 %v16617_v35  ;;  %v4187_v49 = vmul.f32 %v4099_v45, %v12816_v25  ;;  %v4103_v17 = vrot.slane %v16621_v5, %v16605_v62  ;;  %v12830_v32 = vsel %vm3522_vm4, %v16623_v56, %v16622_v63  ;;  %v3770_v50 = vmul.f32 %v3682_v53, %v16624_v54  ;;  %v16625_v52 = vld [vmem:[#allocation211_spill] sm:$0xff]  ;;  %v16629_v54 = vld [vmem:[#allocation109_spill] sm:$0xff] }
 0x383   :  { %v3954_v35 = vsel %vm15691_vm9, %v3904_v10, %v12818_v18  ;;  %v5014_v45 = vmul.f32 %v4937_v15, %v4834_v55  ;;  %v4154_v5 = vmul.f32 %v4095_v30, %v12812_v31  ;;  %v16627_v62 = vpack.c.bf16 %v16625_v52, %v16626_v42  ;;  %v12842_v16 = vpop.permute.xlu1 %3909  ;;  %v16632_v18 = vld [vmem:[#allocation222_spill] sm:$0xff]  ;;  %v16633_v15 = vld [vmem:[#allocation67_spill] sm:$0xff] }
 0x384   :  { %6080 = vmatmul.mubr.bf16.vlgmr.msra.gmra.mxu0 %v12153_v39  ;;  %16628 = vst [vmem:[#allocation98_spill] sm:$0xff] %v12842_v16  ;;  %v4219_v63 = vpack.c.bf16 %v4187_v49, %v4155_v59  ;;  %v5079_v22 = vpack.c.bf16 %v5047_v40, %v5015_v43  ;;  %v4386_v10 = vsel %vm15698_vm8, %v16630_v34, %v16629_v54  ;;  %v16637_v49 = vld [vmem:[#allocation105_spill] sm:$0xff]  ;;  %v16638_v54 = vld [vmem:[#allocation136_spill] sm:$0xff] }
 0x385   :  { %6134 = vmatpush1.bf16.msra.mxu0 %v5526_v1  ;;  %7585 = vmatprep.mubr.msk.bf16.mxu0 %vm15709_vm7, %v12027_v37  ;;  %v16631_v1 = vld [vmem:[#allocation171_spill] sm:$0xff]  ;;  %v3738_v30 = vmul.f32 %v3682_v53, %v16633_v15  ;;  %v3955_v42 = vsel %vm15691_vm9, %v3906_v4, %v12842_v16  ;;  %v3769_v43 = vmul.f32 %v3678_v44, %v12830_v32  ;;  %v16639_v53 = vld [vmem:[#allocation92_spill] sm:$0xff] }
 0x386   :  { %6135 = vmatprep.subr.bf16.mxu0 %v16627_v62  ;;  %v12852_v55 = vsel %vm3522_vm4, %v16632_v18, %v16631_v1  ;;  %v12858_v62 = vpop.permute.xlu0 %3494  ;;  %v4218_v52 = vpack.c.bf16 %v4186_v20, %v4154_v5  ;;  %v12861_v40 = vmul.f32 %v4103_v17, %v3954_v35  ;;  %v12863_v59 = vmul.f32 %v4103_v17, %v3955_v42  ;;  %v16640_v4 = vld [vmem:[#allocation231_spill] sm:$0xff] }
 0x387   :  { %16634 = vst [vmem:[#allocation221_spill] sm:$0xff] %v12858_v62  ;;  %6272 = vmatprep.subr.bf16.mxu1 %v4219_v63  ;;  %v12869_v1 = vsel %vm3105_vm5, %v16638_v54, %v16637_v49  ;;  %v3353_v15 = vmul.f32 %v3265_v21, %v16639_v53  ;;  %3923 = vrot.lane.b32.xlu0 %v16640_v4, %s7791_s25  ;;  %v12875_v20 = vmax.f32 %v12691_v8, 0.0  ;;  %v12882_v49 = vpop.permute.xlu1 %3496  ;;  %v16642_v53 = vld [vmem:[#allocation137_spill] sm:$0xff]  ;;  %v16643_v62 = vld [vmem:[#allocation91_spill] sm:$0xff] }
 0x388   :  { %16635 = vst [vmem:[#allocation132_spill] sm:$0xff] %v12861_v40  ;;  %16636 = vst [vmem:[#allocation47_spill] sm:$0xff] %v12863_v59  ;;  %v3802_v16 = vpack.c.bf16 %v3770_v50, %v3738_v30  ;;  %v3737_v17 = vmul.f32 %v3678_v44, %v12852_v55  ;;  %v3261_v5 = vrot.slane %v11955_v13, %v16470_v2  ;;  %6273 = vmatpush1.bf16.msra.mxu1 %v4218_v52  ;;  %v16644_v50 = vld [vmem:[#allocation202_spill] sm:$0xff]  ;;  %v16647_v40 = vld [vmem:[#allocation103_spill] sm:$0xff] }
 0x389   :  { %6136 = vmatpush1.bf16.msra.mxu0 %v5302_v9  ;;  %16641 = vst [vmem:[#allocation74_spill] sm:$0xff] %v12875_v20  ;;  %v5078_v9 = vpack.c.bf16 %v12798_v7, %v5014_v45  ;;  %v4385_v8 = vsel %vm15698_vm8, %v16643_v62, %v16642_v53  ;;  %v16645_v30 = vld [vmem:[#allocation226_spill] sm:$0xff]  ;;  %v3321_v13 = vmul.f32 %v3265_v21, %v12361_v24  ;;  %v12910_v24 = vmax.f32 %v12687_v23, 0.0 }
 0x38a   :  { %6137 = vmatprep.subr.bf16.mxu0 %v5079_v22  ;;  %v12893_v44 = vsel %vm3105_vm5, %v16645_v30, %v16644_v50  ;;  %6274 = vmatprep.subr.bf16.mxu1 %v3802_v16  ;;  %v12896_v22 = vpop.permute.xlu0 %3498  ;;  %v16646_v52 = vld [vmem:[#allocation38_spill] sm:$0xff]  ;;  %v4598_v45 = vmul.f32 %v12758_v58, %v4386_v10  ;;  %v3801_v63 = vpack.c.bf16 %v3769_v43, %v3737_v17  ;;  %v16649_v16 = vld [vmem:[#allocation8_spill] sm:$0xff]  ;;  %v12921_v17 = vmax.f32 %v12702_v57, 0.0 }
 0x38b   :  { %v4388_v7 = vsel %vm15698_vm8, %v16646_v52, %v16630_v34  ;;  %v3352_v53 = vmul.f32 %v3261_v5, %v12869_v1  ;;  %v7566_v50 = vld [vmem:[%s15118_s7 + $0x1b8] ss:$0 sm:$0xff]  ;;  %3925 = vrot.lane.b32.xlu1 %v16647_v40, %s7791_s25  ;;  %16648 = vst [vmem:[#allocation169_spill] sm:$0xff] %v12910_v24  ;;  %3510 = vrot.lane.b32.xlu0 %v12875_v20, %s7787_s0  ;;  %v16652_v52 = vld [vmem:[#allocation39_spill] sm:$0xff] }
 0x38c   :  { %v16650_v21 = vld [vmem:[#allocation190_spill] sm:$0xff]  ;;  %v5725_v10 = vmul.f32 %v7566_v50, %v3955_v42  ;;  %v3385_v43 = vpack.c.bf16 %v3353_v15, %v3321_v13  ;;  %16651 = vst [vmem:[#allocation170_spill] sm:$0xff] %v12921_v17  ;;  %v4387_v23 = vsel %vm15698_vm8, %v16652_v52, %v16643_v62  ;;  %v4566_v59 = vmul.f32 %v12758_v58, %v4385_v8  ;;  %v16654_v13 = vld [vmem:[#allocation68_spill] sm:$0xff]  ;;  %v7565_v58 = vld [vmem:[%s15118_s7 + $0x1b0] ss:$0 sm:$0xff] }
 0x38d   :  { %v12916_v34 = vsel %vm15691_vm9, %v16650_v21, %v16649_v16  ;;  %6138 = vmatpush1.bf16.msra.mxu0 %v5078_v9  ;;  %v3320_v31 = vmul.f32 %v3261_v5, %v12893_v44  ;;  %v16653_v42 = vpack.c.bf16 %v16579_v26, %v16578_v0  ;;  %6275 = vmatpush1.bf16.msra.mxu1 %v3801_v63  ;;  %v12932_v9 = vpop.permute.xlu1 %3500  ;;  %v16655_v16 = vld [vmem:[#allocation188_spill] sm:$0xff]  ;;  %v12954_v21 = vld [vmem:[%s15118_s7 + $0xe0] sm:$0xff] }
 0x38e   :  { %v3658_v57 = vrot.slane %v12737_v19, %v16237_v29  ;;  %v4597_v15 = vmul.f32 %v12742_v12, %v4388_v7  ;;  %v12941_v62 = vsel %vm15691_vm9, %v16655_v16, %v16654_v13  ;;  %v5693_v0 = vmul.f32 %v7566_v50, %v3954_v35  ;;  %6276 = vmatprep.subr.bf16.mxu1 %v3385_v43  ;;  %v3503_v26 = vpop.permute.xlu0 %3502  ;;  %v12973_v50 = vld [vmem:[%s15118_s7 + $0xd8] sm:$0xff] }
 0x38f   :  { %6139 = vmatprep.subr.bf16.mxu0 %v16653_v42  ;;  %v4181_v5 = vmul.f32 %v12762_v28, %v12916_v34  ;;  %v3384_v63 = vpack.c.bf16 %v3352_v53, %v3320_v31  ;;  %v5724_v8 = vmul.f32 %v7565_v58, %v12816_v25  ;;  %3512 = vrot.lane.b32.xlu1 %v12921_v17, %s7787_s0  ;;  %v12963_v25 = vmax.f32 %v12695_v38, 0.0 }
 0x390   :  { %v4630_v7 = vpack.c.bf16 %v4598_v45, %v4566_v59  ;;  %v4565_v52 = vmul.f32 %v12742_v12, %v4387_v23  ;;  %v16656_v35 = vpack.c.bf16 %v16581_v33, %v16580_v60  ;;  %3514 = vrot.lane.b32.xlu0 %v12910_v24, %s7787_s0  ;;  %v5757_v31 = vpack.c.bf16 %v5725_v10, %v5693_v0 }
 0x391   :  { %16657 = vst [vmem:[#allocation124_spill] sm:$0xff] %v12963_v25  ;;  %v3764_v59 = vmul.f32 %v3658_v57, %v12715_v14  ;;  %v4149_v45 = vmul.f32 %v12762_v28, %v12941_v62  ;;  %v5692_v53 = vmul.f32 %v7565_v58, %v12796_v11  ;;  %6277 = vmatpush1.bf16.msra.mxu1 %v3384_v63  ;;  %v3505_v12 = vpop.permute.xlu1 %3504  ;;  %v12982_v11 = vld [vmem:[%s15118_s7 + $0xd0] sm:$0xff] }
 0x392   :  { %6140 = vmatpush1.bf16.msra.mxu0 %v16656_v35  ;;  %v3732_v60 = vmul.f32 %v3658_v57, %v12731_v47  ;;  %v4629_v33 = vpack.c.bf16 %v4597_v15, %v4565_v52  ;;  %6292 = vmatprep.subr.bf16.mxu1 %v5757_v31  ;;  %v3702_v38 = vrot.slane %v12954_v21, %v16237_v29  ;;  %v12977_v14 = vpop.permute.xlu0 %3506  ;;  %v16663_v35 = vld [vmem:[#allocation192_spill] sm:$0xff] }
 0x393   :  { %6141 = vmatprep.subr.bf16.mxu0 %v4630_v7  ;;  %16658 = vst [vmem:[#allocation163_spill] sm:$0xff] %v12977_v14  ;;  %v5756_v28 = vpack.c.bf16 %v5724_v8, %v5692_v53  ;;  %v12987_v47 = vsel %vm3522_vm4, %v12932_v9, %v3505_v12  ;;  %v5429_v10 = vrot.slane %v12973_v50, %v16591_v6 }
 0x394   :  { %3516 = vrot.lane.b32.xlu1 %v12963_v25, %s7787_s0  ;;  %v4213_v43 = vpack.c.bf16 %v4181_v5, %v4149_v45  ;;  %v3241_v23 = vrot.slane %v12737_v19, %v16470_v2  ;;  %v5425_v42 = vrot.slane %v12982_v11, %v16591_v6  ;;  %v3529_v57 = vsel %vm3522_vm4, %v3503_v26, %v12977_v14  ;;  %v16700_v45 = vld [vmem:[#allocation153_spill] sm:$0xff] }
 0x395   :  { %3093 = vrot.lane.b32.xlu0 %v12875_v20, %s7788_s23  ;;  %6293 = vmatpush2.bf16.msra.mxu1 %v5756_v28  ;;  %v13002_v15 = vpop.permute.xlu1 %3508  ;;  %v3796_v13 = vpack.c.bf16 %v3764_v59, %v3732_v60  ;;  %v13008_v19 = vsel %vm3522_vm4, %v12896_v22, %v3503_v26  ;;  %v13016_v63 = vmul.f32 %v3702_v38, %v3529_v57  ;;  %v16662_v26 = vld [vmem:[#allocation193_spill] sm:$0xff]  ;;  %v16666_v28 = vld [vmem:[#allocation180_spill] sm:$0xff] }
 0x396   :  { %6142 = vmatpush1.bf16.msra.mxu0 %v4629_v33  ;;  %16659 = vst [vmem:[#allocation172_spill] sm:$0xff] %v13002_v15  ;;  %v3347_v16 = vmul.f32 %v3241_v23, %v12725_v61  ;;  %v5504_v58 = vmul.f32 %v5425_v42, %v12987_v47  ;;  %v3530_v0 = vsel %vm3522_vm4, %v3505_v12, %v13002_v15  ;;  %v13014_v5 = vpop.permute.xlu0 %3077 }
 0x397   :  { %6143 = vmatprep.subr.bf16.mxu0 %v4213_v43  ;;  %16660 = vst [vmem:[#allocation102_spill] sm:$0xff] %v13016_v63  ;;  %v5473_v8 = vmul.f32 %v5429_v10, %v3529_v57  ;;  %v13018_v7 = vmul.f32 %v3702_v38, %v3530_v0  ;;  %v5505_v52 = vmul.f32 %v5429_v10, %v3530_v0  ;;  %v16665_v38 = vld [vmem:[#allocation182_spill] sm:$0xff]  ;;  %v7559_v43 = vld [vmem:[%s15118_s7 + $0x180] ss:$0 sm:$0xff]  ;;  %v16669_v0 = vld [vmem:[#allocation200_spill] sm:$0xff] }
 0x398   :  { %3095 = vrot.lane.b32.xlu1 %v12921_v17, %s7788_s23  ;;  %v3315_v61 = vmul.f32 %v3241_v23, %v12750_v51  ;;  %v16664_v31 = vpack.c.bf16 %v16662_v26, %v16663_v35  ;;  %v5472_v59 = vmul.f32 %v5425_v42, %v13008_v19  ;;  %6295 = vmatmul.mubr.bf16.vlgmr.msra.gmra.mxu1 %v12153_v39  ;;  %v16670_v26 = vld [vmem:[#allocation185_spill] sm:$0xff]  ;;  %v16671_v35 = vld [vmem:[#allocation184_spill] sm:$0xff] }
 0x399   :  { %16661 = vst [vmem:[#allocation187_spill] sm:$0xff] %v13018_v7  ;;  %3097 = vrot.lane.b32.xlu0 %v12910_v24, %s7788_s23  ;;  %v13031_v53 = vpop.permute.xlu1 %3079  ;;  %v5537_v12 = vpack.c.bf16 %v5505_v52, %v5473_v8  ;;  %7590 = vmatprep.mubr.msk.bf16.mxu1 %vm15709_vm7, %v12027_v37  ;;  %v16667_v10 = vpack.c.bf16 %v16665_v38, %v16666_v28 }
 0x39a   :  { %6144 = vmatpush1.bf16.msra.mxu0 %v16664_v31  ;;  %v13034_v60 = vpop.permute.xlu0 %3081  ;;  %v5536_v51 = vpack.c.bf16 %v5504_v58, %v5472_v59  ;;  %v3379_v33 = vpack.c.bf16 %v3347_v16, %v3315_v61  ;;  %v5405_v37 = vrot.slane %v12301_v48, %v16591_v6  ;;  %v5718_v42 = vmul.f32 %v7559_v43, %v12916_v34 }
 0x39b   :  { %6145 = vmatprep.subr.bf16.mxu0 %v3796_v13  ;;  %6348 = vmatprep.subr.bf16.mxu1 %v5537_v12  ;;  %v5401_v57 = vrot.slane %v12331_v46, %v16591_v6  ;;  %v16668_v13 = vld [vmem:[#allocation203_spill] sm:$0xff]  ;;  %v13065_v8 = vsel %vm3522_vm4, %v16669_v0, %v16632_v18  ;;  %v5181_v34 = vrot.slane %v12301_v48, %v16595_v27  ;;  %v16673_v12 = vld [vmem:[#allocation149_spill] sm:$0xff]  ;;  %v16678_v0 = vld [vmem:[#allocation162_spill] sm:$0xff] }
 0x39c   :  { %3099 = vrot.lane.b32.xlu1 %v12963_v25, %s7788_s23  ;;  %6349 = vmatpush1.bf16.msra.mxu1 %v5536_v51  ;;  %v13059_v16 = vsel %vm3522_vm4, %v16668_v13, %v16623_v56  ;;  %v5499_v52 = vmul.f32 %v5405_v37, %v12830_v32  ;;  %v5686_v61 = vmul.f32 %v7559_v43, %v12941_v62  ;;  %v16674_v51 = vld [vmem:[#allocation165_spill] sm:$0xff] }
 0x39d   :  { %4793 = vrot.lane.b32.xlu0 %v12875_v20, %s7789_s24  ;;  %v13050_v23 = vpop.permute.xlu1 %3083  ;;  %v5177_v56 = vrot.slane %v12331_v46, %v16595_v27  ;;  %v16672_v31 = vpack.c.bf16 %v16670_v26, %v16671_v35  ;;  %v5498_v18 = vmul.f32 %v5401_v57, %v13059_v16  ;;  %v5467_v32 = vmul.f32 %v5405_v37, %v12852_v55 }
 0x39e   :  { %6146 = vmatpush1.bf16.msra.mxu0 %v16667_v10  ;;  %v3086_v58 = vpop.permute.xlu0 %3085  ;;  %v5275_v59 = vmul.f32 %v5181_v34, %v12869_v1  ;;  %v3285_v46 = vrot.slane %v12954_v21, %v16470_v2  ;;  %v5750_v38 = vpack.c.bf16 %v5718_v42, %v5686_v61  ;;  %v5466_v28 = vmul.f32 %v5401_v57, %v13065_v8  ;;  %v16676_v10 = vld [vmem:[#allocation216_spill] sm:$0xff] }
 0x39f   :  { %6147 = vmatprep.subr.bf16.mxu0 %v3379_v33  ;;  %v16675_v33 = vpack.c.bf16 %v16673_v12, %v16674_v51  ;;  %v13093_v43 = vsel %vm3105_vm5, %v16676_v10, %v16638_v54  ;;  %v5205_v55 = vrot.slane %v12973_v50, %v16595_v27  ;;  %v5243_v37 = vmul.f32 %v5181_v34, %v12893_v44  ;;  %v16679_v34 = vld [vmem:[#allocation213_spill] sm:$0xff] }
 0x3a0   :  { %4795 = vrot.lane.b32.xlu1 %v12921_v17, %s7789_s24  ;;  %v5531_v54 = vpack.c.bf16 %v5499_v52, %v5467_v32  ;;  %v5201_v57 = vrot.slane %v12982_v11, %v16595_v27  ;;  %v5530_v44 = vpack.c.bf16 %v5498_v18, %v5466_v28  ;;  %v13118_v61 = vsel %vm3105_vm5, %v16679_v34, %v16645_v30  ;;  %v16686_v34 = vld [vmem:[#allocation118_spill] sm:$0xff] }
 0x3a1   :  { %4797 = vrot.lane.b32.xlu0 %v12910_v24, %s7789_s24  ;;  %v3088_v62 = vpop.permute.xlu1 %3087  ;;  %v5274_v26 = vmul.f32 %v5177_v56, %v13093_v43  ;;  %v5307_v52 = vpack.c.bf16 %v5275_v59, %v5243_v37  ;;  %v16683_v59 = vld [vmem:[#allocation83_spill] sm:$0xff] }
 0x3a2   :  { %6148 = vmatpush1.bf16.msra.mxu0 %v16672_v31  ;;  %v13097_v1 = vpop.permute.xlu0 %3089  ;;  %v13103_v13 = vsel %vm3105_vm5, %v13050_v23, %v3088_v62  ;;  %v13126_v31 = vsel %vm3105_vm5, %v13034_v60, %v3086_v58 }
 0x3a3   :  { %6163 = vmatprep.subr.bf16.mxu0 %v16675_v33  ;;  %16677 = vst [vmem:[#allocation161_spill] sm:$0xff] %v13097_v1  ;;  %v3112_v42 = vsel %vm3105_vm5, %v3086_v58, %v13097_v1  ;;  %v5280_v32 = vmul.f32 %v5201_v57, %v13103_v13  ;;  %v5242_v58 = vmul.f32 %v5177_v56, %v13118_v61 }
 0x3a4   :  { %4799 = vrot.lane.b32.xlu1 %v12963_v25, %s7789_s24  ;;  %v13129_v18 = vmul.f32 %v3285_v46, %v3112_v42  ;;  %v5249_v51 = vmul.f32 %v5205_v55, %v3112_v42  ;;  %v5248_v28 = vmul.f32 %v5201_v57, %v13126_v31  ;;  %v16684_v42 = vpack.c.bf16 %v12478_v41, %v12475_v3  ;;  %v16692_v3 = vld [vmem:[#allocation96_spill] sm:$0xff] }
 0x3a5   :  { %4801 = vrot.lane.b32.xlu0 %v16678_v0, %s7789_s24  ;;  %v13121_v35 = vpop.permute.xlu1 %3091  ;;  %v5306_v56 = vpack.c.bf16 %v5274_v26, %v5242_v58  ;;  %v4091_v41 = vrot.slane %v12301_v48, %v16692_v3  ;;  %v7570_v0 = vld [vmem:[%s15118_s7 + $0x1d8] ss:$0 sm:$0xff] }
 0x3a6   :  { %6164 = vmatpush2.bf16.msra.mxu0 %v5750_v38  ;;  %16680 = vst [vmem:[#allocation119_spill] sm:$0xff] %v13121_v35  ;;  %16681 = vst [vmem:[#allocation34_spill] sm:$0xff] %v13129_v18  ;;  %v3113_v30 = vsel %vm3105_vm5, %v3088_v62, %v13121_v35  ;;  %v13134_v12 = vpop.permute.xlu0 %4777  ;;  %v5312_v37 = vpack.c.bf16 %v5280_v32, %v5248_v28  ;;  %v16688_v32 = vld [vmem:[#allocation223_spill] sm:$0xff] }
 0x3a7   :  { %6219 = vmatprep.subr.bf16.mxu0 %v5531_v54  ;;  %v13136_v33 = vmul.f32 %v3285_v46, %v3113_v30  ;;  %v5281_v38 = vmul.f32 %v5205_v55, %v3113_v30  ;;  %v16699_v62 = vld [vmem:[#allocation35_spill] sm:$0xff] }
 0x3a8   :  { %4803 = vrot.lane.b32.xlu1 %v16683_v59, %s7789_s24  ;;  %v16701_v18 = vpack.c.bf16 %v16699_v62, %v16700_v45  ;;  %v16703_v45 = vld [vmem:[#allocation125_spill] sm:$0xff] }
 0x3a9   :  { %16682 = vst [vmem:[#allocation120_spill] sm:$0xff] %v13136_v33  ;;  %6166 = vmatmul.mubr.bf16.vlgmr.msra.gmra.mxu0 %v12153_v39  ;;  %4340 = vrot.lane.b32.xlu0 %v16640_v4, %s7790_s1  ;;  %v13147_v46 = vpop.permute.xlu1 %4779  ;;  %v5313_v10 = vpack.c.bf16 %v5281_v38, %v5249_v51  ;;  %v13152_v39 = vld [vmem:[%s15116_s5 + $0x4] ss:$8 sps:$4 sm:$0xff]   ;;  %v16690_v38 = vld [vmem:[#allocation37_spill] sm:$0xff] }
 0x3aa   :  { %6220 = vmatpush1.bf16.msra.mxu0 %v5530_v44  ;;  %7587 = vmatprep.mubr.msk.bf16.mxu0 %vm15709_vm7, %v13152_v39  ;;  %v13156_v55 = vpop.permute.xlu0 %4781  ;;  %v16685_v44 = vld [vmem:[#allocation45_spill] sm:$0xff]  ;;  %v16689_v51 = vld [vmem:[#allocation24_spill] sm:$0xff] }
 0x3ab   :  { %6221 = vmatprep.subr.bf16.mxu0 %v5307_v52  ;;  %6350 = vmatprep.subr.bf16.mxu1 %v5313_v10  ;;  %v4666_v26 = vpack.c.bf16 %v16686_v34, %v16685_v44  ;;  %v16687_v52 = vld [vmem:[#allocation128_spill] sm:$0xff]  ;;  %v16691_v58 = vpack.c.bf16 %v16689_v51, %v16690_v38  ;;  %v16693_v10 = vld [vmem:[#allocation78_spill] sm:$0xff]  ;;  %v16696_v44 = vld [vmem:[#allocation143_spill] sm:$0xff] }
 0x3ac   :  { %4342 = vrot.lane.b32.xlu1 %v16647_v40, %s7790_s1  ;;  %6351 = vmatpush1.bf16.msra.mxu1 %v5312_v37  ;;  %v3961_v30 = vsel %vm15691_vm9, %v16688_v32, %v16687_v52  ;;  %v16697_v34 = vld [vmem:[#allocation145_spill] sm:$0xff]  ;;  %v16698_v38 = vld [vmem:[#allocation82_spill] sm:$0xff] }
 0x3ad   :  { %4344 = vrot.lane.b32.xlu0 %v12875_v20, %s7790_s1  ;;  %v13165_v54 = vpop.permute.xlu1 %4783  ;;  %v4665_v52 = vpack.c.bf16 %v16697_v34, %v16696_v44  ;;  %v4185_v32 = vmul.f32 %v4091_v41, %v3961_v30 }
 0x3ae   :  { %6222 = vmatpush1.bf16.msra.mxu0 %v5306_v56  ;;  %v4786_v57 = vpop.permute.xlu0 %4785  ;;  %v16694_v56 = vld [vmem:[#allocation142_spill] sm:$0xff] }
 0x3af   :  { %6223 = vmatprep.subr.bf16.mxu0 %v16684_v42  ;;  %v13186_v37 = vsel %vm15691_vm9, %v16694_v56, %v16693_v10  ;;  %v3674_v56 = vrot.slane %v12301_v48, %v16237_v29  ;;  %v4814_v34 = vsel %vm15700_vm6, %v13156_v55, %v4786_v57 }
 0x3b0   :  { %4346 = vrot.lane.b32.xlu1 %v12921_v17, %s7790_s1  ;;  %v4153_v44 = vmul.f32 %v4091_v41, %v13186_v37 }
 0x3b1   :  { %4348 = vrot.lane.b32.xlu0 %v12910_v24, %s7790_s1  ;;  %v4788_v28 = vpop.permute.xlu1 %4787 }
 0x3b2   :  { %6224 = vmatpush1.bf16.msra.mxu0 %v16691_v58  ;;  %v13188_v42 = vpop.permute.xlu0 %4789  ;;  %v4815_v51 = vsel %vm15700_vm6, %v13165_v54, %v4788_v28  ;;  %v4977_v58 = vrot.slane %v12982_v11, %v16698_v38 }
 0x3b3   :  { %6225 = vmatprep.subr.bf16.mxu0 %v4666_v26  ;;  %16695 = vst [vmem:[#allocation116_spill] sm:$0xff] %v13188_v42  ;;  %v4981_v26 = vrot.slane %v12973_v50, %v16698_v38  ;;  %v4812_v10 = vsel %vm15700_vm6, %v4786_v57, %v13188_v42  ;;  %v3768_v42 = vmul.f32 %v3674_v56, %v13059_v16 }
 0x3b4   :  { %4350 = vrot.lane.b32.xlu1 %v12963_v25, %s7790_s1  ;;  %v5056_v63 = vmul.f32 %v4977_v58, %v4815_v51  ;;  %v4217_v57 = vpack.c.bf16 %v4185_v32, %v4153_v44  ;;  %v5024_v35 = vmul.f32 %v4977_v58, %v4814_v34  ;;  %v3257_v51 = vrot.slane %v12301_v48, %v16470_v2  ;;  %v16706_v44 = vld [vmem:[#allocation55_spill] sm:$0xff]  ;;  %v16707_v34 = vld [vmem:[#allocation229_spill] sm:$0xff] }
 0x3b5   :  { %3927 = vrot.lane.b32.xlu0 %v12875_v20, %s7791_s25  ;;  %v13215_v33 = vpop.permute.xlu1 %4791  ;;  %v5025_v41 = vmul.f32 %v4981_v26, %v4812_v10 }
 0x3b6   :  { %6226 = vmatpush1.bf16.msra.mxu0 %v4665_v52  ;;  %16702 = vst [vmem:[#allocation30_spill] sm:$0xff] %v13215_v33  ;;  %v4813_v52 = vsel %vm15700_vm6, %v4788_v28, %v13215_v33  ;;  %v13220_v7 = vpop.permute.xlu0 %4324  ;;  %v3736_v28 = vmul.f32 %v3674_v56, %v13065_v8  ;;  %v5088_v10 = vpack.c.bf16 %v5056_v63, %v5024_v35  ;;  %v16708_v56 = vld [vmem:[#allocation13_spill] sm:$0xff] }
 0x3b7   :  { %6227 = vmatprep.subr.bf16.mxu0 %v16701_v18  ;;  %v5057_v1 = vmul.f32 %v4981_v26, %v4813_v52  ;;  %v16704_v18 = vld [vmem:[#allocation166_spill] sm:$0xff]  ;;  %v3351_v32 = vmul.f32 %v3257_v51, %v13093_v43  ;;  %v4672_v8 = vpack.c.bf16 %v16707_v34, %v16706_v44  ;;  %v7564_v43 = vld [vmem:[%s15118_s7 + $0x1a8] ss:$0 sm:$0xff]  ;;  %v16723_v33 = vld [vmem:[#allocation217_spill] sm:$0xff] }
 0x3b8   :  { %3929 = vrot.lane.b32.xlu1 %v12921_v17, %s7791_s25  ;;  %v16705_v62 = vpack.c.bf16 %v16703_v45, %v16704_v18  ;;  %v3800_v58 = vpack.c.bf16 %v3768_v42, %v3736_v28  ;;  %v16709_v45 = vld [vmem:[#allocation66_spill] sm:$0xff]  ;;  %v16711_v42 = vld [vmem:[#allocation64_spill] sm:$0xff] }
 0x3b9   :  { %3931 = vrot.lane.b32.xlu0 %v12910_v24, %s7791_s25  ;;  %v13233_v16 = vpop.permute.xlu1 %4326  ;;  %v5089_v26 = vpack.c.bf16 %v5057_v1, %v5025_v41  ;;  %v16710_v48 = vpack.c.bf16 %v16708_v56, %v16709_v45  ;;  %v3319_v1 = vmul.f32 %v3257_v51, %v13118_v61  ;;  %v16712_v41 = vld [vmem:[#allocation89_spill] sm:$0xff]  ;;  %v16713_v18 = vld [vmem:[#allocation126_spill] sm:$0xff]  ;;  %v13257_v28 = vld [vmem:[%s15118_s7 + $0xc8] sm:$0xff]  ;;  %v13263_v61 = vsel %vm3522_vm4, %v12882_v49, %v12932_v9 }
 0x3ba   :  { %6228 = vmatpush1.bf16.msra.mxu0 %v16705_v62  ;;  %v13235_v52 = vpop.permute.xlu0 %4328  ;;  %v5723_v62 = vmul.f32 %v7564_v43, %v16713_v18  ;;  %v16715_v44 = vld [vmem:[#allocation204_spill] sm:$0xff]  ;;  %v16717_v56 = vld [vmem:[#allocation147_spill] sm:$0xff] }
 0x3bb   :  { %6229 = vmatprep.subr.bf16.mxu0 %v4217_v57  ;;  %6352 = vmatprep.subr.bf16.mxu1 %v5089_v26  ;;  %v4671_v57 = vpack.c.bf16 %v16712_v41, %v16711_v42  ;;  %v3383_v51 = vpack.c.bf16 %v3351_v32, %v3319_v1  ;;  %v7563_v26 = vld [vmem:[%s15118_s7 + $0x1a0] ss:$0 sm:$0xff]  ;;  %v5691_v45 = vmul.f32 %v7564_v43, %v16717_v56  ;;  %v16814_v17 = vld [vmem:[#allocation100_spill] sm:$0xff] }
 0x3bc   :  { %3933 = vrot.lane.b32.xlu1 %v12963_v25, %s7791_s25  ;;  %6353 = vmatpush1.bf16.msra.mxu1 %v5088_v10  ;;  %v5421_v10 = vrot.slane %v13257_v28, %v16591_v6  ;;  %v13283_v1 = vld [vmem:[%s15118_s7 + $0xc0] sm:$0xff]  ;;  %v5690_v18 = vmul.f32 %v7563_v26, %v13186_v37  ;;  %v13309_v56 = vsel %vm3105_vm5, %v13031_v53, %v13050_v23 }
 0x3bd   :  { %v13246_v63 = vpop.permute.xlu1 %4330  ;;  %6354 = vmatprep.subr.bf16.mxu1 %v4672_v8  ;;  %v5722_v8 = vmul.f32 %v7563_v26, %v3961_v30  ;;  %v5417_v42 = vrot.slane %v13283_v1, %v16591_v6  ;;  %v16719_v30 = vld [vmem:[#allocation41_spill] sm:$0xff]  ;;  %v16722_v26 = vld [vmem:[#allocation218_spill] sm:$0xff] }
 0x3be   :  { %6230 = vmatpush1.bf16.msra.mxu0 %v16710_v48  ;;  %v4333_v35 = vpop.permute.xlu0 %4332  ;;  %v16718_v48 = vld [vmem:[#allocation221_spill] sm:$0xff]  ;;  %v13291_v43 = vsel %vm3522_vm4, %v16719_v30, %v12882_v49  ;;  %v5503_v41 = vmul.f32 %v5421_v10, %v13263_v61  ;;  %v16724_v15 = vpack.c.bf16 %v16722_v26, %v16723_v33  ;;  %v16727_v26 = vld [vmem:[#allocation14_spill] sm:$0xff] }
 0x3bf   :  { %6231 = vmatprep.subr.bf16.mxu0 %v3800_v58  ;;  %v16714_v58 = vld [vmem:[#allocation206_spill] sm:$0xff]  ;;  %v13278_v9 = vsel %vm3522_vm4, %v16718_v48, %v12896_v22  ;;  %v5197_v22 = vrot.slane %v13257_v28, %v16595_v27  ;;  %v5502_v23 = vmul.f32 %v5417_v42, %v13291_v43  ;;  %v4367_v14 = vsel %vm15698_vm8, %v13235_v52, %v4333_v35 }
 0x3c0   :  { %v16716_v34 = vpack.c.bf16 %v16714_v58, %v16715_v44  ;;  %6355 = vmatpush1.bf16.msra.mxu1 %v4671_v57  ;;  %v16721_v58 = vld [vmem:[#allocation86_spill] sm:$0xff]  ;;  %v5471_v49 = vmul.f32 %v5421_v10, %v13278_v9  ;;  %v16725_v10 = vld [vmem:[#allocation16_spill] sm:$0xff] }
 0x3c1   :  { %v4335_v32 = vpop.permute.xlu1 %4334  ;;  %v4532_v44 = vrot.slane %v12973_v50, %v16721_v58  ;;  %v4528_v30 = vrot.slane %v12982_v11, %v16721_v58 }
 0x3c2   :  { %6232 = vmatpush1.bf16.msra.mxu0 %v16716_v34  ;;  %v13296_v57 = vpop.permute.xlu0 %4336  ;;  %v5755_v34 = vpack.c.bf16 %v5723_v62, %v5691_v45  ;;  %v5754_v62 = vpack.c.bf16 %v5722_v8, %v5690_v18  ;;  %v13323_v45 = vsel %vm3522_vm4, %v16725_v10, %v16718_v48  ;;  %v5535_v18 = vpack.c.bf16 %v5503_v41, %v5471_v49  ;;  %v16728_v49 = vld [vmem:[#allocation97_spill] sm:$0xff] }
 0x3c3   :  { %6233 = vmatprep.subr.bf16.mxu0 %v3383_v51  ;;  %16720 = vst [vmem:[#allocation106_spill] sm:$0xff] %v13296_v57  ;;  %v4368_v51 = vsel %vm15698_vm8, %v13246_v63, %v4335_v32  ;;  %v4365_v37 = vsel %vm15698_vm8, %v4333_v35, %v13296_v57  ;;  %v13346_v35 = vsel %vm3105_vm5, %v16727_v26, %v13031_v53 }
 0x3c4   :  { %v4607_v33 = vmul.f32 %v4528_v30, %v4368_v51  ;;  %v4576_v10 = vmul.f32 %v4532_v44, %v4365_v37  ;;  %v5193_v51 = vrot.slane %v13283_v1, %v16595_v27  ;;  %v4575_v41 = vmul.f32 %v4528_v30, %v4367_v14 }
 0x3c5   :  { %v13329_v6 = vpop.permute.xlu1 %4338  ;;  %v13360_v53 = vsel %vm3105_vm5, %v16728_v49, %v13014_v5  ;;  %v4816_v14 = vsel %vm15700_vm6, %v13134_v12, %v13156_v55  ;;  %v4969_v55 = vrot.slane %v13283_v1, %v16698_v38 }
 0x3c6   :  { %6234 = vmatpush1.bf16.msra.mxu0 %v16724_v15  ;;  %16726 = vst [vmem:[#allocation104_spill] sm:$0xff] %v13329_v6  ;;  %v13335_v15 = vsel %vm3105_vm5, %v13014_v5, %v13034_v60  ;;  %v4366_v8 = vsel %vm15698_vm8, %v4335_v32, %v13329_v6  ;;  %v13340_v48 = vpop.permute.xlu0 %3911  ;;  %v5470_v60 = vmul.f32 %v5417_v42, %v13323_v45  ;;  %v16729_v5 = vld [vmem:[#allocation141_spill] sm:$0xff] }
 0x3c7   :  { %6249 = vmatprep.subr.bf16.mxu0 %v5755_v34  ;;  %v5279_v34 = vmul.f32 %v5197_v22, %v13309_v56  ;;  %v4608_v57 = vmul.f32 %v4532_v44, %v4366_v8  ;;  %v4817_v32 = vsel %vm15700_vm6, %v13147_v46, %v13165_v54  ;;  %v5247_v44 = vmul.f32 %v5197_v22, %v13335_v15 }
 0x3c8   :  { %v4973_v42 = vrot.slane %v13257_v28, %v16698_v38  ;;  %v5534_v26 = vpack.c.bf16 %v5502_v23, %v5470_v60  ;;  %v5278_v6 = vmul.f32 %v5193_v51, %v13346_v35  ;;  %v4639_v54 = vpack.c.bf16 %v4607_v33, %v4575_v41  ;;  %v16730_v33 = vld [vmem:[#allocation42_spill] sm:$0xff]  ;;  %v16732_v41 = vld [vmem:[#allocation189_spill] sm:$0xff] }
 0x3c9   :  { %v3914_v37 = vpop.permute.xlu1 %3913  ;;  %v4640_v8 = vpack.c.bf16 %v4608_v57, %v4576_v10  ;;  %v4819_v22 = vsel %vm15700_vm6, %v16729_v5, %v13147_v46  ;;  %v13377_v57 = vld [vmem:[%s15116_s5] ss:$8 sps:$4 sm:$0xff]   ;;  %v5311_v23 = vpack.c.bf16 %v5279_v34, %v5247_v44  ;;  %v4818_v46 = vsel %vm15700_vm6, %v16730_v33, %v13134_v12 }
 0x3ca   :  { %6250 = vmatpush2.bf16.msra.mxu0 %v5754_v62  ;;  %v3916_v30 = vpop.permute.xlu0 %3915  ;;  %v5055_v62 = vmul.f32 %v4973_v42, %v4817_v32  ;;  %v5023_v10 = vmul.f32 %v4973_v42, %v4816_v14  ;;  %v16731_v32 = vld [vmem:[#allocation62_spill] sm:$0xff]  ;;  %v3694_v34 = vrot.slane %v12982_v11, %v16237_v29  ;;  %v5054_v44 = vmul.f32 %v4969_v55, %v4819_v22 }
 0x3cb   :  { %6305 = vmatprep.subr.bf16.mxu0 %v5535_v18  ;;  %6356 = vmatprep.subr.bf16.mxu1 %v4640_v8  ;;  %v5246_v18 = vmul.f32 %v5193_v51, %v13360_v53  ;;  %v4669_v49 = vpack.c.bf16 %v16732_v41, %v16731_v32  ;;  %v3698_v12 = vrot.slane %v12973_v50, %v16237_v29 }
 0x3cc   :  { %6357 = vmatpush1.bf16.msra.mxu1 %v4639_v54  ;;  %v16735_v54 = vld [vmem:[#allocation228_spill] sm:$0xff]  ;;  %v4115_v14 = vrot.slane %v12973_v50, %v16692_v3  ;;  %v5022_v33 = vmul.f32 %v4969_v55, %v4818_v46  ;;  %v4111_v22 = vrot.slane %v12982_v11, %v16692_v3  ;;  %v4524_v55 = vrot.slane %v13257_v28, %v16721_v58 }
 0x3cd   :  { %6252 = vmatmul.mubr.bf16.vlgmr.msra.gmra.mxu0 %v13377_v57  ;;  %v3918_v60 = vpop.permute.xlu1 %3917  ;;  %v5310_v51 = vpack.c.bf16 %v5278_v6, %v5246_v18  ;;  %v4370_v6 = vsel %vm15698_vm8, %v13233_v16, %v13246_v63  ;;  %v3774_v32 = vmul.f32 %v3698_v12, %v12987_v47  ;;  %v13424_v63 = vsel %vm15691_vm9, %v13340_v48, %v3916_v30 }
 0x3ce   :  { %6306 = vmatpush1.bf16.msra.mxu0 %v5534_v26  ;;  %7589 = vmatprep.mubr.msk.bf16.mxu0 %vm15709_vm7, %v13152_v39  ;;  %v13393_v8 = vpop.permute.xlu0 %3919  ;;  %v16734_v26 = vld [vmem:[#allocation90_spill] sm:$0xff]  ;;  %v13401_v42 = vsel %vm15691_vm9, %v3914_v37, %v3918_v60  ;;  %v4369_v47 = vsel %vm15698_vm8, %v13220_v7, %v13235_v52  ;;  %v4520_v52 = vrot.slane %v13283_v1, %v16721_v58 }
 0x3cf   :  { %6307 = vmatprep.subr.bf16.mxu0 %v5311_v23  ;;  %16733 = vst [vmem:[#allocation21_spill] sm:$0xff] %v13393_v8  ;;  %v4670_v5 = vpack.c.bf16 %v16735_v54, %v16734_v26  ;;  %v5087_v23 = vpack.c.bf16 %v5055_v62, %v5023_v10  ;;  %v13414_v18 = vsel %vm15691_vm9, %v3916_v30, %v13393_v8 }
 0x3d0   :  { %16736 = vst [vmem:[#allocation56_spill] sm:$0xff] %v13414_v18  ;;  %v3281_v62 = vrot.slane %v12973_v50, %v16470_v2  ;;  %v5086_v10 = vpack.c.bf16 %v5054_v44, %v5022_v33  ;;  %v4190_v41 = vmul.f32 %v4111_v22, %v13401_v42  ;;  %v4606_v26 = vmul.f32 %v4524_v55, %v4370_v6  ;;  %v16740_v33 = vld [vmem:[#allocation98_spill] sm:$0xff]  ;;  %v16741_v6 = vld [vmem:[#allocation121_spill] sm:$0xff] }
 0x3d1   :  { %v13426_v46 = vpop.permute.xlu1 %3921  ;;  %v4159_v44 = vmul.f32 %v4115_v14, %v13414_v18  ;;  %v3773_v8 = vmul.f32 %v3694_v34, %v13263_v61  ;;  %v3690_v61 = vrot.slane %v13257_v28, %v16237_v29 }
 0x3d2   :  { %6308 = vmatpush1.bf16.msra.mxu0 %v5310_v51  ;;  %16737 = vst [vmem:[#allocation22_spill] sm:$0xff] %v13426_v46  ;;  %v13436_v50 = vsel %vm15691_vm9, %v3918_v60, %v13426_v46  ;;  %v16739_v51 = vld [vmem:[#allocation85_spill] sm:$0xff]  ;;  %v3953_v60 = vsel %vm15691_vm9, %v16740_v33, %v3914_v37  ;;  %v4158_v46 = vmul.f32 %v4111_v22, %v13424_v63 }
 0x3d3   :  { %6309 = vmatprep.subr.bf16.mxu0 %v5087_v23  ;;  %16738 = vst [vmem:[#allocation144_spill] sm:$0xff] %v13436_v50  ;;  %v4372_v30 = vsel %vm15698_vm8, %v16739_v51, %v13233_v16  ;;  %v4191_v54 = vmul.f32 %v4115_v14, %v13436_v50  ;;  %v4107_v23 = vrot.slane %v13257_v28, %v16692_v3  ;;  %v16742_v50 = vld [vmem:[#allocation148_spill] sm:$0xff] }
 0x3d4   :  { %v3742_v16 = vmul.f32 %v3698_v12, %v13008_v19  ;;  %v4371_v14 = vsel %vm15698_vm8, %v16741_v6, %v13220_v7  ;;  %v4574_v51 = vmul.f32 %v4524_v55, %v4369_v47  ;;  %v4605_v18 = vmul.f32 %v4520_v52, %v4372_v30  ;;  %v16749_v6 = vld [vmem:[#allocation164_spill] sm:$0xff] }
 0x3d5   :  { %v4223_v1 = vpack.c.bf16 %v4191_v54, %v4159_v44  ;;  %v3952_v37 = vsel %vm15691_vm9, %v16742_v50, %v13340_v48  ;;  %v4222_v22 = vpack.c.bf16 %v4190_v41, %v4158_v46  ;;  %v4189_v19 = vmul.f32 %v4107_v23, %v3953_v60  ;;  %v16744_v50 = vld [vmem:[#allocation132_spill] sm:$0xff] }
 0x3d6   :  { %6310 = vmatpush1.bf16.msra.mxu0 %v5086_v10  ;;  %v3357_v10 = vmul.f32 %v3281_v62, %v13103_v13  ;;  %v4638_v12 = vpack.c.bf16 %v4606_v26, %v4574_v51  ;;  %v3806_v33 = vpack.c.bf16 %v3774_v32, %v3742_v16  ;;  %v3741_v7 = vmul.f32 %v3694_v34, %v13278_v9  ;;  %v16746_v26 = vld [vmem:[#allocation135_spill] sm:$0xff]  ;;  %v16747_v44 = vld [vmem:[#allocation20_spill] sm:$0xff]  ;;  %v16779_v59 = vld [vmem:[#allocation21_spill] sm:$0xff] }
 0x3d7   :  { %6311 = vmatprep.subr.bf16.mxu0 %v4670_v5  ;;  %6358 = vmatprep.subr.bf16.mxu1 %v4223_v1  ;;  %v3277_v5 = vrot.slane %v12982_v11, %v16470_v2  ;;  %v4573_v55 = vmul.f32 %v4520_v52, %v4371_v14  ;;  %v3325_v48 = vmul.f32 %v3281_v62, %v13126_v31  ;;  %v16750_v14 = vld [vmem:[#allocation73_spill] sm:$0xff]  ;;  %v13669_v1 = vadd.s32 2944, %v8822_v36  ;;  %v16778_v24 = vld [vmem:[#allocation56_spill] sm:$0xff] }
 0x3d8   :  { %6359 = vmatpush1.bf16.msra.mxu1 %v4222_v22  ;;  %v4157_v46 = vmul.f32 %v4107_v23, %v3952_v37  ;;  %v3805_v13 = vpack.c.bf16 %v3773_v8, %v3741_v7  ;;  %v3772_v9 = vmul.f32 %v3690_v61, %v13291_v43  ;;  %v3273_v31 = vrot.slane %v13257_v28, %v16470_v2  ;;  %v16752_v7 = vld [vmem:[#allocation79_spill] sm:$0xff] }
 0x3d9   :  { %6360 = vmatprep.subr.bf16.mxu1 %v3806_v33  ;;  %v3356_v47 = vmul.f32 %v3277_v5, %v13309_v56  ;;  %v4637_v32 = vpack.c.bf16 %v4605_v18, %v4573_v55  ;;  %v3389_v41 = vpack.c.bf16 %v3357_v10, %v3325_v48  ;;  %v3324_v11 = vmul.f32 %v3277_v5, %v13335_v15  ;;  %v16743_v18 = vld [vmem:[#allocation47_spill] sm:$0xff]  ;;  %v13532_v55 = vld [vmem:[%s15118_s7 + $0xf8] sm:$0xff] }
 0x3da   :  { %6312 = vmatpush1.bf16.msra.mxu0 %v4669_v49  ;;  %v4221_v34 = vpack.c.bf16 %v4189_v19, %v4157_v46  ;;  %v3740_v49 = vmul.f32 %v3690_v61, %v13323_v45  ;;  %v3355_v8 = vmul.f32 %v3273_v31, %v13346_v35  ;;  %v16745_v43 = vpack.c.bf16 %v16743_v18, %v16744_v50  ;;  %v7568_v45 = vld [vmem:[%s15118_s7 + $0x1c8] ss:$0 sm:$0xff]  ;;  %v7567_v35 = vld [vmem:[%s15118_s7 + $0x1c0] ss:$0 sm:$0xff] }
 0x3db   :  { %6313 = vmatprep.subr.bf16.mxu0 %v4638_v12  ;;  %v3388_v62 = vpack.c.bf16 %v3356_v47, %v3324_v11  ;;  %v3323_v15 = vmul.f32 %v3273_v31, %v13360_v53  ;;  %v5727_v28 = vmul.f32 %v7568_v45, %v13401_v42  ;;  %v16748_v54 = vpack.c.bf16 %v16746_v26, %v16747_v44 }
 0x3dc   :  { %6361 = vmatpush1.bf16.msra.mxu1 %v3805_v13  ;;  %v3804_v56 = vpack.c.bf16 %v3772_v9, %v3740_v49  ;;  %v5695_v52 = vmul.f32 %v7568_v45, %v13424_v63  ;;  %v5726_v53 = vmul.f32 %v7567_v35, %v3953_v60  ;;  %v5694_v16 = vmul.f32 %v7567_v35, %v3952_v37  ;;  %v13500_v63 = vld [vmem:[%s15118_s7 + $0xe8] sm:$0xff]  ;;  %v13505_v60 = vld [vmem:[%s15118_s7 + $0xf0] sm:$0xff] }
 0x3dd   :  { %6362 = vmatprep.subr.bf16.mxu1 %v3389_v41  ;;  %v3387_v30 = vpack.c.bf16 %v3355_v8, %v3323_v15  ;;  %v16751_v51 = vpack.c.bf16 %v16749_v6, %v16750_v14  ;;  %v13513_v22 = vrot.slane %v12954_v21, %v16692_v3  ;;  %v13523_v33 = vrot.slane %v13500_v63, %v16237_v29 }
 0x3de   :  { %6314 = vmatpush1.bf16.msra.mxu0 %v4637_v32  ;;  %v5759_v23 = vpack.c.bf16 %v5727_v28, %v5695_v52  ;;  %v5758_v42 = vpack.c.bf16 %v5726_v53, %v5694_v16  ;;  %v13527_v5 = vrot.slane %v12954_v21, %v16752_v7  ;;  %v13536_v61 = vrot.slane %v13532_v55, %v16237_v29 }
 0x3df   :  { %6315 = vmatprep.subr.bf16.mxu0 %v4221_v34  ;;  %v13540_v48 = vrot.slane %v13500_v63, %v16752_v7  ;;  %v13544_v46 = vrot.slane %v13505_v60, %v16237_v29  ;;  %v13548_v13 = vrot.slane %v13505_v60, %v16752_v7  ;;  %v13552_v47 = vrot.slane %v13500_v63, %v16470_v2 }
 0x3e0   :  { %6363 = vmatpush1.bf16.msra.mxu1 %v3388_v62  ;;  %v13556_v32 = vrot.slane %v12954_v21, %v16595_v27  ;;  %v13560_v9 = vrot.slane %v13505_v60, %v16470_v2  ;;  %v13564_v29 = vrot.slane %v13532_v55, %v16470_v2  ;;  %v13568_v34 = vrot.slane %v13500_v63, %v16595_v27 }
 0x3e1   :  { %v13572_v41 = vrot.slane %v13505_v60, %v16595_v27  ;;  %v13578_v49 = vrot.slane %v12954_v21, %v16698_v38  ;;  %v13582_v31 = vrot.slane %v13500_v63, %v16698_v38  ;;  %v13586_v2 = vrot.slane %v13505_v60, %v16698_v38  ;;  %16774 = vst [vmem:[#allocation194_spill] sm:$0xff] %v13669_v1 }
 0x3e2   :  { %6316 = vmatpush1.bf16.msra.mxu0 %v16745_v43  ;;  %16753 = vst [vmem:[#allocation88_spill] sm:$0xff] %v13560_v9  ;;  %16754 = vst [vmem:[#allocation40_spill] sm:$0xff] %v13564_v29  ;;  %v13590_v62 = vrot.slane %v13532_v55, %v16698_v38  ;;  %v13593_v27 = vadd.s32 128, %v8822_v36  ;;  %v13596_v8 = vadd.s32 256, %v8822_v36  ;;  %v13602_v18 = vadd.s32 512, %v8822_v36 }
 0x3e3   :  { %6317 = vmatprep.subr.bf16.mxu0 %v3804_v56  ;;  %16756 = vst [vmem:[#allocation7_spill] sm:$0xff] %v13586_v2  ;;  %v13599_v56 = vadd.s32 384, %v8822_v36  ;;  %v13606_v50 = vrot.slane %v12954_v21, %v16721_v58  ;;  %v13609_v43 = vadd.s32 640, %v8822_v36  ;;  %v13612_v38 = vadd.s32 768, %v8822_v36  ;;  %v16820_v2 = vld [vmem:[#allocation69_spill] sm:$0xff] }
 0x3e4   :  { %16757 = vst [vmem:[#allocation25_spill] sm:$0xff] %v13590_v62  ;;  %16758 = vst [vmem:[#allocation99_spill] sm:$0xff] %v13593_v27  ;;  %v13615_v15 = vadd.s32 896, %v8822_v36  ;;  %v13618_v45 = vadd.s32 1024, %v8822_v36  ;;  %v13621_v28 = vadd.s32 1152, %v8822_v36  ;;  %v13627_v21 = vadd.s32 1408, %v8822_v36 }
 0x3e5   :  { %16759 = vst [vmem:[#allocation93_spill] sm:$0xff] %v13596_v8  ;;  %16760 = vst [vmem:[#allocation26_spill] sm:$0xff] %v13602_v18  ;;  %v13635_v35 = vadd.s32 1664, %v8822_v36  ;;  %v13638_v52 = vadd.s32 1792, %v8822_v36  ;;  %v13641_v53 = vadd.s32 1920, %v8822_v36  ;;  %v13647_v16 = vadd.s32 2048, %v8822_v36 }
 0x3e6   :  { %6318 = vmatpush1.bf16.msra.mxu0 %v16748_v54  ;;  %16761 = vst [vmem:[#allocation28_spill] sm:$0xff] %v13606_v50  ;;  %16762 = vst [vmem:[#allocation33_spill] sm:$0xff] %v13612_v38  ;;  %v13632_v54 = vadd.s32 1536, %v8822_v36  ;;  %v13650_v6 = vadd.s32 2176, %v8822_v36  ;;  %v13653_v14 = vadd.s32 2304, %v8822_v36  ;;  %v13660_v12 = vadd.s32 2560, %v8822_v36 }
 0x3e7   :  { %6319 = vmatprep.subr.bf16.mxu0 %v3387_v30  ;;  %v13624_v30 = vadd.s32 1280, %v8822_v36  ;;  %16765 = vst [vmem:[#allocation5_spill] sm:$0xff] %v13638_v52  ;;  %16766 = vst [vmem:[#allocation150_spill] sm:$0xff] %v13647_v16  ;;  %v13663_v19 = vadd.s32 2688, %v8822_v36  ;;  %v13666_v10 = vadd.s32 2816, %v8822_v36  ;;  %v13672_v50 = vadd.s32 3072, %v8822_v36 }
 0x3e8   :  { %16764 = vst [vmem:[#allocation31_spill] sm:$0xff] %v13632_v54  ;;  %16767 = vst [vmem:[#allocation212_spill] sm:$0xff] %v13650_v6 }
 0x3e9   :  { %16768 = vst [vmem:[#allocation6_spill] sm:$0xff] %v13653_v14  ;;  %16771 = vst [vmem:[#allocation154_spill] sm:$0xff] %v13660_v12  ;;  %v16811_v12 = vld [vmem:[#allocation122_spill] sm:$0xff] }
 0x3ea   :  { %6320 = vmatpush1.bf16.msra.mxu0 %v16751_v51  ;;  %v13656_v51 = vadd.s32 2432, %v8822_v36  ;;  %16772 = vst [vmem:[#allocation152_spill] sm:$0xff] %v13663_v19  ;;  %16773 = vst [vmem:[#allocation219_spill] sm:$0xff] %v13666_v10  ;;  %v13704_v10 = vadd.s32 3840, %v8822_v36  ;;  %v16810_v19 = vld [vmem:[#allocation235_spill] sm:$0xff] }
 0x3eb   :  { %6335 = vmatprep.subr.bf16.mxu0 %v5759_v23  ;;  %v7569_v23 = vld [vmem:[%s15118_s7 + $0x1d0] ss:$0 sm:$0xff]  ;;  %16775 = vst [vmem:[#allocation179_spill] sm:$0xff] %v13672_v50  ;;  %v13691_v50 = vadd.s32 3456, %v8822_v36 }
 0x3ec   :  { %16769 = vst [vmem:[#allocation159_spill] sm:$0xff] %v13656_v51  ;;  %v5696_v25 = vmul.f32 %v7569_v23, %v16778_v24  ;;  %v16783_v24 = vld [vmem:[#allocation22_spill] sm:$0xff]  ;;  %16785 = vst [vmem:[#allocation178_spill] sm:$0xff] %v13704_v10  ;;  %v16812_v51 = vld [vmem:[#allocation29_spill] sm:$0xff] }
 0x3ed   :  { %16781 = vst [vmem:[#allocation191_spill] sm:$0xff] %v13691_v50  ;;  %v13711_v50 = vrot.slane %v13500_v63, %v16721_v58  ;;  %v16813_v20 = vpack.c.bf16 %v16811_v12, %v16812_v51 }
 0x3ee   :  { %6336 = vmatpush2.bf16.msra.mxu0 %v5758_v42  ;;  %v16770_v42 = vld [vmem:[#allocation144_spill] sm:$0xff] }
 0x3ef   :  { %v5728_v7 = vmul.f32 %v7569_v23, %v16770_v42  ;;  %v13678_v42 = vadd.s32 3328, %v8822_v36  ;;  %16787 = vst [vmem:[#allocation156_spill] sm:$0xff] %v13711_v50  ;;  %v16792_v50 = vld [vmem:[#allocation43_spill] sm:$0xff] }
 0x3f1   :  { %6338 = vmatmul.mubr.bf16.vlgmr.msra.gmra.mxu0 %v13377_v57  ;;  %16777 = vst [vmem:[#allocation207_spill] sm:$0xff] %v13678_v42  ;;  %v13701_v42 = vadd.s32 3712, %v8822_v36 }
 0x3f2   :  { %7591 = vmatprep.mubr.msk.bf16.mxu0 %vm15709_vm7, %v13152_v39 }
 0x3f3   :  { %16784 = vst [vmem:[#allocation205_spill] sm:$0xff] %v13701_v42 }
 0x3f8   :  { %v13509_v37 = vpop.xlane.xlu0 %2591 }
 0x3f9   :  { %vm2626_vm10 = vcmp.eq.f32.partialorder %v16792_v50, %v13509_v37  ;;  %vm2637_vm8 = vcmp.eq.f32.partialorder %v16814_v17, %v13509_v37  ;;  %v16819_v50 = vld [vmem:[#allocation201_spill] sm:$0xff] }
 0x3fc   :  { %v13574_v11 = vpop.permute.xlu0 %3923 }
 0x3fd   :  { %16755 = vst [vmem:[#allocation44_spill] sm:$0xff] %v13574_v11  ;;  %v3946_v29 = vsel %vm15691_vm9, %v16779_v59, %v13574_v11  ;;  %v13707_v59 = vadd.s32 3968, %v8822_v36  ;;  %v5760_v11 = vpack.c.bf16 %v5728_v7, %v5696_v25 }
 0x3fe   :  { %v5697_v10 = vmul.f32 %v7570_v0, %v3946_v29 }
 0x3ff   :  { %v13629_v44 = vpop.xlane.xlu1 %2624  ;;  %16786 = vst [vmem:[#allocation158_spill] sm:$0xff] %v13707_v59 }
 0x400   :  { %v3511_v26 = vpop.permute.xlu0 %3510  ;;  %16763 = vst [vmem:[#allocation32_spill] sm:$0xff] %v13629_v44  ;;  %v13675_v44 = vadd.s32 3200, %v8822_v36 }
 0x402   :  { %16776 = vst [vmem:[#allocation80_spill] sm:$0xff] %v13675_v44  ;;  %v13694_v44 = vadd.s32 3584, %v8822_v36 }
 0x403   :  { %v13688_v9 = vpop.permute.xlu1 %3925 }
 0x404   :  { %v3515_v1 = vpop.permute.xlu0 %3514  ;;  %16780 = vst [vmem:[#allocation183_spill] sm:$0xff] %v13688_v9  ;;  %16782 = vst [vmem:[#allocation177_spill] sm:$0xff] %v13694_v44  ;;  %v3947_v23 = vsel %vm15691_vm9, %v16783_v24, %v13688_v9  ;;  %v13715_v44 = vrot.slane %v13505_v60, %v16721_v58  ;;  %v13719_v24 = vrot.slane %v13532_v55, %v16721_v58 }
 0x405   :  { %v13722_v9 = vmul.f32 %v13513_v22, %v3946_v29  ;;  %v13725_v42 = vmul.f32 %v13513_v22, %v3947_v23  ;;  %v5729_v25 = vmul.f32 %v7570_v0, %v3947_v23  ;;  %v13737_v58 = vrot.slane %v13505_v60, %v16692_v3  ;;  %v16796_v23 = vld [vmem:[#allocation51_spill] sm:$0xff]  ;;  %v16799_v60 = vld [vmem:[#allocation230_spill] sm:$0xff] }
 0x406   :  { %16788 = vst [vmem:[#allocation46_spill] sm:$0xff] %v13715_v44  ;;  %16789 = vst [vmem:[#allocation112_spill] sm:$0xff] %v13719_v24  ;;  %v13733_v44 = vrot.slane %v13500_v63, %v16692_v3  ;;  %v13741_v29 = vrot.slane %v13532_v55, %v16692_v3  ;;  %vm2627_vm11 = vcmp.eq.f32.partialorder %v16796_v23, %v13509_v37  ;;  %v16797_v24 = vld [vmem:[#allocation167_spill] sm:$0xff]  ;;  %v16800_v3 = vld [vmem:[#allocation224_spill] sm:$0xff] }
 0x407   :  { %16790 = vst [vmem:[#allocation58_spill] sm:$0xff] %v13722_v9  ;;  %16791 = vst [vmem:[#allocation186_spill] sm:$0xff] %v13725_v42  ;;  %v3513_v59 = vpop.permute.xlu1 %3512  ;;  %v5761_v22 = vpack.c.bf16 %v5729_v25, %v5697_v10  ;;  %vm2628_vm12 = vcmp.eq.f32.partialorder %v16797_v24, %v13509_v37  ;;  %v16798_v63 = vld [vmem:[#allocation163_spill] sm:$0xff]  ;;  %vm2629_vm13 = vcmp.eq.f32.partialorder %v16799_v60, %v13509_v37  ;;  %v16802_v10 = vld [vmem:[#allocation60_spill] sm:$0xff] }
 0x408   :  { %v13727_v7 = vpop.permute.xlu0 %3093  ;;  %16793 = vst [vmem:[#allocation18_spill] sm:$0xff] %v13733_v44  ;;  %16794 = vst [vmem:[#allocation76_spill] sm:$0xff] %v13737_v58  ;;  %v3527_v44 = vsel %vm3522_vm4, %v16798_v63, %v3511_v26  ;;  %vm2630_vm14 = vcmp.eq.f32.partialorder %v16800_v3, %v13509_v37  ;;  %v16801_v55 = vld [vmem:[#allocation155_spill] sm:$0xff]  ;;  %v13761_v25 = vsel %vm3522_vm4, %v3515_v1, %v16802_v10  ;;  %v16803_v63 = vld [vmem:[#allocation157_spill] sm:$0xff] }
 0x409   :  { %16795 = vst [vmem:[#allocation48_spill] sm:$0xff] %v13741_v29  ;;  %vm2631_vm15 = vcmp.eq.f32.partialorder %v16801_v55, %v13509_v37  ;;  %v3525_v0 = vsel %vm3522_vm4, %v3511_v26, %v3515_v1  ;;  %6378 = vmatprep.subr.bf16.mxu1 %v5761_v22  ;;  %vm2632_vm0 = vcmp.eq.f32.partialorder %v16803_v63, %v13509_v37  ;;  %v16804_v9 = vld [vmem:[#allocation72_spill] sm:$0xff]  ;;  %v16806_v10 = vld [vmem:[#allocation199_spill] sm:$0xff]  ;;  %v16808_v26 = vld [vmem:[#allocation225_spill] sm:$0xff] }
 0x40a   :  { %vm2633_vm1 = vcmp.eq.f32.partialorder %v16804_v9, %v13509_v37  ;;  %v16805_v42 = vld [vmem:[#allocation172_spill] sm:$0xff]  ;;  %6379 = vmatpush2.bf16.msra.mxu1 %v5760_v11  ;;  %vm2634_vm2 = vcmp.eq.f32.partialorder %v16806_v10, %v13509_v37  ;;  %v13781_v22 = vmul.f32 %v13523_v33, %v3527_v44  ;;  %v5474_v40 = vmul.f32 %v13527_v5, %v3527_v44  ;;  %v16822_v3 = vld [vmem:[#allocation119_spill] sm:$0xff]  ;;  %v16823_v63 = vld [vmem:[#allocation161_spill] sm:$0xff] }
 0x40b   :  { %v13772_v29 = vsel %vm3522_vm4, %v16805_v42, %v3513_v59  ;;  %v3517_v4 = vpop.permute.xlu1 %3516  ;;  %v16807_v1 = vld [vmem:[#allocation52_spill] sm:$0xff]  ;;  %6434 = vmatprep.subr.bf16.mxu1 %v16813_v20  ;;  %v13797_v62 = vmul.f32 %v13544_v46, %v3525_v0  ;;  %v5476_v44 = vmul.f32 %v13548_v13, %v13761_v25  ;;  %v2691_v20 = vsel %vm2627_vm11, %v13593_v27, 4096  ;;  %v16824_v10 = vld [vmem:[#allocation234_spill] sm:$0xff] }
 0x40c   :  { %v3098_v58 = vpop.permute.xlu0 %3097  ;;  %vm2635_vm3 = vcmp.eq.f32.partialorder %v16807_v1, %v13509_v37  ;;  %16809 = vst [vmem:[#allocation198_spill] sm:$0xff] %v13781_v22  ;;  %v13787_v11 = vsel %vm3522_vm4, %v3517_v4, %v16810_v19  ;;  %v3526_v42 = vsel %vm3522_vm4, %v3513_v59, %v3517_v4  ;;  %v16816_v22 = vld [vmem:[#allocation110_spill] sm:$0xff]  ;;  %v2690_v4 = vsel %vm2626_vm10, %v8822_v36, 4096 }
 0x40d   :  { %16815 = vst [vmem:[#allocation197_spill] sm:$0xff] %v13797_v62  ;;  %vm2638_vm6 = vcmp.eq.f32.partialorder %v16816_v22, %v13509_v37  ;;  %v16817_v19 = vld [vmem:[#allocation94_spill] sm:$0xff]  ;;  %v5506_v12 = vmul.f32 %v13527_v5, %v13772_v29  ;;  %v13816_v51 = vmul.f32 %v13544_v46, %v3526_v42  ;;  %v5507_v59 = vmul.f32 %v13540_v48, %v3526_v42 }
 0x40e   :  { %vm2639_vm9 = vcmp.eq.f32.partialorder %v16817_v19, %v13509_v37  ;;  %v5508_v14 = vmul.f32 %v13548_v13, %v13787_v11  ;;  %6381 = vmatmul.mubr.bf16.vlgmr.msra.gmra.mxu1 %v13377_v57  ;;  %vm2640_vm4 = vcmp.eq.f32.partialorder %v16819_v50, %v13509_v37  ;;  %vm2641_vm10 = vcmp.eq.f32.partialorder %v16820_v2, %v13509_v37  ;;  %v16821_v5 = vld [vmem:[#allocation138_spill] sm:$0xff] }
 0x40f   :  { %16818 = vst [vmem:[#allocation181_spill] sm:$0xff] %v13816_v51  ;;  %v5475_v23 = vmul.f32 %v13540_v48, %v3525_v0  ;;  %v3096_v27 = vpop.permute.xlu1 %3095  ;;  %vm2642_vm11 = vcmp.eq.f32.partialorder %v16821_v5, %v13509_v37  ;;  %v2692_v46 = vsel %vm2628_vm12, %v13596_v8, 4096  ;;  %v2693_v57 = vsel %vm2629_vm13, %v13599_v56, 4096  ;;  %7592 = vmatprep.mubr.msk.bf16.mxu1 %vm15709_vm7, %v13152_v39 }
 0x410   :  { %v2694_v13 = vsel %vm2630_vm14, %v13602_v18, 4096  ;;  %v5540_v0 = vpack.c.bf16 %v5508_v14, %v5476_v44  ;;  %v2695_v24 = vsel %vm2631_vm15, %v13609_v43, 4096  ;;  %v2696_v60 = vsel %vm2632_vm0, %v13612_v38, 4096  ;;  %v4794_v42 = vpop.permute.xlu0 %4793 }
 0x411   :  { %v13856_v18 = vsel %vm3105_vm5, %v16822_v3, %v3096_v27  ;;  %v5539_v39 = vpack.c.bf16 %v5507_v59, %v5475_v23  ;;  %v2697_v14 = vsel %vm2633_vm1, %v13615_v15, 4096  ;;  %v13866_v55 = vsel %vm2634_vm2, %v13618_v45, 4096  ;;  %v16825_v3 = vld [vmem:[#allocation129_spill] sm:$0xff] }
 0x412   :  { %v3110_v44 = vsel %vm3105_vm5, %v16823_v63, %v13727_v7  ;;  %v5538_v48 = vpack.c.bf16 %v5506_v12, %v5474_v40  ;;  %v13875_v59 = vsel %vm3105_vm5, %v13727_v7, %v3098_v58  ;;  %6435 = vmatpush1.bf16.msra.mxu1 %v5540_v0  ;;  %v2699_v9 = vsel %vm2635_vm3, %v13621_v28, 4096  ;;  %v16826_v63 = vld [vmem:[#allocation36_spill] sm:$0xff] }
 0x413   :  { %v13884_v23 = vsel %vm3105_vm5, %v3098_v58, %v16824_v10  ;;  %6391 = vmatprep.subr.bf16.mxu0 %v5539_v39  ;;  %v16827_v40 = vpack.c.bf16 %v16825_v3, %v16826_v63  ;;  %v3100_v12 = vpop.permute.xlu1 %3099  ;;  %vm16828_vm12 = vcmp.eq.f32.partialorder %v16808_v26, %v13509_v37  ;;  %vm2754_vm13 = vcmp.lt.s32.totalorder %v2690_v4, %v2692_v46  ;;  %v16829_v58 = vld [vmem:[#allocation9_spill] sm:$0xff]  ;;  %v16830_v10 = vld [vmem:[#allocation232_spill] sm:$0xff] }
 0x414   :  { %v13893_v7 = vsel %vm16828_vm12, %v13624_v30, 4096  ;;  %vm2756_vm14 = vcmp.lt.s32.totalorder %v2691_v20, %v2693_v57  ;;  %v5282_v1 = vmul.f32 %v13556_v32, %v13856_v18  ;;  %6392 = vmatpush1.bf16.msra.mxu0 %v5538_v48  ;;  %v13900_v0 = vsel %vm3105_vm5, %v3100_v12, %v16829_v58 }
 0x415   :  { %6436 = vmatprep.subr.bf16.mxu1 %v16827_v40  ;;  %v13904_v39 = vsel %vm3105_vm5, %v3096_v27, %v3100_v12  ;;  %vm2643_vm15 = vcmp.eq.f32.partialorder %v16830_v10, %v13509_v37  ;;  %v2755_v26 = vsel %vm2754_vm13, %v2690_v4, %v2692_v46  ;;  %v13910_v3 = vmul.f32 %v13536_v61, %v13761_v25  ;;  %v4798_v4 = vpop.permute.xlu0 %4797 }
 0x416   :  { %v5250_v63 = vmul.f32 %v13556_v32, %v3110_v44  ;;  %v5251_v48 = vmul.f32 %v13568_v34, %v13875_v59  ;;  %v5283_v40 = vmul.f32 %v13568_v34, %v13904_v39  ;;  %v5252_v27 = vmul.f32 %v13572_v41, %v13884_v23 }
 0x417   :  { %16831 = vst [vmem:[#allocation160_spill] sm:$0xff] %v13910_v3  ;;  %v5284_v12 = vmul.f32 %v13572_v41, %v13900_v0  ;;  %v2757_v58 = vsel %vm2756_vm14, %v2691_v20, %v2693_v57  ;;  %vm2758_vm5 = vcmp.lt.s32.totalorder %v2755_v26, %v2694_v13  ;;  %v4796_v46 = vpop.permute.xlu1 %4795  ;;  %v2701_v32 = vsel %vm2637_vm8, %v13627_v21, 4096  ;;  %v16832_v3 = vld [vmem:[#allocation17_spill] sm:$0xff]  ;;  %v16833_v57 = vld [vmem:[#allocation30_spill] sm:$0xff] }
 0x418   :  { %v5315_v25 = vpack.c.bf16 %v5283_v40, %v5251_v48  ;;  %v2759_v62 = vsel %vm2758_vm5, %v2755_v26, %v2694_v13  ;;  %vm2760_vm0 = vcmp.lt.s32.totalorder %v2757_v58, %v2695_v24  ;;  %v5314_v51 = vpack.c.bf16 %v5282_v1, %v5250_v63  ;;  %v16835_v13 = vld [vmem:[#allocation215_spill] sm:$0xff]  ;;  %v16837_v63 = vld [vmem:[#allocation70_spill] sm:$0xff] }
 0x419   :  { %v5316_v34 = vpack.c.bf16 %v5284_v12, %v5252_v27  ;;  %vm2644_vm1 = vcmp.eq.f32.partialorder %v16832_v3, %v13509_v37  ;;  %v2702_v41 = vsel %vm2638_vm6, %v13632_v54, 4096  ;;  %v2703_v20 = vsel %vm2639_vm9, %v13635_v35, 4096 }
 0x41a   :  { %vm16834_vm8 = vcmp.lt.s32.totalorder %v8822_v36, 127  ;;  %6393 = vmatprep.subr.bf16.mxu0 %v5315_v25  ;;  %vm2645_vm2 = vcmp.eq.f32.partialorder %v16835_v13, %v13509_v37  ;;  %v2704_v1 = vsel %vm2640_vm4, %v13638_v52, 4096  ;;  %v2705_v22 = vsel %vm2641_vm10, %v13641_v53, 4096  ;;  %v16843_v25 = vld [vmem:[#allocation111_spill] sm:$0xff] }
 0x41b   :  { %v4811_v17 = vsel %vm16834_vm8, %v16833_v57, %v4796_v46  ;;  %v2761_v19 = vsel %vm2760_vm0, %v2757_v58, %v2695_v24  ;;  %vm16836_vm6 = vmmov %vm16834_vm8  ;;  %6437 = vmatpush1.bf16.msra.mxu1 %v5316_v34  ;;  %6394 = vmatpush1.bf16.msra.mxu0 %v5314_v51  ;;  %vm2646_vm9 = vcmp.eq.f32.partialorder %v16837_v63, %v13509_v37  ;;  %v13956_v50 = vsel %vm2642_vm11, %v13647_v16, 4096  ;;  %v16839_v24 = vld [vmem:[#allocation116_spill] sm:$0xff]  ;;  %v4800_v40 = vpop.permute.xlu1 %4799  ;;  %v16841_v51 = vld [vmem:[#allocation10_spill] sm:$0xff]  ;;  %v4802_v57 = vpop.permute.xlu0 %4801 }
 0x41c   :  { %v4808_v26 = vsel %vm16836_vm6, %v4794_v42, %v4798_v4  ;;  %vm2762_vm3 = vcmp.lt.s32.totalorder %v2759_v62, %v2696_v60  ;;  %vm2764_vm4 = vcmp.lt.s32.totalorder %v2761_v19, %v2697_v14  ;;  %v13959_v2 = vmul.f32 %v13552_v47, %v3110_v44  ;;  %vm16840_vm10 = vmmov %vm16836_vm6  ;;  %v16844_v34 = vld [vmem:[#allocation95_spill] sm:$0xff] }
 0x41d   :  { %v4810_v48 = vsel %vm16840_vm10, %v16839_v24, %v4794_v42  ;;  %vm2647_vm12 = vcmp.eq.f32.partialorder %v16841_v51, %v13509_v37  ;;  %v2763_v27 = vsel %vm2762_vm3, %v2759_v62, %v2696_v60  ;;  %v2765_v12 = vsel %vm2764_vm4, %v2761_v19, %v2697_v14  ;;  %vm16842_vm11 = vmmov %vm16836_vm6  ;;  %v16848_v24 = vld [vmem:[#allocation15_spill] sm:$0xff]  ;;  %v16874_v51 = vld [vmem:[#allocation194_spill] sm:$0xff] }
 0x41e   :  { %16838 = vst [vmem:[#allocation173_spill] sm:$0xff] %v13959_v2  ;;  %v5058_v58 = vmul.f32 %v13578_v49, %v4811_v17  ;;  %v4809_v5 = vsel %vm16842_vm11, %v4796_v46, %v4800_v40  ;;  %vm2648_vm13 = vcmp.eq.f32.partialorder %v16843_v25, %v13509_v37  ;;  %vm2766_vm14 = vcmp.lt.s32.totalorder %v2763_v27, %v13866_v55  ;;  %v16845_v17 = vld [vmem:[#allocation130_spill] sm:$0xff]  ;;  %vm16849_vm7 = vmmov %vm16840_vm10 }
 0x41f   :  { %vm2768_vm5 = vcmp.lt.s32.totalorder %v2765_v12, %v2699_v9  ;;  %v5027_v44 = vmul.f32 %v13582_v31, %v4808_v26  ;;  %v5059_v42 = vmul.f32 %v13582_v31, %v4809_v5  ;;  %vm2649_vm0 = vcmp.eq.f32.partialorder %v16844_v34, %v13509_v37  ;;  %v16846_v31 = vld [vmem:[#allocation114_spill] sm:$0xff]  ;;  %v16847_v26 = vld [vmem:[#allocation107_spill] sm:$0xff]  ;;  %vm16850_vm4 = vmmov %vm16849_vm7 }
 0x420   :  { %v2767_v62 = vsel %vm2766_vm14, %v2763_v27, %v13866_v55  ;;  %v2769_v60 = vsel %vm2768_vm5, %v2765_v12, %v2699_v9  ;;  %v13979_v14 = vmul.f32 %v13523_v33, %v13772_v29  ;;  %v5026_v46 = vmul.f32 %v13578_v49, %v4810_v48  ;;  %v4804_v9 = vpop.permute.xlu1 %4803  ;;  %v16878_v34 = vld [vmem:[#allocation80_spill] sm:$0xff] }
 0x421   :  { %vm2770_vm8 = vcmp.lt.s32.totalorder %v2767_v62, %v13893_v7  ;;  %vm2772_vm6 = vcmp.lt.s32.totalorder %v2769_v60, %v2701_v32  ;;  %vm2650_vm3 = vcmp.eq.f32.partialorder %v16845_v17, %v13509_v37  ;;  %v2707_v55 = vsel %vm2643_vm15, %v13650_v6, 4096  ;;  %vm16852_vm15 = vmmov %vm16850_vm4 }
 0x422   :  { %v2771_v33 = vsel %vm2770_vm8, %v2767_v62, %v13893_v7  ;;  %v2773_v29 = vsel %vm2772_vm6, %v2769_v60, %v2701_v32  ;;  %v5091_v49 = vpack.c.bf16 %v5059_v42, %v5027_v44  ;;  %v5090_v19 = vpack.c.bf16 %v5058_v58, %v5026_v46  ;;  %v16851_v32 = vld [vmem:[#allocation54_spill] sm:$0xff]  ;;  %v16853_v58 = vld [vmem:[#allocation53_spill] sm:$0xff]  ;;  %vm16854_vm8 = vmmov %vm16850_vm4 }
 0x423   :  { %vm2774_vm14 = vcmp.lt.s32.totalorder %v2771_v33, %v2702_v41  ;;  %vm2776_vm5 = vcmp.lt.s32.totalorder %v2773_v29, %v2703_v20  ;;  %v4807_v48 = vsel %vm16849_vm7, %v4800_v40, %v4804_v9  ;;  %v4806_v10 = vsel %vm16850_vm4, %v4798_v4, %v4802_v57  ;;  %v16855_v44 = vld [vmem:[#allocation113_spill] sm:$0xff]  ;;  %v16856_v42 = vld [vmem:[#allocation27_spill] sm:$0xff]  ;;  %v16860_v62 = vld [vmem:[#allocation6_spill] sm:$0xff] }
 0x424   :  { %v2775_v27 = vsel %vm2774_vm14, %v2771_v33, %v2702_v41  ;;  %v2777_v7 = vsel %vm2776_vm5, %v2773_v29, %v2703_v20  ;;  %v4869_v12 = vsel %vm16852_vm15, %v4804_v9, %v16851_v32  ;;  %6395 = vmatprep.subr.bf16.mxu0 %v5091_v49  ;;  %v4868_v5 = vsel %vm16854_vm8, %v4802_v57, %v16853_v58  ;;  %v16857_v4 = vld [vmem:[#allocation7_spill] sm:$0xff]  ;;  %v16858_v20 = vld [vmem:[#allocation49_spill] sm:$0xff]  ;;  %v16862_v9 = vld [vmem:[#allocation170_spill] sm:$0xff] }
 0x425   :  { %vm2654_vm6 = vcmp.eq.f32.partialorder %v16855_v44, %v13509_v37  ;;  %vm2655_vm7 = vcmp.eq.f32.partialorder %v16856_v42, %v13509_v37  ;;  %vm2778_vm11 = vcmp.lt.s32.totalorder %v2775_v27, %v2704_v1  ;;  %vm2780_vm10 = vcmp.lt.s32.totalorder %v2777_v7, %v2705_v22  ;;  %6396 = vmatpush1.bf16.msra.mxu0 %v5090_v19  ;;  %v16859_v40 = vld [vmem:[#allocation131_spill] sm:$0xff]  ;;  %v16861_v33 = vld [vmem:[#allocation25_spill] sm:$0xff]  ;;  %v16863_v49 = vld [vmem:[#allocation74_spill] sm:$0xff] }
 0x426   :  { %v5060_v41 = vmul.f32 %v16857_v4, %v4807_v48  ;;  %vm2656_vm4 = vcmp.eq.f32.partialorder %v16858_v20, %v13509_v37  ;;  %vm2657_vm14 = vcmp.eq.f32.partialorder %v16859_v40, %v13509_v37  ;;  %v2708_v60 = vsel %vm2644_vm1, %v16860_v62, 4096  ;;  %v16865_v48 = vld [vmem:[#allocation159_spill] sm:$0xff]  ;;  %v16898_v20 = vld [vmem:[#allocation77_spill] sm:$0xff] }
 0x427   :  { %v2779_v46 = vsel %vm2778_vm11, %v2775_v27, %v2704_v1  ;;  %v2781_v57 = vsel %vm2780_vm10, %v2777_v7, %v2705_v22  ;;  %v5061_v29 = vmul.f32 %v16861_v33, %v4869_v12  ;;  %v16864_v32 = vpack.c.bf16 %v16862_v9, %v16863_v49  ;;  %v14030_v1 = vpop.permute.xlu0 %4340  ;;  %v16866_v22 = vld [vmem:[#allocation154_spill] sm:$0xff]  ;;  %v16867_v12 = vld [vmem:[#allocation152_spill] sm:$0xff]  ;;  %v16868_v9 = vld [vmem:[#allocation103_spill] sm:$0xff] }
 0x428   :  { %v5028_v19 = vmul.f32 %v16857_v4, %v4806_v10  ;;  %v2709_v58 = vsel %vm2645_vm2, %v16865_v48, 4096  ;;  %vm2782_vm5 = vcmp.lt.s32.totalorder %v2779_v46, %v13956_v50  ;;  %vm2784_vm15 = vcmp.lt.s32.totalorder %v2781_v57, %v2707_v55  ;;  %v16871_v49 = vld [vmem:[#allocation219_spill] sm:$0xff] }
 0x429   :  { %6397 = vmatprep.subr.bf16.mxu0 %v16864_v32  ;;  %v5029_v3 = vmul.f32 %v16861_v33, %v4868_v5  ;;  %v2710_v27 = vsel %vm2646_vm9, %v16866_v22, 4096  ;;  %v2783_v7 = vsel %vm2782_vm5, %v2779_v46, %v13956_v50  ;;  %v2785_v10 = vsel %vm2784_vm15, %v2781_v57, %v2707_v55  ;;  %v16869_v5 = vld [vmem:[#allocation231_spill] sm:$0xff]  ;;  %v16872_v46 = vld [vmem:[#allocation88_spill] sm:$0xff] }
 0x42a   :  { %v2711_v13 = vsel %vm2647_vm12, %v16867_v12, 4096  ;;  %vm2786_vm1 = vcmp.lt.s32.totalorder %v2783_v7, %v2708_v60  ;;  %vm2788_vm2 = vcmp.lt.s32.totalorder %v2785_v10, %v2709_v58  ;;  %v5092_v4 = vpack.c.bf16 %v5060_v41, %v5028_v19  ;;  %v16875_v19 = vld [vmem:[#allocation40_spill] sm:$0xff] }
 0x42b   :  { %v16870_v33 = vpack.c.bf16 %v16868_v9, %v16869_v5  ;;  %v2712_v63 = vsel %vm2648_vm13, %v16871_v49, 4096  ;;  %v2787_v32 = vsel %vm2786_vm1, %v2783_v7, %v2708_v60  ;;  %v2789_v50 = vsel %vm2788_vm2, %v2785_v10, %v2709_v58  ;;  %v4345_v10 = vpop.permute.xlu0 %4344  ;;  %v16885_v5 = vld [vmem:[#allocation162_spill] sm:$0xff] }
 0x42c   :  { %v5093_v55 = vpack.c.bf16 %v5061_v29, %v5029_v3  ;;  %v14050_v57 = vmul.f32 %v16872_v46, %v13875_v59  ;;  %v2713_v41 = vsel %vm2649_vm0, %v16874_v51, 4096  ;;  %vm2790_vm9 = vcmp.lt.s32.totalorder %v2787_v32, %v2710_v27  ;;  %v16877_v59 = vld [vmem:[#allocation179_spill] sm:$0xff] }
 0x42d   :  { %6398 = vmatpush1.bf16.msra.mxu0 %v16870_v33  ;;  %vm2792_vm12 = vcmp.lt.s32.totalorder %v2789_v50, %v2711_v13  ;;  %v14058_v9 = vmul.f32 %v16875_v19, %v13884_v23  ;;  %v14062_v25 = vmul.f32 %v13536_v61, %v13787_v11  ;;  %v2791_v60 = vsel %vm2790_vm9, %v2787_v32, %v2710_v27  ;;  %v16880_v23 = vld [vmem:[#allocation207_spill] sm:$0xff]  ;;  %v16889_v33 = vld [vmem:[#allocation177_spill] sm:$0xff] }
 0x42e   :  { %16873 = vst [vmem:[#allocation84_spill] sm:$0xff] %v14050_v57  ;;  %v2793_v29 = vsel %vm2792_vm12, %v2789_v50, %v2711_v13  ;;  %6438 = vmatprep.subr.bf16.mxu1 %v5093_v55  ;;  %v2714_v58 = vsel %vm2650_vm3, %v16877_v59, 4096  ;;  %vm16879_vm13 = vcmp.eq.f32.partialorder %v16846_v31, %v13509_v37  ;;  %vm2794_vm0 = vcmp.lt.s32.totalorder %v2791_v60, %v2712_v63  ;;  %v16882_v11 = vld [vmem:[#allocation191_spill] sm:$0xff]  ;;  %v16922_v57 = vld [vmem:[#allocation208_spill] sm:$0xff] }
 0x42f   :  { %16876 = vst [vmem:[#allocation23_spill] sm:$0xff] %v14058_v9  ;;  %v2715_v3 = vsel %vm16879_vm13, %v16878_v34, 4096  ;;  %vm2796_vm10 = vcmp.lt.s32.totalorder %v2793_v29, %v2713_v41  ;;  %6439 = vmatpush1.bf16.msra.mxu1 %v5092_v4  ;;  %vm16881_vm11 = vcmp.eq.f32.partialorder %v16847_v26, %v13509_v37  ;;  %vm16883_vm8 = vcmp.eq.f32.partialorder %v16848_v24, %v13509_v37  ;;  %v16884_v13 = vld [vmem:[#allocation83_spill] sm:$0xff]  ;;  %v16899_v37 = vld [vmem:[#allocation106_spill] sm:$0xff] }
 0x430   :  { %v2716_v61 = vsel %vm16881_vm11, %v16880_v23, 4096  ;;  %v2717_v27 = vsel %vm16883_vm8, %v16882_v11, 4096  ;;  %v2795_v17 = vsel %vm2794_vm0, %v2791_v60, %v2712_v63  ;;  %v2797_v7 = vsel %vm2796_vm10, %v2793_v29, %v2713_v41  ;;  %v16890_v63 = vld [vmem:[#allocation205_spill] sm:$0xff]  ;;  %v16893_v41 = vld [vmem:[#allocation124_spill] sm:$0xff] }
 0x431   :  { %v16886_v31 = vpack.c.bf16 %v16884_v13, %v16885_v5  ;;  %v14085_v4 = vmul.f32 %v13552_v47, %v13856_v18  ;;  %v14089_v26 = vmul.f32 %v16872_v46, %v13904_v39  ;;  %vm2798_vm3 = vcmp.lt.s32.totalorder %v2795_v17, %v2714_v58  ;;  %v14099_v47 = vpop.permute.xlu1 %4342  ;;  %v16891_v18 = vld [vmem:[#allocation178_spill] sm:$0xff]  ;;  %v16894_v60 = vld [vmem:[#allocation169_spill] sm:$0xff] }
 0x432   :  { %vm2800_vm5 = vcmp.lt.s32.totalorder %v2797_v7, %v2715_v3  ;;  %v2718_v24 = vsel %vm2654_vm6, %v16889_v33, 4096  ;;  %v2719_v32 = vsel %vm2655_vm7, %v16890_v63, 4096  ;;  %v2799_v50 = vsel %vm2798_vm3, %v2795_v17, %v2714_v58  ;;  %v16892_v46 = vld [vmem:[#allocation158_spill] sm:$0xff]  ;;  %v16897_v17 = vld [vmem:[#allocation32_spill] sm:$0xff]  ;;  %v16928_v63 = vld [vmem:[#allocation75_spill] sm:$0xff] }
 0x433   :  { %6440 = vmatprep.subr.bf16.mxu1 %v16886_v31  ;;  %16887 = vst [vmem:[#allocation211_spill] sm:$0xff] %v14085_v4  ;;  %16888 = vst [vmem:[#allocation210_spill] sm:$0xff] %v14089_v26  ;;  %v2801_v55 = vsel %vm2800_vm5, %v2797_v7, %v2715_v3  ;;  %v2720_v39 = vsel %vm2656_vm4, %v16891_v18, 4096  ;;  %v2721_v44 = vsel %vm2657_vm14, %v16892_v46, 4096  ;;  %vm2802_vm6 = vcmp.lt.s32.totalorder %v2799_v50, %v2716_v61  ;;  %v4349_v31 = vpop.permute.xlu0 %4348  ;;  %v16920_v7 = vld [vmem:[#allocation117_spill] sm:$0xff]  ;;  %v16926_v46 = vld [vmem:[#allocation115_spill] sm:$0xff] }
 0x434   :  { %vm2804_vm15 = vcmp.lt.s32.totalorder %v2801_v55, %v2717_v27  ;;  %v16895_v42 = vpack.c.bf16 %v16893_v41, %v16894_v60  ;;  %v14114_v29 = vmul.f32 %v16875_v19, %v13900_v0  ;;  %v2803_v58 = vsel %vm2802_vm6, %v2799_v50, %v2716_v61  ;;  %v16901_v0 = vld [vmem:[#allocation104_spill] sm:$0xff]  ;;  %v16925_v26 = vld [vmem:[#allocation81_spill] sm:$0xff]  ;;  %v16929_v33 = vld [vmem:[#allocation99_spill] sm:$0xff] }
 0x435   :  { %v2805_v3 = vsel %vm2804_vm15, %v2801_v55, %v2717_v27  ;;  %vm2658_vm7 = vcmp.eq.f32.partialorder %v16898_v20, %v16897_v17  ;;  %vm16900_vm4 = vcmp.lt.s32.totalorder %v8822_v36, 1  ;;  %vm2806_vm14 = vcmp.lt.s32.totalorder %v2803_v58, %v2718_v24  ;;  %v16903_v61 = vld [vmem:[#allocation12_spill] sm:$0xff]  ;;  %v16931_v4 = vld [vmem:[#allocation26_spill] sm:$0xff] }
 0x436   :  { %6441 = vmatpush1.bf16.msra.mxu1 %v16895_v42  ;;  %16896 = vst [vmem:[#allocation109_spill] sm:$0xff] %v14114_v29  ;;  %v4363_v40 = vsel %vm16900_vm4, %v16899_v37, %v14030_v1  ;;  %vm2808_vm1 = vcmp.lt.s32.totalorder %v2805_v3, %v2719_v32  ;;  %v2807_v13 = vsel %vm2806_vm14, %v2803_v58, %v2718_v24  ;;  %vm16902_vm2 = vmmov %vm16900_vm4  ;;  %v16904_v27 = vld [vmem:[#allocation220_spill] sm:$0xff]  ;;  %v2722_v50 = vsel %vm2658_vm7, %v8822_v36, 4096  ;;  %v14139_v42 = vpop.permute.xlu1 %4346  ;;  %v16907_v58 = vld [vmem:[#allocation227_spill] sm:$0xff] }
 0x437   :  { %v2809_v5 = vsel %vm2808_vm1, %v2805_v3, %v2719_v32  ;;  %v4364_v19 = vsel %vm16902_vm2, %v16901_v0, %v14099_v47  ;;  %vm2659_vm9 = vcmp.eq.f32.partialorder %v16903_v61, %v16897_v17  ;;  %vm2810_vm12 = vcmp.lt.s32.totalorder %v2807_v13, %v2720_v39  ;;  %v16905_v55 = vld [vmem:[#allocation28_spill] sm:$0xff]  ;;  %vm16906_vm10 = vmmov %vm16902_vm2  ;;  %v14191_v18 = vpop.permute.xlu0 %3927 }
 0x438   :  { %vm2812_vm13 = vcmp.lt.s32.totalorder %v2809_v5, %v2721_v44  ;;  %vm2660_vm0 = vcmp.eq.f32.partialorder %v16904_v27, %v16897_v17  ;;  %v14134_v41 = vmul.f32 %v16905_v55, %v4363_v40  ;;  %v2811_v24 = vsel %vm2810_vm12, %v2807_v13, %v2720_v39  ;;  %vm16908_vm8 = vmmov %vm16902_vm2  ;;  %v16911_v39 = vld [vmem:[#allocation11_spill] sm:$0xff] }
 0x439   :  { %v2813_v32 = vsel %vm2812_vm13, %v2809_v5, %v2721_v44  ;;  %v4361_v60 = vsel %vm16906_vm10, %v14030_v1, %v4345_v10  ;;  %v4357_v3 = vsel %vm16908_vm8, %v4349_v31, %v16907_v58  ;;  %vm16909_vm3 = vmmov %vm16902_vm2  ;;  %v14147_v37 = vmul.f32 %v16905_v55, %v4364_v19  ;;  %v16912_v1 = vld [vmem:[#allocation195_spill] sm:$0xff]  ;;  %v16913_v44 = vld [vmem:[#allocation61_spill] sm:$0xff] }
 0x43a   :  { %vm2814_vm11 = vcmp.lt.s32.totalorder %v2811_v24, %v2813_v32  ;;  %v4359_v20 = vsel %vm16909_vm3, %v4345_v10, %v4349_v31  ;;  %vm2661_vm5 = vcmp.eq.f32.partialorder %v16911_v39, %v16897_v17  ;;  %vm2662_vm6 = vcmp.eq.f32.partialorder %v16912_v1, %v16897_v17  ;;  %v16914_v5 = vld [vmem:[#allocation156_spill] sm:$0xff]  ;;  %v16915_v10 = vld [vmem:[#allocation59_spill] sm:$0xff]  ;;  %v16917_v19 = vld [vmem:[#allocation46_spill] sm:$0xff] }
 0x43b   :  { %v14149_v40 = vsel %vm2814_vm11, %v2811_v24, %v2813_v32  ;;  %vm2663_vm15 = vcmp.eq.f32.partialorder %v16913_v44, %v16897_v17  ;;  %v14159_v0 = vmul.f32 %v16914_v5, %v4361_v60  ;;  %vm2664_vm7 = vcmp.eq.f32.partialorder %v16915_v10, %v16897_v17  ;;  %v16916_v31 = vld [vmem:[#allocation196_spill] sm:$0xff]  ;;  %v16919_v58 = vld [vmem:[#allocation57_spill] sm:$0xff]  ;;  %v16932_v39 = vld [vmem:[#allocation174_spill] sm:$0xff] }
 0x43c   :  { %16910 = vst [vmem:[#allocation134_spill] sm:$0xff] %v14149_v40  ;;  %v2817_v13 = vshra.s32 %v14149_v40, 16  ;;  %vm2665_vm4 = vcmp.eq.f32.partialorder %v16916_v31, %v16897_v17  ;;  %v14166_v55 = vmul.f32 %v16917_v19, %v4359_v20  ;;  %v16918_v24 = vld [vmem:[#allocation112_spill] sm:$0xff]  ;;  %vm2666_vm14 = vcmp.eq.f32.partialorder %v16919_v58, %v16897_v17  ;;  %v16923_v20 = vld [vmem:[#allocation209_spill] sm:$0xff]  ;;  %v4351_v40 = vpop.permute.xlu1 %4350 }
 0x43d   :  { %v14169_v32 = vmul.f32 %v16918_v24, %v4357_v3  ;;  %vm2667_vm1 = vcmp.eq.f32.partialorder %v16920_v7, %v16897_v17  ;;  %vm2668_vm2 = vcmp.eq.f32.partialorder %v16922_v57, %v16897_v17  ;;  %vm2669_vm12 = vcmp.eq.f32.partialorder %v16923_v20, %v16897_v17  ;;  %v16924_v3 = vld [vmem:[#allocation139_spill] sm:$0xff] }
 0x43e   :  { %v14175_v60 = vcvt.s32.f32 %v2817_v13  ;;  %vm2670_vm13 = vcmp.eq.f32.partialorder %v16924_v3, %v16897_v17  ;;  %vm2671_vm10 = vcmp.eq.f32.partialorder %v16925_v26, %v16897_v17  ;;  %vm2672_vm11 = vcmp.eq.f32.partialorder %v16926_v46, %v16897_v17  ;;  %v16927_v13 = vld [vmem:[#allocation214_spill] sm:$0xff]  ;;  %v3932_v3 = vpop.permute.xlu0 %3931  ;;  %v16935_v26 = vld [vmem:[#allocation19_spill] sm:$0xff] }
 0x43f   :  { %vm2674_vm3 = vcmp.eq.f32.partialorder %v16928_v63, %v16897_v17  ;;  %v2723_v29 = vsel %vm2659_vm9, %v16929_v33, 4096  ;;  %v2724_v9 = vsel %vm2660_vm0, %v13596_v8, 4096  ;;  %v2725_v11 = vsel %vm2661_vm5, %v13599_v56, 4096  ;;  %v16938_v63 = vld [vmem:[#allocation87_spill] sm:$0xff] }
 0x440   :  { %16921 = vst [vmem:[#allocation171_spill] sm:$0xff] %v14175_v60  ;;  %2820 = vmin.xlane.f32.xlu0 %v14175_v60  ;;  %v16930_v60 = vld [vmem:[#allocation101_spill] sm:$0xff]  ;;  %v2726_v2 = vsel %vm2662_vm6, %v16931_v4, 4096  ;;  %v2727_v61 = vsel %vm2663_vm15, %v13609_v43, 4096  ;;  %v2728_v27 = vsel %vm2664_vm7, %v13612_v38, 4096  ;;  %vm2676_vm9 = vcmp.eq.f32.partialorder %v16932_v39, %v16897_v17 }
 0x441   :  { %vm2675_vm8 = vcmp.eq.f32.partialorder %v16930_v60, %v16897_v17  ;;  %v2729_v8 = vsel %vm2665_vm4, %v13615_v15, 4096  ;;  %v2730_v1 = vsel %vm2666_vm14, %v13618_v45, 4096  ;;  %v2731_v44 = vsel %vm2667_vm1, %v13621_v28, 4096  ;;  %v16941_v60 = vld [vmem:[#allocation65_spill] sm:$0xff] }
 0x442   :  { %v2732_v10 = vsel %vm2668_vm2, %v13624_v30, 4096  ;;  %v2733_v31 = vsel %vm2669_vm12, %v13627_v21, 4096  ;;  %vm2830_vm0 = vcmp.lt.s32.totalorder %v2722_v50, %v2724_v9  ;;  %vm2832_vm5 = vcmp.lt.s32.totalorder %v2723_v29, %v2725_v11 }
 0x443   :  { %vm16933_vm6 = vcmp.lt.s32.totalorder %v8822_v36, 1  ;;  %v2734_v7 = vsel %vm2670_vm13, %v13632_v54, 4096  ;;  %v2735_v57 = vsel %vm2671_vm10, %v13635_v35, 4096  ;;  %v2831_v38 = vsel %vm2830_vm0, %v2722_v50, %v2724_v9  ;;  %v3930_v54 = vpop.permute.xlu1 %3929 }
 0x444   :  { %v4362_v58 = vsel %vm16933_vm6, %v14099_v47, %v14139_v42  ;;  %v2833_v20 = vsel %vm2832_vm5, %v2723_v29, %v2725_v11  ;;  %v14260_v4 = vsel %vm2672_vm11, %v13638_v52, 4096  ;;  %vm16934_vm15 = vcmp.eq.f32.partialorder %v16927_v13, %v16897_v17  ;;  %v16936_v13 = vld [vmem:[#allocation44_spill] sm:$0xff]  ;;  %vm16942_vm11 = vmmov %vm16933_vm6 }
 0x445   :  { %v14266_v47 = vsel %vm16934_vm15, %v13641_v53, 4096  ;;  %vm2834_vm7 = vcmp.lt.s32.totalorder %v2831_v38, %v2726_v2  ;;  %vm2836_vm4 = vcmp.lt.s32.totalorder %v2833_v20, %v2727_v61  ;;  %vm2677_vm14 = vcmp.eq.f32.partialorder %v16935_v26, %v16897_v17  ;;  %vm16944_vm5 = vmmov %vm16933_vm6 }
 0x446   :  { %v14274_v9 = vsel %vm2674_vm3, %v13647_v16, 4096  ;;  %v2835_v11 = vsel %vm2834_vm7, %v2831_v38, %v2726_v2  ;;  %v2837_v46 = vsel %vm2836_vm4, %v2833_v20, %v2727_v61  ;;  %v4610_v29 = vmul.f32 %v16914_v5, %v4362_v58  ;;  %v16939_v61 = vld [vmem:[#allocation63_spill] sm:$0xff]  ;;  %v16943_v20 = vld [vmem:[#allocation146_spill] sm:$0xff]  ;;  %v16946_v16 = vld [vmem:[#allocation168_spill] sm:$0xff] }
 0x447   :  { %v2739_v50 = vsel %vm2675_vm8, %v13650_v6, 4096  ;;  %vm2838_vm1 = vcmp.lt.s32.totalorder %v2835_v11, %v2728_v27  ;;  %vm2840_vm2 = vcmp.lt.s32.totalorder %v2837_v46, %v2729_v8  ;;  %vm16937_vm12 = vcmp.lt.s32.totalorder %v8822_v36, 63  ;;  %v16947_v6 = vld [vmem:[#allocation175_spill] sm:$0xff] }
 0x448   :  { %v14285_v52 = vsel %vm16937_vm12, %v16936_v13, %v14191_v18  ;;  %vm2678_vm13 = vcmp.eq.f32.partialorder %v16938_v63, %v16897_v17  ;;  %v2839_v38 = vsel %vm2838_vm1, %v2835_v11, %v2728_v27  ;;  %v2841_v2 = vsel %vm2840_vm2, %v2837_v46, %v2729_v8  ;;  %vm16940_vm10 = vmmov %vm16937_vm12  ;;  %v16945_v27 = vld [vmem:[#allocation151_spill] sm:$0xff] }
 0x449   :  { %v14292_v5 = vsel %vm16940_vm10, %v3932_v3, %v16939_v61  ;;  %v4358_v58 = vsel %vm16942_vm11, %v4351_v40, %v16941_v60  ;;  %vm2679_vm8 = vcmp.eq.f32.partialorder %v16943_v20, %v16897_v17  ;;  %vm2842_vm3 = vcmp.lt.s32.totalorder %v2839_v38, %v2730_v1  ;;  %vm16949_vm2 = vmmov %vm16940_vm10  ;;  %v16969_v20 = vld [vmem:[#allocation160_spill] sm:$0xff] }
 0x44a   :  { %vm2844_vm0 = vcmp.lt.s32.totalorder %v2841_v2, %v2731_v44  ;;  %v4360_v13 = vsel %vm16944_vm5, %v14139_v42, %v4351_v40  ;;  %v4612_v8 = vmul.f32 %v16918_v24, %v4358_v58  ;;  %vm2680_vm6 = vcmp.eq.f32.partialorder %v16945_v27, %v16897_v17  ;;  %v16948_v42 = vld [vmem:[#allocation183_spill] sm:$0xff]  ;;  %vm16952_vm11 = vmmov %vm16949_vm2 }
 0x44b   :  { %v2843_v11 = vsel %vm2842_vm3, %v2839_v38, %v2730_v1  ;;  %v2845_v46 = vsel %vm2844_vm0, %v2841_v2, %v2731_v44  ;;  %v4611_v61 = vmul.f32 %v16917_v19, %v4360_v13  ;;  %v4642_v60 = vpack.c.bf16 %v4610_v29, %v14159_v0  ;;  %v3934_v1 = vpop.permute.xlu1 %3933  ;;  %v16950_v19 = vld [vmem:[#allocation236_spill] sm:$0xff]  ;;  %v16956_v13 = vld [vmem:[#allocation233_spill] sm:$0xff] }
 0x44c   :  { %vm2681_vm15 = vcmp.eq.f32.partialorder %v16946_v16, %v16897_v17  ;;  %vm2682_vm7 = vcmp.eq.f32.partialorder %v16947_v6, %v16897_v17  ;;  %vm2846_vm4 = vcmp.lt.s32.totalorder %v2843_v11, %v2732_v10  ;;  %vm2848_vm1 = vcmp.lt.s32.totalorder %v2845_v46, %v2733_v31  ;;  %v16951_v0 = vld [vmem:[#allocation176_spill] sm:$0xff] }
 0x44d   :  { %v14314_v40 = vsel %vm16949_vm2, %v16948_v42, %v3930_v54  ;;  %v4644_v24 = vpack.c.bf16 %v4612_v8, %v14169_v32  ;;  %vm2683_vm12 = vcmp.eq.f32.partialorder %v16950_v19, %v16897_v17  ;;  %vm2684_vm10 = vcmp.eq.f32.partialorder %v16951_v0, %v16897_v17  ;;  %6399 = vmatprep.subr.bf16.mxu0 %v4642_v60  ;;  %v16962_v60 = vld [vmem:[#allocation48_spill] sm:$0xff]  ;;  %v16972_v19 = vld [vmem:[#allocation191_spill] sm:$0xff] }
 0x44e   :  { %v2847_v44 = vsel %vm2846_vm4, %v2843_v11, %v2732_v10  ;;  %v2849_v29 = vsel %vm2848_vm1, %v2845_v46, %v2733_v31  ;;  %v14324_v38 = vsel %vm16952_vm11, %v14191_v18, %v3932_v3  ;;  %v4643_v2 = vpack.c.bf16 %v4611_v61, %v14166_v55  ;;  %v16954_v10 = vld [vmem:[#allocation18_spill] sm:$0xff]  ;;  %vm16957_vm4 = vmmov %vm16949_vm2  ;;  %v16961_v11 = vld [vmem:[#allocation133_spill] sm:$0xff] }
 0x44f   :  { %v2740_v32 = vsel %vm2676_vm9, %v16860_v62, 4096  ;;  %vm2850_vm3 = vcmp.lt.s32.totalorder %v2847_v44, %v2734_v7  ;;  %vm2852_vm0 = vcmp.lt.s32.totalorder %v2849_v29, %v2735_v57  ;;  %v16953_v58 = vpack.c.bf16 %v14147_v37, %v14134_v41  ;;  %6442 = vmatprep.subr.bf16.mxu1 %v4644_v24  ;;  %v16955_v18 = vld [vmem:[#allocation50_spill] sm:$0xff]  ;;  %vm16958_vm9 = vmmov %vm16949_vm2  ;;  %v16959_v41 = vld [vmem:[#allocation71_spill] sm:$0xff] }
 0x450   :  { %v4193_v31 = vmul.f32 %v16954_v10, %v14314_v40  ;;  %vm2685_vm5 = vcmp.eq.f32.partialorder %v16955_v18, %v16897_v17  ;;  %v2851_v55 = vsel %vm2850_vm3, %v2847_v44, %v2734_v7  ;;  %v2853_v3 = vsel %vm2852_vm0, %v2849_v29, %v2735_v57  ;;  %6443 = vmatpush1.bf16.msra.mxu1 %v4643_v2  ;;  %v16960_v7 = vld [vmem:[#allocation76_spill] sm:$0xff]  ;;  %v16973_v0 = vld [vmem:[#allocation187_spill] sm:$0xff] }
 0x451   :  { %6400 = vmatpush1.bf16.msra.mxu0 %v16953_v58  ;;  %v14341_v39 = vsel %vm16957_vm4, %v3934_v1, %v16956_v13  ;;  %v3943_v8 = vsel %vm16958_vm9, %v3930_v54, %v3934_v1  ;;  %vm2686_vm1 = vcmp.eq.f32.partialorder %v16959_v41, %v16897_v17  ;;  %vm2854_vm2 = vcmp.lt.s32.totalorder %v2851_v55, %v14260_v4  ;;  %v16964_v58 = vld [vmem:[#allocation123_spill] sm:$0xff]  ;;  %v16966_v13 = vld [vmem:[#allocation186_spill] sm:$0xff]  ;;  %v7572_v6 = vld [vmem:[%s15118_s7 + $0x1e8] ss:$0 sm:$0xff] }
 0x452   :  { %vm2856_vm11 = vcmp.lt.s32.totalorder %v2853_v3, %v14266_v47  ;;  %v4161_v37 = vmul.f32 %v16954_v10, %v14285_v52  ;;  %v4194_v57 = vmul.f32 %v16960_v7, %v3943_v8  ;;  %vm2687_vm3 = vcmp.eq.f32.partialorder %v16961_v11, %v16897_v17  ;;  %v7571_v18 = vld [vmem:[%s15118_s7 + $0x1e0] ss:$0 sm:$0xff]  ;;  %v7573_v41 = vld [vmem:[%s15118_s7 + $0x1f0] ss:$0 sm:$0xff] }
 0x453   :  { %v2855_v46 = vsel %vm2854_vm2, %v2851_v55, %v14260_v4  ;;  %v2857_v61 = vsel %vm2856_vm11, %v2853_v3, %v14266_v47  ;;  %v4162_v54 = vmul.f32 %v16960_v7, %v14324_v38  ;;  %v4195_v42 = vmul.f32 %v16962_v60, %v14341_v39  ;;  %v16963_v4 = vld [vmem:[#allocation108_spill] sm:$0xff] }
 0x454   :  { %v2741_v24 = vsel %vm2677_vm14, %v16865_v48, 4096  ;;  %vm2858_vm0 = vcmp.lt.s32.totalorder %v2855_v46, %v14274_v9  ;;  %vm2860_vm4 = vcmp.lt.s32.totalorder %v2857_v61, %v2739_v50  ;;  %v4163_v1 = vmul.f32 %v16962_v60, %v14292_v5 }
 0x455   :  { %vm2688_vm9 = vcmp.eq.f32.partialorder %v16963_v4, %v16897_v17  ;;  %v2859_v47 = vsel %vm2858_vm0, %v2855_v46, %v14274_v9  ;;  %v2861_v44 = vsel %vm2860_vm4, %v2857_v61, %v2739_v50  ;;  %v4226_v29 = vpack.c.bf16 %v4194_v57, %v4162_v54  ;;  %v16988_v4 = vld [vmem:[#allocation210_spill] sm:$0xff] }
 0x456   :  { %v4225_v2 = vpack.c.bf16 %v4193_v31, %v4161_v37  ;;  %vm2689_vm2 = vcmp.eq.f32.partialorder %v16964_v58, %v16897_v17  ;;  %v2742_v26 = vsel %vm2678_vm13, %v16866_v22, 4096  ;;  %vm2862_vm14 = vcmp.lt.s32.totalorder %v2859_v47, %v2740_v32  ;;  %v16965_v31 = vld [vmem:[#allocation198_spill] sm:$0xff] }
 0x457   :  { %vm2864_vm11 = vcmp.lt.s32.totalorder %v2861_v44, %v2741_v24  ;;  %v4227_v10 = vpack.c.bf16 %v4195_v42, %v4163_v1  ;;  %v2743_v55 = vsel %vm2679_vm8, %v16867_v12, 4096  ;;  %v2863_v9 = vsel %vm2862_vm14, %v2859_v47, %v2740_v32  ;;  %v16967_v37 = vld [vmem:[#allocation58_spill] sm:$0xff]  ;;  %v16970_v42 = vld [vmem:[#allocation173_spill] sm:$0xff] }
 0x458   :  { %v2865_v50 = vsel %vm2864_vm11, %v2861_v44, %v2741_v24  ;;  %6401 = vmatprep.subr.bf16.mxu0 %v4225_v2  ;;  %v3808_v3 = vpack.c.bf16 %v13979_v14, %v16965_v31  ;;  %v2744_v63 = vsel %vm2680_vm6, %v16871_v49, 4096  ;;  %vm2866_vm13 = vcmp.lt.s32.totalorder %v2863_v9, %v2742_v26  ;;  %v16971_v24 = vld [vmem:[#allocation211_spill] sm:$0xff]  ;;  %v16974_v44 = vld [vmem:[#allocation102_spill] sm:$0xff] }
 0x459   :  { %vm2868_vm0 = vcmp.lt.s32.totalorder %v2865_v50, %v2743_v55  ;;  %v16968_v7 = vpack.c.bf16 %v16966_v13, %v16967_v37  ;;  %6444 = vmatprep.subr.bf16.mxu1 %v4227_v10  ;;  %v3810_v32 = vpack.c.bf16 %v14062_v25, %v16969_v20  ;;  %v2745_v14 = vsel %vm2681_vm15, %v16874_v51, 4096  ;;  %v16976_v2 = vld [vmem:[#allocation23_spill] sm:$0xff]  ;;  %v16982_v37 = vld [vmem:[#allocation205_spill] sm:$0xff] }
 0x45a   :  { %v2746_v27 = vsel %vm2682_vm7, %v16877_v59, 4096  ;;  %v2867_v57 = vsel %vm2866_vm13, %v2863_v9, %v2742_v26  ;;  %v2869_v46 = vsel %vm2868_vm0, %v2865_v50, %v2743_v55  ;;  %6445 = vmatpush1.bf16.msra.mxu1 %v4226_v29  ;;  %v2747_v61 = vsel %vm2683_vm12, %v16878_v34, 4096  ;;  %v16977_v26 = vld [vmem:[#allocation109_spill] sm:$0xff] }
 0x45b   :  { %6402 = vmatpush1.bf16.msra.mxu0 %v16968_v7  ;;  %v2748_v16 = vsel %vm2684_vm10, %v16880_v23, 4096  ;;  %vm2870_vm8 = vcmp.lt.s32.totalorder %v2867_v57, %v2744_v63  ;;  %vm2872_vm6 = vcmp.lt.s32.totalorder %v2869_v46, %v2745_v14  ;;  %6446 = vmatprep.subr.bf16.mxu1 %v3810_v32  ;;  %v5731_v60 = vmul.f32 %v7572_v6, %v3943_v8  ;;  %v16978_v55 = vld [vmem:[#allocation177_spill] sm:$0xff] }
 0x45c   :  { %6403 = vmatprep.subr.bf16.mxu0 %v3808_v3  ;;  %v2871_v25 = vsel %vm2870_vm8, %v2867_v57, %v2744_v63  ;;  %v2873_v54 = vsel %vm2872_vm6, %v2869_v46, %v2745_v14  ;;  %v3391_v1 = vpack.c.bf16 %v16971_v24, %v16970_v42  ;;  %v2749_v47 = vsel %vm2685_vm5, %v16972_v19, 4096  ;;  %v16979_v3 = vld [vmem:[#allocation181_spill] sm:$0xff]  ;;  %v16983_v57 = vld [vmem:[#allocation178_spill] sm:$0xff]  ;;  %v16989_v42 = vld [vmem:[#allocation84_spill] sm:$0xff] }
 0x45d   :  { %vm2874_vm15 = vcmp.lt.s32.totalorder %v2871_v25, %v2746_v27  ;;  %vm2876_vm7 = vcmp.lt.s32.totalorder %v2873_v54, %v2747_v61  ;;  %v16975_v29 = vpack.c.bf16 %v16973_v0, %v16974_v44  ;;  %v3393_v10 = vpack.c.bf16 %v16977_v26, %v16976_v2  ;;  %v16980_v63 = vld [vmem:[#allocation197_spill] sm:$0xff]  ;;  %v7762_v2 = vld [vmem:[%s15116_s5] ss:$8 sps:$4 sm:$0xff]  }
 0x45e   :  { %v2750_v8 = vsel %vm2686_vm1, %v16978_v55, 4096  ;;  %v2875_v9 = vsel %vm2874_vm15, %v2871_v25, %v2746_v27  ;;  %v2877_v50 = vsel %vm2876_vm7, %v2873_v54, %v2747_v61  ;;  %v5699_v31 = vmul.f32 %v7572_v6, %v14324_v38  ;;  %v16984_v61 = vld [vmem:[#allocation120_spill] sm:$0xff]  ;;  %v16985_v6 = vld [vmem:[#allocation34_spill] sm:$0xff] }
 0x45f   :  { %6404 = vmatpush1.bf16.msra.mxu0 %v16975_v29  ;;  %v16981_v13 = vpack.c.bf16 %v16979_v3, %v16980_v63  ;;  %v2751_v7 = vsel %vm2687_vm3, %v16982_v37, 4096  ;;  %vm2878_vm12 = vcmp.lt.s32.totalorder %v2875_v9, %v2748_v16  ;;  %vm2880_vm10 = vcmp.lt.s32.totalorder %v2877_v50, %v2749_v47 }
 0x460   :  { %6405 = vmatprep.subr.bf16.mxu0 %v3391_v1  ;;  %v5730_v20 = vmul.f32 %v7571_v18, %v14314_v40  ;;  %v2879_v38 = vsel %vm2878_vm12, %v2875_v9, %v2748_v16  ;;  %v2881_v32 = vsel %vm2880_vm10, %v2877_v50, %v2749_v47  ;;  %v5732_v14 = vmul.f32 %v7573_v41, %v14341_v39  ;;  %v16987_v40 = vld [vmem:[#allocation158_spill] sm:$0xff]  ;;  %v16991_v1 = vld [vmem:[#allocation127_spill] sm:$0xff]  ;;  %v16992_v47 = vld [vmem:[#allocation140_spill] sm:$0xff] }
 0x461   :  { %6447 = vmatpush1.bf16.msra.mxu1 %v16981_v13  ;;  %v5763_v27 = vpack.c.bf16 %v5731_v60, %v5699_v31  ;;  %v2752_v11 = vsel %vm2688_vm9, %v16983_v57, 4096  ;;  %vm2882_vm5 = vcmp.lt.s32.totalorder %v2879_v38, %v2750_v8  ;;  %vm2884_vm1 = vcmp.lt.s32.totalorder %v2881_v32, %v2751_v7  ;;  %v16995_v31 = vld [vmem:[#allocation171_spill] sm:$0xff] }
 0x462   :  { %6448 = vmatprep.subr.bf16.mxu1 %v3393_v10  ;;  %v5698_v46 = vmul.f32 %v7571_v18, %v14285_v52  ;;  %v16986_v25 = vpack.c.bf16 %v16984_v61, %v16985_v6  ;;  %v2753_v16 = vsel %vm2689_vm2, %v16987_v40, 4096  ;;  %v2883_v39 = vsel %vm2882_vm5, %v2879_v38, %v2750_v8  ;;  %v2911_v10 = vld [vmem:[%s15117_s6] sm:$0xff]  ;;  %v16994_v8 = vld [vmem:[#allocation134_spill] sm:$0xff]  ;;  %v5823_v38 = vpop.f32.mrf.mxu0 }
 0x463   :  { %v2885_v54 = vsel %vm2884_vm1, %v2881_v32, %v2751_v7  ;;  %v5700_v60 = vmul.f32 %v7573_v41, %v14292_v5  ;;  %v16990_v24 = vpack.c.bf16 %v16988_v4, %v16989_v42  ;;  %vm2886_vm3 = vcmp.lt.s32.totalorder %v2883_v39, %v2752_v11  ;;  %v5866_v32 = vpop.f32.mrf.mxu1 }
 0x464   :  { %6406 = vmatpush1.bf16.msra.mxu0 %v16986_v25  ;;  %vm2888_vm4 = vcmp.lt.s32.totalorder %v2885_v54, %v2753_v16  ;;  %v5762_v52 = vpack.c.bf16 %v5730_v20, %v5698_v46  ;;  %v16993_v0 = vpack.c.bf16 %v16991_v1, %v16992_v47  ;;  %v2887_v44 = vsel %vm2886_vm3, %v2883_v39, %v2752_v11  ;;  %v2912_v20 = vld [vmem:[%s15117_s6 + $0x8] sm:$0xff] }
 0x465   :  { %6421 = vmatprep.subr.bf16.mxu0 %v5763_v27  ;;  %6449 = vmatpush1.bf16.msra.mxu1 %v16990_v24  ;;  %v2889_v29 = vsel %vm2888_vm4, %v2885_v54, %v2753_v16  ;;  %v5764_v17 = vpack.c.bf16 %v5732_v14, %v5700_v60  ;;  %v2816_v9 = vand.u32 65535, %v16994_v8  ;;  %v5825_v14 = vpop.f32.mrf.mxu0  ;;  %v5868_v27 = vpop.f32.mrf.mxu1  ;;  %vm2906_vm11 = vcmask 7168  }
 0x466   :  { %6464 = vmatprep.subr.bf16.mxu1 %v16993_v0  ;;  %vm2890_vm9 = vcmp.lt.s32.totalorder %v2887_v44, %v2889_v29 }
 0x467   :  { %v2891_v58 = vsel %vm2890_vm9, %v2887_v44, %v2889_v29  ;;  %v2818_v18 = vcvt.s32.f32 %v2816_v9  ;;  %v14471_v11 = vpop.f32.mrf.mxu0  ;;  %v14473_v46 = vpop.f32.mrf.mxu1 }
 0x468   :  { %6422 = vmatpush2.bf16.msra.mxu0 %v5762_v52  ;;  %v2893_v5 = vshra.s32 %v2891_v58, 16  ;;  %v2892_v63 = vand.u32 65535, %v2891_v58 }
 0x469   :  { %6465 = vmatpush2.bf16.msra.mxu1 %v5764_v17  ;;  %v14475_v61 = vpop.f32.mrf.mxu0  ;;  %v14477_v25 = vpop.f32.mrf.mxu1 }
 0x46a   :  { %v2895_v26 = vcvt.s32.f32 %v2893_v5  ;;  %v2894_v7 = vcvt.s32.f32 %v2892_v63 }
 0x46b   :  { %6424 = vmatmul.mubr.bf16.vlgmr.msra.gmra.mxu0 %v7762_v2  ;;  %v5909_v6 = vpop.f32.mrf.mxu0  ;;  %v5952_v16 = vpop.f32.mrf.mxu1 }
 0x46c   :  { %6467 = vmatmul.mubr.bf16.vlgmr.msra.gmra.mxu1 %v7762_v2  ;;  %2896 = vmin.xlane.f32.xlu1 %v2895_v26 }
 0x46d   :  { %v5911_v39 = vpop.f32.mrf.mxu0  ;;  %v5954_v54 = vpop.f32.mrf.mxu1 }
 0x46f   :  { %v14479_v4 = vpop.f32.mrf.mxu0  ;;  %v14481_v24 = vpop.f32.mrf.mxu1 }
 0x471   :  { %v5915_v47 = vpop.f32.mrf.mxu0  ;;  %v5958_v44 = vpop.f32.mrf.mxu1 }
 0x473   :  { %v14490_v29 = vpop.f32.mrf.mxu0  ;;  %v14492_v17 = vpop.f32.mrf.mxu1 }
 0x475   :  { %v14494_v58 = vpop.f32.mrf.mxu0  ;;  %v14496_v5 = vpop.f32.mrf.mxu1 }
 0x477   :  { %v14498_v2 = vpop.f32.mrf.mxu0 }
 0x47d   :  { %5768 = vperm.xlu1 %7733, %v2911_v10   ;;  %v14502_v10 = vpop.f32.mrf.mxu0 }
 0x47f   :  { %v14506_v9 = vpop.f32.mrf.mxu0 }
 0x480   :  { %16996 = vst [vmem:[#allocation222_spill] sm:$0xff] %v14506_v9 }
 0x4c9   :  { %v2821_v50 = vpop.xlane.xlu0 %2820 }
 0x4ca   :  { %vm2822_vm2 = vcmp.eq.f32.partialorder %v16995_v31, %v2821_v50  ;;  %v2827_v60 = vcvt.f32.s32 %v2821_v50 }
 0x4cb   :  { %v2823_v3 = vsel %vm2822_vm2, %v2818_v18, inf  ;;  %v14510_v18 = vpop.f32.mrf.mxu0 }
 0x4cc   :  { %2824 = vmin.xlane.f32.xlu0 %v2823_v3  ;;  %v2828_v52 = vshll.u32 %v2827_v60, 16 }
 0x4cd   :  { %v14514_v3 = vpop.f32.mrf.mxu0 }
 0x4f5   :  { %v2897_v13 = vpop.xlane.xlu1 %2896 }
 0x4f6   :  { %vm2898_vm14 = vcmp.eq.f32.partialorder %v2895_v26, %v2897_v13  ;;  %v14500_v26 = vpop.f32.mrf.mxu1 }
 0x4f7   :  { %v2899_v41 = vsel %vm2898_vm14, %v2894_v7, inf  ;;  %v14518_v7 = vpop.f32.mrf.mxu0 }
 0x4f8   :  { %2900 = vmin.xlane.f32.xlu0 %v2899_v41  ;;  %v14504_v8 = vpop.f32.mrf.mxu1  ;;  %v2903_v41 = vcvt.f32.s32 %v2897_v13 }
 0x4f9   :  { %v14522_v60 = vpop.f32.mrf.mxu0 }
 0x4fa   :  { %v14508_v50 = vpop.f32.mrf.mxu1  ;;  %16999 = vst [vmem:[#allocation136_spill] sm:$0xff] %v14522_v60 }
 0x4fb   :  { %16997 = vst [vmem:[#allocation67_spill] sm:$0xff] %v14508_v50  ;;  %v14528_v9 = vpop.f32.mrf.mxu0 }
 0x4fc   :  { %v14512_v31 = vpop.f32.mrf.mxu1  ;;  %17001 = vst [vmem:[#allocation137_spill] sm:$0xff] %v14528_v9 }
 0x4fe   :  { %v14516_v63 = vpop.f32.mrf.mxu1 }
 0x4ff   :  { %16998 = vst [vmem:[#allocation105_spill] sm:$0xff] %v14516_v63 }
 0x50e   :  { %5773 = vperm.xlu0 %7732, %v2912_v20   ;;  %v14520_v20 = vpop.f32.mrf.mxu1 }
 0x510   :  { %v14526_v57 = vpop.f32.mrf.mxu1 }
 0x511   :  { %17000 = vst [vmem:[#allocation92_spill] sm:$0xff] %v14526_v57 }
 0x555   :  { %v2825_v42 = vpop.xlane.xlu0 %2824 }
 0x556   :  { %v2826_v1 = vcvt.f32.s32 %v2825_v42 }
 0x558   :  { %v14483_v0 = vadd.s32 %v2828_v52, %v2826_v1  ;;  %v2904_v52 = vshll.u32 %v2903_v41, 16  ;;  %v14524_v1 = vpop.permute.xlu1 %5768 }
 0x559   :  { %v5826_v63 = vadd.f32 %v5825_v14, %v14524_v1  ;;  %v5869_v13 = vadd.f32 %v5868_v27, %v14524_v1  ;;  %v5824_v14 = vadd.f32 %v5823_v38, %v14524_v1  ;;  %v5867_v41 = vadd.f32 %v5866_v32, %v14524_v1  ;;  %v17004_v32 = vld [vmem:[#allocation93_spill] sm:$0xff] }
 0x55a   :  { %2907 = vst.msk [vmem:[%s15119_s8] sm:$0xff] %vm2906_vm11, %v14483_v0  ;;  %vm6510_vm13 = vcmp.eq.s32.totalorder %v16929_v33, %v14483_v0  ;;  %vm6512_vm15 = vcmp.eq.s32.totalorder %v13599_v56, %v14483_v0  ;;  %v5955_v27 = vadd.f32 %v5954_v54, %v14524_v1  ;;  %vm6509_vm12 = vcmp.eq.s32.totalorder %v8822_v36, %v14483_v0 }
 0x55b   :  { %v14559_v57 = vadd.f32 %v5909_v6, %v14524_v1  ;;  %vm6511_vm5 = vcmp.eq.s32.totalorder %v17004_v32, %v14483_v0 }
 0x581   :  { %v2901_v42 = vpop.xlane.xlu0 %2900 }
 0x582   :  { %v2902_v50 = vcvt.f32.s32 %v2901_v42  ;;  %v5912_v42 = vadd.f32 %v5911_v39, %v14524_v1 }
 0x584   :  { %v14530_v55 = vadd.s32 %v2904_v52, %v2902_v50  ;;  %v14545_v50 = vpop.f32.mrf.mxu1  ;;  %v14552_v52 = vpop.f32.mrf.mxu0 }
 0x585   :  { %17002 = vst [vmem:[#allocation91_spill] sm:$0xff] %v14545_v50  ;;  %17003 = vst [vmem:[#allocation202_spill] sm:$0xff] %v14552_v52 }
 0x586   :  { %2908 = vst.msk [vmem:[%s15119_s8 + $0x8] sm:$0xff] %vm2906_vm11, %v14530_v55  ;;  %vm6542_vm0 = vcmp.eq.s32.totalorder %v16929_v33, %v14530_v55  ;;  %vm6544_vm8 = vcmp.eq.s32.totalorder %v13599_v56, %v14530_v55  ;;  %v15726_v33 = vmov 1.0|1.0   ;;  %v14562_v56 = vadd.f32 %v5952_v16, %v14524_v1  ;;  %s7793_s8 = smov [#allocation2]  }
 0x587   :  { %vm7657_vm6 = vmpackc.low %vm6542_vm0, %vm6510_vm13  ;;  %vm6541_vm10 = vcmp.eq.s32.totalorder %v8822_v36, %v14530_v55  ;;  %vm6543_vm1 = vcmp.eq.s32.totalorder %v17004_v32, %v14530_v55  ;;  %vm6546_vm3 = vcmp.eq.s32.totalorder %v13609_v43, %v14530_v55  ;;  %vm6548_vm4 = vcmp.eq.s32.totalorder %v13615_v15, %v14530_v55  ;;  %s7398_s12 = sshll.u32 %s7793_s8, 4  ;;  %s7399_s12 = int_to_ptr.vmem [resolvable:$true] %s7398_s12 }
 0x588   :  { %7658 = vmatprep.mubr.msk.bf16.mxu0 %vm7657_vm6, %v15726_v33  ;;  %vm7661_vm7 = vmpackc.low %vm6544_vm8, %vm6512_vm15  ;;  %vm6550_vm9 = vcmp.eq.s32.totalorder %v13621_v28, %v14530_v55  ;;  %vm6514_vm11 = vcmp.eq.s32.totalorder %v13609_v43, %v14483_v0  ;;  %vm6516_vm13 = vcmp.eq.s32.totalorder %v13615_v15, %v14483_v0  ;;  %vm6518_vm0 = vcmp.eq.s32.totalorder %v13621_v28, %v14483_v0  ;;  %v17072_v28 = vld [vmem:[#allocation105_spill] sm:$0xff]  ;;  %s7763_s4 = scalar_lea.vmem %s7399_s12, 256  ;;  %p7768_p1 = scmp.lt.s32.totalorder %s7399_s12, %s7399_s12 }
 0x589   :  { %7662 = vmatprep.mubr.msk.bf16.mxu1 %vm7661_vm7, %v15726_v33  ;;  %v14565_v38 = vpop.permute.xlu0 %5773  ;;  %v14583_v33 = vpop.f32.mrf.mxu1  ;;  %vm14599_vm2 = vmpackc.low %vm6541_vm10, %vm6509_vm12  ;;  %vm6552_vm8 = vcmp.eq.s32.totalorder %v13627_v21, %v14530_v55  ;;  %vm6549_vm15 = vcmp.eq.s32.totalorder %v13618_v45, %v14530_v55  ;;  %v5998_v43 = vadd.f32 %v14494_v58, %v14524_v1  ;;  %vm6520_vm10 = vcmp.eq.s32.totalorder %v13627_v21, %v14483_v0  ;;  %p7764_p0 = scmp.ne.s32.totalorder %s7399_s12, %s7763_s4  ;;  %p7769_p2 = scmp.lt.s32.totalorder %s7763_s4, %s7763_s4 }
 0x58a   :  { %v5830_v6 = vadd.f32 %v14475_v61, %v14565_v38  ;;  %v5873_v16 = vadd.f32 %v14477_v25, %v14565_v38  ;;  %v5828_v39 = vadd.f32 %v14471_v11, %v14565_v38  ;;  %v5871_v54 = vadd.f32 %v14473_v46, %v14565_v38  ;;  %v14591_v61 = vpop.f32.mrf.mxu0  ;;  %vm14609_vm14 = vmpackc.low %vm6543_vm1, %vm6511_vm5 }
 0x58b   :  { %v5916_v60 = vadd.f32 %v5915_v47, %v14565_v38  ;;  %v5959_v52 = vadd.f32 %v5958_v44, %v14565_v38  ;;  %vm14624_vm6 = vmpackc.low %vm6546_vm3, %vm6514_vm11  ;;  %vm6551_vm5 = vcmp.eq.s32.totalorder %v13624_v30, %v14530_v55  ;;  %v6041_v58 = vadd.f32 %v14496_v5, %v14524_v1  ;;  %p7770_p3 = por %p7769_p2, %p7768_p1 }
 0x58c   :  { %v6478_v25 = vpack.c.bf16 %v5830_v6, %v5826_v63  ;;  %v6480_v50 = vpack.c.bf16 %v5873_v16, %v5869_v13  ;;  %v6477_v11 = vpack.c.bf16 %v5828_v39, %v5824_v14  ;;  %v6479_v9 = vpack.c.bf16 %v5871_v54, %v5867_v41  ;;  %v14630_v13 = vpop.f32.mrf.mxu1  ;;  %vm14635_vm7 = vmpackc.low %vm6548_vm4, %vm6516_vm13  ;;  %v14652_v15 = vpop.f32.mrf.mxu0  ;;  %v17022_v14 = vld [vmem:[#allocation31_spill] sm:$0xff]  ;;  %v17081_v6 = vld [vmem:[#allocation178_spill] sm:$0xff] }
 0x58d   :  { %v6482_v36 = vpack.c.bf16 %v5916_v60, %v5912_v42  ;;  %v6484_v44 = vpack.c.bf16 %v5959_v52, %v5955_v27  ;;  %vm14644_vm12 = vmpackc.low %vm6550_vm9, %vm6518_vm0  ;;  %vm6517_vm3 = vcmp.eq.s32.totalorder %v13618_v45, %v14483_v0  ;;  %vm6554_vm4 = vcmp.eq.s32.totalorder %v13635_v35, %v14530_v55  ;;  %v17026_v27 = vld [vmem:[#allocation5_spill] sm:$0xff]  ;;  %v17082_v39 = vld [vmem:[#allocation67_spill] sm:$0xff]  ;;  %p7771_p4 = pnand %p7770_p3, %p7764_p0 }
 0x58e   :  { %6747 = vmatprep.subr.bf16.mxu0 %v6478_v25  ;;  %6788 = vmatprep.subr.bf16.mxu1 %v6480_v50  ;;  %vm14659_vm1 = vmpackc.low %vm6552_vm8, %vm6520_vm10  ;;  %v17017_v5 = vmov 0  ;;  %vm6519_vm11 = vcmp.eq.s32.totalorder %v13624_v30, %v14483_v0  ;;  %vm6522_vm13 = vcmp.eq.s32.totalorder %v13635_v35, %v14483_v0  ;;  %v5957_v21 = vadd.f32 %v14481_v24, %v14565_v38  ;;  %v14697_v41 = vpop.f32.mrf.mxu1  ;;  %v17023_v30 = vld [vmem:[#allocation33_spill] sm:$0xff]  ;;  %v14714_v32 = vpop.f32.mrf.mxu0  ;;  %v17044_v25 = vld [vmem:[#allocation150_spill] sm:$0xff] }
 0x58f   :  { %6748 = vmatpush1.bf16.xpose.msra.mxu0 %v6477_v11  ;;  %6789 = vmatpush1.bf16.xpose.msra.mxu1 %v6479_v9  ;;  %v5914_v9 = vadd.f32 %v14479_v4, %v14565_v38  ;;  %vm14672_vm9 = vmpackc.low %vm6549_vm15, %vm6517_vm3  ;;  %v17019_v4 = vld [vmem:[#allocation26_spill] sm:$0xff]  ;;  %v17020_v45 = vmov 0  ;;  %vm6524_vm10 = vcmp.eq.s32.totalorder %v13641_v53, %v14483_v0  ;;  %v6002_v24 = vadd.f32 %v14502_v10, %v14565_v38  ;;  %v17030_v10 = vld [vmem:[#allocation212_spill] sm:$0xff] }
 0x590   :  { %6829 = vmatprep.subr.bf16.mxu0 %v6482_v36  ;;  %6870 = vmatprep.subr.bf16.mxu1 %v6484_v44  ;;  %v17018_v5 = vsel %vm14672_vm9, 4294967295, %v17017_v5  ;;  %vm14689_vm15 = vmpackc.low %vm6551_vm5, %vm6519_vm11  ;;  %v6045_v42 = vadd.f32 %v14504_v8, %v14565_v38  ;;  %v17024_v52 = vmov 0  ;;  %vm6513_vm8 = vcmp.eq.s32.totalorder %v17019_v4, %v14483_v0  ;;  %v14791_v36 = vpop.f32.mrf.mxu0 }
 0x591   :  { %v17021_v45 = vsel %vm14689_vm15, 4294967295, %v17020_v45  ;;  %vm14708_vm11 = vmpackc.low %vm6554_vm4, %vm6522_vm13  ;;  %vm6515_vm0 = vcmp.eq.s32.totalorder %v17023_v30, %v14483_v0  ;;  %vm17027_vm5 = vcmp.eq.s32.totalorder %v13641_v53, %v14530_v55  ;;  %v17028_v35 = vmov 0 }
 0x592   :  { %v17025_v52 = vsel %vm14708_vm11, 4294967295, %v17024_v52  ;;  %vm14723_vm15 = vmpackc.low %vm17027_vm5, %vm6524_vm10  ;;  %vm6521_vm4 = vcmp.eq.s32.totalorder %v17022_v14, %v14483_v0  ;;  %v6481_v8 = vpack.c.bf16 %v5914_v9, %v14559_v57  ;;  %vm17031_vm3 = vcmp.eq.s32.totalorder %v17019_v4, %v14530_v55 }
 0x593   :  { %v17029_v35 = vsel %vm14723_vm15, 4294967295, %v17028_v35  ;;  %vm14735_vm11 = vmpackc.low %vm17031_vm3, %vm6513_vm8  ;;  %vm17034_vm10 = vcmp.eq.s32.totalorder %v17022_v14, %v14530_v55  ;;  %vm6523_vm15 = vcmp.eq.s32.totalorder %v17026_v27, %v14483_v0  ;;  %vm6526_vm13 = vcmp.eq.s32.totalorder %v17030_v10, %v14483_v0 }
 0x594   :  { %vm14742_vm5 = vmpackc.low %vm17034_vm10, %vm6521_vm4  ;;  %vm6560_vm9 = vcmp.eq.s32.totalorder %v16865_v48, %v14530_v55  ;;  %v17037_v57 = vmov 1.0|1.0   ;;  %v6483_v16 = vpack.c.bf16 %v5957_v21, %v14562_v56  ;;  %vm17038_vm8 = vcmp.eq.s32.totalorder %v17023_v30, %v14530_v55  ;;  %v14777_v56 = vpop.f32.mrf.mxu1 }
 0x595   :  { %vm14762_vm3 = vmpackc.low %vm17038_vm8, %vm6515_vm0  ;;  %vm17041_vm4 = vcmp.eq.s32.totalorder %v17026_v27, %v14530_v55  ;;  %v6486_v11 = vpack.c.bf16 %v6002_v24, %v5998_v43  ;;  %v6488_v46 = vpack.c.bf16 %v6045_v42, %v6041_v58  ;;  %vm17045_vm0 = vcmp.eq.s32.totalorder %v17030_v10, %v14530_v55  ;;  %v17077_v27 = vld [vmem:[#allocation222_spill] sm:$0xff] }
 0x596   :  { %7660 = vmatmul.mubr.msk.bf16.vlgmr.msra.gmra.mxu0 %vm14599_vm2, %v17037_v57  ;;  %7664 = vmatmul.mubr.msk.bf16.vlgmr.msra.gmra.mxu1 %vm14609_vm14, %v17037_v57  ;;  %vm14769_vm10 = vmpackc.low %vm17041_vm4, %vm6523_vm15  ;;  %vm6528_vm2 = vcmp.eq.s32.totalorder %v16865_v48, %v14483_v0  ;;  %vm6557_vm14 = vcmp.eq.s32.totalorder %v17044_v25, %v14530_v55  ;;  %vm6559_vm8 = vcmp.eq.s32.totalorder %v16860_v62, %v14530_v55  ;;  %v14807_v63 = vpop.f32.mrf.mxu1  ;;  %v17050_v48 = vmov 0 }
 0x597   :  { %6830 = vmatpush1.bf16.xpose.msra.mxu0 %v6481_v8  ;;  %7666 = vmatprep.mubr.msk.bf16.mxu0 %vm14624_vm6, %v17037_v57  ;;  %vm14785_vm15 = vmpackc.low %vm17045_vm0, %vm6526_vm13  ;;  %vm6525_vm13 = vcmp.eq.s32.totalorder %v17044_v25, %v14483_v0  ;;  %vm6562_vm4 = vcmp.eq.s32.totalorder %v16867_v12, %v14530_v55  ;;  %v6000_v60 = vadd.f32 %v14498_v2, %v14565_v38  ;;  %v17070_v50 = vmov 0 }
 0x598   :  { %6871 = vmatpush1.bf16.xpose.msra.mxu1 %v6483_v16  ;;  %7670 = vmatprep.mubr.msk.bf16.mxu1 %vm14635_vm7, %v17037_v57  ;;  %vm14799_vm6 = vmpackc.low %vm6560_vm9, %vm6528_vm2  ;;  %vm6527_vm9 = vcmp.eq.s32.totalorder %v16860_v62, %v14483_v0  ;;  %vm6564_vm2 = vcmp.eq.s32.totalorder %v16874_v51, %v14530_v55  ;;  %v6043_v43 = vadd.f32 %v14500_v26, %v14565_v38  ;;  %v17054_v26 = vmov 0  ;;  %v14847_v62 = vpop.f32.mrf.mxu0 }
 0x599   :  { %6911 = vmatprep.subr.bf16.mxu0 %v6486_v11  ;;  %6952 = vmatprep.subr.bf16.mxu1 %v6488_v46  ;;  %vm14814_vm7 = vmpackc.low %vm6557_vm14, %vm6525_vm13  ;;  %vm6530_vm14 = vcmp.eq.s32.totalorder %v16867_v12, %v14483_v0  ;;  %v5996_v58 = vadd.f32 %v14490_v29, %v14524_v1  ;;  %v6088_v9 = vadd.f32 %v14518_v7, %v14565_v38 }
 0x59a   :  { %v17051_v48 = vsel %vm14814_vm7, 4294967295, %v17050_v48  ;;  %vm14827_vm0 = vmpackc.low %vm6559_vm8, %vm6527_vm9  ;;  %vm6532_vm8 = vcmp.eq.s32.totalorder %v16874_v51, %v14483_v0  ;;  %v6039_v12 = vadd.f32 %v14492_v17, %v14524_v1  ;;  %v6131_v29 = vadd.f32 %v14520_v20, %v14565_v38  ;;  %v14861_v51 = vpop.f32.mrf.mxu1 }
 0x59b   :  { %vm14839_vm7 = vmpackc.low %vm6562_vm4, %vm6530_vm14  ;;  %vm6529_vm4 = vcmp.eq.s32.totalorder %v16866_v22, %v14483_v0  ;;  %v6485_v21 = vpack.c.bf16 %v6000_v60, %v5996_v58  ;;  %v6084_v4 = vadd.f32 %v14510_v18, %v14524_v1  ;;  %vm17058_vm9 = vcmp.eq.s32.totalorder %v16866_v22, %v14530_v55 }
 0x59c   :  { %v17055_v26 = vsel %vm14839_vm7, 4294967295, %v17054_v26  ;;  %vm14853_vm13 = vmpackc.low %vm6564_vm2, %vm6532_vm8  ;;  %v17059_v17 = vmov 0  ;;  %vm6531_vm2 = vcmp.eq.s32.totalorder %v16871_v49, %v14483_v0  ;;  %v6487_v20 = vpack.c.bf16 %v6043_v43, %v6039_v12  ;;  %v14922_v42 = vpop.f32.mrf.mxu1 }
 0x59d   :  { %vm14868_vm7 = vmpackc.low %vm17058_vm9, %vm6529_vm4  ;;  %v6127_v18 = vadd.f32 %v14512_v31, %v14524_v1  ;;  %vm17061_vm9 = vcmp.eq.s32.totalorder %v16871_v49, %v14530_v55  ;;  %vm6534_vm14 = vcmp.eq.s32.totalorder %v16878_v34, %v14483_v0  ;;  %vm6565_vm8 = vcmp.eq.s32.totalorder %v16877_v59, %v14530_v55  ;;  %v14906_v31 = vpop.f32.mrf.mxu0 }
 0x59e   :  { %v17060_v17 = vsel %vm14868_vm7, 4294967295, %v17059_v17  ;;  %7668 = vmatmul.mubr.msk.bf16.vlgmr.msra.gmra.mxu0 %vm14735_vm11, %v17037_v57  ;;  %vm14884_vm4 = vmpackc.low %vm17061_vm9, %vm6531_vm2  ;;  %v6490_v14 = vpack.c.bf16 %v6088_v9, %v6084_v4  ;;  %vm17064_vm11 = vcmp.eq.s32.totalorder %v16878_v34, %v14530_v55  ;;  %vm6536_vm2 = vcmp.eq.s32.totalorder %v16972_v19, %v14483_v0  ;;  %v17089_v9 = vld [vmem:[#allocation91_spill] sm:$0xff] }
 0x59f   :  { %7672 = vmatmul.mubr.msk.bf16.vlgmr.msra.gmra.mxu1 %vm14762_vm3, %v17037_v57  ;;  %6912 = vmatpush1.bf16.xpose.msra.mxu0 %v6485_v21  ;;  %vm14898_vm7 = vmpackc.low %vm17064_vm11, %vm6534_vm14  ;;  %v6492_v24 = vpack.c.bf16 %v6131_v29, %v6127_v18  ;;  %vm17067_vm3 = vcmp.eq.s32.totalorder %v16972_v19, %v14530_v55  ;;  %v17068_v34 = vmov 0  ;;  %vm6533_vm11 = vcmp.eq.s32.totalorder %v16877_v59, %v14483_v0  ;;  %v17076_v59 = vld [vmem:[#allocation177_spill] sm:$0xff]  ;;  %v6341_v16 = vpop.f32.mrf.mxu0 }
 0x5a0   :  { %7674 = vmatprep.mubr.msk.bf16.mxu0 %vm14644_vm12, %v17037_v57  ;;  %6953 = vmatpush1.bf16.xpose.msra.mxu1 %v6487_v20  ;;  %vm14914_vm14 = vmpackc.low %vm17067_vm3, %vm6536_vm2  ;;  %v6086_v19 = vadd.f32 %v14514_v3, %v14565_v38  ;;  %vm6535_vm2 = vcmp.eq.s32.totalorder %v16880_v23, %v14483_v0  ;;  %vm6572_vm3 = vcmp.eq.s32.totalorder %v16987_v40, %v14530_v55  ;;  %v17074_v3 = vmov 0 }
 0x5a1   :  { %v17069_v34 = vsel %vm14914_vm14, 4294967295, %v17068_v34  ;;  %7678 = vmatprep.mubr.msk.bf16.mxu1 %vm14659_vm1, %v17037_v57  ;;  %6993 = vmatprep.subr.bf16.mxu0 %v6490_v14  ;;  %vm14932_vm12 = vmpackc.low %vm6565_vm8, %vm6533_vm11  ;;  %v6129_v30 = vadd.f32 %v17072_v28, %v14565_v38  ;;  %vm17073_vm1 = vcmp.eq.s32.totalorder %v16880_v23, %v14530_v55  ;;  %vm6538_vm8 = vcmp.eq.s32.totalorder %v16982_v37, %v14483_v0  ;;  %v17097_v14 = vld [vmem:[#allocation136_spill] sm:$0xff] }
 0x5a2   :  { %v17071_v50 = vsel %vm14932_vm12, 4294967295, %v17070_v50  ;;  %7034 = vmatprep.subr.bf16.mxu1 %v6492_v24  ;;  %vm14945_vm9 = vmpackc.low %vm17073_vm1, %vm6535_vm2  ;;  %vm6569_vm11 = vcmp.eq.s32.totalorder %v17076_v59, %v14530_v55  ;;  %v6082_v10 = vadd.f32 %v17077_v27, %v14524_v1  ;;  %v6174_v8 = vadd.f32 %v14591_v61, %v14565_v38 }
 0x5a3   :  { %v17075_v3 = vsel %vm14945_vm9, 4294967295, %v17074_v3  ;;  %vm17078_vm12 = vcmp.eq.s32.totalorder %v16982_v37, %v14530_v55  ;;  %vm6540_vm2 = vcmp.eq.s32.totalorder %v16987_v40, %v14483_v0  ;;  %v6125_v25 = vadd.f32 %v17082_v39, %v14524_v1  ;;  %v6384_v37 = vpop.f32.mrf.mxu1  ;;  %v17085_v40 = vld [vmem:[#allocation137_spill] sm:$0xff] }
 0x5a4   :  { %vm14960_vm14 = vmpackc.low %vm17078_vm12, %vm6538_vm8  ;;  %v6217_v61 = vadd.f32 %v14630_v13, %v14565_v38  ;;  %vm6537_vm12 = vcmp.eq.s32.totalorder %v17076_v59, %v14483_v0  ;;  %v6489_v46 = vpack.c.bf16 %v6086_v19, %v6082_v10  ;;  %v6170_v60 = vadd.f32 %v17085_v40, %v14524_v1  ;;  %v14986_v13 = vpop.f32.mrf.mxu0  ;;  %v17098_v19 = vld [vmem:[#allocation92_spill] sm:$0xff] }
 0x5a5   :  { %vm14972_vm9 = vmpackc.low %vm6572_vm3, %vm6540_vm2  ;;  %v17086_v43 = vmov 0  ;;  %vm6539_vm1 = vcmp.eq.s32.totalorder %v17081_v6, %v14483_v0  ;;  %vm17088_vm3 = vnez %v17018_v5  ;;  %v6491_v58 = vpack.c.bf16 %v6129_v30, %v6125_v25  ;;  %v6386_v21 = vpop.f32.mrf.mxu1 }
 0x5a6   :  { %vm14980_vm8 = vmpackc.low %vm6569_vm11, %vm6537_vm12  ;;  %7676 = vmatmul.mubr.msk.bf16.vlgmr.msra.gmra.mxu0 %vm17088_vm3, %v17037_v57  ;;  %v6213_v12 = vadd.f32 %v17089_v9, %v14524_v1  ;;  %vm17090_vm2 = vcmp.eq.s32.totalorder %v17081_v6, %v14530_v55  ;;  %vm17093_vm12 = vnez %v17021_v45  ;;  %v6494_v0 = vpack.c.bf16 %v6174_v8, %v6170_v60  ;;  %v17096_v55 = vld [vmem:[#allocation202_spill] sm:$0xff]  ;;  %v6345_v20 = vpop.f32.mrf.mxu0 }
 0x5a7   :  { %v17087_v43 = vsel %vm14980_vm8, 4294967295, %v17086_v43  ;;  %vm14996_vm11 = vmpackc.low %vm17090_vm2, %vm6539_vm1  ;;  %7680 = vmatmul.mubr.msk.bf16.vlgmr.msra.gmra.mxu1 %vm17093_vm12, %v17037_v57  ;;  %6994 = vmatpush1.bf16.xpose.msra.mxu0 %v6489_v46  ;;  %vm17094_vm3 = vnez %v17025_v52  ;;  %vm17095_vm8 = vnez %v17029_v35  ;;  %v6172_v4 = vadd.f32 %v17096_v55, %v14565_v38  ;;  %v6388_v18 = vpop.f32.mrf.mxu1 }
 0x5a8   :  { %7682 = vmatprep.mubr.msk.bf16.mxu0 %vm17094_vm3, %v17037_v57  ;;  %7035 = vmatpush1.bf16.xpose.msra.mxu1 %v6491_v58  ;;  %v6496_v5 = vpack.c.bf16 %v6217_v61, %v6213_v12  ;;  %v6215_v45 = vadd.f32 %v14583_v33, %v14565_v38  ;;  %v6168_v52 = vadd.f32 %v17097_v14, %v14524_v1  ;;  %v6425_v27 = vpop.f32.mrf.mxu0 }
 0x5a9   :  { %7686 = vmatprep.mubr.msk.bf16.mxu1 %vm17095_vm8, %v17037_v57  ;;  %7075 = vmatprep.subr.bf16.mxu0 %v6494_v0  ;;  %v6260_v24 = vadd.f32 %v14847_v62, %v14565_v38  ;;  %v6211_v35 = vadd.f32 %v17098_v19, %v14524_v1  ;;  %v6303_v28 = vadd.f32 %v14861_v51, %v14565_v38  ;;  %v6468_v62 = vpop.f32.mrf.mxu1 }
 0x5aa   :  { %7116 = vmatprep.subr.bf16.mxu1 %v6496_v5  ;;  %v6493_v30 = vpack.c.bf16 %v6172_v4, %v6168_v52  ;;  %v6256_v59 = vadd.f32 %v14714_v32, %v14524_v1  ;;  %v6299_v10 = vadd.f32 %v14777_v56, %v14524_v1  ;;  %v6258_v53 = vadd.f32 %v14791_v36, %v14565_v38  ;;  %v6427_v56 = vpop.f32.mrf.mxu0 }
 0x5ab   :  { %v6495_v33 = vpack.c.bf16 %v6215_v45, %v6211_v35  ;;  %v6301_v54 = vadd.f32 %v14807_v63, %v14565_v38  ;;  %v6470_v8 = vpop.f32.mrf.mxu1  ;;  %v6254_v47 = vadd.f32 %v14652_v15, %v14524_v1  ;;  %v6346_v6 = vadd.f32 %v6345_v20, %v14565_v38 }
 0x5ac   :  { %v6498_v51 = vpack.c.bf16 %v6260_v24, %v6256_v59  ;;  %v6500_v32 = vpack.c.bf16 %v6303_v28, %v6299_v10  ;;  %v6429_v39 = vpop.f32.mrf.mxu0  ;;  %v6297_v44 = vadd.f32 %v14697_v41, %v14524_v1  ;;  %v6389_v25 = vadd.f32 %v6388_v18, %v14565_v38 }
 0x5ad   :  { %v6472_v61 = vpop.f32.mrf.mxu1  ;;  %v6497_v46 = vpack.c.bf16 %v6258_v53, %v6254_v47  ;;  %v6342_v36 = vadd.f32 %v6341_v16, %v14524_v1  ;;  %v6385_v40 = vadd.f32 %v6384_v37, %v14524_v1  ;;  %v6387_v2 = vadd.f32 %v6386_v21, %v14565_v38 }
 0x5ae   :  { %7684 = vmatmul.mubr.msk.bf16.vlgmr.msra.gmra.mxu0 %vm14742_vm5, %v17037_v57  ;;  %vm17099_vm5 = vnez %v17051_v48  ;;  %v6499_v63 = vpack.c.bf16 %v6301_v54, %v6297_v44  ;;  %v6431_v41 = vpop.f32.mrf.mxu0  ;;  %v6344_v48 = vadd.f32 %v14986_v13, %v14565_v38  ;;  %v6340_v37 = vadd.f32 %v14906_v31, %v14524_v1 }
 0x5af   :  { %7688 = vmatmul.mubr.msk.bf16.vlgmr.msra.gmra.mxu1 %vm14769_vm10, %v17037_v57  ;;  %7076 = vmatpush1.bf16.xpose.msra.mxu0 %v6493_v30  ;;  %v6502_v15 = vpack.c.bf16 %v6346_v6, %v6342_v36  ;;  %vm17100_vm10 = vnez %v17055_v26  ;;  %v6504_v16 = vpack.c.bf16 %v6389_v25, %v6385_v40  ;;  %v6474_v60 = vpop.f32.mrf.mxu1  ;;  %v6432_v26 = vadd.f32 %v6431_v41, %v14565_v38 }
 0x5b0   :  { %7690 = vmatprep.mubr.msk.bf16.mxu0 %vm14785_vm15, %v17037_v57  ;;  %7117 = vmatpush1.bf16.xpose.msra.mxu1 %v6495_v33  ;;  %v6383_v58 = vadd.f32 %v14922_v42, %v14524_v1  ;;  %v6475_v9 = vadd.f32 %v6474_v60, %v14565_v38  ;;  %v6428_v7 = vadd.f32 %v6427_v56, %v14524_v1 }
 0x5b1   :  { %7694 = vmatprep.mubr.msk.bf16.mxu1 %vm14799_vm6, %v17037_v57  ;;  %7157 = vmatprep.subr.bf16.mxu0 %v6498_v51  ;;  %v6501_v12 = vpack.c.bf16 %v6344_v48, %v6340_v37  ;;  %v6471_v0 = vadd.f32 %v6470_v8, %v14524_v1  ;;  %vm17101_vm15 = vnez %v17060_v17  ;;  %vm17102_vm6 = vnez %v17069_v34 }
 0x5b2   :  { %7198 = vmatprep.subr.bf16.mxu1 %v6500_v32  ;;  %v6503_v13 = vpack.c.bf16 %v6387_v2, %v6383_v58  ;;  %v6506_v31 = vpack.c.bf16 %v6432_v26, %v6428_v7  ;;  %v6430_v17 = vadd.f32 %v6429_v39, %v14565_v38  ;;  %v6473_v21 = vadd.f32 %v6472_v61, %v14565_v38 }
 0x5b3   :  { %v6508_v42 = vpack.c.bf16 %v6475_v9, %v6471_v0  ;;  %v6426_v22 = vadd.f32 %v6425_v27, %v14524_v1  ;;  %v6469_v5 = vadd.f32 %v6468_v62, %v14524_v1 }
 0x5b5   :  { %v6505_v55 = vpack.c.bf16 %v6430_v17, %v6426_v22  ;;  %v6507_v49 = vpack.c.bf16 %v6473_v21, %v6469_v5 }
 0x5b6   :  { %7692 = vmatmul.mubr.msk.bf16.vlgmr.msra.gmra.mxu0 %vm17099_vm5, %v17037_v57 }
 0x5b7   :  { %7696 = vmatmul.mubr.msk.bf16.vlgmr.msra.gmra.mxu1 %vm14827_vm0, %v17037_v57  ;;  %7158 = vmatpush1.bf16.xpose.msra.mxu0 %v6497_v46  ;;  %vm17104_vm0 = vnez %v17075_v3 }
 0x5b8   :  { %7698 = vmatprep.mubr.msk.bf16.mxu0 %vm17100_vm10, %v17037_v57  ;;  %7199 = vmatpush1.bf16.xpose.msra.mxu1 %v6499_v63 }
 0x5b9   :  { %7702 = vmatprep.mubr.msk.bf16.mxu1 %vm14853_vm13, %v17037_v57  ;;  %7239 = vmatprep.subr.bf16.mxu0 %v6502_v15  ;;  %vm17105_vm13 = vnez %v17087_v43 }
 0x5ba   :  { %7280 = vmatprep.subr.bf16.mxu1 %v6504_v16 }
 0x5be   :  { %7700 = vmatmul.mubr.msk.bf16.vlgmr.msra.gmra.mxu0 %vm17101_vm15, %v17037_v57 }
 0x5bf   :  { %7704 = vmatmul.mubr.msk.bf16.vlgmr.msra.gmra.mxu1 %vm14884_vm4, %v17037_v57  ;;  %7240 = vmatpush1.bf16.xpose.msra.mxu0 %v6501_v12  ;;  %vm17106_vm4 = vcmask 130048  }
 0x5c0   :  { %7706 = vmatprep.mubr.msk.bf16.mxu0 %vm14898_vm7, %v17037_v57  ;;  %7281 = vmatpush1.bf16.xpose.msra.mxu1 %v6503_v13  ;;  %vm17103_vm7 = vnez %v17071_v50 }
 0x5c1   :  { %7710 = vmatprep.mubr.msk.bf16.mxu1 %vm17102_vm6, %v17037_v57  ;;  %7321 = vmatprep.subr.bf16.mxu0 %v6506_v31 }
 0x5c2   :  { %7362 = vmatprep.subr.bf16.mxu1 %v6508_v42 }
 0x5c6   :  { %7708 = vmatmul.mubr.msk.bf16.vlgmr.msra.gmra.mxu0 %vm17103_vm7, %v17037_v57 }
 0x5c7   :  { %7712 = vmatmul.mubr.msk.bf16.vlgmr.msra.gmra.mxu1 %vm17104_vm0, %v17037_v57  ;;  %7322 = vmatpush1.bf16.xpose.msra.mxu0 %v6505_v55 }
 0x5c8   :  { %7714 = vmatprep.mubr.msk.bf16.mxu0 %vm14960_vm14, %v17037_v57  ;;  %7363 = vmatpush1.bf16.xpose.msra.mxu1 %v6507_v49 }
 0x5c9   :  { %7718 = vmatprep.mubr.msk.bf16.mxu1 %vm14972_vm9, %v17037_v57  ;;  %vm17107_vm9 = vmmov %vm17106_vm4 }
 0x5ce   :  { %7716 = vmatmul.mubr.msk.bf16.vlgmr.msra.gmra.mxu0 %vm17105_vm13, %v17037_v57 }
 0x5cf   :  { %7720 = vmatmul.mubr.msk.bf16.vlgmr.msra.gmra.mxu1 %vm14996_vm11, %v17037_v57 }
 0x656   :  { %v6767_v1 = vpop.f32.mrf.mxu0  ;;  %v6808_v38 = vpop.f32.mrf.mxu1 }
 0x657   :  { %v6809_v57 = vadd.f32 %v6808_v38, %v6767_v1 }
 0x658   :  { %v6769_v34 = vpop.f32.mrf.mxu0  ;;  %v6810_v50 = vpop.f32.mrf.mxu1 }
 0x65a   :  { %v6770_v3 = vpop.f32.mrf.mxu0  ;;  %v6811_v23 = vpop.f32.mrf.mxu1 }
 0x65b   :  { %v6812_v62 = vadd.f32 %v6811_v23, %v6770_v3 }
 0x65c   :  { %v6772_v4 = vpop.f32.mrf.mxu0  ;;  %v6813_v20 = vpop.f32.mrf.mxu1 }
 0x65e   :  { %v6849_v45 = vpop.f32.mrf.mxu0 }
 0x65f   :  { %v6890_v18 = vpop.f32.mrf.mxu1  ;;  %v6850_v27 = vadd.f32 %v6849_v45, %v6809_v57 }
 0x660   :  { %v6851_v11 = vpop.f32.mrf.mxu0 }
 0x661   :  { %v6892_v14 = vpop.f32.mrf.mxu1  ;;  %v6891_v53 = vadd.f32 %v6890_v18, %v6850_v27 }
 0x662   :  { %v6852_v52 = vpop.f32.mrf.mxu0 }
 0x663   :  { %v6893_v24 = vpop.f32.mrf.mxu1  ;;  %v6853_v56 = vadd.f32 %v6852_v52, %v6812_v62 }
 0x664   :  { %v6854_v43 = vpop.f32.mrf.mxu0 }
 0x665   :  { %v6895_v19 = vpop.f32.mrf.mxu1  ;;  %v6894_v44 = vadd.f32 %v6893_v24, %v6853_v56 }
 0x666   :  { %v6931_v35 = vpop.f32.mrf.mxu0 }
 0x667   :  { %v6972_v28 = vpop.f32.mrf.mxu1  ;;  %v6932_v47 = vadd.f32 %v6931_v35, %v6891_v53 }
 0x668   :  { %v6933_v29 = vpop.f32.mrf.mxu0 }
 0x669   :  { %v6974_v30 = vpop.f32.mrf.mxu1  ;;  %v6973_v46 = vadd.f32 %v6972_v28, %v6932_v47 }
 0x66a   :  { %v6934_v59 = vpop.f32.mrf.mxu0 }
 0x66b   :  { %v6975_v33 = vpop.f32.mrf.mxu1  ;;  %v6935_v36 = vadd.f32 %v6934_v59, %v6894_v44 }
 0x66c   :  { %v6936_v10 = vpop.f32.mrf.mxu0 }
 0x66d   :  { %v6977_v51 = vpop.f32.mrf.mxu1  ;;  %v6976_v60 = vadd.f32 %v6975_v33, %v6935_v36 }
 0x66e   :  { %v7013_v32 = vpop.f32.mrf.mxu0 }
 0x66f   :  { %v7054_v54 = vpop.f32.mrf.mxu1  ;;  %v7014_v15 = vadd.f32 %v7013_v32, %v6973_v46 }
 0x670   :  { %v7015_v8 = vpop.f32.mrf.mxu0 }
 0x671   :  { %v7056_v6 = vpop.f32.mrf.mxu1  ;;  %v7055_v37 = vadd.f32 %v7054_v54, %v7014_v15 }
 0x672   :  { %v7016_v39 = vpop.f32.mrf.mxu0 }
 0x673   :  { %v7057_v25 = vpop.f32.mrf.mxu1  ;;  %v7017_v26 = vadd.f32 %v7016_v39, %v6976_v60 }
 0x674   :  { %v7018_v61 = vpop.f32.mrf.mxu0 }
 0x675   :  { %v7059_v40 = vpop.f32.mrf.mxu1  ;;  %v7058_v13 = vadd.f32 %v7057_v25, %v7017_v26 }
 0x676   :  { %v7095_v63 = vpop.f32.mrf.mxu0 }
 0x677   :  { %v7136_v41 = vpop.f32.mrf.mxu1  ;;  %v7096_v7 = vadd.f32 %v7095_v63, %v7055_v37 }
 0x678   :  { %v7097_v16 = vpop.f32.mrf.mxu0 }
 0x679   :  { %v7138_v48 = vpop.f32.mrf.mxu1  ;;  %v7137_v17 = vadd.f32 %v7136_v41, %v7096_v7 }
 0x67a   :  { %v7098_v2 = vpop.f32.mrf.mxu0 }
 0x67b   :  { %v7139_v58 = vpop.f32.mrf.mxu1  ;;  %v7099_v21 = vadd.f32 %v7098_v2, %v7058_v13 }
 0x67c   :  { %v7100_v9 = vpop.f32.mrf.mxu0 }
 0x67d   :  { %v7141_v12 = vpop.f32.mrf.mxu1  ;;  %v7140_v38 = vadd.f32 %v7139_v58, %v7099_v21 }
 0x67e   :  { %v7177_v0 = vpop.f32.mrf.mxu0 }
 0x67f   :  { %v7218_v31 = vpop.f32.mrf.mxu1  ;;  %v7178_v55 = vadd.f32 %v7177_v0, %v7137_v17 }
 0x680   :  { %v7179_v42 = vpop.f32.mrf.mxu0 }
 0x681   :  { %v7220_v22 = vpop.f32.mrf.mxu1  ;;  %v7219_v3 = vadd.f32 %v7218_v31, %v7178_v55 }
 0x682   :  { %v7180_v5 = vpop.f32.mrf.mxu0 }
 0x683   :  { %v7221_v49 = vpop.f32.mrf.mxu1  ;;  %v7181_v23 = vadd.f32 %v7180_v5, %v7140_v38 }
 0x684   :  { %v7182_v1 = vpop.f32.mrf.mxu0 }
 0x685   :  { %v7223_v34 = vpop.f32.mrf.mxu1  ;;  %v7222_v14 = vadd.f32 %v7221_v49, %v7181_v23 }
 0x686   :  { %v7259_v50 = vpop.f32.mrf.mxu0 }
 0x687   :  { %v7300_v4 = vpop.f32.mrf.mxu1  ;;  %v7260_v45 = vadd.f32 %v7259_v50, %v7219_v3 }
 0x688   :  { %v7261_v20 = vpop.f32.mrf.mxu0 }
 0x689   :  { %v7302_v18 = vpop.f32.mrf.mxu1  ;;  %v7301_v43 = vadd.f32 %v7300_v4, %v7260_v45 }
 0x68a   :  { %v7262_v11 = vpop.f32.mrf.mxu0 }
 0x68b   :  { %v7303_v52 = vpop.f32.mrf.mxu1  ;;  %v7263_v19 = vadd.f32 %v7262_v11, %v7222_v14 }
 0x68c   :  { %v7264_v24 = vpop.f32.mrf.mxu0 }
 0x68d   :  { %v7305_v35 = vpop.f32.mrf.mxu1  ;;  %v7304_v59 = vadd.f32 %v7303_v52, %v7263_v19 }
 0x68e   :  { %v7341_v28 = vpop.f32.mrf.mxu0 }
 0x68f   :  { %v7342_v29 = vadd.f32 %v7341_v28, %v7301_v43  ;;  %v7382_v57 = vpop.f32.mrf.mxu1 }
 0x690   :  { %v7343_v30 = vpop.f32.mrf.mxu0 }
 0x691   :  { %v7383_v27 = vadd.f32 %v7382_v57, %v7342_v29  ;;  %v7384_v33 = vpop.f32.mrf.mxu1 }
 0x692   :  { %v7344_v10 = vpop.f32.mrf.mxu0 }
 0x693   :  { %7389 = vst.msk [vmem:[#allocation2] sm:$0xff] %vm17106_vm4, %v7383_v27  ;;  %v7345_v62 = vadd.f32 %v7344_v10, %v7304_v59  ;;  %v7385_v51 = vpop.f32.mrf.mxu1 }
 0x694   :  { %v7346_v32 = vpop.f32.mrf.mxu0 }
 0x695   :  { %v7386_v53 = vadd.f32 %v7385_v51, %v7345_v62  ;;  %v7387_v56 = vpop.f32.mrf.mxu1 }
 0x697   :  { %7390 = vst.msk [vmem:[#allocation2 + $0x8] sm:$0xff] %vm17107_vm9, %v7386_v53 }
 0x698   :  { %7774 = shalt.err (!%p7771_p4)
}
 0x699   :  { %s7794_s13 = smov 128   ;;  %s7795_s14 = smov 8  }
 0x69a   :  { %7404 = dma.vmem_to_hbm [thread:$0]  %s7399_s12, 256, %s15120_s9, [#allocation3], %s7794_s13, %s7794_s13, %s7795_s14  }
 0x69b   :  { %7783 = dma.done.wait [#allocation3], 256  }
 0x69c   :  { %7784 = vsyncadd [#allocation3], 4294967040 }
 0x69d   :  { %7410 = vsyncpa [#allocation3], 1 }

</bundles_post_ra>
